<compile_context>
chip_gen: v7x
topology: tpu7x:2x2x1
jax: 0.10.0
libtpu: 0.0.40
codegen_flags: <defaults>
</compile_context>

<pallas_src>
import jax
import jax.numpy as jnp
from jax.experimental import pallas as pl
from jax.experimental.pallas import tpu as pltpu

N_EMBD = 384          # from the reference script globals
HIDDEN = 4 * N_EMBD   # 1536
ROW_TILE = 256        # rows of the flattened (B*T, C) slab per grid step
# dropout = 0.2 in the reference module; implemented as identity (eval mode).


# ----------------------------- kernel -------------------------------------- #

def _ffn_kernel(x_ref, w1_ref, b1_ref, w2_ref, b2_ref, o_ref):
    # x_ref:  (ROW_TILE, C)   f32 activation tile
    # w1_ref: (C, 4C) bf16    b1_ref: (1, 4C) f32
    # w2_ref: (4C, C) bf16    b2_ref: (1, C)  f32
    x = x_ref[...].astype(jnp.bfloat16)
    h = jnp.dot(x, w1_ref[...], preferred_element_type=jnp.float32) + b1_ref[...]
    h = jnp.maximum(h, 0.0)                                      # ReLU (f32)
    y = jnp.dot(h.astype(jnp.bfloat16), w2_ref[...],
                preferred_element_type=jnp.float32) + b2_ref[...]
    # Dropout is identity in eval mode.
    o_ref[...] = y.astype(o_ref.dtype)


# ----------------------------- wrapper -------------------------------------- #

def feedforward(x, params):
    """x: (..., N_EMBD) float32 -> (..., N_EMBD) float32."""
    orig_shape = x.shape
    C = orig_shape[-1]
    assert C == N_EMBD
    x2d = x.reshape(-1, C)
    rows = x2d.shape[0]

    # Pad rows up to a multiple of the row tile so every block is full.
    rows_p = pl.cdiv(rows, ROW_TILE) * ROW_TILE
    if rows_p != rows:
        x2d = jnp.pad(x2d, ((0, rows_p - rows), (0, 0)))

    # Weights in bf16 (one-time cast), biases kept in f32.
    w1 = params["w1"].astype(jnp.bfloat16)          # (C, 4C)
    w2 = params["w2"].astype(jnp.bfloat16)          # (4C, C)
    b1 = params["b1"].reshape(1, HIDDEN)
    b2 = params["b2"].reshape(1, C)

    out = pl.pallas_call(
        _ffn_kernel,
        out_shape=jax.ShapeDtypeStruct((rows_p, C), jnp.float32),
        grid=(rows_p // ROW_TILE,),
        in_specs=[
            pl.BlockSpec((ROW_TILE, C), lambda i: (i, 0)),   # activation tile
            pl.BlockSpec((C, HIDDEN), lambda i: (0, 0)),     # w1 (resident)
            pl.BlockSpec((1, HIDDEN), lambda i: (0, 0)),     # b1 (resident)
            pl.BlockSpec((HIDDEN, C), lambda i: (0, 0)),     # w2 (resident)
            pl.BlockSpec((1, C), lambda i: (0, 0)),          # b2 (resident)
        ],
        out_specs=pl.BlockSpec((ROW_TILE, C), lambda i: (i, 0)),
        compiler_params=pltpu.CompilerParams(
            dimension_semantics=("parallel",),
            vmem_limit_bytes=32 * 1024 * 1024,
        ),
    )(x2d, w1, b1, w2, b2)

    return out[:rows].reshape(orig_shape)


# ----------------------------- reference (plain JAX, f32) ------------------- #

def feedforward_ref(x, p):
    h = jnp.maximum(x @ p["w1"] + p["b1"], 0.0)
    return h @ p["w2"] + p["b2"]


# ----------------------------- main ----------------------------------------- #

def init_params(key):
    k1, k2, k3, k4 = jax.random.split(key, 4)
    std = 0.02
    return {
        # Stored as (in, out), i.e. the transpose of PyTorch's nn.Linear.weight;
        # forward semantics (x @ W^T + b) are identical.
        "w1": jax.random.normal(k1, (N_EMBD, HIDDEN), jnp.float32) * std,
        "b1": jax.random.normal(k2, (HIDDEN,), jnp.float32) * std,
        "w2": jax.random.normal(k3, (HIDDEN, N_EMBD), jnp.float32) * std,
        "b2": jax.random.normal(k4, (N_EMBD,), jnp.float32) * std,
    }


if __name__ == "__main__":
    B, T = 2, 256                      # small demo shapes; C fixed by module
    key = jax.random.PRNGKey(0)
    kx, kp = jax.random.split(key)
    x = jax.random.normal(kx, (B, T, N_EMBD), jnp.float32)
    params = init_params(kp)

    out = jax.block_until_ready(feedforward(x, params))
    ref = jax.block_until_ready(feedforward_ref(x, params))

    assert out.shape == (B, T, N_EMBD) and out.dtype == jnp.float32
    assert bool(jnp.all(jnp.isfinite(out)))
    # bf16 matmul operands with f32 accumulation vs f32 reference.
    assert bool(jnp.allclose(out, ref, atol=2e-2, rtol=2e-2))
    print("KERNEL_OK")
</pallas_src>

<mosaic_0001>
module attributes {stable_mosaic.version = 11 : i64} {
  func.func @_ffn_kernel(%arg0: i32, %arg1: memref<256x384xf32, #tpu.memory_space<vmem>>, %arg2: memref<384x1536xbf16, #tpu.memory_space<vmem>>, %arg3: memref<1x1536xf32, #tpu.memory_space<vmem>>, %arg4: memref<1536x384xbf16, #tpu.memory_space<vmem>>, %arg5: memref<1x384xf32, #tpu.memory_space<vmem>>, %arg6: memref<256x384xf32, #tpu.memory_space<vmem>>) attributes {dimension_semantics = [#tpu.dimension_semantics<parallel>], iteration_bounds = array<i64: 2>, scalar_prefetch = 0 : i64, scratch_operands = 0 : i64, tpu.core_type = #tpu.core_type<tc>, window_params = [{transform_indices = @transform_0, window_bounds = array<i64: 256, 384>}, {pipeline_mode = #tpu.pipeline_mode<synchronous>, transform_indices = @transform_1, window_bounds = array<i64: 384, 1536>}, {pipeline_mode = #tpu.pipeline_mode<synchronous>, transform_indices = @transform_2, window_bounds = array<i64: 1, 1536>}, {pipeline_mode = #tpu.pipeline_mode<synchronous>, transform_indices = @transform_3, window_bounds = array<i64: 1536, 384>}, {pipeline_mode = #tpu.pipeline_mode<synchronous>, transform_indices = @transform_4, window_bounds = array<i64: 1, 384>}, {transform_indices = @transform_5, window_bounds = array<i64: 256, 384>}]} {
    %c0 = arith.constant 0 : index
    %c0_0 = arith.constant 0 : index
    %0 = vector.load %arg1[%c0, %c0_0] : memref<256x384xf32, #tpu.memory_space<vmem>>, vector<256x384xf32>
    %1 = arith.truncf %0 : vector<256x384xf32> to vector<256x384xbf16>
    %c0_1 = arith.constant 0 : index
    %c0_2 = arith.constant 0 : index
    %2 = vector.load %arg2[%c0_1, %c0_2] : memref<384x1536xbf16, #tpu.memory_space<vmem>>, vector<384x1536xbf16>
    %cst = arith.constant dense<0.000000e+00> : vector<256x1536xf32>
    %3 = tpu.matmul %1, %2, %cst {dimension_numbers = #tpu.dot_dimension_numbers<[1], [0], [0], [1], [0, 0, 1, 1], [], []>} : vector<256x384xbf16>, vector<384x1536xbf16>, vector<256x1536xf32> -> vector<256x1536xf32>
    %c0_3 = arith.constant 0 : index
    %c0_4 = arith.constant 0 : index
    %4 = vector.load %arg3[%c0_3, %c0_4] : memref<1x1536xf32, #tpu.memory_space<vmem>>, vector<1x1536xf32>
    %5 = vector.broadcast %4 : vector<1x1536xf32> to vector<256x1536xf32>
    %6 = arith.addf %3, %5 : vector<256x1536xf32>
    %cst_5 = arith.constant 0.000000e+00 : f32
    %7 = vector.broadcast %cst_5 : f32 to vector<256x1536xf32>
    %8 = arith.maximumf %6, %7 : vector<256x1536xf32>
    %9 = arith.truncf %8 : vector<256x1536xf32> to vector<256x1536xbf16>
    %c0_6 = arith.constant 0 : index
    %c0_7 = arith.constant 0 : index
    %10 = vector.load %arg4[%c0_6, %c0_7] : memref<1536x384xbf16, #tpu.memory_space<vmem>>, vector<1536x384xbf16>
    %cst_8 = arith.constant dense<0.000000e+00> : vector<256x384xf32>
    %11 = tpu.matmul %9, %10, %cst_8 {dimension_numbers = #tpu.dot_dimension_numbers<[1], [0], [0], [1], [0, 0, 1, 1], [], []>} : vector<256x1536xbf16>, vector<1536x384xbf16>, vector<256x384xf32> -> vector<256x384xf32>
    %c0_9 = arith.constant 0 : index
    %c0_10 = arith.constant 0 : index
    %12 = vector.load %arg5[%c0_9, %c0_10] : memref<1x384xf32, #tpu.memory_space<vmem>>, vector<1x384xf32>
    %13 = vector.broadcast %12 : vector<1x384xf32> to vector<256x384xf32>
    %14 = arith.addf %11, %13 : vector<256x384xf32>
    %c0_11 = arith.constant 0 : index
    %c0_12 = arith.constant 0 : index
    %15 = vector.load %arg6[%c0_11, %c0_12] : memref<256x384xf32, #tpu.memory_space<vmem>>, vector<256x384xf32>
    tpu.vector_store %arg6[%c0_11, %c0_12], %14 {strides = array<i32>} : memref<256x384xf32, #tpu.memory_space<vmem>>, vector<256x384xf32>,
    return
  }
  func.func @transform_0(%arg0: i32) -> (i32, i32) {
    %c0_i32 = arith.constant 0 : i32
    %c0_i32_0 = arith.constant 0 : i32
    return %arg0, %c0_i32 : i32, i32
  }
  func.func @transform_1(%arg0: i32) -> (i32, i32) {
    %c0_i32 = arith.constant 0 : i32
    %c0_i32_0 = arith.constant 0 : i32
    %c0_i32_1 = arith.constant 0 : i32
    return %c0_i32, %c0_i32_0 : i32, i32
  }
  func.func @transform_2(%arg0: i32) -> (i32, i32) {
    %c0_i32 = arith.constant 0 : i32
    %c0_i32_0 = arith.constant 0 : i32
    %c0_i32_1 = arith.constant 0 : i32
    return %c0_i32, %c0_i32_0 : i32, i32
  }
  func.func @transform_3(%arg0: i32) -> (i32, i32) {
    %c0_i32 = arith.constant 0 : i32
    %c0_i32_0 = arith.constant 0 : i32
    %c0_i32_1 = arith.constant 0 : i32
    return %c0_i32, %c0_i32_0 : i32, i32
  }
  func.func @transform_4(%arg0: i32) -> (i32, i32) {
    %c0_i32 = arith.constant 0 : i32
    %c0_i32_0 = arith.constant 0 : i32
    %c0_i32_1 = arith.constant 0 : i32
    return %c0_i32, %c0_i32_0 : i32, i32
  }
  func.func @transform_5(%arg0: i32) -> (i32, i32) {
    %c0_i32 = arith.constant 0 : i32
    %c0_i32_0 = arith.constant 0 : i32
    return %arg0, %c0_i32 : i32, i32
  }
}

</mosaic_0001>

<bundles_post_ra>
// kernel: tpu_custom_call.1
= control target key start
LH: loop header
LB: loop body
LE: loop exit
PB: predicated region body
PF: predicated region fallthrough
CT: control target
= control target key end

     0   :  { %10 = vsyncpa [#allocation3], 0  ;;  %s15763_s0 = inlined_call_operand.hbm [shape: f32[512,384], index: 0, kind: input, shape index: {}]   ;;  %s15764_s1 = inlined_call_operand.hbm [shape: bf16[384,1536], index: 1, kind: input, shape index: {}]   ;;  %s15765_s2 = inlined_call_operand.hbm [shape: f32[1,1536], index: 2, kind: input, shape index: {}]   ;;  %s15766_s3 = inlined_call_operand.hbm [shape: bf16[1536,384], index: 3, kind: input, shape index: {}]   ;;  %s15767_s4 = inlined_call_operand.hbm [shape: f32[1,384], index: 4, kind: input, shape index: {}]   ;;  %s15768_s5 = inlined_call_operand.hbm [shape: f32[512,384], index: 5, kind: output, shape index: {}]  }
   0x1   :  { %12 = vsyncpa [#allocation3 + $0x1], 0 }
   0x2   :  { %13 = vsyncpa [#allocation6], 0 }
   0x3   :  { %14 = vsyncpa [#allocation9], 0 }
   0x4   :  { %15 = vsyncpa [#allocation4], 0 }
   0x5   :  { %17 = vsyncpa [#allocation4 + $0x1], 0  ;;  %s13013_s18 = smov 0   ;;  %s13015_s19 = smov 0  }
   0x6   :  { %s13017_s20 = smov 0   ;;  %s13019_s21 = smov 0  }
   0x7 LB: > { %s13034_s22 = sadd.s32 4294967295, %s12966_s21   ;;  %s9412_s23 = sadd.s32 4294967294, %s12966_s21   ;;  %s12966_s21 = sphi %s13019_s21, %s16304_s21   ;;  %s12962_s20 = sphi %s13017_s20, %s16303_s20   ;;  %s12958_s19 = sphi %s13015_s19, %s16302_s19   ;;  %s12954_s18 = sphi %s13013_s18, %s16301_s18  }
   0x8   : > { %p43_p0 = scmp.ne.s32.totalorder %s12958_s19, %s12954_s18  ;;  %p15769_p1 = scmp.eq.s32.totalorder %s13034_s22, 0 }
   0x9   : > { %p157_p3 = scmp.eq.s32.totalorder %s9412_s23, 1  ;;  %p9413_p5 = scmp.ge.s32.totalorder %s12966_s21, 1 }
   0xa   : > { %p13043_p4 = por %p15769_p1, %p43_p0  ;;  %p164_p7 = scmp.lt.s32.totalorder %s12966_s21, 3 }
   0xb   : > { %p13048_p6 = por %p157_p3, %p43_p0  ;;  %s12968_s27 = smov [#allocation5]  }
   0xc   : > { %s15955_s24 = scalar_select %p13043_p4, 1, 0 }
   0xd   : > { %s15956_s25 = scalar_select %p13048_p6, 1, 0 }
   0xe   : > { %p13053_p8 = pnand %p9413_p5, %p164_p7  ;;  %s176_s28 = sshll.u32 %s12968_s27, 4  ;;  %s13057_s28 = int_to_ptr.vmem [resolvable:$true] %s176_s28 }
   0xf   : > { %s12969_s30 = smov [#allocation8]   ;;  %s12750_s9 = scalar_lea.hbm %s15764_s1, 36864 }
  0x10   : > { %s15957_s26 = scalar_select %p13053_p8, 1, 0 }
  0x11   : > { %p11856_p9 = pneg %p13053_p8  ;;  %s200_s6 = sshll.u32 %s12969_s30, 4  ;;  %s13068_s6 = int_to_ptr.vmem [resolvable:$true] %s200_s6 }
  0x12   : > { %p12751_p12 = scmp.ne.s32.totalorder %s15764_s1, %s12750_s9  ;;  %p12757_p5 = scmp.lt.u32.totalorder %s12750_s9, %s15764_s1 }
  0x13   : > { %p13064_p11 = pnand %p11856_p9, %p15769_p1 }
  0x15   : > { %p13078_p13 = pneg %p13064_p11 }
  0x17   : > { %p12753_p0 = pnand %p13078_p13, %p12751_p12 }
  0x19   : > { %p12754_p3 = pneg %p12753_p0 }
  0x1b   : > { %p12759_p7 = pnand %p12757_p5, %p12754_p3 }
  0x1d   : > { %12762 = shalt.err (!%p12759_p7)
}
  0x1e   : > { %s12763_s15 = scalar_lea.vmem %s13057_s28, 36864  ;;  %p12771_p2 = scmp.lt.s32.totalorder %s13057_s28, %s13057_s28 }
  0x1f   : > { %p12764_p9 = scmp.ne.s32.totalorder %s13057_s28, %s12763_s15  ;;  %p12772_p6 = scmp.lt.s32.totalorder %s12763_s15, %s12763_s15 }
  0x21   : > { %p12766_p10 = pnand %p12764_p9, %p13078_p13  ;;  %p12773_p12 = por %p12772_p6, %p12771_p2 }
  0x23   : > { %p12767_p1 = pneg %p12766_p10 }
  0x25   : > { %p12774_p0 = pnand %p12773_p12, %p12767_p1 }
  0x27   : > { %12777 = shalt.err (!%p12774_p0)
}
  0x28   : > { %s12970_s16 = smov 768   ;;  %s12971_s17 = smov 48  }
  0x29   : > { %11859 = dma.hbm_to_vmem [thread:$0]  (!%p13064_p11), %s15764_s1, 36864, %s13057_s28, [#allocation6], %s12970_s16, %s12970_s16, %s12971_s17  }
  0x2a   : > { %s12778_s8 = scalar_lea.hbm %s15766_s3, 36864 }
  0x2b   : > { %p12779_p2 = scmp.ne.s32.totalorder %s15766_s3, %s12778_s8  ;;  %p12785_p10 = scmp.lt.u32.totalorder %s12778_s8, %s15766_s3 }
  0x2d   : > { %p12781_p1 = pnand %p12779_p2, %p13078_p13 }
  0x2f   : > { %p12782_p6 = pneg %p12781_p1 }
  0x31   : > { %p12787_p3 = pnand %p12785_p10, %p12782_p6 }
  0x33   : > { %12790 = shalt.err (!%p12787_p3)
}
  0x34   : > { %s12791_s28 = scalar_lea.vmem %s13068_s6, 36864  ;;  %p12799_p12 = scmp.lt.s32.totalorder %s13068_s6, %s13068_s6 }
  0x35   : > { %p12792_p5 = scmp.ne.s32.totalorder %s13068_s6, %s12791_s28  ;;  %p12800_p0 = scmp.lt.s32.totalorder %s12791_s28, %s12791_s28 }
  0x37   : > { %p12794_p7 = pnand %p12792_p5, %p13078_p13  ;;  %p12801_p2 = por %p12800_p0, %p12799_p12 }
  0x39   : > { %p12795_p9 = pneg %p12794_p7 }
  0x3b   : > { %p12802_p1 = pnand %p12801_p2, %p12795_p9 }
  0x3d   : > { %12805 = shalt.err (!%p12802_p1)
}
  0x3e   : > { %s12972_s14 = smov 192   ;;  %s12973_s15 = smov 12  }
  0x3f   : > { %11865 = dma.hbm_to_vmem [thread:$0]  (!%p13064_p11), %s15766_s3, 36864, %s13068_s6, [#allocation9], %s12972_s14, %s12972_s14, %s12973_s15  }
  0x40   : > { %s12974_s23 = smov [#allocation7]   ;;  %s12975_s30 = smov [#allocation10]  }
  0x41   : > { %s190_s27 = sshll.u32 %s12974_s23, 4  ;;  %s214_s7 = sshll.u32 %s12975_s30, 4  ;;  %s191_s27 = int_to_ptr.vmem [resolvable:$true] %s190_s27  ;;  %s13122_s7 = int_to_ptr.vmem [resolvable:$true] %s214_s7 }
  0x42   : > { %s12806_s10 = scalar_lea.hbm %s15765_s2, 192 }
  0x43   : > { %p12807_p6 = scmp.ne.s32.totalorder %s15765_s2, %s12806_s10  ;;  %p12813_p5 = scmp.lt.u32.totalorder %s12806_s10, %s15765_s2 }
  0x45   : > { %p12809_p10 = pnand %p12807_p6, %p13078_p13 }
  0x47   : > { %p12810_p3 = pneg %p12809_p10 }
  0x49   : > { %p12815_p7 = pnand %p12813_p5, %p12810_p3 }
  0x4b   : > { %12818 = shalt.err (!%p12815_p7)
}
  0x4c   : > { %s12819_s14 = scalar_lea.vmem %s191_s27, 192  ;;  %p12827_p2 = scmp.lt.s32.totalorder %s191_s27, %s191_s27 }
  0x4d   : > { %p12820_p9 = scmp.ne.s32.totalorder %s191_s27, %s12819_s14  ;;  %p12828_p1 = scmp.lt.s32.totalorder %s12819_s14, %s12819_s14 }
  0x4f   : > { %p12822_p12 = pnand %p12820_p9, %p13078_p13  ;;  %p12829_p4 = por %p12828_p1, %p12827_p2 }
  0x51   : > { %p12823_p0 = pneg %p12822_p12 }
  0x53   : > { %p12830_p8 = pnand %p12829_p4, %p12823_p0 }
  0x55   : > { %12833 = shalt.err (!%p12830_p8)
}
  0x56   : > { %11862 = dma.hbm_to_vmem [thread:$0]  (!%p13064_p11), %s15765_s2, 192, %s191_s27, [#allocation6]  }
  0x57   : > { %s12834_s30 = scalar_lea.hbm %s15767_s4, 48 }
  0x58   : > { %p12835_p6 = scmp.ne.s32.totalorder %s15767_s4, %s12834_s30  ;;  %p12841_p4 = scmp.lt.u32.totalorder %s12834_s30, %s15767_s4 }
  0x5a   : > { %p12837_p10 = pnand %p12835_p6, %p13078_p13 }
  0x5c   : > { %p12838_p3 = pneg %p12837_p10 }
  0x5e   : > { %p12843_p8 = pnand %p12841_p4, %p12838_p3 }
  0x60   : > { %12846 = shalt.err (!%p12843_p8)
}
  0x61   : > { %s12847_s27 = scalar_lea.vmem %s13122_s7, 48  ;;  %s12854_s13 = scalar_lea.vmem %s13122_s7, 64 }
  0x62   : > { %p12848_p5 = scmp.ne.s32.totalorder %s13122_s7, %s12847_s27  ;;  %p12855_p12 = scmp.lt.s32.totalorder %s13122_s7, %s13122_s7 }
  0x63   : > { %p12856_p0 = scmp.lt.s32.totalorder %s12854_s13, %s12847_s27 }
  0x64   : > { %p12850_p7 = pnand %p12848_p5, %p13078_p13 }
  0x65   : > { %p12857_p2 = por %p12856_p0, %p12855_p12 }
  0x66   : > { %p12851_p9 = pneg %p12850_p7 }
  0x68   : > { %p12858_p1 = pnand %p12857_p2, %p12851_p9 }
  0x6a   : > { %12861 = shalt.err (!%p12858_p1)
}
  0x6b   : > { %11868 = dma.hbm_to_vmem [thread:$0]  (!%p13064_p11), %s15767_s4, 48, %s13122_s7, [#allocation9]  }
  0x6c   : > { %s13167_s12 = sadd.s32 1, %s12966_s21   ;;  %s30_s14 = sadd.s32 1, %s12962_s20 }
  0x6d   : > { %s27_s29 = ssub.s32 %s12966_s21, %s13167_s12  ;;  %p37_p6 = scmp.ne.s32.totalorder %s12962_s20, %s12958_s19 }
  0x6e   : > { %p28_p13 = scmp.eq.s32.totalorder %s27_s29, 0  ;;  %p38_p10 = scmp.eq.s32.totalorder %s12966_s21, 0 }
  0x6f   : > { %p15960_p4 = scmp.eq.s32.totalorder %s13034_s22, 1  ;;  %p11881_p5 = scmp.lt.s32.totalorder %s12966_s21, 2 }
  0x70   : > { %s13176_s15 = scalar_select %p28_p13, %s12962_s20, %s30_s14  }
  0x71   : > { %p39_p3 = por %p38_p10, %p37_p6  ;;  %p13180_p8 = por %p15960_p4, %p37_p6 }
  0x72   : > { %s225_s17 = sand.u32 1, %s12962_s20   ;;  %s11833_s7 = smul.u32 12288, %s12966_s21 }
  0x73   : > { %s11832_s23 = smul.u32 768, %s225_s17  ;;  %p13187_p11 = pnand %p11881_p5, %p39_p3 }
  0x74   : > { %s13194_s10 = scalar_lea.hbm %s15763_s0, %s11833_s7  ;;  %s13198_s13 = scalar_lea.sflag [#allocation3], %s225_s17 }
  0x75   : > { %s229_s11 = scalar_lea.vmem [#allocation2], %s11832_s23  ;;  %s12862_s28 = scalar_lea.hbm %s13194_s10, 12288 }
  0x76   : > { %s237_s27 = sshll.u32 %s229_s11, 4  ;;  %p12863_p7 = scmp.ne.s32.totalorder %s13194_s10, %s12862_s28  ;;  %s13196_s27 = int_to_ptr.vmem [resolvable:$true] %s237_s27 }
  0x77   : > { %p12864_p9 = pneg %p13187_p11  ;;  %s12867_s14 = scalar_lea.hbm %s15763_s0, 24576 }
  0x78   : > { %p12868_p2 = scmp.lt.u32.totalorder %s13194_s10, %s15763_s0  ;;  %p12869_p1 = scmp.lt.u32.totalorder %s12867_s14, %s12862_s28 }
  0x79   : > { %p12865_p12 = pnand %p12864_p9, %p12863_p7  ;;  %p12871_p6 = scmp.lt.u32.totalorder %s12862_s28, %s13194_s10 }
  0x7a   : > { %p12870_p13 = por %p12869_p1, %p12868_p2 }
  0x7b   : > { %p12866_p0 = pneg %p12865_p12 }
  0x7c   : > { %p12872_p10 = por %p12871_p6, %p12870_p13 }
  0x7e   : > { %p12873_p3 = pnand %p12872_p10, %p12866_p0 }
  0x80   : > { %12876 = shalt.err (!%p12873_p3)
}
  0x81   : > { %s12877_s17 = scalar_lea.vmem %s13196_s27, 12288  ;;  %s12976_s23 = smov [#allocation2]  }
  0x82   : > { %p12878_p4 = scmp.ne.s32.totalorder %s13196_s27, %s12877_s17  ;;  %s12882_s9 = sshll.u32 %s12976_s23, 4  ;;  %s12883_s9 = int_to_ptr.vmem [resolvable:$false] %s12882_s9 }
  0x83   : > { %s12884_s11 = scalar_lea.vmem %s12883_s9, 24576  ;;  %p12885_p12 = scmp.lt.s32.totalorder %s13196_s27, %s12883_s9 }
  0x84   : > { %p12880_p5 = pnand %p12878_p4, %p12864_p9  ;;  %p12886_p2 = scmp.lt.s32.totalorder %s12884_s11, %s12877_s17 }
  0x86   : > { %p12881_p7 = pneg %p12880_p5  ;;  %p12887_p1 = por %p12886_p2, %p12885_p12 }
  0x88   : > { %p12888_p13 = pnand %p12887_p1, %p12881_p7 }
  0x8a   : > { %12891 = shalt.err (!%p12888_p13)
}
  0x8b   : > { %s12977_s28 = smov 384   ;;  %s12978_s6 = smov 24  }
  0x8c   : > { %11872 = dma.hbm_to_vmem [thread:$0]  (!%p13187_p11), %s13194_s10, 12288, %s13196_s27, %s13198_s13, %s12977_s28, %s12977_s28, %s12978_s6  }
  0x8d   : > { %p15963_p9 = scmp.ne.s32.totalorder %s15957_s26, 0 }
  0x8f   : > { %249 = sbr.rel (%p15963_p9) target bundleno = 1989 (0x7c5), region = 40 }
  0x96   : > { %s13229_s29 = sand.u32 1, %s12958_s19   ;;  %p15964_p0 = scmp.ne.s32.totalorder %s15955_s24, 0 }
  0x97   : > { %s11834_s14 = smul.u32 768, %s13229_s29  ;;  %s252_s7 = scalar_lea.sflag [#allocation3], %s13229_s29 }
  0x99   : > { %s13235_s8 = scalar_lea.vmem [#allocation2], %s11834_s14 }
  0x9a   : > { %12937 = dma.done.wait (%p15964_p0), %s252_s7, 12288  }
  0x9b   : > { %12939 = vsyncadd (%p15964_p0), %s252_s7, 4294955008  ;;  %p15965_p11 = scmp.eq.s32.totalorder %s13034_s22, 0 }
  0x9d   : > { %12941 = dma.done.wait (%p15965_p11), [#allocation6], 37056   ;;  %p15966_p6 = pmov %p15965_p11 }
  0x9f   : > { %12943 = vsyncadd (%p15966_p6), [#allocation6], 4294930240  ;;  %p15967_p10 = pmov %p15966_p6 }
  0xa0   : > { %p15968_p3 = pmov %p15966_p6 }
  0xa1   : > { %12945 = dma.done.wait (%p15967_p10), [#allocation9], 36912  }
  0xa2   : > { %12947 = vsyncadd (%p15968_p3), [#allocation9], 4294930384  ;;  %v11932_v0 = vld [vmem:[#allocation5 + $0x4] ss:$48 sps:$4 sm:$0xff]   ;;  %v11934_v1 = vld [vmem:[#allocation5 + $0xc] ss:$48 sps:$4 sm:$0xff]  }
  0xa3   : > { %2237 = vmatprep.subr.bf16.mxu0 %v11932_v0  ;;  %v11936_v2 = vld [vmem:[#allocation5] ss:$48 sps:$4 sm:$0xff]   ;;  %v11937_v3 = vld [vmem:[#allocation5 + $0x8] ss:$48 sps:$4 sm:$0xff]   ;;  %2623 = vmatprep.subr.bf16.mxu1 %v11934_v1  ;;  %v11938_v4 = vld [vmem:[#allocation5 + $0x64] ss:$48 sps:$4 sm:$0xff]  }
  0xa4   : > { %2238 = vmatpush1.bf16.msra.mxu0 %v11936_v2  ;;  %2624 = vmatpush1.bf16.msra.mxu1 %v11937_v3  ;;  %v11940_v5 = vld [vmem:[#allocation5 + $0x6c] ss:$48 sps:$4 sm:$0xff]   ;;  %v11942_v6 = vld [vmem:[#allocation5 + $0x60] ss:$48 sps:$4 sm:$0xff]   ;;  %v11943_v7 = vld [vmem:[#allocation5 + $0x68] ss:$48 sps:$4 sm:$0xff]  }
  0xa5   : > { %2239 = vmatprep.subr.bf16.mxu0 %v11938_v4  ;;  %2625 = vmatprep.subr.bf16.mxu1 %v11940_v5  ;;  %v11944_v8 = vld [vmem:[#allocation5 + $0xc4] ss:$48 sps:$4 sm:$0xff]   ;;  %v11946_v9 = vld [vmem:[#allocation5 + $0xcc] ss:$48 sps:$4 sm:$0xff]   ;;  %v11948_v10 = vld [vmem:[#allocation5 + $0xc0] ss:$48 sps:$4 sm:$0xff]  }
  0xa6   : > { %v11949_v11 = vld [vmem:[#allocation5 + $0xc8] ss:$48 sps:$4 sm:$0xff]   ;;  %v11950_v12 = vld [vmem:[#allocation5 + $0x124] ss:$48 sps:$4 sm:$0xff]   ;;  %v11952_v13 = vld [vmem:[#allocation5 + $0x12c] ss:$48 sps:$4 sm:$0xff]  }
  0xa7   : > { %v11954_v14 = vld [vmem:[#allocation5 + $0x120] ss:$48 sps:$4 sm:$0xff]   ;;  %v11955_v15 = vld [vmem:[#allocation5 + $0x128] ss:$48 sps:$4 sm:$0xff]   ;;  %v11956_v16 = vld [vmem:[#allocation5 + $0x184] ss:$48 sps:$4 sm:$0xff]  }
  0xa8   : > { %2240 = vmatpush1.bf16.msra.mxu0 %v11942_v6  ;;  %2626 = vmatpush1.bf16.msra.mxu1 %v11943_v7  ;;  %v11958_v17 = vld [vmem:[#allocation5 + $0x18c] ss:$48 sps:$4 sm:$0xff]   ;;  %v11960_v18 = vld [vmem:[#allocation5 + $0x180] ss:$48 sps:$4 sm:$0xff]   ;;  %v11961_v19 = vld [vmem:[#allocation5 + $0x188] ss:$48 sps:$4 sm:$0xff]  }
  0xa9   : > { %2241 = vmatprep.subr.bf16.mxu0 %v11944_v8  ;;  %2627 = vmatprep.subr.bf16.mxu1 %v11946_v9  ;;  %v11962_v20 = vld [vmem:[#allocation5 + $0x1e4] ss:$48 sps:$4 sm:$0xff]   ;;  %v11964_v21 = vld [vmem:[#allocation5 + $0x1ec] ss:$48 sps:$4 sm:$0xff]   ;;  %v11966_v22 = vld [vmem:[#allocation5 + $0x1e0] ss:$48 sps:$4 sm:$0xff]  }
  0xaa   : > { %v11967_v23 = vld [vmem:[#allocation5 + $0x1e8] ss:$48 sps:$4 sm:$0xff]   ;;  %v11968_v24 = vld [vmem:[#allocation5 + $0x244] ss:$48 sps:$4 sm:$0xff]   ;;  %v11970_v25 = vld [vmem:[#allocation5 + $0x24c] ss:$48 sps:$4 sm:$0xff]  }
  0xab   : > { %v11972_v26 = vld [vmem:[#allocation5 + $0x240] ss:$48 sps:$4 sm:$0xff]   ;;  %v11973_v27 = vld [vmem:[#allocation5 + $0x248] ss:$48 sps:$4 sm:$0xff]   ;;  %v11974_v28 = vld [vmem:[#allocation5 + $0x2a4] ss:$48 sps:$4 sm:$0xff]  }
  0xac   : > { %2242 = vmatpush1.bf16.msra.mxu0 %v11948_v10  ;;  %2628 = vmatpush1.bf16.msra.mxu1 %v11949_v11  ;;  %v11976_v29 = vld [vmem:[#allocation5 + $0x2ac] ss:$48 sps:$4 sm:$0xff]   ;;  %v11978_v30 = vld [vmem:[#allocation5 + $0x2a0] ss:$48 sps:$4 sm:$0xff]   ;;  %v11979_v31 = vld [vmem:[#allocation5 + $0x2a8] ss:$48 sps:$4 sm:$0xff]  }
  0xad   : > { %2243 = vmatprep.subr.bf16.mxu0 %v11950_v12  ;;  %2629 = vmatprep.subr.bf16.mxu1 %v11952_v13  ;;  %v11980_v32 = vld [vmem:[#allocation5 + $0x304] ss:$48 sps:$4 sm:$0xff]   ;;  %v11982_v33 = vld [vmem:[#allocation5 + $0x30c] ss:$48 sps:$4 sm:$0xff]   ;;  %v11984_v34 = vld [vmem:[#allocation5 + $0x300] ss:$48 sps:$4 sm:$0xff]  }
  0xae   : > { %v11985_v35 = vld [vmem:[#allocation5 + $0x308] ss:$48 sps:$4 sm:$0xff]   ;;  %v11986_v36 = vld [vmem:[#allocation5 + $0x364] ss:$48 sps:$4 sm:$0xff]   ;;  %v11988_v37 = vld [vmem:[#allocation5 + $0x36c] ss:$48 sps:$4 sm:$0xff]  }
  0xaf   : > { %v11990_v38 = vld [vmem:[#allocation5 + $0x360] ss:$48 sps:$4 sm:$0xff]   ;;  %v11991_v39 = vld [vmem:[#allocation5 + $0x368] ss:$48 sps:$4 sm:$0xff]   ;;  %v11992_v40 = vld [vmem:[#allocation5 + $0x3c4] ss:$48 sps:$4 sm:$0xff]  }
  0xb0   : > { %2244 = vmatpush1.bf16.msra.mxu0 %v11954_v14  ;;  %2630 = vmatpush1.bf16.msra.mxu1 %v11955_v15  ;;  %v11994_v41 = vld [vmem:[#allocation5 + $0x3cc] ss:$48 sps:$4 sm:$0xff]   ;;  %v11996_v42 = vld [vmem:[#allocation5 + $0x3c0] ss:$48 sps:$4 sm:$0xff]   ;;  %v11997_v43 = vld [vmem:[#allocation5 + $0x3c8] ss:$48 sps:$4 sm:$0xff]  }
  0xb1   : > { %2245 = vmatprep.subr.bf16.mxu0 %v11956_v16  ;;  %2631 = vmatprep.subr.bf16.mxu1 %v11958_v17  ;;  %v11998_v44 = vld [vmem:[#allocation5 + $0x424] ss:$48 sps:$4 sm:$0xff]   ;;  %v12000_v45 = vld [vmem:[#allocation5 + $0x42c] ss:$48 sps:$4 sm:$0xff]   ;;  %v12002_v47 = vld [vmem:[#allocation5 + $0x420] ss:$48 sps:$4 sm:$0xff]  }
  0xb2   : > { %v302_v46 = vld [vmem:[%s13235_s8 + $0x8] sm:$0xff]  ;;  %v305_v49 = vld [vmem:[%s13235_s8 + $0x20] sm:$0xff]  ;;  %v304_v4 = vld [vmem:[%s13235_s8 + $0x18] sm:$0xff]  ;;  %s15520_s24 = scalar_lea.vmem [#allocation11], %s11834_s14  ;;  %s11835_s26 = smul.u32 12288, %s13034_s22 }
  0xb3   : > { %v12003_v48 = vld [vmem:[#allocation5 + $0x428] ss:$48 sps:$4 sm:$0xff]   ;;  %v12004_v50 = vld [vmem:[#allocation5 + $0x484] ss:$48 sps:$4 sm:$0xff]   ;;  %v13251_v51 = vpack.c.bf16 %v305_v49, %v302_v46  ;;  %v12006_v52 = vld [vmem:[#allocation5 + $0x48c] ss:$48 sps:$4 sm:$0xff]  }
  0xb4   : > { %2246 = vmatpush1.bf16.msra.mxu0 %v11960_v18  ;;  %2632 = vmatpush1.bf16.msra.mxu1 %v11961_v19  ;;  %v12008_v53 = vld [vmem:[#allocation5 + $0x480] ss:$48 sps:$4 sm:$0xff]   ;;  %v12009_v54 = vld [vmem:[#allocation5 + $0x488] ss:$48 sps:$4 sm:$0xff]   ;;  %v12010_v55 = vld [vmem:[#allocation5 + $0x4e4] ss:$48 sps:$4 sm:$0xff]   ;;  %s15713_s27 = scalar_lea.hbm %s15768_s5, %s11835_s26 }
  0xb5   : > { %2247 = vmatprep.subr.bf16.mxu0 %v11962_v20  ;;  %2633 = vmatprep.subr.bf16.mxu1 %v11964_v21  ;;  %v12012_v56 = vld [vmem:[#allocation5 + $0x4ec] ss:$48 sps:$4 sm:$0xff]   ;;  %v12014_v57 = vld [vmem:[#allocation5 + $0x4e0] ss:$48 sps:$4 sm:$0xff]   ;;  %v12015_v58 = vld [vmem:[#allocation5 + $0x4e8] ss:$48 sps:$4 sm:$0xff]  }
  0xb6   : > { %2269 = vmatprep.mubr.bf16.mxu0 %v13251_v51  ;;  %2655 = vmatprep.mubr.bf16.mxu1 %v13251_v51  ;;  %v12016_v59 = vld [vmem:[#allocation5 + $0x544] ss:$48 sps:$4 sm:$0xff]   ;;  %v12018_v60 = vld [vmem:[#allocation5 + $0x54c] ss:$48 sps:$4 sm:$0xff]   ;;  %v12020_v61 = vld [vmem:[#allocation5 + $0x540] ss:$48 sps:$4 sm:$0xff]  }
  0xb7   : > { %v12021_v62 = vld [vmem:[#allocation5 + $0x548] ss:$48 sps:$4 sm:$0xff]   ;;  %v12022_v63 = vld [vmem:[#allocation5 + $0x5a4] ss:$48 sps:$4 sm:$0xff]   ;;  %v12024_v0 = vld [vmem:[#allocation5 + $0x5ac] ss:$48 sps:$4 sm:$0xff]  }
  0xb8   : > { %2248 = vmatpush1.bf16.msra.mxu0 %v11966_v22  ;;  %2634 = vmatpush1.bf16.msra.mxu1 %v11967_v23  ;;  %v12026_v1 = vld [vmem:[#allocation5 + $0x5a0] ss:$48 sps:$4 sm:$0xff]   ;;  %v12027_v2 = vld [vmem:[#allocation5 + $0x5a8] ss:$48 sps:$4 sm:$0xff]   ;;  %v12030_v5 = vld [vmem:[#allocation5 + $0x60c] ss:$48 sps:$4 sm:$0xff]  }
  0xb9   : > { %2249 = vmatprep.subr.bf16.mxu0 %v11968_v24  ;;  %2635 = vmatprep.subr.bf16.mxu1 %v11970_v25  ;;  %v301_v3 = vld [vmem:[%s13235_s8] sm:$0xff]  ;;  %v308_v7 = vld [vmem:[%s13235_s8 + $0x38] sm:$0xff]  ;;  %v311_v8 = vld [vmem:[%s13235_s8 + $0x50] sm:$0xff]  ;;  %s9301_s30 = sshll.u32 %s15520_s24, 4  ;;  %s9287_s13 = scalar_lea.sflag [#allocation4], %s13229_s29  ;;  %s15715_s30 = int_to_ptr.vmem [resolvable:$true] %s9301_s30 }
  0xba   : > { %v12033_v6 = vld [vmem:[#allocation5 + $0x604] ss:$48 sps:$4 sm:$0xff]   ;;  %v13259_v9 = vpack.c.bf16 %v304_v4, %v301_v3  ;;  %v12028_v10 = vld [vmem:[#allocation5 + $0x608] ss:$48 sps:$4 sm:$0xff]   ;;  %v12031_v11 = vld [vmem:[#allocation5 + $0x600] ss:$48 sps:$4 sm:$0xff]   ;;  %v13261_v12 = vpack.c.bf16 %v311_v8, %v308_v7 }
  0xbb   : > { %v12036_v13 = vld [vmem:[#allocation5 + $0x66c] ss:$48 sps:$4 sm:$0xff]   ;;  %v12039_v14 = vld [vmem:[#allocation5 + $0x664] ss:$48 sps:$4 sm:$0xff]   ;;  %v12034_v18 = vld [vmem:[#allocation5 + $0x668] ss:$48 sps:$4 sm:$0xff]  }
  0xbc   : > { %2250 = vmatpush1.bf16.msra.mxu0 %v11972_v26  ;;  %2636 = vmatpush1.bf16.msra.mxu1 %v11973_v27  ;;  %v307_v15 = vld [vmem:[%s13235_s8 + $0x30] sm:$0xff]  ;;  %v310_v16 = vld [vmem:[%s13235_s8 + $0x48] sm:$0xff]  ;;  %v317_v20 = vld [vmem:[%s13235_s8 + $0x80] sm:$0xff]  ;;  %s12892_s17 = scalar_lea.vmem %s15715_s30, 12288  ;;  %s12980_s23 = smov [#allocation11]  }
  0xbd   : > { %2251 = vmatprep.subr.bf16.mxu0 %v11974_v28  ;;  %2637 = vmatprep.subr.bf16.mxu1 %v11976_v29  ;;  %v314_v17 = vld [vmem:[%s13235_s8 + $0x68] sm:$0xff]  ;;  %v12037_v19 = vld [vmem:[#allocation5 + $0x660] ss:$48 sps:$4 sm:$0xff]   ;;  %v12045_v22 = vld [vmem:[#allocation5 + $0x6c4] ss:$48 sps:$4 sm:$0xff]   ;;  %v13271_v23 = vpack.c.bf16 %v310_v16, %v307_v15  ;;  %p12893_p4 = scmp.ne.s32.totalorder %s15715_s30, %s12892_s17  ;;  %s12896_s9 = sshll.u32 %s12980_s23, 4  ;;  %s12897_s9 = int_to_ptr.vmem [resolvable:$false] %s12896_s9 }
  0xbe   : > { %v12042_v21 = vld [vmem:[#allocation5 + $0x6cc] ss:$48 sps:$4 sm:$0xff]   ;;  %v13273_v24 = vpack.c.bf16 %v317_v20, %v314_v17  ;;  %v12040_v25 = vld [vmem:[#allocation5 + $0x6c8] ss:$48 sps:$4 sm:$0xff]   ;;  %v12043_v26 = vld [vmem:[#allocation5 + $0x6c0] ss:$48 sps:$4 sm:$0xff]   ;;  %p12899_p12 = scmp.lt.s32.totalorder %s15715_s30, %s12897_s9 }
  0xbf   : > { %v313_v27 = vld [vmem:[%s13235_s8 + $0x60] sm:$0xff]  ;;  %v12048_v28 = vld [vmem:[#allocation5 + $0x72c] ss:$48 sps:$4 sm:$0xff]   ;;  %v331_v4 = vld [vmem:[%s13235_s8 + $0xf0] sm:$0xff]  ;;  %p12894_p5 = pnand %p12893_p4, %p13180_p8  ;;  %s12898_s11 = scalar_lea.vmem %s12897_s9, 24576 }
  0xc0   : > { %2252 = vmatpush1.bf16.msra.mxu0 %v11978_v30  ;;  %2638 = vmatpush1.bf16.msra.mxu1 %v11979_v31  ;;  %v12051_v29 = vld [vmem:[#allocation5 + $0x724] ss:$48 sps:$4 sm:$0xff]   ;;  %v316_v30 = vld [vmem:[%s13235_s8 + $0x78] sm:$0xff]  ;;  %v350_v20 = vld [vmem:[%s13235_s8 + $0x188] sm:$0xff]  ;;  %p12900_p2 = scmp.lt.s32.totalorder %s12898_s11, %s12892_s17 }
  0xc1   : > { %2253 = vmatprep.subr.bf16.mxu0 %v11980_v32  ;;  %2639 = vmatprep.subr.bf16.mxu1 %v11982_v33  ;;  %v320_v31 = vld [vmem:[%s13235_s8 + $0x98] sm:$0xff]  ;;  %v323_v32 = vld [vmem:[%s13235_s8 + $0xb0] sm:$0xff]  ;;  %v329_v46 = vld [vmem:[%s13235_s8 + $0xe0] sm:$0xff]  ;;  %p12895_p7 = pneg %p12894_p5 }
  0xc2   : > { %v12046_v33 = vld [vmem:[#allocation5 + $0x728] ss:$48 sps:$4 sm:$0xff]   ;;  %v12066_v49 = vld [vmem:[#allocation5 + $0x84c] ss:$48 sps:$4 sm:$0xff]   ;;  %v341_v7 = vld [vmem:[%s13235_s8 + $0x140] sm:$0xff]  ;;  %p12901_p1 = por %p12900_p2, %p12899_p12 }
  0xc3   : > { %v347_v15 = vld [vmem:[%s13235_s8 + $0x170] sm:$0xff] }
  0xc4   : > { %2254 = vmatpush1.bf16.msra.mxu0 %v11984_v34  ;;  %2640 = vmatpush1.bf16.msra.mxu1 %v11985_v35  ;;  %v12049_v34 = vld [vmem:[#allocation5 + $0x720] ss:$48 sps:$4 sm:$0xff]   ;;  %v12054_v35 = vld [vmem:[#allocation5 + $0x78c] ss:$48 sps:$4 sm:$0xff]   ;;  %p12902_p13 = pnand %p12901_p1, %p12895_p7 }
  0xc5   : > { %2255 = vmatprep.subr.bf16.mxu0 %v11986_v36  ;;  %2641 = vmatprep.subr.bf16.mxu1 %v11988_v37  ;;  %v12057_v36 = vld [vmem:[#allocation5 + $0x784] ss:$48 sps:$4 sm:$0xff]   ;;  %v13283_v37 = vpack.c.bf16 %v316_v30, %v313_v27  ;;  %v352_v27 = vld [vmem:[%s13235_s8 + $0x198] sm:$0xff] }
  0xc8   : > { %2256 = vmatpush1.bf16.msra.mxu0 %v11990_v38  ;;  %2642 = vmatpush1.bf16.msra.mxu1 %v11991_v39  ;;  %v13285_v38 = vpack.c.bf16 %v323_v32, %v320_v31  ;;  %v12052_v39 = vld [vmem:[#allocation5 + $0x788] ss:$48 sps:$4 sm:$0xff]   ;;  %v355_v32 = vld [vmem:[%s13235_s8 + $0x1b0] sm:$0xff] }
  0xc9   : > { %2257 = vmatprep.subr.bf16.mxu0 %v11992_v40  ;;  %2643 = vmatprep.subr.bf16.mxu1 %v11994_v41  ;;  %v12055_v40 = vld [vmem:[#allocation5 + $0x780] ss:$48 sps:$4 sm:$0xff]   ;;  %v12060_v41 = vld [vmem:[#allocation5 + $0x7ec] ss:$48 sps:$4 sm:$0xff]  }
  0xcc   : > { %2258 = vmatpush1.bf16.msra.mxu0 %v11996_v42  ;;  %2644 = vmatpush1.bf16.msra.mxu1 %v11997_v43  ;;  %v12063_v42 = vld [vmem:[#allocation5 + $0x7e4] ss:$48 sps:$4 sm:$0xff]  }
  0xcd   : > { %2259 = vmatprep.subr.bf16.mxu0 %v11998_v44  ;;  %2645 = vmatprep.subr.bf16.mxu1 %v12000_v45  ;;  %v319_v43 = vld [vmem:[%s13235_s8 + $0x90] sm:$0xff]  ;;  %v322_v44 = vld [vmem:[%s13235_s8 + $0xa8] sm:$0xff] }
  0xce   : > { %v326_v45 = vld [vmem:[%s13235_s8 + $0xc8] sm:$0xff] }
  0xd0   : > { %2260 = vmatpush1.bf16.msra.mxu0 %v12002_v47  ;;  %2646 = vmatpush1.bf16.msra.mxu1 %v12003_v48  ;;  %v12058_v47 = vld [vmem:[#allocation5 + $0x7e8] ss:$48 sps:$4 sm:$0xff]   ;;  %v12061_v48 = vld [vmem:[#allocation5 + $0x7e0] ss:$48 sps:$4 sm:$0xff]  }
  0xd1   : > { %2261 = vmatprep.subr.bf16.mxu0 %v12004_v50  ;;  %2647 = vmatprep.subr.bf16.mxu1 %v12006_v52  ;;  %v12069_v50 = vld [vmem:[#allocation5 + $0x844] ss:$48 sps:$4 sm:$0xff]   ;;  %v13295_v52 = vpack.c.bf16 %v322_v44, %v319_v43 }
  0xd2   : > { %v371_v43 = vld [vmem:[%s13235_s8 + $0x230] sm:$0xff] }
  0xd4   : > { %2262 = vmatpush1.bf16.msra.mxu0 %v12008_v53  ;;  %2648 = vmatpush1.bf16.msra.mxu1 %v12009_v54  ;;  %v13297_v53 = vpack.c.bf16 %v329_v46, %v326_v45  ;;  %v12064_v54 = vld [vmem:[#allocation5 + $0x848] ss:$48 sps:$4 sm:$0xff]   ;;  %v367_v46 = vld [vmem:[%s13235_s8 + $0x210] sm:$0xff] }
  0xd5   : > { %2263 = vmatprep.subr.bf16.mxu0 %v12010_v55  ;;  %2649 = vmatprep.subr.bf16.mxu1 %v12012_v56  ;;  %v12067_v55 = vld [vmem:[#allocation5 + $0x840] ss:$48 sps:$4 sm:$0xff]  }
  0xd6   : > { %v325_v56 = vld [vmem:[%s13235_s8 + $0xc0] sm:$0xff] }
  0xd8   : > { %2264 = vmatpush1.bf16.msra.mxu0 %v12014_v57  ;;  %2650 = vmatpush1.bf16.msra.mxu1 %v12015_v58  ;;  %v12072_v57 = vld [vmem:[#allocation5 + $0x8ac] ss:$48 sps:$4 sm:$0xff]   ;;  %v12075_v58 = vld [vmem:[#allocation5 + $0x8a4] ss:$48 sps:$4 sm:$0xff]  }
  0xd9   : > { %2265 = vmatprep.subr.bf16.mxu0 %v12016_v59  ;;  %2651 = vmatprep.subr.bf16.mxu1 %v12018_v60  ;;  %v328_v59 = vld [vmem:[%s13235_s8 + $0xd8] sm:$0xff] }
  0xda   : > { %v332_v60 = vld [vmem:[%s13235_s8 + $0xf8] sm:$0xff] }
  0xdc   : > { %2266 = vmatpush1.bf16.msra.mxu0 %v12020_v61  ;;  %2652 = vmatpush1.bf16.msra.mxu1 %v12021_v62  ;;  %v335_v61 = vld [vmem:[%s13235_s8 + $0x110] sm:$0xff]  ;;  %v12070_v62 = vld [vmem:[#allocation5 + $0x8a8] ss:$48 sps:$4 sm:$0xff]  }
  0xdd   : > { %2267 = vmatprep.subr.bf16.mxu0 %v12022_v63  ;;  %2653 = vmatprep.subr.bf16.mxu1 %v12024_v0  ;;  %v12073_v63 = vld [vmem:[#allocation5 + $0x8a0] ss:$48 sps:$4 sm:$0xff]   ;;  %v12078_v0 = vld [vmem:[#allocation5 + $0x1c] ss:$48 sps:$4 sm:$0xff]   ;;  %v13309_v3 = vpack.c.bf16 %v335_v61, %v332_v60 }
  0xde   : > { %v379_v61 = vld [vmem:[%s13235_s8 + $0x270] sm:$0xff] }
  0xe0   : > { %2268 = vmatpush1.bf16.msra.mxu0 %v12026_v1  ;;  %2654 = vmatpush1.bf16.msra.mxu1 %v12027_v2  ;;  %v12081_v1 = vld [vmem:[#allocation5 + $0x14] ss:$48 sps:$4 sm:$0xff]   ;;  %v13307_v2 = vpack.c.bf16 %v328_v59, %v325_v56  ;;  %v376_v56 = vld [vmem:[%s13235_s8 + $0x258] sm:$0xff] }
  0xe1   : > { %2816 = vmatprep.subr.bf16.mxu1 %v12030_v5  ;;  %2430 = vmatprep.subr.bf16.mxu0 %v12033_v6  ;;  %v334_v5 = vld [vmem:[%s13235_s8 + $0x108] sm:$0xff] }
  0xe2   : > { %v338_v6 = vld [vmem:[%s13235_s8 + $0x128] sm:$0xff]  ;;  %v13319_v8 = vpack.c.bf16 %v334_v5, %v331_v4  ;;  %v385_v5 = vld [vmem:[%s13235_s8 + $0x2a0] sm:$0xff] }
  0xe3   : > { %2270 = vmatmul.mubr.bf16.vlgmr.msra.gmra.mrb[0].mxu0 %v13259_v9  ;;  %2656 = vmatmul.mubr.bf16.vlgmr.msra.gmra.mrb[0].mxu1 %v13259_v9 }
  0xe4   : > { %2817 = vmatpush1.bf16.msra.mxu1 %v12028_v10  ;;  %2431 = vmatpush1.bf16.msra.mxu0 %v12031_v11  ;;  %v13321_v10 = vpack.c.bf16 %v341_v7, %v338_v6  ;;  %v337_v11 = vld [vmem:[%s13235_s8 + $0x120] sm:$0xff]  ;;  %v388_v6 = vld [vmem:[%s13235_s8 + $0x2b8] sm:$0xff] }
  0xe5   : > { %2279 = vmatprep.mubr.bf16.mxu0 %v13261_v12  ;;  %2665 = vmatprep.mubr.bf16.mxu1 %v13261_v12  ;;  %v392_v7 = vld [vmem:[%s13235_s8 + $0x2d8] sm:$0xff] }
  0xe6   : > { %2818 = vmatprep.subr.bf16.mxu1 %v12036_v13  ;;  %2432 = vmatprep.subr.bf16.mxu0 %v12039_v14  ;;  %v340_v13 = vld [vmem:[%s13235_s8 + $0x138] sm:$0xff] }
  0xe7   : > { %v344_v14 = vld [vmem:[%s13235_s8 + $0x158] sm:$0xff]  ;;  %v13331_v16 = vpack.c.bf16 %v340_v13, %v337_v11  ;;  %v395_v11 = vld [vmem:[%s13235_s8 + $0x2f0] sm:$0xff]  ;;  %v13427_v13 = vpack.c.bf16 %v388_v6, %v385_v5 }
  0xe8   : > { %2819 = vmatpush1.bf16.msra.mxu1 %v12034_v18  ;;  %2433 = vmatpush1.bf16.msra.mxu0 %v12037_v19  ;;  %v13333_v17 = vpack.c.bf16 %v347_v15, %v344_v14  ;;  %v343_v18 = vld [vmem:[%s13235_s8 + $0x150] sm:$0xff]  ;;  %v346_v19 = vld [vmem:[%s13235_s8 + $0x168] sm:$0xff]  ;;  %v13429_v14 = vpack.c.bf16 %v395_v11, %v392_v7 }
  0xe9   : > { %2820 = vmatprep.subr.bf16.mxu1 %v12042_v21  ;;  %2434 = vmatprep.subr.bf16.mxu0 %v12045_v22  ;;  %v353_v21 = vld [vmem:[%s13235_s8 + $0x1a0] sm:$0xff]  ;;  %v13343_v22 = vpack.c.bf16 %v346_v19, %v343_v18  ;;  %15979 = vst [vmem:[#allocation26_spill] sm:$0xff] %v13427_v13  ;;  %v391_v15 = vld [vmem:[%s13235_s8 + $0x2d0] sm:$0xff]  ;;  %v394_v18 = vld [vmem:[%s13235_s8 + $0x2e8] sm:$0xff] }
  0xea   : > { %15980 = vst [vmem:[#allocation27_spill] sm:$0xff] %v13429_v14  ;;  %v13437_v19 = vpack.c.bf16 %v394_v18, %v391_v15  ;;  %v12100_v5 = vld [vmem:[#allocation5 + $0x198] ss:$48 sps:$4 sm:$0xff]   ;;  %v12103_v6 = vld [vmem:[#allocation5 + $0x190] ss:$48 sps:$4 sm:$0xff]  }
  0xeb   : > { %2280 = vmatmul.mubr.bf16.gmra.mrb[4].mxu0 %v13271_v23  ;;  %2666 = vmatmul.mubr.bf16.gmra.mrb[4].mxu1 %v13271_v23  ;;  %v12108_v7 = vld [vmem:[#allocation5 + $0x1fc] ss:$48 sps:$4 sm:$0xff]   ;;  %v12111_v11 = vld [vmem:[#allocation5 + $0x1f4] ss:$48 sps:$4 sm:$0xff]  }
  0xec   : > { %2289 = vmatprep.mubr.bf16.mxu0 %v13273_v24  ;;  %2675 = vmatprep.mubr.bf16.mxu1 %v13273_v24  ;;  %15981 = vst [vmem:[#allocation28_spill] sm:$0xff] %v13437_v19  ;;  %v321_v15 = vld [vmem:[%s13235_s8 + $0xa0] sm:$0xff]  ;;  %v324_v18 = vld [vmem:[%s13235_s8 + $0xb8] sm:$0xff] }
  0xed   : > { %2821 = vmatpush1.bf16.msra.mxu1 %v12040_v25  ;;  %2435 = vmatpush1.bf16.msra.mxu0 %v12043_v26  ;;  %v13345_v25 = vpack.c.bf16 %v353_v21, %v350_v20  ;;  %v349_v26 = vld [vmem:[%s13235_s8 + $0x180] sm:$0xff]  ;;  %v303_v20 = vld [vmem:[%s13235_s8 + $0x10] sm:$0xff]  ;;  %v15772_v21 = vmov 0  }
  0xee   : > { %2822 = vmatprep.subr.bf16.mxu1 %v12048_v28  ;;  %2436 = vmatprep.subr.bf16.mxu0 %v12051_v29  ;;  %v356_v28 = vld [vmem:[%s13235_s8 + $0x1b8] sm:$0xff]  ;;  %v359_v29 = vld [vmem:[%s13235_s8 + $0x1d0] sm:$0xff]  ;;  %v13355_v30 = vpack.c.bf16 %v352_v27, %v349_v26  ;;  %v306_v26 = vld [vmem:[%s13235_s8 + $0x28] sm:$0xff] }
  0xef   : > { %15969 = vst [vmem:[#allocation16_spill] sm:$0xff] %v13345_v25  ;;  %v13357_v31 = vpack.c.bf16 %v359_v29, %v356_v28  ;;  %v12076_v27 = vld [vmem:[#allocation5 + $0x18] ss:$48 sps:$4 sm:$0xff]   ;;  %v12079_v28 = vld [vmem:[#allocation5 + $0x10] ss:$48 sps:$4 sm:$0xff]   ;;  %v13445_v29 = vpack.c.bf16 %v306_v26, %v303_v20 }
  0xf0   : > { %15970 = vst [vmem:[#allocation17_spill] sm:$0xff] %v13355_v30  ;;  %v12106_v20 = vld [vmem:[#allocation5 + $0x1f8] ss:$48 sps:$4 sm:$0xff]   ;;  %v12109_v26 = vld [vmem:[#allocation5 + $0x1f0] ss:$48 sps:$4 sm:$0xff]  }
  0xf1   : > { %2823 = vmatpush1.bf16.msra.mxu1 %v12046_v33  ;;  %2437 = vmatpush1.bf16.msra.mxu0 %v12049_v34  ;;  %15971 = vst [vmem:[#allocation18_spill] sm:$0xff] %v13357_v31  ;;  %v358_v33 = vld [vmem:[%s13235_s8 + $0x1c8] sm:$0xff] }
  0xf2   : > { %2824 = vmatprep.subr.bf16.mxu1 %v12054_v35  ;;  %2438 = vmatprep.subr.bf16.mxu0 %v12057_v36  ;;  %v362_v34 = vld [vmem:[%s13235_s8 + $0x1e8] sm:$0xff]  ;;  %v365_v35 = vld [vmem:[%s13235_s8 + $0x200] sm:$0xff]  ;;  %v13367_v36 = vpack.c.bf16 %v358_v33, %v355_v32 }
  0xf3   : > { %2290 = vmatmul.mubr.bf16.gmra.mrb[8].mxu0 %v13283_v37  ;;  %2676 = vmatmul.mubr.bf16.gmra.mrb[8].mxu1 %v13283_v37  ;;  %v12084_v32 = vld [vmem:[#allocation5 + $0x7c] ss:$48 sps:$4 sm:$0xff]   ;;  %v12087_v33 = vld [vmem:[#allocation5 + $0x74] ss:$48 sps:$4 sm:$0xff]  }
  0xf4   : > { %2299 = vmatprep.mubr.bf16.mxu0 %v13285_v38  ;;  %2685 = vmatprep.mubr.bf16.mxu1 %v13285_v38  ;;  %15972 = vst [vmem:[#allocation19_spill] sm:$0xff] %v13367_v36 }
  0xf5   : > { %2825 = vmatpush1.bf16.msra.mxu1 %v12052_v39  ;;  %2439 = vmatpush1.bf16.msra.mxu0 %v12055_v40  ;;  %v13369_v39 = vpack.c.bf16 %v365_v35, %v362_v34  ;;  %v361_v40 = vld [vmem:[%s13235_s8 + $0x1e0] sm:$0xff]  ;;  %v312_v35 = vld [vmem:[%s13235_s8 + $0x58] sm:$0xff] }
  0xf6   : > { %2826 = vmatprep.subr.bf16.mxu1 %v12060_v41  ;;  %2440 = vmatprep.subr.bf16.mxu0 %v12063_v42  ;;  %v364_v41 = vld [vmem:[%s13235_s8 + $0x1f8] sm:$0xff]  ;;  %v309_v34 = vld [vmem:[%s13235_s8 + $0x40] sm:$0xff] }
  0xf7   : > { %15973 = vst [vmem:[#allocation20_spill] sm:$0xff] %v13369_v39  ;;  %v368_v42 = vld [vmem:[%s13235_s8 + $0x218] sm:$0xff]  ;;  %v13379_v44 = vpack.c.bf16 %v364_v41, %v361_v40  ;;  %v12085_v41 = vld [vmem:[#allocation5 + $0x70] ss:$48 sps:$4 sm:$0xff]  }
  0xf8   : > { %v13381_v45 = vpack.c.bf16 %v371_v43, %v368_v42  ;;  %v12082_v40 = vld [vmem:[#allocation5 + $0x78] ss:$48 sps:$4 sm:$0xff]   ;;  %v12090_v42 = vld [vmem:[#allocation5 + $0xdc] ss:$48 sps:$4 sm:$0xff]   ;;  %v12093_v43 = vld [vmem:[#allocation5 + $0xd4] ss:$48 sps:$4 sm:$0xff]  }
  0xf9   : > { %2827 = vmatpush1.bf16.msra.mxu1 %v12058_v47  ;;  %2441 = vmatpush1.bf16.msra.mxu0 %v12061_v48  ;;  %15974 = vst [vmem:[#allocation21_spill] sm:$0xff] %v13379_v44  ;;  %v370_v47 = vld [vmem:[%s13235_s8 + $0x228] sm:$0xff] }
  0xfa   : > { %2828 = vmatprep.subr.bf16.mxu1 %v12066_v49  ;;  %2442 = vmatprep.subr.bf16.mxu0 %v12069_v50  ;;  %15975 = vst [vmem:[#allocation22_spill] sm:$0xff] %v13381_v45  ;;  %v374_v48 = vld [vmem:[%s13235_s8 + $0x248] sm:$0xff]  ;;  %v377_v49 = vld [vmem:[%s13235_s8 + $0x260] sm:$0xff]  ;;  %v13391_v50 = vpack.c.bf16 %v370_v47, %v367_v46  ;;  %v13453_v46 = vpack.c.bf16 %v312_v35, %v309_v34 }
  0xfb   : > { %2300 = vmatmul.mubr.bf16.gmra.mrb[12].mxu0 %v13295_v52  ;;  %2686 = vmatmul.mubr.bf16.gmra.mrb[12].mxu1 %v13295_v52  ;;  %v12088_v47 = vld [vmem:[#allocation5 + $0xd8] ss:$48 sps:$4 sm:$0xff]   ;;  %v12115_v34 = vld [vmem:[#allocation5 + $0x250] ss:$48 sps:$4 sm:$0xff]   ;;  %v12120_v35 = vld [vmem:[#allocation5 + $0x2bc] ss:$48 sps:$4 sm:$0xff]  }
  0xfc   : > { %2309 = vmatprep.mubr.bf16.mxu0 %v13297_v53  ;;  %2695 = vmatprep.mubr.bf16.mxu1 %v13297_v53 }
  0xfd   : > { %2829 = vmatpush1.bf16.msra.mxu1 %v12064_v54  ;;  %2443 = vmatpush1.bf16.msra.mxu0 %v12067_v55  ;;  %v13393_v54 = vpack.c.bf16 %v377_v49, %v374_v48  ;;  %v373_v55 = vld [vmem:[%s13235_s8 + $0x240] sm:$0xff]  ;;  %v12096_v49 = vld [vmem:[#allocation5 + $0x13c] ss:$48 sps:$4 sm:$0xff]  }
  0xfe   : > { %2830 = vmatprep.subr.bf16.mxu1 %v12072_v57  ;;  %2444 = vmatprep.subr.bf16.mxu0 %v12075_v58  ;;  %v380_v57 = vld [vmem:[%s13235_s8 + $0x278] sm:$0xff]  ;;  %v383_v58 = vld [vmem:[%s13235_s8 + $0x290] sm:$0xff]  ;;  %v13403_v59 = vpack.c.bf16 %v376_v56, %v373_v55 }
  0xff   : > { %15976 = vst [vmem:[#allocation23_spill] sm:$0xff] %v13393_v54  ;;  %v13405_v60 = vpack.c.bf16 %v383_v58, %v380_v57  ;;  %v12091_v48 = vld [vmem:[#allocation5 + $0xd0] ss:$48 sps:$4 sm:$0xff]   ;;  %v12099_v55 = vld [vmem:[#allocation5 + $0x134] ss:$48 sps:$4 sm:$0xff]   ;;  %v318_v57 = vld [vmem:[%s13235_s8 + $0x88] sm:$0xff] }
 0x100   : > { %v315_v56 = vld [vmem:[%s13235_s8 + $0x70] sm:$0xff]  ;;  %v12094_v58 = vld [vmem:[#allocation5 + $0x138] ss:$48 sps:$4 sm:$0xff]  }
 0x101   : > { %2831 = vmatpush1.bf16.msra.mxu1 %v12070_v62  ;;  %2445 = vmatpush1.bf16.msra.mxu0 %v12073_v63  ;;  %v382_v62 = vld [vmem:[%s13235_s8 + $0x288] sm:$0xff] }
 0x102   : > { %3395 = vmatprep.subr.bf16.mxu1 %v12078_v0  ;;  %3009 = vmatprep.subr.bf16.mxu0 %v12081_v1  ;;  %v386_v63 = vld [vmem:[%s13235_s8 + $0x2a8] sm:$0xff]  ;;  %v389_v0 = vld [vmem:[%s13235_s8 + $0x2c0] sm:$0xff]  ;;  %v13415_v1 = vpack.c.bf16 %v382_v62, %v379_v61 }
 0x103   : > { %2310 = vmatmul.mubr.bf16.gmra.mrb[16].mxu0 %v13307_v2  ;;  %2696 = vmatmul.mubr.bf16.gmra.mrb[16].mxu1 %v13307_v2  ;;  %v13417_v4 = vpack.c.bf16 %v389_v0, %v386_v63  ;;  %v12097_v61 = vld [vmem:[#allocation5 + $0x130] ss:$48 sps:$4 sm:$0xff]   ;;  %v12102_v62 = vld [vmem:[#allocation5 + $0x19c] ss:$48 sps:$4 sm:$0xff]   ;;  %v12105_v63 = vld [vmem:[#allocation5 + $0x194] ss:$48 sps:$4 sm:$0xff]   ;;  %v13461_v0 = vpack.c.bf16 %v318_v57, %v315_v56 }
 0x104   : > { %2319 = vmatprep.mubr.bf16.mxu0 %v13309_v3  ;;  %2705 = vmatprep.mubr.bf16.mxu1 %v13309_v3  ;;  %15977 = vst [vmem:[#allocation24_spill] sm:$0xff] %v13415_v1  ;;  %v12124_v56 = vld [vmem:[#allocation5 + $0x318] ss:$48 sps:$4 sm:$0xff]   ;;  %v12127_v57 = vld [vmem:[#allocation5 + $0x310] ss:$48 sps:$4 sm:$0xff]  }
 0x105   : > { %15978 = vst [vmem:[#allocation25_spill] sm:$0xff] %v13417_v4 }
 0x10b   : > { %2320 = vmatmul.mubr.bf16.gmra.mrb[20].mxu0 %v13319_v8  ;;  %2706 = vmatmul.mubr.bf16.gmra.mrb[20].mxu1 %v13319_v8 }
 0x10c   : > { %2329 = vmatprep.mubr.bf16.mxu0 %v13321_v10  ;;  %2715 = vmatprep.mubr.bf16.mxu1 %v13321_v10 }
 0x113   : > { %2330 = vmatmul.mubr.bf16.gmra.mrb[24].mxu0 %v13331_v16  ;;  %2716 = vmatmul.mubr.bf16.gmra.mrb[24].mxu1 %v13331_v16 }
 0x114   : > { %2339 = vmatprep.mubr.bf16.mxu0 %v13333_v17  ;;  %2725 = vmatprep.mubr.bf16.mxu1 %v13333_v17 }
 0x11b   : > { %2340 = vmatmul.mubr.bf16.gmra.mrb[28].mxu0 %v13343_v22  ;;  %2726 = vmatmul.mubr.bf16.gmra.mrb[28].mxu1 %v13343_v22 }
 0x11c   : > { %2349 = vmatprep.mubr.bf16.mxu0 %v13345_v25  ;;  %2735 = vmatprep.mubr.bf16.mxu1 %v13345_v25 }
 0x123   : > { %2350 = vmatmul.mubr.bf16.gmra.mrb[32].mxu0 %v13355_v30  ;;  %2736 = vmatmul.mubr.bf16.gmra.mrb[32].mxu1 %v13355_v30 }
 0x124   : > { %2359 = vmatprep.mubr.bf16.mxu0 %v13357_v31  ;;  %2745 = vmatprep.mubr.bf16.mxu1 %v13357_v31 }
 0x12b   : > { %2360 = vmatmul.mubr.bf16.gmra.mrb[36].mxu0 %v13367_v36  ;;  %2746 = vmatmul.mubr.bf16.gmra.mrb[36].mxu1 %v13367_v36 }
 0x12c   : > { %2369 = vmatprep.mubr.bf16.mxu0 %v13369_v39  ;;  %2755 = vmatprep.mubr.bf16.mxu1 %v13369_v39 }
 0x133   : > { %2370 = vmatmul.mubr.bf16.gmra.mrb[40].mxu0 %v13379_v44  ;;  %2756 = vmatmul.mubr.bf16.gmra.mrb[40].mxu1 %v13379_v44 }
 0x134   : > { %2379 = vmatprep.mubr.bf16.mxu0 %v13381_v45  ;;  %2765 = vmatprep.mubr.bf16.mxu1 %v13381_v45 }
 0x13b   : > { %2380 = vmatmul.mubr.bf16.gmra.mrb[44].mxu0 %v13391_v50  ;;  %2766 = vmatmul.mubr.bf16.gmra.mrb[44].mxu1 %v13391_v50 }
 0x13c   : > { %2389 = vmatprep.mubr.bf16.mxu0 %v13393_v54  ;;  %2775 = vmatprep.mubr.bf16.mxu1 %v13393_v54 }
 0x143   : > { %2390 = vmatmul.mubr.bf16.gmra.mrb[48].mxu0 %v13403_v59  ;;  %2776 = vmatmul.mubr.bf16.gmra.mrb[48].mxu1 %v13403_v59 }
 0x144   : > { %2399 = vmatprep.mubr.bf16.mxu0 %v13405_v60  ;;  %2785 = vmatprep.mubr.bf16.mxu1 %v13405_v60 }
 0x14b   : > { %2400 = vmatmul.mubr.bf16.gmra.mrb[52].mxu0 %v13415_v1  ;;  %2786 = vmatmul.mubr.bf16.gmra.mrb[52].mxu1 %v13415_v1 }
 0x14c   : > { %2409 = vmatprep.mubr.bf16.mxu0 %v13417_v4  ;;  %2795 = vmatprep.mubr.bf16.mxu1 %v13417_v4 }
 0x153   : > { %2410 = vmatmul.mubr.bf16.gmra.mrb[56].mxu0 %v13427_v13  ;;  %2796 = vmatmul.mubr.bf16.gmra.mrb[56].mxu1 %v13427_v13 }
 0x154   : > { %2419 = vmatprep.mubr.bf16.mxu0 %v13429_v14  ;;  %2805 = vmatprep.mubr.bf16.mxu1 %v13429_v14 }
 0x15b   : > { %2420 = vmatmul.mubr.bf16.gmra.mrb[60].mxu0 %v13437_v19  ;;  %2806 = vmatmul.mubr.bf16.gmra.mrb[60].mxu1 %v13437_v19 }
 0x15c   : > { %2462 = vmatprep.mubr.bf16.mxu0 %v15772_v21  ;;  %2848 = vmatprep.mubr.bf16.mxu1 %v15772_v21 }
 0x163   : > { %2463 = vmatmul.mubr.bf16.vlgmr.msra.gmra.mrb[0].mxu0 %v13445_v29  ;;  %2849 = vmatmul.mubr.bf16.vlgmr.msra.gmra.mrb[0].mxu1 %v13445_v29 }
 0x164   : > { %3396 = vmatpush1.bf16.msra.mxu1 %v12076_v27  ;;  %3010 = vmatpush1.bf16.msra.mxu0 %v12079_v28  ;;  %v12114_v27 = vld [vmem:[#allocation5 + $0x25c] ss:$48 sps:$4 sm:$0xff]   ;;  %v12117_v28 = vld [vmem:[#allocation5 + $0x254] ss:$48 sps:$4 sm:$0xff]  }
 0x165   : > { %2472 = vmatprep.mubr.bf16.mxu0 %v15772_v21  ;;  %2858 = vmatprep.mubr.bf16.mxu1 %v15772_v21 }
 0x166   : > { %3397 = vmatprep.subr.bf16.mxu1 %v12084_v32  ;;  %3011 = vmatprep.subr.bf16.mxu0 %v12087_v33  ;;  %v13469_v32 = vpack.c.bf16 %v324_v18, %v321_v15  ;;  %v12112_v33 = vld [vmem:[#allocation5 + $0x258] ss:$48 sps:$4 sm:$0xff]  }
 0x167   : > { %v12136_v18 = vld [vmem:[#allocation5 + $0x3d8] ss:$48 sps:$4 sm:$0xff]  }
 0x168   : > { %3398 = vmatpush1.bf16.msra.mxu1 %v12082_v40  ;;  %3012 = vmatpush1.bf16.msra.mxu0 %v12085_v41  ;;  %v12123_v40 = vld [vmem:[#allocation5 + $0x2b4] ss:$48 sps:$4 sm:$0xff]  }
 0x169   : > { %3399 = vmatprep.subr.bf16.mxu1 %v12090_v42  ;;  %3013 = vmatprep.subr.bf16.mxu0 %v12093_v43  ;;  %v327_v41 = vld [vmem:[%s13235_s8 + $0xd0] sm:$0xff]  ;;  %v330_v42 = vld [vmem:[%s13235_s8 + $0xe8] sm:$0xff] }
 0x16a   : > { %v12118_v43 = vld [vmem:[#allocation5 + $0x2b8] ss:$48 sps:$4 sm:$0xff]  }
 0x16b   : > { %2473 = vmatmul.mubr.bf16.gmra.mrb[4].mxu0 %v13453_v46  ;;  %2859 = vmatmul.mubr.bf16.gmra.mrb[4].mxu1 %v13453_v46 }
 0x16c   : > { %2482 = vmatprep.mubr.bf16.mxu0 %v15772_v21  ;;  %2868 = vmatprep.mubr.bf16.mxu1 %v15772_v21 }
 0x16d   : > { %3400 = vmatpush1.bf16.msra.mxu1 %v12088_v47  ;;  %3014 = vmatpush1.bf16.msra.mxu0 %v12091_v48  ;;  %v12121_v47 = vld [vmem:[#allocation5 + $0x2b0] ss:$48 sps:$4 sm:$0xff]   ;;  %v12126_v48 = vld [vmem:[#allocation5 + $0x31c] ss:$48 sps:$4 sm:$0xff]  }
 0x16e   : > { %3401 = vmatprep.subr.bf16.mxu1 %v12096_v49  ;;  %3015 = vmatprep.subr.bf16.mxu0 %v12099_v55  ;;  %v12129_v49 = vld [vmem:[#allocation5 + $0x314] ss:$48 sps:$4 sm:$0xff]   ;;  %v13477_v55 = vpack.c.bf16 %v330_v42, %v327_v41 }
 0x16f   : > { %v12153_v41 = vld [vmem:[#allocation5 + $0x494] ss:$48 sps:$4 sm:$0xff]  }
 0x171   : > { %3402 = vmatpush1.bf16.msra.mxu1 %v12094_v58  ;;  %3016 = vmatpush1.bf16.msra.mxu0 %v12097_v61  ;;  %v12132_v58 = vld [vmem:[#allocation5 + $0x37c] ss:$48 sps:$4 sm:$0xff]   ;;  %v12135_v61 = vld [vmem:[#allocation5 + $0x374] ss:$48 sps:$4 sm:$0xff]  }
 0x172   : > { %3403 = vmatprep.subr.bf16.mxu1 %v12102_v62  ;;  %3017 = vmatprep.subr.bf16.mxu0 %v12105_v63  ;;  %v333_v62 = vld [vmem:[%s13235_s8 + $0x100] sm:$0xff]  ;;  %v336_v63 = vld [vmem:[%s13235_s8 + $0x118] sm:$0xff] }
 0x173   : > { %2483 = vmatmul.mubr.bf16.gmra.mrb[8].mxu0 %v13461_v0  ;;  %2869 = vmatmul.mubr.bf16.gmra.mrb[8].mxu1 %v13461_v0  ;;  %v13485_v15 = vpack.c.bf16 %v336_v63, %v333_v62  ;;  %v12162_v62 = vld [vmem:[#allocation5 + $0x55c] ss:$48 sps:$4 sm:$0xff]   ;;  %v12165_v63 = vld [vmem:[#allocation5 + $0x554] ss:$48 sps:$4 sm:$0xff]  }
 0x174   : > { %2492 = vmatprep.mubr.bf16.mxu0 %v15772_v21  ;;  %2878 = vmatprep.mubr.bf16.mxu1 %v15772_v21 }
 0x175   : > { %3404 = vmatpush1.bf16.msra.mxu1 %v12100_v5  ;;  %3018 = vmatpush1.bf16.msra.mxu0 %v12103_v6  ;;  %v12130_v5 = vld [vmem:[#allocation5 + $0x378] ss:$48 sps:$4 sm:$0xff]   ;;  %v12133_v6 = vld [vmem:[#allocation5 + $0x370] ss:$48 sps:$4 sm:$0xff]  }
 0x176   : > { %3405 = vmatprep.subr.bf16.mxu1 %v12108_v7  ;;  %3019 = vmatprep.subr.bf16.mxu0 %v12111_v11  ;;  %v12138_v7 = vld [vmem:[#allocation5 + $0x3dc] ss:$48 sps:$4 sm:$0xff]   ;;  %v12141_v11 = vld [vmem:[#allocation5 + $0x3d4] ss:$48 sps:$4 sm:$0xff]  }
 0x179   : > { %3406 = vmatpush1.bf16.msra.mxu1 %v12106_v20  ;;  %3020 = vmatpush1.bf16.msra.mxu0 %v12109_v26  ;;  %v12139_v20 = vld [vmem:[#allocation5 + $0x3d0] ss:$48 sps:$4 sm:$0xff]   ;;  %v12144_v26 = vld [vmem:[#allocation5 + $0x43c] ss:$48 sps:$4 sm:$0xff]  }
 0x17a   : > { %3407 = vmatprep.subr.bf16.mxu1 %v12114_v27  ;;  %3021 = vmatprep.subr.bf16.mxu0 %v12117_v28  ;;  %v12147_v27 = vld [vmem:[#allocation5 + $0x434] ss:$48 sps:$4 sm:$0xff]  }
 0x17b   : > { %2493 = vmatmul.mubr.bf16.gmra.mrb[12].mxu0 %v13469_v32  ;;  %2879 = vmatmul.mubr.bf16.gmra.mrb[12].mxu1 %v13469_v32  ;;  %v339_v28 = vld [vmem:[%s13235_s8 + $0x130] sm:$0xff] }
 0x17c   : > { %2502 = vmatprep.mubr.bf16.mxu0 %v15772_v21  ;;  %2888 = vmatprep.mubr.bf16.mxu1 %v15772_v21 }
 0x17d   : > { %3408 = vmatpush1.bf16.msra.mxu1 %v12112_v33  ;;  %3022 = vmatpush1.bf16.msra.mxu0 %v12115_v34  ;;  %v342_v33 = vld [vmem:[%s13235_s8 + $0x148] sm:$0xff] }
 0x17e   : > { %3409 = vmatprep.subr.bf16.mxu1 %v12120_v35  ;;  %3023 = vmatprep.subr.bf16.mxu0 %v12123_v40  ;;  %v12142_v34 = vld [vmem:[#allocation5 + $0x438] ss:$48 sps:$4 sm:$0xff]   ;;  %v12145_v35 = vld [vmem:[#allocation5 + $0x430] ss:$48 sps:$4 sm:$0xff]   ;;  %v12150_v40 = vld [vmem:[#allocation5 + $0x49c] ss:$48 sps:$4 sm:$0xff]   ;;  %v13493_v42 = vpack.c.bf16 %v342_v33, %v339_v28 }
 0x17f   : > { %v12169_v28 = vld [vmem:[#allocation5 + $0x5b0] ss:$48 sps:$4 sm:$0xff]   ;;  %v12174_v33 = vld [vmem:[#allocation5 + $0x61c] ss:$48 sps:$4 sm:$0xff]  }
 0x181   : > { %3410 = vmatpush1.bf16.msra.mxu1 %v12118_v43  ;;  %3024 = vmatpush1.bf16.msra.mxu0 %v12121_v47  ;;  %v12148_v43 = vld [vmem:[#allocation5 + $0x498] ss:$48 sps:$4 sm:$0xff]   ;;  %v12151_v47 = vld [vmem:[#allocation5 + $0x490] ss:$48 sps:$4 sm:$0xff]  }
 0x182   : > { %3411 = vmatprep.subr.bf16.mxu1 %v12126_v48  ;;  %3025 = vmatprep.subr.bf16.mxu0 %v12129_v49  ;;  %v12156_v48 = vld [vmem:[#allocation5 + $0x4fc] ss:$48 sps:$4 sm:$0xff]   ;;  %v12159_v49 = vld [vmem:[#allocation5 + $0x4f4] ss:$48 sps:$4 sm:$0xff]  }
 0x183   : > { %2503 = vmatmul.mubr.bf16.gmra.mrb[16].mxu0 %v13477_v55  ;;  %2889 = vmatmul.mubr.bf16.gmra.mrb[16].mxu1 %v13477_v55 }
 0x184   : > { %2512 = vmatprep.mubr.bf16.mxu0 %v15772_v21  ;;  %2898 = vmatprep.mubr.bf16.mxu1 %v15772_v21 }
 0x185   : > { %3412 = vmatpush1.bf16.msra.mxu1 %v12124_v56  ;;  %3026 = vmatpush1.bf16.msra.mxu0 %v12127_v57  ;;  %v345_v56 = vld [vmem:[%s13235_s8 + $0x160] sm:$0xff]  ;;  %v348_v57 = vld [vmem:[%s13235_s8 + $0x178] sm:$0xff] }
 0x186   : > { %3413 = vmatprep.subr.bf16.mxu1 %v12132_v58  ;;  %3027 = vmatprep.subr.bf16.mxu0 %v12135_v61  ;;  %v12154_v58 = vld [vmem:[#allocation5 + $0x4f8] ss:$48 sps:$4 sm:$0xff]   ;;  %v12157_v61 = vld [vmem:[#allocation5 + $0x4f0] ss:$48 sps:$4 sm:$0xff]  }
 0x189   : > { %3414 = vmatpush1.bf16.msra.mxu1 %v12130_v5  ;;  %3028 = vmatpush1.bf16.msra.mxu0 %v12133_v6  ;;  %v13501_v5 = vpack.c.bf16 %v348_v57, %v345_v56  ;;  %v12160_v6 = vld [vmem:[#allocation5 + $0x558] ss:$48 sps:$4 sm:$0xff]   ;;  %v369_v56 = vld [vmem:[%s13235_s8 + $0x220] sm:$0xff] }
 0x18a   : > { %3415 = vmatprep.subr.bf16.mxu1 %v12138_v7  ;;  %3029 = vmatprep.subr.bf16.mxu0 %v12141_v11  ;;  %v12163_v7 = vld [vmem:[#allocation5 + $0x550] ss:$48 sps:$4 sm:$0xff]   ;;  %v12168_v11 = vld [vmem:[#allocation5 + $0x5bc] ss:$48 sps:$4 sm:$0xff]  }
 0x18b   : > { %2513 = vmatmul.mubr.bf16.gmra.mrb[20].mxu0 %v13485_v15  ;;  %2899 = vmatmul.mubr.bf16.gmra.mrb[20].mxu1 %v13485_v15  ;;  %v372_v57 = vld [vmem:[%s13235_s8 + $0x238] sm:$0xff] }
 0x18c   : > { %2522 = vmatprep.mubr.bf16.mxu0 %v15772_v21  ;;  %2908 = vmatprep.mubr.bf16.mxu1 %v15772_v21 }
 0x18d   : > { %3416 = vmatpush1.bf16.msra.mxu1 %v12136_v18  ;;  %3030 = vmatpush1.bf16.msra.mxu0 %v12139_v20  ;;  %v12171_v18 = vld [vmem:[#allocation5 + $0x5b4] ss:$48 sps:$4 sm:$0xff]  }
 0x18e   : > { %3417 = vmatprep.subr.bf16.mxu1 %v12144_v26  ;;  %3031 = vmatprep.subr.bf16.mxu0 %v12147_v27  ;;  %v351_v20 = vld [vmem:[%s13235_s8 + $0x190] sm:$0xff]  ;;  %v354_v26 = vld [vmem:[%s13235_s8 + $0x1a8] sm:$0xff] }
 0x18f   : > { %v12166_v27 = vld [vmem:[#allocation5 + $0x5b8] ss:$48 sps:$4 sm:$0xff]  }
 0x191   : > { %3418 = vmatpush1.bf16.msra.mxu1 %v12142_v34  ;;  %3032 = vmatpush1.bf16.msra.mxu0 %v12145_v35  ;;  %v12177_v34 = vld [vmem:[#allocation5 + $0x614] ss:$48 sps:$4 sm:$0xff]   ;;  %v13509_v35 = vpack.c.bf16 %v354_v26, %v351_v20  ;;  %v390_v20 = vld [vmem:[%s13235_s8 + $0x2c8] sm:$0xff] }
 0x192   : > { %3419 = vmatprep.subr.bf16.mxu1 %v12150_v40  ;;  %3033 = vmatprep.subr.bf16.mxu0 %v12153_v41  ;;  %v357_v40 = vld [vmem:[%s13235_s8 + $0x1c0] sm:$0xff]  ;;  %v360_v41 = vld [vmem:[%s13235_s8 + $0x1d8] sm:$0xff] }
 0x193   : > { %2523 = vmatmul.mubr.bf16.gmra.mrb[24].mxu0 %v13493_v42  ;;  %2909 = vmatmul.mubr.bf16.gmra.mrb[24].mxu1 %v13493_v42 }
 0x194   : > { %2532 = vmatprep.mubr.bf16.mxu0 %v15772_v21  ;;  %2918 = vmatprep.mubr.bf16.mxu1 %v15772_v21 }
 0x195   : > { %3420 = vmatpush1.bf16.msra.mxu1 %v12148_v43  ;;  %3034 = vmatpush1.bf16.msra.mxu0 %v12151_v47  ;;  %v13517_v43 = vpack.c.bf16 %v360_v41, %v357_v40  ;;  %v363_v47 = vld [vmem:[%s13235_s8 + $0x1f0] sm:$0xff]  ;;  %v12180_v41 = vld [vmem:[#allocation5 + $0x67c] ss:$48 sps:$4 sm:$0xff]  }
 0x196   : > { %3421 = vmatprep.subr.bf16.mxu1 %v12156_v48  ;;  %3035 = vmatprep.subr.bf16.mxu0 %v12159_v49  ;;  %v366_v48 = vld [vmem:[%s13235_s8 + $0x208] sm:$0xff]  ;;  %v12175_v40 = vld [vmem:[#allocation5 + $0x610] ss:$48 sps:$4 sm:$0xff]  }
 0x197   : > { %v13525_v49 = vpack.c.bf16 %v366_v48, %v363_v47  ;;  %v12183_v47 = vld [vmem:[#allocation5 + $0x674] ss:$48 sps:$4 sm:$0xff]   ;;  %v12178_v48 = vld [vmem:[#allocation5 + $0x678] ss:$48 sps:$4 sm:$0xff]  }
 0x199   : > { %3422 = vmatpush1.bf16.msra.mxu1 %v12154_v58  ;;  %3036 = vmatpush1.bf16.msra.mxu0 %v12157_v61  ;;  %v13533_v58 = vpack.c.bf16 %v372_v57, %v369_v56  ;;  %v375_v61 = vld [vmem:[%s13235_s8 + $0x250] sm:$0xff]  ;;  %v12186_v57 = vld [vmem:[#allocation5 + $0x6dc] ss:$48 sps:$4 sm:$0xff]  }
 0x19a   : > { %3423 = vmatprep.subr.bf16.mxu1 %v12162_v62  ;;  %3037 = vmatprep.subr.bf16.mxu0 %v12165_v63  ;;  %v378_v62 = vld [vmem:[%s13235_s8 + $0x268] sm:$0xff]  ;;  %v12181_v56 = vld [vmem:[#allocation5 + $0x670] ss:$48 sps:$4 sm:$0xff]  }
 0x19b   : > { %2533 = vmatmul.mubr.bf16.gmra.mrb[28].mxu0 %v13501_v5  ;;  %2919 = vmatmul.mubr.bf16.gmra.mrb[28].mxu1 %v13501_v5  ;;  %v13541_v63 = vpack.c.bf16 %v378_v62, %v375_v61  ;;  %v12189_v61 = vld [vmem:[#allocation5 + $0x6d4] ss:$48 sps:$4 sm:$0xff]   ;;  %v12184_v62 = vld [vmem:[#allocation5 + $0x6d8] ss:$48 sps:$4 sm:$0xff]  }
 0x19c   : > { %2542 = vmatprep.mubr.bf16.mxu0 %v15772_v21  ;;  %2928 = vmatprep.mubr.bf16.mxu1 %v15772_v21 }
 0x19d   : > { %3424 = vmatpush1.bf16.msra.mxu1 %v12160_v6  ;;  %3038 = vmatpush1.bf16.msra.mxu0 %v12163_v7  ;;  %v381_v6 = vld [vmem:[%s13235_s8 + $0x280] sm:$0xff]  ;;  %v384_v7 = vld [vmem:[%s13235_s8 + $0x298] sm:$0xff] }
 0x19e   : > { %3425 = vmatprep.subr.bf16.mxu1 %v12168_v11  ;;  %3039 = vmatprep.subr.bf16.mxu0 %v12171_v18  ;;  %v13549_v11 = vpack.c.bf16 %v384_v7, %v381_v6  ;;  %v387_v18 = vld [vmem:[%s13235_s8 + $0x2b0] sm:$0xff]  ;;  %v12192_v7 = vld [vmem:[#allocation5 + $0x73c] ss:$48 sps:$4 sm:$0xff]  }
 0x19f   : > { %v13557_v26 = vpack.c.bf16 %v390_v20, %v387_v18  ;;  %v12187_v6 = vld [vmem:[#allocation5 + $0x6d0] ss:$48 sps:$4 sm:$0xff]   ;;  %v12195_v18 = vld [vmem:[#allocation5 + $0x734] ss:$48 sps:$4 sm:$0xff]   ;;  %v12190_v20 = vld [vmem:[#allocation5 + $0x738] ss:$48 sps:$4 sm:$0xff]  }
 0x1a1   : > { %3426 = vmatpush1.bf16.msra.mxu1 %v12166_v27  ;;  %3040 = vmatpush1.bf16.msra.mxu0 %v12169_v28  ;;  %v393_v27 = vld [vmem:[%s13235_s8 + $0x2e0] sm:$0xff]  ;;  %v396_v28 = vld [vmem:[%s13235_s8 + $0x2f8] sm:$0xff] }
 0x1a2   : > { %3588 = vmatprep.subr.bf16.mxu1 %v12174_v33  ;;  %3202 = vmatprep.subr.bf16.mxu0 %v12177_v34  ;;  %v13565_v33 = vpack.c.bf16 %v396_v28, %v393_v27  ;;  %v12172_v34 = vld [vmem:[#allocation5 + $0x618] ss:$48 sps:$4 sm:$0xff]   ;;  %v12193_v27 = vld [vmem:[#allocation5 + $0x730] ss:$48 sps:$4 sm:$0xff]   ;;  %v12198_v28 = vld [vmem:[#allocation5 + $0x79c] ss:$48 sps:$4 sm:$0xff]  }
 0x1a3   : > { %2543 = vmatmul.mubr.bf16.gmra.mrb[32].mxu0 %v13509_v35  ;;  %2929 = vmatmul.mubr.bf16.gmra.mrb[32].mxu1 %v13509_v35 }
 0x1a4   : > { %2552 = vmatprep.mubr.bf16.mxu0 %v15772_v21  ;;  %2938 = vmatprep.mubr.bf16.mxu1 %v15772_v21 }
 0x1ab   : > { %2553 = vmatmul.mubr.bf16.gmra.mrb[36].mxu0 %v13517_v43  ;;  %2939 = vmatmul.mubr.bf16.gmra.mrb[36].mxu1 %v13517_v43 }
 0x1ac   : > { %2562 = vmatprep.mubr.bf16.mxu0 %v15772_v21  ;;  %2948 = vmatprep.mubr.bf16.mxu1 %v15772_v21 }
 0x1b3   : > { %2563 = vmatmul.mubr.bf16.gmra.mrb[40].mxu0 %v13525_v49  ;;  %2949 = vmatmul.mubr.bf16.gmra.mrb[40].mxu1 %v13525_v49 }
 0x1b4   : > { %2572 = vmatprep.mubr.bf16.mxu0 %v15772_v21  ;;  %2958 = vmatprep.mubr.bf16.mxu1 %v15772_v21 }
 0x1bb   : > { %2573 = vmatmul.mubr.bf16.gmra.mrb[44].mxu0 %v13533_v58  ;;  %2959 = vmatmul.mubr.bf16.gmra.mrb[44].mxu1 %v13533_v58 }
 0x1bc   : > { %2582 = vmatprep.mubr.bf16.mxu0 %v15772_v21  ;;  %2968 = vmatprep.mubr.bf16.mxu1 %v15772_v21 }
 0x1c3   : > { %2583 = vmatmul.mubr.bf16.gmra.mrb[48].mxu0 %v13541_v63  ;;  %2969 = vmatmul.mubr.bf16.gmra.mrb[48].mxu1 %v13541_v63 }
 0x1c4   : > { %2592 = vmatprep.mubr.bf16.mxu0 %v15772_v21  ;;  %2978 = vmatprep.mubr.bf16.mxu1 %v15772_v21 }
 0x1cb   : > { %2593 = vmatmul.mubr.bf16.gmra.mrb[52].mxu0 %v13549_v11  ;;  %2979 = vmatmul.mubr.bf16.gmra.mrb[52].mxu1 %v13549_v11 }
 0x1cc   : > { %2602 = vmatprep.mubr.bf16.mxu0 %v15772_v21  ;;  %2988 = vmatprep.mubr.bf16.mxu1 %v15772_v21 }
 0x1d3   : > { %2603 = vmatmul.mubr.bf16.gmra.mrb[56].mxu0 %v13557_v26  ;;  %2989 = vmatmul.mubr.bf16.gmra.mrb[56].mxu1 %v13557_v26 }
 0x1d4   : > { %2612 = vmatprep.mubr.bf16.mxu0 %v15772_v21  ;;  %2998 = vmatprep.mubr.bf16.mxu1 %v15772_v21 }
 0x1db   : > { %2613 = vmatmul.mubr.bf16.gmra.mrb[60].mxu0 %v13565_v33  ;;  %2999 = vmatmul.mubr.bf16.gmra.mrb[60].mxu1 %v13565_v33 }
 0x1dc   : > { %3041 = vmatprep.mubr.bf16.mxu0 %v13251_v51  ;;  %3427 = vmatprep.mubr.bf16.mxu1 %v13251_v51 }
 0x1e3   : > { %3042 = vmatmul.mubr.bf16.vlgmr.msra.gmra.mrb[64].mxu0 %v13259_v9  ;;  %3428 = vmatmul.mubr.bf16.vlgmr.msra.gmra.mrb[64].mxu1 %v13259_v9 }
 0x1e4   : > { %3589 = vmatpush1.bf16.msra.mxu1 %v12172_v34  ;;  %3203 = vmatpush1.bf16.msra.mxu0 %v12175_v40  ;;  %v12201_v34 = vld [vmem:[#allocation5 + $0x794] ss:$48 sps:$4 sm:$0xff]   ;;  %v12196_v40 = vld [vmem:[#allocation5 + $0x798] ss:$48 sps:$4 sm:$0xff]  }
 0x1e5   : > { %3051 = vmatprep.mubr.bf16.mxu0 %v13261_v12  ;;  %3437 = vmatprep.mubr.bf16.mxu1 %v13261_v12 }
 0x1e6   : > { %3590 = vmatprep.subr.bf16.mxu1 %v12180_v41  ;;  %3204 = vmatprep.subr.bf16.mxu0 %v12183_v47  ;;  %v12199_v41 = vld [vmem:[#allocation5 + $0x790] ss:$48 sps:$4 sm:$0xff]   ;;  %v12204_v47 = vld [vmem:[#allocation5 + $0x7fc] ss:$48 sps:$4 sm:$0xff]  }
 0x1e8   : > { %3591 = vmatpush1.bf16.msra.mxu1 %v12178_v48  ;;  %3205 = vmatpush1.bf16.msra.mxu0 %v12181_v56  ;;  %v12207_v48 = vld [vmem:[#allocation5 + $0x7f4] ss:$48 sps:$4 sm:$0xff]   ;;  %v12202_v56 = vld [vmem:[#allocation5 + $0x7f8] ss:$48 sps:$4 sm:$0xff]  }
 0x1e9   : > { %3592 = vmatprep.subr.bf16.mxu1 %v12186_v57  ;;  %3206 = vmatprep.subr.bf16.mxu0 %v12189_v61  ;;  %v12205_v57 = vld [vmem:[#allocation5 + $0x7f0] ss:$48 sps:$4 sm:$0xff]   ;;  %v12210_v61 = vld [vmem:[#allocation5 + $0x85c] ss:$48 sps:$4 sm:$0xff]  }
 0x1eb   : > { %3052 = vmatmul.mubr.bf16.gmra.mrb[68].mxu0 %v13271_v23  ;;  %3438 = vmatmul.mubr.bf16.gmra.mrb[68].mxu1 %v13271_v23 }
 0x1ec   : > { %3061 = vmatprep.mubr.bf16.mxu0 %v13273_v24  ;;  %3447 = vmatprep.mubr.bf16.mxu1 %v13273_v24 }
 0x1ed   : > { %3593 = vmatpush1.bf16.msra.mxu1 %v12184_v62  ;;  %3207 = vmatpush1.bf16.msra.mxu0 %v12187_v6  ;;  %v12213_v62 = vld [vmem:[#allocation5 + $0x854] ss:$48 sps:$4 sm:$0xff]   ;;  %v12208_v6 = vld [vmem:[#allocation5 + $0x858] ss:$48 sps:$4 sm:$0xff]  }
 0x1ee   : > { %3594 = vmatprep.subr.bf16.mxu1 %v12192_v7  ;;  %3208 = vmatprep.subr.bf16.mxu0 %v12195_v18  ;;  %v12211_v7 = vld [vmem:[#allocation5 + $0x850] ss:$48 sps:$4 sm:$0xff]   ;;  %v12216_v18 = vld [vmem:[#allocation5 + $0x8bc] ss:$48 sps:$4 sm:$0xff]  }
 0x1f1   : > { %3595 = vmatpush1.bf16.msra.mxu1 %v12190_v20  ;;  %3209 = vmatpush1.bf16.msra.mxu0 %v12193_v27  ;;  %v12219_v20 = vld [vmem:[#allocation5 + $0x8b4] ss:$48 sps:$4 sm:$0xff]   ;;  %v12214_v27 = vld [vmem:[#allocation5 + $0x8b8] ss:$48 sps:$4 sm:$0xff]  }
 0x1f2   : > { %3596 = vmatprep.subr.bf16.mxu1 %v12198_v28  ;;  %3210 = vmatprep.subr.bf16.mxu0 %v12201_v34  ;;  %v12217_v28 = vld [vmem:[#allocation5 + $0x8b0] ss:$48 sps:$4 sm:$0xff]   ;;  %v12222_v34 = vld [vmem:[#allocation5 + $0x2c] ss:$48 sps:$4 sm:$0xff]  }
 0x1f3   : > { %3062 = vmatmul.mubr.bf16.gmra.mrb[72].mxu0 %v13283_v37  ;;  %3448 = vmatmul.mubr.bf16.gmra.mrb[72].mxu1 %v13283_v37 }
 0x1f4   : > { %3071 = vmatprep.mubr.bf16.mxu0 %v13285_v38  ;;  %3457 = vmatprep.mubr.bf16.mxu1 %v13285_v38 }
 0x1f5   : > { %3597 = vmatpush1.bf16.msra.mxu1 %v12196_v40  ;;  %3211 = vmatpush1.bf16.msra.mxu0 %v12199_v41  ;;  %v12225_v40 = vld [vmem:[#allocation5 + $0x24] ss:$48 sps:$4 sm:$0xff]   ;;  %v737_v41 = vlaneseq }
 0x1f6   : > { %3598 = vmatprep.subr.bf16.mxu1 %v12204_v47  ;;  %3212 = vmatprep.subr.bf16.mxu0 %v12207_v48 }
 0x1f7   : > { %v13609_v47 = vshrl.u32 %v737_v41, 7 }
 0x1f9   : > { %3599 = vmatpush1.bf16.msra.mxu1 %v12202_v56  ;;  %3213 = vmatpush1.bf16.msra.mxu0 %v12205_v57  ;;  %15982 = vst [vmem:[#allocation29_spill] sm:$0xff] %v13609_v47  ;;  %v13614_v48 = vsub.s32 0, %v13609_v47  ;;  %v13617_v56 = vsub.s32 2, %v13609_v47  ;;  %v733_v57 = vld [vmem:[#allocation7] sm:$0xff] }
 0x1fa   : > { %3600 = vmatprep.subr.bf16.mxu1 %v12210_v61  ;;  %3214 = vmatprep.subr.bf16.mxu0 %v12213_v62  ;;  %v13620_v61 = vsub.s32 1, %v13609_v47  ;;  %v15782_v62 = vsub.s32 3, %v13609_v47 }
 0x1fb   : > { %3072 = vmatmul.mubr.bf16.gmra.mrb[76].mxu0 %v13295_v52  ;;  %3458 = vmatmul.mubr.bf16.gmra.mrb[76].mxu1 %v13295_v52  ;;  %15983 = vst [vmem:[#allocation30_spill] sm:$0xff] %v13614_v48  ;;  %15984 = vst [vmem:[#allocation31_spill] sm:$0xff] %v13617_v56 }
 0x1fc   : > { %3081 = vmatprep.mubr.bf16.mxu0 %v13297_v53  ;;  %3467 = vmatprep.mubr.bf16.mxu1 %v13297_v53  ;;  %15985 = vst [vmem:[#allocation32_spill] sm:$0xff] %v13620_v61 }
 0x1fd   : > { %3601 = vmatpush1.bf16.msra.mxu1 %v12208_v6  ;;  %3215 = vmatpush1.bf16.msra.mxu0 %v12211_v7  ;;  %v13626_v6 = vrot.slane %v733_v57, %v13614_v48  ;;  %v13629_v7 = vrot.slane %v733_v57, %v13617_v56 }
 0x1fe   : > { %3602 = vmatprep.subr.bf16.mxu1 %v12216_v18  ;;  %3216 = vmatprep.subr.bf16.mxu0 %v12219_v20  ;;  %v13632_v18 = vrot.slane %v733_v57, %v13620_v61  ;;  %v13636_v20 = vrot.slane %v733_v57, %v15782_v62 }
 0x201   : > { %3603 = vmatpush1.bf16.msra.mxu1 %v12214_v27  ;;  %3217 = vmatpush1.bf16.msra.mxu0 %v12217_v28 }
 0x202   : > { %4167 = vmatprep.subr.bf16.mxu1 %v12222_v34  ;;  %3781 = vmatprep.subr.bf16.mxu0 %v12225_v40 }
 0x203   : > { %3082 = vmatmul.mubr.bf16.gmra.mrb[80].mxu0 %v13307_v2  ;;  %3468 = vmatmul.mubr.bf16.gmra.mrb[80].mxu1 %v13307_v2 }
 0x204   : > { %3091 = vmatprep.mubr.bf16.mxu0 %v13309_v3  ;;  %3477 = vmatprep.mubr.bf16.mxu1 %v13309_v3 }
 0x20b   : > { %3092 = vmatmul.mubr.bf16.gmra.mrb[84].mxu0 %v13319_v8  ;;  %3478 = vmatmul.mubr.bf16.gmra.mrb[84].mxu1 %v13319_v8 }
 0x20c   : > { %3101 = vmatprep.mubr.bf16.mxu0 %v13321_v10  ;;  %3487 = vmatprep.mubr.bf16.mxu1 %v13321_v10 }
 0x213   : > { %3102 = vmatmul.mubr.bf16.gmra.mrb[88].mxu0 %v13331_v16  ;;  %3488 = vmatmul.mubr.bf16.gmra.mrb[88].mxu1 %v13331_v16 }
 0x214   : > { %3111 = vmatprep.mubr.bf16.mxu0 %v13333_v17  ;;  %3497 = vmatprep.mubr.bf16.mxu1 %v13333_v17 }
 0x21b   : > { %3112 = vmatmul.mubr.bf16.gmra.mrb[92].mxu0 %v13343_v22  ;;  %3498 = vmatmul.mubr.bf16.gmra.mrb[92].mxu1 %v13343_v22 }
 0x21c   : > { %3121 = vmatprep.mubr.bf16.mxu0 %v13345_v25  ;;  %3507 = vmatprep.mubr.bf16.mxu1 %v13345_v25 }
 0x223   : > { %3122 = vmatmul.mubr.bf16.gmra.mrb[96].mxu0 %v13355_v30  ;;  %3508 = vmatmul.mubr.bf16.gmra.mrb[96].mxu1 %v13355_v30 }
 0x224   : > { %3131 = vmatprep.mubr.bf16.mxu0 %v13357_v31  ;;  %3517 = vmatprep.mubr.bf16.mxu1 %v13357_v31 }
 0x22b   : > { %3132 = vmatmul.mubr.bf16.gmra.mrb[100].mxu0 %v13367_v36  ;;  %3518 = vmatmul.mubr.bf16.gmra.mrb[100].mxu1 %v13367_v36 }
 0x22c   : > { %3141 = vmatprep.mubr.bf16.mxu0 %v13369_v39  ;;  %3527 = vmatprep.mubr.bf16.mxu1 %v13369_v39 }
 0x233   : > { %3142 = vmatmul.mubr.bf16.gmra.mrb[104].mxu0 %v13379_v44  ;;  %3528 = vmatmul.mubr.bf16.gmra.mrb[104].mxu1 %v13379_v44 }
 0x234   : > { %3151 = vmatprep.mubr.bf16.mxu0 %v13381_v45  ;;  %3537 = vmatprep.mubr.bf16.mxu1 %v13381_v45 }
 0x236   : > { %v2464_v27 = vpop.f32.mrb[0].mxu0  ;;  %v2850_v28 = vpop.f32.mrb[0].mxu1 }
 0x237   : > { %v10680_v34 = vadd.f32 %v2464_v27, %v13626_v6  ;;  %v10744_v40 = vadd.f32 %v2850_v28, %v13629_v7  ;;  %v2466_v41 = vpop.f32.mrb[1].mxu0  ;;  %v2852_v21 = vpop.f32.mrb[1].mxu1 }
 0x238   : > { %v10681_v56 = vadd.f32 %v2466_v41, %v13632_v18  ;;  %v10745_v61 = vadd.f32 %v2852_v21, %v13636_v20  ;;  %v2468_v48 = vpop.f32.mrb[2].mxu0  ;;  %v2854_v44 = vpop.f32.mrb[2].mxu1 }
 0x239   : > { %v10682_v57 = vadd.f32 %v2468_v48, %v13626_v6  ;;  %v10746_v62 = vadd.f32 %v2854_v44, %v13629_v7  ;;  %v2470_v47 = vpop.f32.mrb[3].mxu0  ;;  %v2856_v45 = vpop.f32.mrb[3].mxu1  ;;  %v4553_v36 = vmax.f32 %v10680_v34, 0.0  ;;  %v4555_v28 = vmax.f32 %v10744_v40, 0.0 }
 0x23a   : > { %v10683_v39 = vadd.f32 %v2470_v47, %v13632_v18  ;;  %v10747_v27 = vadd.f32 %v2856_v45, %v13636_v20  ;;  %v4554_v21 = vmax.f32 %v10681_v56, 0.0  ;;  %v4556_v41 = vmax.f32 %v10745_v61, 0.0 }
 0x23b   : > { %v4565_v31 = vmax.f32 %v10682_v57, 0.0  ;;  %v4567_v30 = vmax.f32 %v10746_v62, 0.0  ;;  %3152 = vmatmul.mubr.bf16.gmra.mrb[108].mxu0 %v13391_v50  ;;  %3538 = vmatmul.mubr.bf16.gmra.mrb[108].mxu1 %v13391_v50 }
 0x23c   : > { %v4566_v25 = vmax.f32 %v10683_v39, 0.0  ;;  %v4568_v48 = vmax.f32 %v10747_v27, 0.0  ;;  %3161 = vmatprep.mubr.bf16.mxu0 %v13393_v54  ;;  %3547 = vmatprep.mubr.bf16.mxu1 %v13393_v54 }
 0x23d   : > { %v13652_v44 = vpack.c.bf16 %v4565_v31, %v4553_v36  ;;  %v13654_v47 = vpack.c.bf16 %v4567_v30, %v4555_v28 }
 0x23e   : > { %v13656_v45 = vpack.c.bf16 %v4566_v25, %v4554_v21  ;;  %v2474_v34 = vpop.f32.mrb[4].mxu0  ;;  %v2860_v62 = vpop.f32.mrb[4].mxu1  ;;  %v13658_v40 = vpack.c.bf16 %v4568_v48, %v4556_v41 }
 0x23f   : > { %15986 = vst [vmem:[#allocation33_spill] sm:$0xff] %v13652_v44  ;;  %15987 = vst [vmem:[#allocation34_spill] sm:$0xff] %v13654_v47  ;;  %v10684_v57 = vadd.f32 %v2474_v34, %v13626_v6  ;;  %v10748_v56 = vadd.f32 %v2860_v62, %v13629_v7  ;;  %v2476_v39 = vpop.f32.mrb[5].mxu0  ;;  %v2862_v61 = vpop.f32.mrb[5].mxu1 }
 0x240   : > { %15988 = vst [vmem:[#allocation35_spill] sm:$0xff] %v13656_v45  ;;  %15989 = vst [vmem:[#allocation36_spill] sm:$0xff] %v13658_v40  ;;  %v10685_v27 = vadd.f32 %v2476_v39, %v13632_v18  ;;  %v10749_v54 = vadd.f32 %v2862_v61, %v13636_v20  ;;  %v2478_v31 = vpop.f32.mrb[6].mxu0  ;;  %v2864_v36 = vpop.f32.mrb[6].mxu1 }
 0x241   : > { %v10686_v30 = vadd.f32 %v2478_v31, %v13626_v6  ;;  %v10750_v25 = vadd.f32 %v2864_v36, %v13629_v7  ;;  %v2480_v28 = vpop.f32.mrb[7].mxu0  ;;  %v2866_v21 = vpop.f32.mrb[7].mxu1  ;;  %v4577_v34 = vmax.f32 %v10684_v57, 0.0  ;;  %v4579_v62 = vmax.f32 %v10748_v56, 0.0 }
 0x242   : > { %v10687_v41 = vadd.f32 %v2480_v28, %v13632_v18  ;;  %v10751_v48 = vadd.f32 %v2866_v21, %v13636_v20  ;;  %v4578_v39 = vmax.f32 %v10685_v27, 0.0  ;;  %v4580_v61 = vmax.f32 %v10749_v54, 0.0 }
 0x243   : > { %v4589_v47 = vmax.f32 %v10686_v30, 0.0  ;;  %v4591_v40 = vmax.f32 %v10750_v25, 0.0  ;;  %3162 = vmatmul.mubr.bf16.gmra.mrb[112].mxu0 %v13403_v59  ;;  %3548 = vmatmul.mubr.bf16.gmra.mrb[112].mxu1 %v13403_v59 }
 0x244   : > { %v4590_v44 = vmax.f32 %v10687_v41, 0.0  ;;  %v4592_v31 = vmax.f32 %v10751_v48, 0.0  ;;  %3171 = vmatprep.mubr.bf16.mxu0 %v13405_v60  ;;  %3557 = vmatprep.mubr.bf16.mxu1 %v13405_v60 }
 0x245   : > { %v13672_v36 = vpack.c.bf16 %v4589_v47, %v4577_v34  ;;  %v13674_v28 = vpack.c.bf16 %v4591_v40, %v4579_v62 }
 0x246   : > { %v13676_v57 = vpack.c.bf16 %v4590_v44, %v4578_v39  ;;  %v2484_v56 = vpop.f32.mrb[8].mxu0  ;;  %v2870_v30 = vpop.f32.mrb[8].mxu1  ;;  %v13678_v25 = vpack.c.bf16 %v4592_v31, %v4580_v61 }
 0x247   : > { %15990 = vst [vmem:[#allocation37_spill] sm:$0xff] %v13672_v36  ;;  %15991 = vst [vmem:[#allocation38_spill] sm:$0xff] %v13674_v28  ;;  %v10688_v21 = vadd.f32 %v2484_v56, %v13626_v6  ;;  %v10752_v54 = vadd.f32 %v2870_v30, %v13629_v7  ;;  %v2486_v27 = vpop.f32.mrb[9].mxu0  ;;  %v2872_v41 = vpop.f32.mrb[9].mxu1 }
 0x248   : > { %15992 = vst [vmem:[#allocation39_spill] sm:$0xff] %v13676_v57  ;;  %15993 = vst [vmem:[#allocation40_spill] sm:$0xff] %v13678_v25  ;;  %v10689_v48 = vadd.f32 %v2486_v27, %v13632_v18  ;;  %v10753_v45 = vadd.f32 %v2872_v41, %v13636_v20  ;;  %v2488_v47 = vpop.f32.mrb[10].mxu0  ;;  %v2874_v34 = vpop.f32.mrb[10].mxu1 }
 0x249   : > { %v10690_v40 = vadd.f32 %v2488_v47, %v13626_v6  ;;  %v10754_v44 = vadd.f32 %v2874_v34, %v13629_v7  ;;  %v2490_v62 = vpop.f32.mrb[11].mxu0  ;;  %v2876_v39 = vpop.f32.mrb[11].mxu1  ;;  %v4601_v56 = vmax.f32 %v10688_v21, 0.0  ;;  %v4603_v30 = vmax.f32 %v10752_v54, 0.0 }
 0x24a   : > { %v10691_v61 = vadd.f32 %v2490_v62, %v13632_v18  ;;  %v10755_v31 = vadd.f32 %v2876_v39, %v13636_v20  ;;  %v4602_v27 = vmax.f32 %v10689_v48, 0.0  ;;  %v4604_v41 = vmax.f32 %v10753_v45, 0.0 }
 0x24b   : > { %v4613_v28 = vmax.f32 %v10690_v40, 0.0  ;;  %v4615_v25 = vmax.f32 %v10754_v44, 0.0  ;;  %3172 = vmatmul.mubr.bf16.gmra.mrb[116].mxu0 %v13415_v1  ;;  %3558 = vmatmul.mubr.bf16.gmra.mrb[116].mxu1 %v13415_v1 }
 0x24c   : > { %v4614_v36 = vmax.f32 %v10691_v61, 0.0  ;;  %v4616_v47 = vmax.f32 %v10755_v31, 0.0  ;;  %3181 = vmatprep.mubr.bf16.mxu0 %v13417_v4  ;;  %3567 = vmatprep.mubr.bf16.mxu1 %v13417_v4 }
 0x24d   : > { %v13692_v34 = vpack.c.bf16 %v4613_v28, %v4601_v56  ;;  %v13694_v62 = vpack.c.bf16 %v4615_v25, %v4603_v30 }
 0x24e   : > { %v13696_v21 = vpack.c.bf16 %v4614_v36, %v4602_v27  ;;  %v2494_v54 = vpop.f32.mrb[12].mxu0  ;;  %v2880_v40 = vpop.f32.mrb[12].mxu1  ;;  %v13698_v44 = vpack.c.bf16 %v4616_v47, %v4604_v41 }
 0x24f   : > { %15994 = vst [vmem:[#allocation41_spill] sm:$0xff] %v13692_v34  ;;  %15995 = vst [vmem:[#allocation42_spill] sm:$0xff] %v13694_v62  ;;  %v10692_v39 = vadd.f32 %v2494_v54, %v13626_v6  ;;  %v10756_v45 = vadd.f32 %v2880_v40, %v13629_v7  ;;  %v2496_v48 = vpop.f32.mrb[13].mxu0  ;;  %v2882_v61 = vpop.f32.mrb[13].mxu1 }
 0x250   : > { %15996 = vst [vmem:[#allocation43_spill] sm:$0xff] %v13696_v21  ;;  %15997 = vst [vmem:[#allocation44_spill] sm:$0xff] %v13698_v44  ;;  %v10693_v31 = vadd.f32 %v2496_v48, %v13632_v18  ;;  %v10757_v57 = vadd.f32 %v2882_v61, %v13636_v20  ;;  %v2498_v28 = vpop.f32.mrb[14].mxu0  ;;  %v2884_v56 = vpop.f32.mrb[14].mxu1 }
 0x251   : > { %v10694_v25 = vadd.f32 %v2498_v28, %v13626_v6  ;;  %v10758_v36 = vadd.f32 %v2884_v56, %v13629_v7  ;;  %v2500_v30 = vpop.f32.mrb[15].mxu0  ;;  %v2886_v27 = vpop.f32.mrb[15].mxu1  ;;  %v4625_v54 = vmax.f32 %v10692_v39, 0.0  ;;  %v4627_v40 = vmax.f32 %v10756_v45, 0.0 }
 0x252   : > { %v10695_v41 = vadd.f32 %v2500_v30, %v13632_v18  ;;  %v10759_v47 = vadd.f32 %v2886_v27, %v13636_v20  ;;  %v4626_v48 = vmax.f32 %v10693_v31, 0.0  ;;  %v4628_v61 = vmax.f32 %v10757_v57, 0.0 }
 0x253   : > { %v4637_v62 = vmax.f32 %v10694_v25, 0.0  ;;  %v4639_v44 = vmax.f32 %v10758_v36, 0.0  ;;  %3182 = vmatmul.mubr.bf16.gmra.mrb[120].mxu0 %v13427_v13  ;;  %3568 = vmatmul.mubr.bf16.gmra.mrb[120].mxu1 %v13427_v13 }
 0x254   : > { %v4638_v34 = vmax.f32 %v10695_v41, 0.0  ;;  %v4640_v28 = vmax.f32 %v10759_v47, 0.0  ;;  %3191 = vmatprep.mubr.bf16.mxu0 %v13429_v14  ;;  %3577 = vmatprep.mubr.bf16.mxu1 %v13429_v14  ;;  %v12226_v14 = vld [vmem:[#allocation5 + $0x88] ss:$48 sps:$4 sm:$0xff]  }
 0x255   : > { %v13712_v56 = vpack.c.bf16 %v4637_v62, %v4625_v54  ;;  %v13714_v30 = vpack.c.bf16 %v4639_v44, %v4627_v40 }
 0x256   : > { %v13716_v39 = vpack.c.bf16 %v4638_v34, %v4626_v48  ;;  %v2504_v45 = vpop.f32.mrb[16].mxu0  ;;  %v2890_v25 = vpop.f32.mrb[16].mxu1  ;;  %v13718_v36 = vpack.c.bf16 %v4640_v28, %v4628_v61 }
 0x257   : > { %15998 = vst [vmem:[#allocation45_spill] sm:$0xff] %v13712_v56  ;;  %15999 = vst [vmem:[#allocation46_spill] sm:$0xff] %v13714_v30  ;;  %v10696_v27 = vadd.f32 %v2504_v45, %v13626_v6  ;;  %v10760_v57 = vadd.f32 %v2890_v25, %v13629_v7  ;;  %v2506_v31 = vpop.f32.mrb[17].mxu0  ;;  %v2892_v41 = vpop.f32.mrb[17].mxu1 }
 0x258   : > { %16000 = vst [vmem:[#allocation47_spill] sm:$0xff] %v13716_v39  ;;  %16001 = vst [vmem:[#allocation48_spill] sm:$0xff] %v13718_v36  ;;  %v10697_v47 = vadd.f32 %v2506_v31, %v13632_v18  ;;  %v10761_v21 = vadd.f32 %v2892_v41, %v13636_v20  ;;  %v2508_v62 = vpop.f32.mrb[18].mxu0  ;;  %v2894_v54 = vpop.f32.mrb[18].mxu1  ;;  %v16002_v39 = vmov 0  }
 0x259   : > { %v10698_v44 = vadd.f32 %v2508_v62, %v13626_v6  ;;  %v10762_v34 = vadd.f32 %v2894_v54, %v13629_v7  ;;  %v2510_v40 = vpop.f32.mrb[19].mxu0  ;;  %v2896_v48 = vpop.f32.mrb[19].mxu1  ;;  %v4649_v45 = vmax.f32 %v10696_v27, 0.0  ;;  %v4651_v25 = vmax.f32 %v10760_v57, 0.0 }
 0x25a   : > { %v10699_v61 = vadd.f32 %v2510_v40, %v13632_v18  ;;  %v10763_v28 = vadd.f32 %v2896_v48, %v13636_v20  ;;  %v4650_v31 = vmax.f32 %v10697_v47, 0.0  ;;  %v4652_v41 = vmax.f32 %v10761_v21, 0.0 }
 0x25b   : > { %v4661_v30 = vmax.f32 %v10698_v44, 0.0  ;;  %v4663_v36 = vmax.f32 %v10762_v34, 0.0  ;;  %3192 = vmatmul.mubr.bf16.gmra.mrb[124].mxu0 %v13437_v19  ;;  %3578 = vmatmul.mubr.bf16.gmra.mrb[124].mxu1 %v13437_v19 }
 0x25c   : > { %v4662_v56 = vmax.f32 %v10699_v61, 0.0  ;;  %v4664_v62 = vmax.f32 %v10763_v28, 0.0  ;;  %3234 = vmatprep.mubr.bf16.mxu0 %v16002_v39  ;;  %3620 = vmatprep.mubr.bf16.mxu1 %v16002_v39 }
 0x25d   : > { %v13732_v54 = vpack.c.bf16 %v4661_v30, %v4649_v45  ;;  %v13734_v40 = vpack.c.bf16 %v4663_v36, %v4651_v25  ;;  %v12220_v36 = vld [vmem:[#allocation5 + $0x28] ss:$48 sps:$4 sm:$0xff]   ;;  %v12223_v25 = vld [vmem:[#allocation5 + $0x20] ss:$48 sps:$4 sm:$0xff]  }
 0x25e   : > { %v13736_v27 = vpack.c.bf16 %v4662_v56, %v4650_v31  ;;  %v2514_v57 = vpop.f32.mrb[20].mxu0  ;;  %v2900_v44 = vpop.f32.mrb[20].mxu1  ;;  %v13738_v34 = vpack.c.bf16 %v4664_v62, %v4652_v41 }
 0x25f   : > { %16003 = vst [vmem:[#allocation49_spill] sm:$0xff] %v13732_v54  ;;  %16004 = vst [vmem:[#allocation50_spill] sm:$0xff] %v13734_v40  ;;  %v10700_v48 = vadd.f32 %v2514_v57, %v13626_v6  ;;  %v10764_v21 = vadd.f32 %v2900_v44, %v13629_v7  ;;  %v2516_v47 = vpop.f32.mrb[21].mxu0  ;;  %v2902_v61 = vpop.f32.mrb[21].mxu1  ;;  %v12228_v40 = vld [vmem:[#allocation5 + $0x8c] ss:$48 sps:$4 sm:$0xff]  }
 0x260   : > { %16005 = vst [vmem:[#allocation51_spill] sm:$0xff] %v13736_v27  ;;  %16006 = vst [vmem:[#allocation52_spill] sm:$0xff] %v13738_v34  ;;  %v10701_v28 = vadd.f32 %v2516_v47, %v13632_v18  ;;  %v10765_v19 = vadd.f32 %v2902_v61, %v13636_v20  ;;  %v2518_v30 = vpop.f32.mrb[22].mxu0  ;;  %v2904_v45 = vpop.f32.mrb[22].mxu1  ;;  %v12231_v34 = vld [vmem:[#allocation5 + $0x84] ss:$48 sps:$4 sm:$0xff]  }
 0x261   : > { %v10702_v56 = vadd.f32 %v2518_v30, %v13626_v6  ;;  %v10766_v31 = vadd.f32 %v2904_v45, %v13629_v7  ;;  %v2520_v41 = vpop.f32.mrb[23].mxu0  ;;  %v2906_v62 = vpop.f32.mrb[23].mxu1  ;;  %v4673_v54 = vmax.f32 %v10700_v48, 0.0  ;;  %v4675_v47 = vmax.f32 %v10764_v21, 0.0  ;;  %v12234_v48 = vld [vmem:[#allocation5 + $0xec] ss:$48 sps:$4 sm:$0xff]  }
 0x262   : > { %v10703_v57 = vadd.f32 %v2520_v41, %v13632_v18  ;;  %v10767_v44 = vadd.f32 %v2906_v62, %v13636_v20  ;;  %v4674_v30 = vmax.f32 %v10701_v28, 0.0  ;;  %v4676_v13 = vmax.f32 %v10765_v19, 0.0  ;;  %v12229_v41 = vld [vmem:[#allocation5 + $0x80] ss:$48 sps:$4 sm:$0xff]   ;;  %v12237_v21 = vld [vmem:[#allocation5 + $0xe4] ss:$48 sps:$4 sm:$0xff]  }
 0x263   : > { %v4685_v27 = vmax.f32 %v10702_v56, 0.0  ;;  %v4687_v61 = vmax.f32 %v10766_v31, 0.0  ;;  %3235 = vmatmul.mubr.bf16.vlgmr.msra.gmra.mrb[64].mxu0 %v13445_v29  ;;  %3621 = vmatmul.mubr.bf16.vlgmr.msra.gmra.mrb[64].mxu1 %v13445_v29 }
 0x264   : > { %v4686_v45 = vmax.f32 %v10703_v57, 0.0  ;;  %v4688_v4 = vmax.f32 %v10767_v44, 0.0  ;;  %4168 = vmatpush1.bf16.msra.mxu1 %v12220_v36  ;;  %3782 = vmatpush1.bf16.msra.mxu0 %v12223_v25 }
 0x265   : > { %v13750_v1 = vpack.c.bf16 %v4685_v27, %v4673_v54  ;;  %3244 = vmatprep.mubr.bf16.mxu0 %v16002_v39  ;;  %3630 = vmatprep.mubr.bf16.mxu1 %v16002_v39  ;;  %v13754_v56 = vpack.c.bf16 %v4687_v61, %v4675_v47 }
 0x266   : > { %v13756_v31 = vpack.c.bf16 %v4686_v45, %v4674_v30  ;;  %v2524_v62 = vpop.f32.mrb[24].mxu0  ;;  %v2910_v28 = vpop.f32.mrb[24].mxu1  ;;  %4169 = vmatprep.subr.bf16.mxu1 %v12228_v40  ;;  %3783 = vmatprep.subr.bf16.mxu0 %v12231_v34  ;;  %v13758_v19 = vpack.c.bf16 %v4688_v4, %v4676_v13  ;;  %v12232_v34 = vld [vmem:[#allocation5 + $0xe8] ss:$48 sps:$4 sm:$0xff]   ;;  %v12235_v45 = vld [vmem:[#allocation5 + $0xe0] ss:$48 sps:$4 sm:$0xff]  }
 0x267   : > { %16007 = vst [vmem:[#allocation53_spill] sm:$0xff] %v13750_v1  ;;  %16008 = vst [vmem:[#allocation54_spill] sm:$0xff] %v13754_v56  ;;  %v10704_v36 = vadd.f32 %v2524_v62, %v13626_v6  ;;  %v10768_v54 = vadd.f32 %v2910_v28, %v13629_v7  ;;  %v2526_v27 = vpop.f32.mrb[25].mxu0  ;;  %v2912_v25 = vpop.f32.mrb[25].mxu1 }
 0x268   : > { %16009 = vst [vmem:[#allocation55_spill] sm:$0xff] %v13756_v31  ;;  %16010 = vst [vmem:[#allocation56_spill] sm:$0xff] %v13758_v19  ;;  %v10705_v57 = vadd.f32 %v2526_v27, %v13632_v18  ;;  %v10769_v44 = vadd.f32 %v2912_v25, %v13636_v20  ;;  %v2528_v47 = vpop.f32.mrb[26].mxu0  ;;  %v2914_v61 = vpop.f32.mrb[26].mxu1  ;;  %4170 = vmatpush1.bf16.msra.mxu1 %v12226_v14  ;;  %3784 = vmatpush1.bf16.msra.mxu0 %v12229_v41  ;;  %v12240_v27 = vld [vmem:[#allocation5 + $0x14c] ss:$48 sps:$4 sm:$0xff]  }
 0x269   : > { %v10706_v30 = vadd.f32 %v2528_v47, %v13626_v6  ;;  %v10770_v40 = vadd.f32 %v2914_v61, %v13629_v7  ;;  %v2530_v4 = vpop.f32.mrb[27].mxu0  ;;  %v2916_v13 = vpop.f32.mrb[27].mxu1  ;;  %4171 = vmatprep.subr.bf16.mxu1 %v12234_v48  ;;  %3785 = vmatprep.subr.bf16.mxu0 %v12237_v21  ;;  %v12243_v25 = vld [vmem:[#allocation5 + $0x144] ss:$48 sps:$4 sm:$0xff]   ;;  %v4697_v56 = vmax.f32 %v10704_v36, 0.0  ;;  %v4699_v19 = vmax.f32 %v10768_v54, 0.0 }
 0x26a   : > { %v10707_v62 = vadd.f32 %v2530_v4, %v13632_v18  ;;  %v10771_v28 = vadd.f32 %v2916_v13, %v13636_v20  ;;  %v4698_v47 = vmax.f32 %v10705_v57, 0.0  ;;  %v4700_v61 = vmax.f32 %v10769_v44, 0.0  ;;  %v12238_v36 = vld [vmem:[#allocation5 + $0x148] ss:$48 sps:$4 sm:$0xff]   ;;  %v12241_v54 = vld [vmem:[#allocation5 + $0x140] ss:$48 sps:$4 sm:$0xff]  }
 0x26b   : > { %v4709_v14 = vmax.f32 %v10706_v30, 0.0  ;;  %v4711_v41 = vmax.f32 %v10770_v40, 0.0  ;;  %3245 = vmatmul.mubr.bf16.gmra.mrb[68].mxu0 %v13453_v46  ;;  %3631 = vmatmul.mubr.bf16.gmra.mrb[68].mxu1 %v13453_v46  ;;  %v12246_v57 = vld [vmem:[#allocation5 + $0x1ac] ss:$48 sps:$4 sm:$0xff]   ;;  %v12249_v44 = vld [vmem:[#allocation5 + $0x1a4] ss:$48 sps:$4 sm:$0xff]  }
 0x26c   : > { %v4710_v1 = vmax.f32 %v10707_v62, 0.0  ;;  %v4712_v48 = vmax.f32 %v10771_v28, 0.0  ;;  %3254 = vmatprep.mubr.bf16.mxu0 %v16002_v39  ;;  %3640 = vmatprep.mubr.bf16.mxu1 %v16002_v39 }
 0x26d   : > { %v13772_v21 = vpack.c.bf16 %v4709_v14, %v4697_v56  ;;  %4172 = vmatpush1.bf16.msra.mxu1 %v12232_v34  ;;  %3786 = vmatpush1.bf16.msra.mxu0 %v12235_v45  ;;  %v13774_v30 = vpack.c.bf16 %v4711_v41, %v4699_v19 }
 0x26e   : > { %v13776_v40 = vpack.c.bf16 %v4710_v1, %v4698_v47  ;;  %v2534_v4 = vpop.f32.mrb[28].mxu0  ;;  %v2920_v13 = vpop.f32.mrb[28].mxu1  ;;  %4173 = vmatprep.subr.bf16.mxu1 %v12240_v27  ;;  %3787 = vmatprep.subr.bf16.mxu0 %v12243_v25  ;;  %v13778_v62 = vpack.c.bf16 %v4712_v48, %v4700_v61  ;;  %v12244_v61 = vld [vmem:[#allocation5 + $0x1a8] ss:$48 sps:$4 sm:$0xff]   ;;  %v12247_v48 = vld [vmem:[#allocation5 + $0x1a0] ss:$48 sps:$4 sm:$0xff]  }
 0x26f   : > { %16011 = vst [vmem:[#allocation57_spill] sm:$0xff] %v13772_v21  ;;  %16012 = vst [vmem:[#allocation58_spill] sm:$0xff] %v13774_v30  ;;  %v10708_v28 = vadd.f32 %v2534_v4, %v13626_v6  ;;  %v10772_v56 = vadd.f32 %v2920_v13, %v13629_v7  ;;  %v2536_v34 = vpop.f32.mrb[29].mxu0  ;;  %v2922_v45 = vpop.f32.mrb[29].mxu1 }
 0x270   : > { %16013 = vst [vmem:[#allocation59_spill] sm:$0xff] %v13776_v40  ;;  %16014 = vst [vmem:[#allocation60_spill] sm:$0xff] %v13778_v62  ;;  %v10709_v14 = vadd.f32 %v2536_v34, %v13632_v18  ;;  %v10773_v19 = vadd.f32 %v2922_v45, %v13636_v20  ;;  %v2538_v1 = vpop.f32.mrb[30].mxu0  ;;  %v2924_v41 = vpop.f32.mrb[30].mxu1  ;;  %v12252_v34 = vld [vmem:[#allocation5 + $0x20c] ss:$48 sps:$4 sm:$0xff]  }
 0x271   : > { %v10710_v47 = vadd.f32 %v2538_v1, %v13626_v6  ;;  %v10774_v27 = vadd.f32 %v2924_v41, %v13629_v7  ;;  %v2540_v25 = vpop.f32.mrb[31].mxu0  ;;  %v2926_v30 = vpop.f32.mrb[31].mxu1  ;;  %4174 = vmatpush1.bf16.msra.mxu1 %v12238_v36  ;;  %3788 = vmatpush1.bf16.msra.mxu0 %v12241_v54  ;;  %v12255_v45 = vld [vmem:[#allocation5 + $0x204] ss:$48 sps:$4 sm:$0xff]   ;;  %v4721_v62 = vmax.f32 %v10708_v28, 0.0  ;;  %v4723_v21 = vmax.f32 %v10772_v56, 0.0 }
 0x272   : > { %v10711_v4 = vadd.f32 %v2540_v25, %v13632_v18  ;;  %v10775_v13 = vadd.f32 %v2926_v30, %v13636_v20  ;;  %4175 = vmatprep.subr.bf16.mxu1 %v12246_v57  ;;  %3789 = vmatprep.subr.bf16.mxu0 %v12249_v44  ;;  %v4722_v36 = vmax.f32 %v10709_v14, 0.0  ;;  %v4724_v54 = vmax.f32 %v10773_v19, 0.0  ;;  %v12250_v57 = vld [vmem:[#allocation5 + $0x208] ss:$48 sps:$4 sm:$0xff]   ;;  %v12253_v44 = vld [vmem:[#allocation5 + $0x200] ss:$48 sps:$4 sm:$0xff]  }
 0x273   : > { %v4733_v40 = vmax.f32 %v10710_v47, 0.0  ;;  %v4735_v1 = vmax.f32 %v10774_v27, 0.0  ;;  %3255 = vmatmul.mubr.bf16.gmra.mrb[72].mxu0 %v13461_v0  ;;  %3641 = vmatmul.mubr.bf16.gmra.mrb[72].mxu1 %v13461_v0  ;;  %v12258_v14 = vld [vmem:[#allocation5 + $0x26c] ss:$48 sps:$4 sm:$0xff]   ;;  %v12261_v19 = vld [vmem:[#allocation5 + $0x264] ss:$48 sps:$4 sm:$0xff]  }
 0x274   : > { %v4734_v41 = vmax.f32 %v10711_v4, 0.0  ;;  %v4736_v31 = vmax.f32 %v10775_v13, 0.0  ;;  %3264 = vmatprep.mubr.bf16.mxu0 %v16002_v39  ;;  %3650 = vmatprep.mubr.bf16.mxu1 %v16002_v39 }
 0x275   : > { %v13792_v30 = vpack.c.bf16 %v4733_v40, %v4721_v62  ;;  %4176 = vmatpush1.bf16.msra.mxu1 %v12244_v61  ;;  %3790 = vmatpush1.bf16.msra.mxu0 %v12247_v48  ;;  %v13794_v28 = vpack.c.bf16 %v4735_v1, %v4723_v21 }
 0x276   : > { %v13796_v56 = vpack.c.bf16 %v4734_v41, %v4722_v36  ;;  %v2544_v47 = vpop.f32.mrb[32].mxu0  ;;  %v2930_v27 = vpop.f32.mrb[32].mxu1  ;;  %4177 = vmatprep.subr.bf16.mxu1 %v12252_v34  ;;  %3791 = vmatprep.subr.bf16.mxu0 %v12255_v45  ;;  %v13798_v25 = vpack.c.bf16 %v4736_v31, %v4724_v54  ;;  %v12256_v31 = vld [vmem:[#allocation5 + $0x268] ss:$48 sps:$4 sm:$0xff]   ;;  %v12259_v54 = vld [vmem:[#allocation5 + $0x260] ss:$48 sps:$4 sm:$0xff]  }
 0x277   : > { %16015 = vst [vmem:[#allocation61_spill] sm:$0xff] %v13792_v30  ;;  %16016 = vst [vmem:[#allocation62_spill] sm:$0xff] %v13794_v28  ;;  %v10712_v4 = vadd.f32 %v2544_v47, %v13626_v6  ;;  %v10776_v40 = vadd.f32 %v2930_v27, %v13629_v7  ;;  %v2546_v62 = vpop.f32.mrb[33].mxu0  ;;  %v2932_v61 = vpop.f32.mrb[33].mxu1 }
 0x278   : > { %16017 = vst [vmem:[#allocation63_spill] sm:$0xff] %v13796_v56  ;;  %16018 = vst [vmem:[#allocation64_spill] sm:$0xff] %v13798_v25  ;;  %v10713_v48 = vadd.f32 %v2546_v62, %v13632_v18  ;;  %v10777_v21 = vadd.f32 %v2932_v61, %v13636_v20  ;;  %v2548_v13 = vpop.f32.mrb[34].mxu0  ;;  %v2934_v1 = vpop.f32.mrb[34].mxu1  ;;  %v12264_v62 = vld [vmem:[#allocation5 + $0x2cc] ss:$48 sps:$4 sm:$0xff]  }
 0x279   : > { %v10714_v36 = vadd.f32 %v2548_v13, %v13626_v6  ;;  %v10778_v34 = vadd.f32 %v2934_v1, %v13629_v7  ;;  %v2550_v45 = vpop.f32.mrb[35].mxu0  ;;  %v2936_v41 = vpop.f32.mrb[35].mxu1  ;;  %4178 = vmatpush1.bf16.msra.mxu1 %v12250_v57  ;;  %3792 = vmatpush1.bf16.msra.mxu0 %v12253_v44  ;;  %v12267_v61 = vld [vmem:[#allocation5 + $0x2c4] ss:$48 sps:$4 sm:$0xff]   ;;  %v4745_v28 = vmax.f32 %v10712_v4, 0.0  ;;  %v4747_v25 = vmax.f32 %v10776_v40, 0.0 }
 0x27a   : > { %v10715_v47 = vadd.f32 %v2550_v45, %v13632_v18  ;;  %v10779_v27 = vadd.f32 %v2936_v41, %v13636_v20  ;;  %4179 = vmatprep.subr.bf16.mxu1 %v12258_v14  ;;  %3793 = vmatprep.subr.bf16.mxu0 %v12261_v19  ;;  %v4746_v57 = vmax.f32 %v10713_v48, 0.0  ;;  %v4748_v44 = vmax.f32 %v10777_v21, 0.0  ;;  %v12262_v19 = vld [vmem:[#allocation5 + $0x2c8] ss:$48 sps:$4 sm:$0xff]   ;;  %v12265_v4 = vld [vmem:[#allocation5 + $0x2c0] ss:$48 sps:$4 sm:$0xff]  }
 0x27b   : > { %v4757_v30 = vmax.f32 %v10714_v36, 0.0  ;;  %v4759_v13 = vmax.f32 %v10778_v34, 0.0  ;;  %3265 = vmatmul.mubr.bf16.gmra.mrb[76].mxu0 %v13469_v32  ;;  %3651 = vmatmul.mubr.bf16.gmra.mrb[76].mxu1 %v13469_v32  ;;  %v12270_v48 = vld [vmem:[#allocation5 + $0x32c] ss:$48 sps:$4 sm:$0xff]   ;;  %v12273_v21 = vld [vmem:[#allocation5 + $0x324] ss:$48 sps:$4 sm:$0xff]  }
 0x27c   : > { %v4758_v1 = vmax.f32 %v10715_v47, 0.0  ;;  %v4760_v56 = vmax.f32 %v10779_v27, 0.0  ;;  %3274 = vmatprep.mubr.bf16.mxu0 %v16002_v39  ;;  %3660 = vmatprep.mubr.bf16.mxu1 %v16002_v39 }
 0x27d   : > { %v13812_v14 = vpack.c.bf16 %v4757_v30, %v4745_v28  ;;  %4180 = vmatpush1.bf16.msra.mxu1 %v12256_v31  ;;  %3794 = vmatpush1.bf16.msra.mxu0 %v12259_v54  ;;  %v13814_v40 = vpack.c.bf16 %v4759_v13, %v4747_v25 }
 0x27e   : > { %v13816_v36 = vpack.c.bf16 %v4758_v1, %v4746_v57  ;;  %v2554_v34 = vpop.f32.mrb[36].mxu0  ;;  %v2940_v45 = vpop.f32.mrb[36].mxu1  ;;  %4181 = vmatprep.subr.bf16.mxu1 %v12264_v62  ;;  %3795 = vmatprep.subr.bf16.mxu0 %v12267_v61  ;;  %v13818_v41 = vpack.c.bf16 %v4760_v56, %v4748_v44  ;;  %v12268_v56 = vld [vmem:[#allocation5 + $0x328] ss:$48 sps:$4 sm:$0xff]   ;;  %v12271_v44 = vld [vmem:[#allocation5 + $0x320] ss:$48 sps:$4 sm:$0xff]  }
 0x27f   : > { %16019 = vst [vmem:[#allocation65_spill] sm:$0xff] %v13812_v14  ;;  %16020 = vst [vmem:[#allocation66_spill] sm:$0xff] %v13814_v40  ;;  %v10716_v47 = vadd.f32 %v2554_v34, %v13626_v6  ;;  %v10780_v30 = vadd.f32 %v2940_v45, %v13629_v7  ;;  %v2556_v28 = vpop.f32.mrb[37].mxu0  ;;  %v2942_v31 = vpop.f32.mrb[37].mxu1 }
 0x280   : > { %16021 = vst [vmem:[#allocation67_spill] sm:$0xff] %v13816_v36  ;;  %16022 = vst [vmem:[#allocation68_spill] sm:$0xff] %v13818_v41  ;;  %v10717_v54 = vadd.f32 %v2556_v28, %v13632_v18  ;;  %v10781_v25 = vadd.f32 %v2942_v31, %v13636_v20  ;;  %v2558_v27 = vpop.f32.mrb[38].mxu0  ;;  %v2944_v13 = vpop.f32.mrb[38].mxu1  ;;  %v12276_v28 = vld [vmem:[#allocation5 + $0x38c] ss:$48 sps:$4 sm:$0xff]  }
 0x281   : > { %v10718_v57 = vadd.f32 %v2558_v27, %v13626_v6  ;;  %v10782_v62 = vadd.f32 %v2944_v13, %v13629_v7  ;;  %v2560_v61 = vpop.f32.mrb[39].mxu0  ;;  %v2946_v1 = vpop.f32.mrb[39].mxu1  ;;  %4182 = vmatpush1.bf16.msra.mxu1 %v12262_v19  ;;  %3796 = vmatpush1.bf16.msra.mxu0 %v12265_v4  ;;  %v12279_v31 = vld [vmem:[#allocation5 + $0x384] ss:$48 sps:$4 sm:$0xff]   ;;  %v4769_v40 = vmax.f32 %v10716_v47, 0.0  ;;  %v4771_v41 = vmax.f32 %v10780_v30, 0.0 }
 0x282   : > { %v10719_v34 = vadd.f32 %v2560_v61, %v13632_v18  ;;  %v10783_v45 = vadd.f32 %v2946_v1, %v13636_v20  ;;  %4183 = vmatprep.subr.bf16.mxu1 %v12270_v48  ;;  %3797 = vmatprep.subr.bf16.mxu0 %v12273_v21  ;;  %v4770_v19 = vmax.f32 %v10717_v54, 0.0  ;;  %v4772_v4 = vmax.f32 %v10781_v25, 0.0  ;;  %v12274_v21 = vld [vmem:[#allocation5 + $0x388] ss:$48 sps:$4 sm:$0xff]   ;;  %v12277_v47 = vld [vmem:[#allocation5 + $0x380] ss:$48 sps:$4 sm:$0xff]  }
 0x283   : > { %v4781_v14 = vmax.f32 %v10718_v57, 0.0  ;;  %v4783_v27 = vmax.f32 %v10782_v62, 0.0  ;;  %3275 = vmatmul.mubr.bf16.gmra.mrb[80].mxu0 %v13477_v55  ;;  %3661 = vmatmul.mubr.bf16.gmra.mrb[80].mxu1 %v13477_v55  ;;  %v12282_v54 = vld [vmem:[#allocation5 + $0x3ec] ss:$48 sps:$4 sm:$0xff]   ;;  %v12285_v25 = vld [vmem:[#allocation5 + $0x3e4] ss:$48 sps:$4 sm:$0xff]  }
 0x284   : > { %v4782_v13 = vmax.f32 %v10719_v34, 0.0  ;;  %v4784_v36 = vmax.f32 %v10783_v45, 0.0  ;;  %3284 = vmatprep.mubr.bf16.mxu0 %v16002_v39  ;;  %3670 = vmatprep.mubr.bf16.mxu1 %v16002_v39 }
 0x285   : > { %v13832_v48 = vpack.c.bf16 %v4781_v14, %v4769_v40  ;;  %4184 = vmatpush1.bf16.msra.mxu1 %v12268_v56  ;;  %3798 = vmatpush1.bf16.msra.mxu0 %v12271_v44  ;;  %v13834_v30 = vpack.c.bf16 %v4783_v27, %v4771_v41 }
 0x286   : > { %v13836_v57 = vpack.c.bf16 %v4782_v13, %v4770_v19  ;;  %v2564_v62 = vpop.f32.mrb[40].mxu0  ;;  %v2950_v61 = vpop.f32.mrb[40].mxu1  ;;  %4185 = vmatprep.subr.bf16.mxu1 %v12276_v28  ;;  %3799 = vmatprep.subr.bf16.mxu0 %v12279_v31  ;;  %v13838_v1 = vpack.c.bf16 %v4784_v36, %v4772_v4  ;;  %v12280_v36 = vld [vmem:[#allocation5 + $0x3e8] ss:$48 sps:$4 sm:$0xff]   ;;  %v12283_v4 = vld [vmem:[#allocation5 + $0x3e0] ss:$48 sps:$4 sm:$0xff]  }
 0x287   : > { %16023 = vst [vmem:[#allocation69_spill] sm:$0xff] %v13832_v48  ;;  %16024 = vst [vmem:[#allocation70_spill] sm:$0xff] %v13834_v30  ;;  %v10720_v34 = vadd.f32 %v2564_v62, %v13626_v6  ;;  %v10784_v14 = vadd.f32 %v2950_v61, %v13629_v7  ;;  %v2566_v40 = vpop.f32.mrb[41].mxu0  ;;  %v2952_v56 = vpop.f32.mrb[41].mxu1 }
 0x288   : > { %16025 = vst [vmem:[#allocation71_spill] sm:$0xff] %v13836_v57  ;;  %16026 = vst [vmem:[#allocation72_spill] sm:$0xff] %v13838_v1  ;;  %v10721_v44 = vadd.f32 %v2566_v40, %v13632_v18  ;;  %v10785_v41 = vadd.f32 %v2952_v56, %v13636_v20  ;;  %v2568_v45 = vpop.f32.mrb[42].mxu0  ;;  %v2954_v27 = vpop.f32.mrb[42].mxu1  ;;  %v12288_v40 = vld [vmem:[#allocation5 + $0x44c] ss:$48 sps:$4 sm:$0xff]  }
 0x289   : > { %v10722_v19 = vadd.f32 %v2568_v45, %v13626_v6  ;;  %v10786_v28 = vadd.f32 %v2954_v27, %v13629_v7  ;;  %v2570_v31 = vpop.f32.mrb[43].mxu0  ;;  %v2956_v13 = vpop.f32.mrb[43].mxu1  ;;  %4186 = vmatpush1.bf16.msra.mxu1 %v12274_v21  ;;  %3800 = vmatpush1.bf16.msra.mxu0 %v12277_v47  ;;  %v12291_v56 = vld [vmem:[#allocation5 + $0x444] ss:$48 sps:$4 sm:$0xff]   ;;  %v4793_v30 = vmax.f32 %v10720_v34, 0.0  ;;  %v4795_v1 = vmax.f32 %v10784_v14, 0.0 }
 0x28a   : > { %v10723_v62 = vadd.f32 %v2570_v31, %v13632_v18  ;;  %v10787_v61 = vadd.f32 %v2956_v13, %v13636_v20  ;;  %4187 = vmatprep.subr.bf16.mxu1 %v12282_v54  ;;  %3801 = vmatprep.subr.bf16.mxu0 %v12285_v25  ;;  %v4794_v21 = vmax.f32 %v10721_v44, 0.0  ;;  %v4796_v47 = vmax.f32 %v10785_v41, 0.0  ;;  %v12286_v25 = vld [vmem:[#allocation5 + $0x448] ss:$48 sps:$4 sm:$0xff]   ;;  %v12289_v34 = vld [vmem:[#allocation5 + $0x440] ss:$48 sps:$4 sm:$0xff]  }
 0x28b   : > { %v4805_v48 = vmax.f32 %v10722_v19, 0.0  ;;  %v4807_v45 = vmax.f32 %v10786_v28, 0.0  ;;  %3285 = vmatmul.mubr.bf16.gmra.mrb[84].mxu0 %v13485_v15  ;;  %3671 = vmatmul.mubr.bf16.gmra.mrb[84].mxu1 %v13485_v15  ;;  %v12294_v44 = vld [vmem:[#allocation5 + $0x4ac] ss:$48 sps:$4 sm:$0xff]   ;;  %v12297_v41 = vld [vmem:[#allocation5 + $0x4a4] ss:$48 sps:$4 sm:$0xff]  }
 0x28c   : > { %v4806_v27 = vmax.f32 %v10723_v62, 0.0  ;;  %v4808_v57 = vmax.f32 %v10787_v61, 0.0  ;;  %3294 = vmatprep.mubr.bf16.mxu0 %v16002_v39  ;;  %3680 = vmatprep.mubr.bf16.mxu1 %v16002_v39 }
 0x28d   : > { %v13852_v54 = vpack.c.bf16 %v4805_v48, %v4793_v30  ;;  %4188 = vmatpush1.bf16.msra.mxu1 %v12280_v36  ;;  %3802 = vmatpush1.bf16.msra.mxu0 %v12283_v4  ;;  %v13854_v14 = vpack.c.bf16 %v4807_v45, %v4795_v1 }
 0x28e   : > { %v13856_v19 = vpack.c.bf16 %v4806_v27, %v4794_v21  ;;  %v2574_v28 = vpop.f32.mrb[44].mxu0  ;;  %v2960_v31 = vpop.f32.mrb[44].mxu1  ;;  %4189 = vmatprep.subr.bf16.mxu1 %v12288_v40  ;;  %3803 = vmatprep.subr.bf16.mxu0 %v12291_v56  ;;  %v13858_v13 = vpack.c.bf16 %v4808_v57, %v4796_v47  ;;  %v12292_v57 = vld [vmem:[#allocation5 + $0x4a8] ss:$48 sps:$4 sm:$0xff]   ;;  %v12295_v47 = vld [vmem:[#allocation5 + $0x4a0] ss:$48 sps:$4 sm:$0xff]  }
 0x28f   : > { %16027 = vst [vmem:[#allocation73_spill] sm:$0xff] %v13852_v54  ;;  %16028 = vst [vmem:[#allocation74_spill] sm:$0xff] %v13854_v14  ;;  %v10724_v62 = vadd.f32 %v2574_v28, %v13626_v6  ;;  %v10788_v48 = vadd.f32 %v2960_v31, %v13629_v7  ;;  %v2576_v30 = vpop.f32.mrb[45].mxu0  ;;  %v2962_v36 = vpop.f32.mrb[45].mxu1 }
 0x290   : > { %16029 = vst [vmem:[#allocation75_spill] sm:$0xff] %v13856_v19  ;;  %16030 = vst [vmem:[#allocation76_spill] sm:$0xff] %v13858_v13  ;;  %v10725_v4 = vadd.f32 %v2576_v30, %v13632_v18  ;;  %v10789_v1 = vadd.f32 %v2962_v36, %v13636_v20  ;;  %v2578_v61 = vpop.f32.mrb[46].mxu0  ;;  %v2964_v45 = vpop.f32.mrb[46].mxu1  ;;  %v12300_v30 = vld [vmem:[#allocation5 + $0x50c] ss:$48 sps:$4 sm:$0xff]  }
 0x291   : > { %v10726_v21 = vadd.f32 %v2578_v61, %v13626_v6  ;;  %v10790_v40 = vadd.f32 %v2964_v45, %v13629_v7  ;;  %v2580_v56 = vpop.f32.mrb[47].mxu0  ;;  %v2966_v27 = vpop.f32.mrb[47].mxu1  ;;  %4190 = vmatpush1.bf16.msra.mxu1 %v12286_v25  ;;  %3804 = vmatpush1.bf16.msra.mxu0 %v12289_v34  ;;  %v12303_v36 = vld [vmem:[#allocation5 + $0x504] ss:$48 sps:$4 sm:$0xff]   ;;  %v4817_v14 = vmax.f32 %v10724_v62, 0.0  ;;  %v4819_v13 = vmax.f32 %v10788_v48, 0.0 }
 0x292   : > { %v10727_v28 = vadd.f32 %v2580_v56, %v13632_v18  ;;  %v10791_v31 = vadd.f32 %v2966_v27, %v13636_v20  ;;  %4191 = vmatprep.subr.bf16.mxu1 %v12294_v44  ;;  %3805 = vmatprep.subr.bf16.mxu0 %v12297_v41  ;;  %v4818_v25 = vmax.f32 %v10725_v4, 0.0  ;;  %v4820_v34 = vmax.f32 %v10789_v1, 0.0  ;;  %v12298_v41 = vld [vmem:[#allocation5 + $0x508] ss:$48 sps:$4 sm:$0xff]   ;;  %v12301_v62 = vld [vmem:[#allocation5 + $0x500] ss:$48 sps:$4 sm:$0xff]  }
 0x293   : > { %v4829_v54 = vmax.f32 %v10726_v21, 0.0  ;;  %v4831_v61 = vmax.f32 %v10790_v40, 0.0  ;;  %3295 = vmatmul.mubr.bf16.gmra.mrb[88].mxu0 %v13493_v42  ;;  %3681 = vmatmul.mubr.bf16.gmra.mrb[88].mxu1 %v13493_v42  ;;  %v12306_v4 = vld [vmem:[#allocation5 + $0x56c] ss:$48 sps:$4 sm:$0xff]   ;;  %v12309_v1 = vld [vmem:[#allocation5 + $0x564] ss:$48 sps:$4 sm:$0xff]  }
 0x294   : > { %v4830_v45 = vmax.f32 %v10727_v28, 0.0  ;;  %v4832_v19 = vmax.f32 %v10791_v31, 0.0  ;;  %3304 = vmatprep.mubr.bf16.mxu0 %v16002_v39  ;;  %3690 = vmatprep.mubr.bf16.mxu1 %v16002_v39 }
 0x295   : > { %v13872_v44 = vpack.c.bf16 %v4829_v54, %v4817_v14  ;;  %4192 = vmatpush1.bf16.msra.mxu1 %v12292_v57  ;;  %3806 = vmatpush1.bf16.msra.mxu0 %v12295_v47  ;;  %v13874_v48 = vpack.c.bf16 %v4831_v61, %v4819_v13 }
 0x296   : > { %v13876_v21 = vpack.c.bf16 %v4830_v45, %v4818_v25  ;;  %v2584_v40 = vpop.f32.mrb[48].mxu0  ;;  %v2970_v56 = vpop.f32.mrb[48].mxu1  ;;  %4193 = vmatprep.subr.bf16.mxu1 %v12300_v30  ;;  %3807 = vmatprep.subr.bf16.mxu0 %v12303_v36  ;;  %v13878_v27 = vpack.c.bf16 %v4832_v19, %v4820_v34  ;;  %v12304_v19 = vld [vmem:[#allocation5 + $0x568] ss:$48 sps:$4 sm:$0xff]   ;;  %v12307_v34 = vld [vmem:[#allocation5 + $0x560] ss:$48 sps:$4 sm:$0xff]  }
 0x297   : > { %16031 = vst [vmem:[#allocation77_spill] sm:$0xff] %v13872_v44  ;;  %16032 = vst [vmem:[#allocation78_spill] sm:$0xff] %v13874_v48  ;;  %v10728_v28 = vadd.f32 %v2584_v40, %v13626_v6  ;;  %v10792_v54 = vadd.f32 %v2970_v56, %v13629_v7  ;;  %v2586_v14 = vpop.f32.mrb[49].mxu0  ;;  %v2972_v57 = vpop.f32.mrb[49].mxu1 }
 0x298   : > { %16033 = vst [vmem:[#allocation79_spill] sm:$0xff] %v13876_v21  ;;  %16034 = vst [vmem:[#allocation80_spill] sm:$0xff] %v13878_v27  ;;  %v10729_v47 = vadd.f32 %v2586_v14, %v13632_v18  ;;  %v10793_v13 = vadd.f32 %v2972_v57, %v13636_v20  ;;  %v2588_v31 = vpop.f32.mrb[50].mxu0  ;;  %v2974_v61 = vpop.f32.mrb[50].mxu1  ;;  %v12312_v14 = vld [vmem:[#allocation5 + $0x5cc] ss:$48 sps:$4 sm:$0xff]  }
 0x299   : > { %v10730_v25 = vadd.f32 %v2588_v31, %v13626_v6  ;;  %v10794_v30 = vadd.f32 %v2974_v61, %v13629_v7  ;;  %v2590_v36 = vpop.f32.mrb[51].mxu0  ;;  %v2976_v45 = vpop.f32.mrb[51].mxu1  ;;  %4194 = vmatpush1.bf16.msra.mxu1 %v12298_v41  ;;  %3808 = vmatpush1.bf16.msra.mxu0 %v12301_v62  ;;  %v12315_v57 = vld [vmem:[#allocation5 + $0x5c4] ss:$48 sps:$4 sm:$0xff]   ;;  %v4841_v48 = vmax.f32 %v10728_v28, 0.0  ;;  %v4843_v27 = vmax.f32 %v10792_v54, 0.0 }
 0x29a   : > { %v10731_v40 = vadd.f32 %v2590_v36, %v13632_v18  ;;  %v10795_v56 = vadd.f32 %v2976_v45, %v13636_v20  ;;  %4195 = vmatprep.subr.bf16.mxu1 %v12306_v4  ;;  %3809 = vmatprep.subr.bf16.mxu0 %v12309_v1  ;;  %v4842_v41 = vmax.f32 %v10729_v47, 0.0  ;;  %v4844_v62 = vmax.f32 %v10793_v13, 0.0  ;;  %v12310_v1 = vld [vmem:[#allocation5 + $0x5c8] ss:$48 sps:$4 sm:$0xff]   ;;  %v12313_v28 = vld [vmem:[#allocation5 + $0x5c0] ss:$48 sps:$4 sm:$0xff]  }
 0x29b   : > { %v4853_v44 = vmax.f32 %v10730_v25, 0.0  ;;  %v4855_v31 = vmax.f32 %v10794_v30, 0.0  ;;  %3305 = vmatmul.mubr.bf16.gmra.mrb[92].mxu0 %v13501_v5  ;;  %3691 = vmatmul.mubr.bf16.gmra.mrb[92].mxu1 %v13501_v5  ;;  %v12318_v47 = vld [vmem:[#allocation5 + $0x62c] ss:$48 sps:$4 sm:$0xff]   ;;  %v12321_v13 = vld [vmem:[#allocation5 + $0x624] ss:$48 sps:$4 sm:$0xff]  }
 0x29c   : > { %v4854_v61 = vmax.f32 %v10731_v40, 0.0  ;;  %v4856_v21 = vmax.f32 %v10795_v56, 0.0  ;;  %3314 = vmatprep.mubr.bf16.mxu0 %v16002_v39  ;;  %3700 = vmatprep.mubr.bf16.mxu1 %v16002_v39 }
 0x29d   : > { %v13892_v4 = vpack.c.bf16 %v4853_v44, %v4841_v48  ;;  %4196 = vmatpush1.bf16.msra.mxu1 %v12304_v19  ;;  %3810 = vmatpush1.bf16.msra.mxu0 %v12307_v34  ;;  %v13894_v54 = vpack.c.bf16 %v4855_v31, %v4843_v27 }
 0x29e   : > { %v13896_v25 = vpack.c.bf16 %v4854_v61, %v4842_v41  ;;  %v2594_v30 = vpop.f32.mrb[52].mxu0  ;;  %v2980_v36 = vpop.f32.mrb[52].mxu1  ;;  %4197 = vmatprep.subr.bf16.mxu1 %v12312_v14  ;;  %3811 = vmatprep.subr.bf16.mxu0 %v12315_v57  ;;  %v13898_v45 = vpack.c.bf16 %v4856_v21, %v4844_v62 }
 0x29f   : > { %16035 = vst [vmem:[#allocation81_spill] sm:$0xff] %v13894_v54  ;;  %v10732_v40 = vadd.f32 %v2594_v30, %v13626_v6  ;;  %v10796_v44 = vadd.f32 %v2980_v36, %v13629_v7  ;;  %v2596_v48 = vpop.f32.mrb[53].mxu0  ;;  %v2982_v19 = vpop.f32.mrb[53].mxu1 }
 0x2a0   : > { %16036 = vst [vmem:[#allocation82_spill] sm:$0xff] %v13898_v45  ;;  %v10733_v34 = vadd.f32 %v2596_v48, %v13632_v18  ;;  %v10797_v27 = vadd.f32 %v2982_v19, %v13636_v20  ;;  %v2598_v56 = vpop.f32.mrb[54].mxu0  ;;  %v2984_v31 = vpop.f32.mrb[54].mxu1 }
 0x2a1   : > { %v10734_v41 = vadd.f32 %v2598_v56, %v13626_v6  ;;  %v10798_v14 = vadd.f32 %v2984_v31, %v13629_v7  ;;  %v2600_v57 = vpop.f32.mrb[55].mxu0  ;;  %v2986_v61 = vpop.f32.mrb[55].mxu1  ;;  %4198 = vmatpush1.bf16.msra.mxu1 %v12310_v1  ;;  %3812 = vmatpush1.bf16.msra.mxu0 %v12313_v28  ;;  %v4865_v30 = vmax.f32 %v10732_v40, 0.0  ;;  %v4867_v36 = vmax.f32 %v10796_v44, 0.0 }
 0x2a2   : > { %v10735_v21 = vadd.f32 %v2600_v57, %v13632_v18  ;;  %v10799_v62 = vadd.f32 %v2986_v61, %v13636_v20  ;;  %4360 = vmatprep.subr.bf16.mxu1 %v12318_v47  ;;  %3974 = vmatprep.subr.bf16.mxu0 %v12321_v13  ;;  %v4866_v56 = vmax.f32 %v10733_v34, 0.0  ;;  %v4868_v31 = vmax.f32 %v10797_v27, 0.0 }
 0x2a3   : > { %v4877_v48 = vmax.f32 %v10734_v41, 0.0  ;;  %v4879_v19 = vmax.f32 %v10798_v14, 0.0  ;;  %3315 = vmatmul.mubr.bf16.gmra.mrb[96].mxu0 %v13509_v35  ;;  %3701 = vmatmul.mubr.bf16.gmra.mrb[96].mxu1 %v13509_v35 }
 0x2a4   : > { %v4878_v54 = vmax.f32 %v10735_v21, 0.0  ;;  %v4880_v45 = vmax.f32 %v10799_v62, 0.0  ;;  %3324 = vmatprep.mubr.bf16.mxu0 %v16002_v39  ;;  %3710 = vmatprep.mubr.bf16.mxu1 %v16002_v39 }
 0x2a5   : > { %v13912_v1 = vpack.c.bf16 %v4877_v48, %v4865_v30  ;;  %v13914_v28 = vpack.c.bf16 %v4879_v19, %v4867_v36 }
 0x2a6   : > { %v13916_v47 = vpack.c.bf16 %v4878_v54, %v4866_v56  ;;  %v2604_v13 = vpop.f32.mrb[56].mxu0  ;;  %v2990_v40 = vpop.f32.mrb[56].mxu1  ;;  %v13918_v44 = vpack.c.bf16 %v4880_v45, %v4868_v31 }
 0x2a7   : > { %16037 = vst [vmem:[#allocation83_spill] sm:$0xff] %v13914_v28  ;;  %v10736_v41 = vadd.f32 %v2604_v13, %v13626_v6  ;;  %v10800_v34 = vadd.f32 %v2990_v40, %v13629_v7  ;;  %v2606_v27 = vpop.f32.mrb[57].mxu0  ;;  %v2992_v14 = vpop.f32.mrb[57].mxu1 }
 0x2a8   : > { %16038 = vst [vmem:[#allocation84_spill] sm:$0xff] %v13918_v44  ;;  %v10737_v57 = vadd.f32 %v2606_v27, %v13632_v18  ;;  %v10801_v61 = vadd.f32 %v2992_v14, %v13636_v20  ;;  %v2608_v21 = vpop.f32.mrb[58].mxu0  ;;  %v2994_v62 = vpop.f32.mrb[58].mxu1 }
 0x2a9   : > { %v10738_v30 = vadd.f32 %v2608_v21, %v13626_v6  ;;  %v10802_v54 = vadd.f32 %v2994_v62, %v13629_v7  ;;  %v2610_v36 = vpop.f32.mrb[59].mxu0  ;;  %v2996_v48 = vpop.f32.mrb[59].mxu1  ;;  %v4889_v56 = vmax.f32 %v10736_v41, 0.0  ;;  %v4891_v31 = vmax.f32 %v10800_v34, 0.0 }
 0x2aa   : > { %v10739_v45 = vadd.f32 %v2610_v36, %v13632_v18  ;;  %v10803_v19 = vadd.f32 %v2996_v48, %v13636_v20  ;;  %v4890_v27 = vmax.f32 %v10737_v57, 0.0  ;;  %v4892_v14 = vmax.f32 %v10801_v61, 0.0 }
 0x2ab   : > { %v4901_v13 = vmax.f32 %v10738_v30, 0.0  ;;  %v4903_v40 = vmax.f32 %v10802_v54, 0.0  ;;  %3325 = vmatmul.mubr.bf16.gmra.mrb[100].mxu0 %v13517_v43  ;;  %3711 = vmatmul.mubr.bf16.gmra.mrb[100].mxu1 %v13517_v43 }
 0x2ac   : > { %v4902_v28 = vmax.f32 %v10739_v45, 0.0  ;;  %v4904_v21 = vmax.f32 %v10803_v19, 0.0  ;;  %3334 = vmatprep.mubr.bf16.mxu0 %v16002_v39  ;;  %3720 = vmatprep.mubr.bf16.mxu1 %v16002_v39 }
 0x2ad   : > { %v13932_v62 = vpack.c.bf16 %v4901_v13, %v4889_v56  ;;  %v13934_v36 = vpack.c.bf16 %v4903_v40, %v4891_v31 }
 0x2ae   : > { %v13936_v41 = vpack.c.bf16 %v4902_v28, %v4890_v27  ;;  %v2614_v34 = vpop.f32.mrb[60].mxu0  ;;  %v3000_v30 = vpop.f32.mrb[60].mxu1  ;;  %v13938_v54 = vpack.c.bf16 %v4904_v21, %v4892_v14 }
 0x2af   : > { %16039 = vst [vmem:[#allocation85_spill] sm:$0xff] %v13932_v62  ;;  %16040 = vst [vmem:[#allocation86_spill] sm:$0xff] %v13934_v36  ;;  %v10740_v48 = vadd.f32 %v2614_v34, %v13626_v6  ;;  %v10804_v57 = vadd.f32 %v3000_v30, %v13629_v7  ;;  %v2616_v61 = vpop.f32.mrb[61].mxu0  ;;  %v3002_v45 = vpop.f32.mrb[61].mxu1 }
 0x2b0   : > { %16041 = vst [vmem:[#allocation87_spill] sm:$0xff] %v13938_v54  ;;  %v10741_v19 = vadd.f32 %v2616_v61, %v13632_v18  ;;  %v10805_v44 = vadd.f32 %v3002_v45, %v13636_v20  ;;  %v2618_v56 = vpop.f32.mrb[62].mxu0  ;;  %v3004_v13 = vpop.f32.mrb[62].mxu1 }
 0x2b1   : > { %v10742_v31 = vadd.f32 %v2618_v56, %v13626_v6  ;;  %v10806_v28 = vadd.f32 %v3004_v13, %v13629_v7  ;;  %v2620_v40 = vpop.f32.mrb[63].mxu0  ;;  %v3006_v27 = vpop.f32.mrb[63].mxu1  ;;  %v4913_v34 = vmax.f32 %v10740_v48, 0.0  ;;  %v4915_v30 = vmax.f32 %v10804_v57, 0.0  ;;  %v12322_v57 = vld [vmem:[#allocation5 + $0x688] ss:$48 sps:$4 sm:$0xff]  }
 0x2b2   : > { %v10743_v14 = vadd.f32 %v2620_v40, %v13632_v18  ;;  %v10807_v21 = vadd.f32 %v3006_v27, %v13636_v20  ;;  %v4914_v61 = vmax.f32 %v10741_v19, 0.0  ;;  %v4916_v45 = vmax.f32 %v10805_v44, 0.0  ;;  %v12316_v44 = vld [vmem:[#allocation5 + $0x628] ss:$48 sps:$4 sm:$0xff]   ;;  %v12325_v19 = vld [vmem:[#allocation5 + $0x680] ss:$48 sps:$4 sm:$0xff]  }
 0x2b3   : > { %v4925_v36 = vmax.f32 %v10742_v31, 0.0  ;;  %v4927_v54 = vmax.f32 %v10806_v28, 0.0  ;;  %3335 = vmatmul.mubr.bf16.gmra.mrb[104].mxu0 %v13525_v49  ;;  %3721 = vmatmul.mubr.bf16.gmra.mrb[104].mxu1 %v13525_v49  ;;  %v12330_v56 = vld [vmem:[#allocation5 + $0x6ec] ss:$48 sps:$4 sm:$0xff]   ;;  %v12333_v13 = vld [vmem:[#allocation5 + $0x6e4] ss:$48 sps:$4 sm:$0xff]  }
 0x2b4   : > { %v4926_v62 = vmax.f32 %v10743_v14, 0.0  ;;  %v4928_v6 = vmax.f32 %v10807_v21, 0.0  ;;  %3344 = vmatprep.mubr.bf16.mxu0 %v16002_v39  ;;  %3730 = vmatprep.mubr.bf16.mxu1 %v16002_v39  ;;  %v12331_v31 = vld [vmem:[#allocation5 + $0x6e0] ss:$48 sps:$4 sm:$0xff]   ;;  %v12336_v28 = vld [vmem:[#allocation5 + $0x74c] ss:$48 sps:$4 sm:$0xff]  }
 0x2b5   : > { %v13952_v7 = vpack.c.bf16 %v4925_v36, %v4913_v34  ;;  %v13958_v48 = vpack.c.bf16 %v4927_v54, %v4915_v30  ;;  %v12324_v36 = vld [vmem:[#allocation5 + $0x68c] ss:$48 sps:$4 sm:$0xff]   ;;  %v12327_v54 = vld [vmem:[#allocation5 + $0x684] ss:$48 sps:$4 sm:$0xff]   ;;  %v12337_v40 = vld [vmem:[#allocation5 + $0x740] ss:$48 sps:$4 sm:$0xff]  }
 0x2b6   : > { %v13954_v18 = vpack.c.bf16 %v4926_v62, %v4914_v61  ;;  %v13956_v20 = vpack.c.bf16 %v4928_v6, %v4916_v45  ;;  %v12319_v62 = vld [vmem:[#allocation5 + $0x620] ss:$48 sps:$4 sm:$0xff]   ;;  %v12342_v27 = vld [vmem:[#allocation5 + $0x7ac] ss:$48 sps:$4 sm:$0xff]   ;;  %v12345_v14 = vld [vmem:[#allocation5 + $0x7a4] ss:$48 sps:$4 sm:$0xff]  }
 0x2b7   : > { %v12340_v21 = vld [vmem:[#allocation5 + $0x7a8] ss:$48 sps:$4 sm:$0xff]   ;;  %v12343_v34 = vld [vmem:[#allocation5 + $0x7a0] ss:$48 sps:$4 sm:$0xff]   ;;  %v12348_v30 = vld [vmem:[#allocation5 + $0x80c] ss:$48 sps:$4 sm:$0xff]  }
 0x2b8   : > { %v12349_v61 = vld [vmem:[#allocation5 + $0x800] ss:$48 sps:$4 sm:$0xff]   ;;  %v12354_v45 = vld [vmem:[#allocation5 + $0x86c] ss:$48 sps:$4 sm:$0xff]   ;;  %v12357_v6 = vld [vmem:[#allocation5 + $0x864] ss:$48 sps:$4 sm:$0xff]  }
 0x2bb   : > { %3345 = vmatmul.mubr.bf16.gmra.mrb[108].mxu0 %v13533_v58  ;;  %3731 = vmatmul.mubr.bf16.gmra.mrb[108].mxu1 %v13533_v58 }
 0x2bc   : > { %3354 = vmatprep.mubr.bf16.mxu0 %v16002_v39  ;;  %3740 = vmatprep.mubr.bf16.mxu1 %v16002_v39 }
 0x2c3   : > { %3355 = vmatmul.mubr.bf16.gmra.mrb[112].mxu0 %v13541_v63  ;;  %3741 = vmatmul.mubr.bf16.gmra.mrb[112].mxu1 %v13541_v63 }
 0x2c4   : > { %3364 = vmatprep.mubr.bf16.mxu0 %v16002_v39  ;;  %3750 = vmatprep.mubr.bf16.mxu1 %v16002_v39 }
 0x2cb   : > { %3365 = vmatmul.mubr.bf16.gmra.mrb[116].mxu0 %v13549_v11  ;;  %3751 = vmatmul.mubr.bf16.gmra.mrb[116].mxu1 %v13549_v11 }
 0x2cc   : > { %3374 = vmatprep.mubr.bf16.mxu0 %v16002_v39  ;;  %3760 = vmatprep.mubr.bf16.mxu1 %v16002_v39 }
 0x2d3   : > { %3375 = vmatmul.mubr.bf16.gmra.mrb[120].mxu0 %v13557_v26  ;;  %3761 = vmatmul.mubr.bf16.gmra.mrb[120].mxu1 %v13557_v26 }
 0x2d4   : > { %3384 = vmatprep.mubr.bf16.mxu0 %v16002_v39  ;;  %3770 = vmatprep.mubr.bf16.mxu1 %v16002_v39 }
 0x2db   : > { %3385 = vmatmul.mubr.bf16.gmra.mrb[124].mxu0 %v13565_v33  ;;  %3771 = vmatmul.mubr.bf16.gmra.mrb[124].mxu1 %v13565_v33 }
 0x2dc   : > { %3813 = vmatprep.mubr.bf16.mxu0 %v13251_v51  ;;  %4199 = vmatprep.mubr.bf16.mxu1 %v13251_v51  ;;  %v12328_v51 = vld [vmem:[#allocation5 + $0x6e8] ss:$48 sps:$4 sm:$0xff]  }
 0x2e3   : > { %3814 = vmatmul.mubr.bf16.vlgmr.msra.gmra.mrb[128].mxu0 %v13259_v9  ;;  %4200 = vmatmul.mubr.bf16.vlgmr.msra.gmra.mrb[128].mxu1 %v13259_v9  ;;  %v12339_v9 = vld [vmem:[#allocation5 + $0x744] ss:$48 sps:$4 sm:$0xff]  }
 0x2e4   : > { %4361 = vmatpush1.bf16.msra.mxu1 %v12316_v44  ;;  %3975 = vmatpush1.bf16.msra.mxu0 %v12319_v62  ;;  %v12352_v44 = vld [vmem:[#allocation5 + $0x868] ss:$48 sps:$4 sm:$0xff]   ;;  %v12355_v62 = vld [vmem:[#allocation5 + $0x860] ss:$48 sps:$4 sm:$0xff]  }
 0x2e5   : > { %3823 = vmatprep.mubr.bf16.mxu0 %v13261_v12  ;;  %4209 = vmatprep.mubr.bf16.mxu1 %v13261_v12  ;;  %v12334_v12 = vld [vmem:[#allocation5 + $0x748] ss:$48 sps:$4 sm:$0xff]  }
 0x2e6   : > { %4362 = vmatprep.subr.bf16.mxu1 %v12324_v36  ;;  %3976 = vmatprep.subr.bf16.mxu0 %v12327_v54  ;;  %v12360_v36 = vld [vmem:[#allocation5 + $0x8cc] ss:$48 sps:$4 sm:$0xff]   ;;  %v12361_v54 = vld [vmem:[#allocation5 + $0x8c0] ss:$48 sps:$4 sm:$0xff]  }
 0x2e8   : > { %4363 = vmatpush1.bf16.msra.mxu1 %v12322_v57  ;;  %3977 = vmatpush1.bf16.msra.mxu0 %v12325_v19  ;;  %v12364_v57 = vld [vmem:[#allocation8 + $0xc8] ss:$12 sps:$4 sm:$0xff]   ;;  %v12368_v19 = vld [vmem:[#allocation8 + $0x4] ss:$12 sps:$4 sm:$0xff]  }
 0x2e9   : > { %4364 = vmatprep.subr.bf16.mxu1 %v12330_v56  ;;  %3978 = vmatprep.subr.bf16.mxu0 %v12333_v13  ;;  %v16048_v13 = vld [vmem:[#allocation21_spill] sm:$0xff] }
 0x2eb   : > { %3824 = vmatmul.mubr.bf16.gmra.mrb[132].mxu0 %v13271_v23  ;;  %4210 = vmatmul.mubr.bf16.gmra.mrb[132].mxu1 %v13271_v23  ;;  %v12351_v23 = vld [vmem:[#allocation5 + $0x804] ss:$48 sps:$4 sm:$0xff]  }
 0x2ec   : > { %3833 = vmatprep.mubr.bf16.mxu0 %v13273_v24  ;;  %4219 = vmatprep.mubr.bf16.mxu1 %v13273_v24  ;;  %v12346_v24 = vld [vmem:[#allocation5 + $0x808] ss:$48 sps:$4 sm:$0xff]  }
 0x2ed   : > { %4365 = vmatpush1.bf16.msra.mxu1 %v12328_v51  ;;  %3979 = vmatpush1.bf16.msra.mxu0 %v12331_v31  ;;  %v12748_v51 = vld [vmem:[#allocation7] sm:$0xff] }
 0x2ee   : > { %4366 = vmatprep.subr.bf16.mxu1 %v12336_v28  ;;  %3980 = vmatprep.subr.bf16.mxu0 %v12339_v9 }
 0x2f1   : > { %4367 = vmatpush1.bf16.msra.mxu1 %v12334_v12  ;;  %3981 = vmatpush1.bf16.msra.mxu0 %v12337_v40  ;;  %v16049_v40 = vld [vmem:[#allocation22_spill] sm:$0xff] }
 0x2f2   : > { %4368 = vmatprep.subr.bf16.mxu1 %v12342_v27  ;;  %3982 = vmatprep.subr.bf16.mxu0 %v12345_v14 }
 0x2f3   : > { %3834 = vmatmul.mubr.bf16.gmra.mrb[136].mxu0 %v13283_v37  ;;  %4220 = vmatmul.mubr.bf16.gmra.mrb[136].mxu1 %v13283_v37  ;;  %v12363_v37 = vld [vmem:[#allocation5 + $0x8c4] ss:$48 sps:$4 sm:$0xff]  }
 0x2f4   : > { %3843 = vmatprep.mubr.bf16.mxu0 %v13285_v38  ;;  %4229 = vmatprep.mubr.bf16.mxu1 %v13285_v38  ;;  %v12358_v38 = vld [vmem:[#allocation5 + $0x8c8] ss:$48 sps:$4 sm:$0xff]  }
 0x2f5   : > { %4369 = vmatpush1.bf16.msra.mxu1 %v12340_v21  ;;  %3983 = vmatpush1.bf16.msra.mxu0 %v12343_v34 }
 0x2f6   : > { %4370 = vmatprep.subr.bf16.mxu1 %v12348_v30  ;;  %3984 = vmatprep.subr.bf16.mxu0 %v12351_v23 }
 0x2f9   : > { %4371 = vmatpush1.bf16.msra.mxu1 %v12346_v24  ;;  %3985 = vmatpush1.bf16.msra.mxu0 %v12349_v61 }
 0x2fa   : > { %4372 = vmatprep.subr.bf16.mxu1 %v12354_v45  ;;  %3986 = vmatprep.subr.bf16.mxu0 %v12357_v6 }
 0x2fb   : > { %3844 = vmatmul.mubr.bf16.gmra.mrb[140].mxu0 %v13295_v52  ;;  %4230 = vmatmul.mubr.bf16.gmra.mrb[140].mxu1 %v13295_v52  ;;  %v16042_v52 = vld [vmem:[#allocation16_spill] sm:$0xff] }
 0x2fc   : > { %3853 = vmatprep.mubr.bf16.mxu0 %v13297_v53  ;;  %4239 = vmatprep.mubr.bf16.mxu1 %v13297_v53  ;;  %v16043_v53 = vld [vmem:[#allocation17_spill] sm:$0xff] }
 0x2fd   : > { %4373 = vmatpush1.bf16.msra.mxu1 %v12352_v44  ;;  %3987 = vmatpush1.bf16.msra.mxu0 %v12355_v62 }
 0x2fe   : > { %4374 = vmatprep.subr.bf16.mxu1 %v12360_v36  ;;  %3988 = vmatprep.subr.bf16.mxu0 %v12363_v37 }
 0x301   : > { %4375 = vmatpush1.bf16.msra.mxu1 %v12358_v38  ;;  %3989 = vmatpush1.bf16.msra.mxu0 %v12361_v54 }
 0x302   : > { %10008 = vmatprep.subr.bf16.mxu1 %v12364_v57  ;;  %7066 = vmatprep.subr.bf16.mxu0 %v12368_v19 }
 0x303   : > { %3854 = vmatmul.mubr.bf16.gmra.mrb[144].mxu0 %v13307_v2  ;;  %4240 = vmatmul.mubr.bf16.gmra.mrb[144].mxu1 %v13307_v2  ;;  %v16044_v2 = vld [vmem:[#allocation18_spill] sm:$0xff] }
 0x304   : > { %3863 = vmatprep.mubr.bf16.mxu0 %v13309_v3  ;;  %4249 = vmatprep.mubr.bf16.mxu1 %v13309_v3  ;;  %v16045_v3 = vld [vmem:[#allocation19_spill] sm:$0xff] }
 0x30b   : > { %3864 = vmatmul.mubr.bf16.gmra.mrb[148].mxu0 %v13319_v8  ;;  %4250 = vmatmul.mubr.bf16.gmra.mrb[148].mxu1 %v13319_v8  ;;  %v16046_v8 = vld [vmem:[#allocation20_spill] sm:$0xff] }
 0x30c   : > { %3873 = vmatprep.mubr.bf16.mxu0 %v13321_v10  ;;  %4259 = vmatprep.mubr.bf16.mxu1 %v13321_v10  ;;  %v16047_v10 = vld [vmem:[#allocation29_spill] sm:$0xff] }
 0x30d   : > { %v767_v56 = vsub.s32 7, %v16047_v10 }
 0x30f   : > { %v14032_v12 = vrot.slane %v12748_v51, %v767_v56 }
 0x313   : > { %3874 = vmatmul.mubr.bf16.gmra.mrb[152].mxu0 %v13331_v16  ;;  %4260 = vmatmul.mubr.bf16.gmra.mrb[152].mxu1 %v13331_v16  ;;  %v755_v16 = vsub.s32 4, %v16047_v10 }
 0x314   : > { %3883 = vmatprep.mubr.bf16.mxu0 %v13333_v17  ;;  %4269 = vmatprep.mubr.bf16.mxu1 %v13333_v17  ;;  %v763_v17 = vsub.s32 6, %v16047_v10 }
 0x315   : > { %v14026_v31 = vrot.slane %v12748_v51, %v755_v16 }
 0x316   : > { %v14028_v28 = vrot.slane %v12748_v51, %v763_v17  ;;  %v16050_v17 = vld [vmem:[#allocation23_spill] sm:$0xff] }
 0x31b   : > { %3884 = vmatmul.mubr.bf16.gmra.mrb[156].mxu0 %v13343_v22  ;;  %4270 = vmatmul.mubr.bf16.gmra.mrb[156].mxu1 %v13343_v22  ;;  %v759_v22 = vsub.s32 5, %v16047_v10 }
 0x31c   : > { %3893 = vmatprep.mubr.bf16.mxu0 %v16042_v52  ;;  %4279 = vmatprep.mubr.bf16.mxu1 %v16042_v52 }
 0x31d   : > { %v14030_v9 = vrot.slane %v12748_v51, %v759_v22 }
 0x323   : > { %3894 = vmatmul.mubr.bf16.gmra.mrb[160].mxu0 %v16043_v53  ;;  %4280 = vmatmul.mubr.bf16.gmra.mrb[160].mxu1 %v16043_v53 }
 0x324   : > { %3903 = vmatprep.mubr.bf16.mxu0 %v16044_v2  ;;  %4289 = vmatprep.mubr.bf16.mxu1 %v16044_v2 }
 0x32b   : > { %3904 = vmatmul.mubr.bf16.gmra.mrb[164].mxu0 %v16045_v3  ;;  %4290 = vmatmul.mubr.bf16.gmra.mrb[164].mxu1 %v16045_v3 }
 0x32c   : > { %3913 = vmatprep.mubr.bf16.mxu0 %v16046_v8  ;;  %4299 = vmatprep.mubr.bf16.mxu1 %v16046_v8 }
 0x333   : > { %3914 = vmatmul.mubr.bf16.gmra.mrb[168].mxu0 %v16048_v13  ;;  %4300 = vmatmul.mubr.bf16.gmra.mrb[168].mxu1 %v16048_v13 }
 0x334   : > { %3923 = vmatprep.mubr.bf16.mxu0 %v16049_v40  ;;  %4309 = vmatprep.mubr.bf16.mxu1 %v16049_v40 }
 0x336   : > { %v3236_v27 = vpop.f32.mrb[64].mxu0  ;;  %v3622_v14 = vpop.f32.mrb[64].mxu1 }
 0x337   : > { %v10808_v21 = vadd.f32 %v3236_v27, %v14026_v31  ;;  %v10872_v34 = vadd.f32 %v3622_v14, %v14028_v28  ;;  %v3238_v30 = vpop.f32.mrb[65].mxu0  ;;  %v3624_v23 = vpop.f32.mrb[65].mxu1 }
 0x338   : > { %v10809_v24 = vadd.f32 %v3238_v30, %v14030_v9  ;;  %v10873_v61 = vadd.f32 %v3624_v23, %v14032_v12  ;;  %v3240_v45 = vpop.f32.mrb[66].mxu0  ;;  %v3626_v6 = vpop.f32.mrb[66].mxu1 }
 0x339   : > { %v10810_v44 = vadd.f32 %v3240_v45, %v14026_v31  ;;  %v10874_v62 = vadd.f32 %v3626_v6, %v14028_v28  ;;  %v3242_v36 = vpop.f32.mrb[67].mxu0  ;;  %v3628_v37 = vpop.f32.mrb[67].mxu1  ;;  %v4557_v57 = vmax.f32 %v10808_v21, 0.0  ;;  %v4559_v19 = vmax.f32 %v10872_v34, 0.0 }
 0x33a   : > { %v10811_v38 = vadd.f32 %v3242_v36, %v14030_v9  ;;  %v10875_v54 = vadd.f32 %v3628_v37, %v14032_v12  ;;  %v4558_v2 = vmax.f32 %v10809_v24, 0.0  ;;  %v4560_v3 = vmax.f32 %v10873_v61, 0.0 }
 0x33b   : > { %v4569_v52 = vmax.f32 %v10810_v44, 0.0  ;;  %v4571_v53 = vmax.f32 %v10874_v62, 0.0  ;;  %3924 = vmatmul.mubr.bf16.gmra.mrb[172].mxu0 %v13391_v50  ;;  %4310 = vmatmul.mubr.bf16.gmra.mrb[172].mxu1 %v13391_v50 }
 0x33c   : > { %v4570_v8 = vmax.f32 %v10811_v38, 0.0  ;;  %v4572_v16 = vmax.f32 %v10875_v54, 0.0  ;;  %3933 = vmatprep.mubr.bf16.mxu0 %v16050_v17  ;;  %4319 = vmatprep.mubr.bf16.mxu1 %v16050_v17 }
 0x33d   : > { %v14048_v22 = vpack.c.bf16 %v4569_v52, %v4557_v57  ;;  %v14050_v56 = vpack.c.bf16 %v4571_v53, %v4559_v19 }
 0x33e   : > { %v14052_v13 = vpack.c.bf16 %v4570_v8, %v4558_v2  ;;  %v3246_v51 = vpop.f32.mrb[68].mxu0  ;;  %v3632_v40 = vpop.f32.mrb[68].mxu1  ;;  %v14054_v27 = vpack.c.bf16 %v4572_v16, %v4560_v3 }
 0x33f   : > { %16051 = vst [vmem:[#allocation16_spill] sm:$0xff] %v14050_v56  ;;  %v10812_v50 = vadd.f32 %v3246_v51, %v14026_v31  ;;  %v10876_v14 = vadd.f32 %v3632_v40, %v14028_v28  ;;  %v3248_v21 = vpop.f32.mrb[69].mxu0  ;;  %v3634_v34 = vpop.f32.mrb[69].mxu1 }
 0x340   : > { %16052 = vst [vmem:[#allocation17_spill] sm:$0xff] %v14054_v27  ;;  %v10813_v30 = vadd.f32 %v3248_v21, %v14030_v9  ;;  %v10877_v23 = vadd.f32 %v3634_v34, %v14032_v12  ;;  %v3250_v24 = vpop.f32.mrb[70].mxu0  ;;  %v3636_v61 = vpop.f32.mrb[70].mxu1 }
 0x341   : > { %v10814_v45 = vadd.f32 %v3250_v24, %v14026_v31  ;;  %v10878_v6 = vadd.f32 %v3636_v61, %v14028_v28  ;;  %v3252_v44 = vpop.f32.mrb[71].mxu0  ;;  %v3638_v62 = vpop.f32.mrb[71].mxu1  ;;  %v4581_v38 = vmax.f32 %v10812_v50, 0.0  ;;  %v4583_v54 = vmax.f32 %v10876_v14, 0.0 }
 0x342   : > { %v10815_v36 = vadd.f32 %v3252_v44, %v14030_v9  ;;  %v10879_v37 = vadd.f32 %v3638_v62, %v14032_v12  ;;  %v4582_v52 = vmax.f32 %v10813_v30, 0.0  ;;  %v4584_v53 = vmax.f32 %v10877_v23, 0.0 }
 0x343   : > { %v4593_v57 = vmax.f32 %v10814_v45, 0.0  ;;  %v4595_v19 = vmax.f32 %v10878_v6, 0.0  ;;  %3934 = vmatmul.mubr.bf16.gmra.mrb[176].mxu0 %v13403_v59  ;;  %4320 = vmatmul.mubr.bf16.gmra.mrb[176].mxu1 %v13403_v59 }
 0x344   : > { %v4594_v2 = vmax.f32 %v10815_v36, 0.0  ;;  %v4596_v3 = vmax.f32 %v10879_v37, 0.0  ;;  %3943 = vmatprep.mubr.bf16.mxu0 %v13405_v60  ;;  %4329 = vmatprep.mubr.bf16.mxu1 %v13405_v60 }
 0x345   : > { %v14068_v8 = vpack.c.bf16 %v4593_v57, %v4581_v38  ;;  %v14070_v16 = vpack.c.bf16 %v4595_v19, %v4583_v54  ;;  %v16055_v19 = vld [vmem:[#allocation24_spill] sm:$0xff] }
 0x346   : > { %v14072_v17 = vpack.c.bf16 %v4594_v2, %v4582_v52  ;;  %v3256_v51 = vpop.f32.mrb[72].mxu0  ;;  %v3642_v40 = vpop.f32.mrb[72].mxu1  ;;  %v14074_v50 = vpack.c.bf16 %v4596_v3, %v4584_v53 }
 0x347   : > { %16053 = vst [vmem:[#allocation18_spill] sm:$0xff] %v14070_v16  ;;  %v10816_v59 = vadd.f32 %v3256_v51, %v14026_v31  ;;  %v10880_v14 = vadd.f32 %v3642_v40, %v14028_v28  ;;  %v3258_v21 = vpop.f32.mrb[73].mxu0  ;;  %v3644_v34 = vpop.f32.mrb[73].mxu1  ;;  %v16056_v51 = vld [vmem:[#allocation25_spill] sm:$0xff] }
 0x348   : > { %16054 = vst [vmem:[#allocation19_spill] sm:$0xff] %v14074_v50  ;;  %v10817_v30 = vadd.f32 %v3258_v21, %v14030_v9  ;;  %v10881_v60 = vadd.f32 %v3644_v34, %v14032_v12  ;;  %v3260_v23 = vpop.f32.mrb[74].mxu0  ;;  %v3646_v24 = vpop.f32.mrb[74].mxu1  ;;  %v12369_v50 = vld [vmem:[#allocation8 + $0x18] ss:$12 sps:$4 sm:$0xff]  }
 0x349   : > { %v10818_v61 = vadd.f32 %v3260_v23, %v14026_v31  ;;  %v10882_v45 = vadd.f32 %v3646_v24, %v14028_v28  ;;  %v3262_v6 = vpop.f32.mrb[75].mxu0  ;;  %v3648_v44 = vpop.f32.mrb[75].mxu1  ;;  %v4605_v37 = vmax.f32 %v10816_v59, 0.0  ;;  %v4607_v38 = vmax.f32 %v10880_v14, 0.0 }
 0x34a   : > { %v10819_v62 = vadd.f32 %v3262_v6, %v14030_v9  ;;  %v10883_v36 = vadd.f32 %v3648_v44, %v14032_v12  ;;  %v4606_v52 = vmax.f32 %v10817_v30, 0.0  ;;  %v4608_v53 = vmax.f32 %v10881_v60, 0.0 }
 0x34b   : > { %v4617_v54 = vmax.f32 %v10818_v61, 0.0  ;;  %v4619_v57 = vmax.f32 %v10882_v45, 0.0  ;;  %3944 = vmatmul.mubr.bf16.gmra.mrb[180].mxu0 %v16055_v19  ;;  %4330 = vmatmul.mubr.bf16.gmra.mrb[180].mxu1 %v16055_v19 }
 0x34c   : > { %v4618_v2 = vmax.f32 %v10819_v62, 0.0  ;;  %v4620_v3 = vmax.f32 %v10883_v36, 0.0  ;;  %3953 = vmatprep.mubr.bf16.mxu0 %v16056_v51  ;;  %4339 = vmatprep.mubr.bf16.mxu1 %v16056_v51  ;;  %v16059_v51 = vld [vmem:[#allocation26_spill] sm:$0xff] }
 0x34d   : > { %v14088_v40 = vpack.c.bf16 %v4617_v54, %v4605_v37  ;;  %v14090_v21 = vpack.c.bf16 %v4619_v57, %v4607_v38 }
 0x34e   : > { %v14092_v59 = vpack.c.bf16 %v4618_v2, %v4606_v52  ;;  %v3266_v14 = vpop.f32.mrb[76].mxu0  ;;  %v3652_v34 = vpop.f32.mrb[76].mxu1  ;;  %v14094_v23 = vpack.c.bf16 %v4620_v3, %v4608_v53 }
 0x34f   : > { %16057 = vst [vmem:[#allocation20_spill] sm:$0xff] %v14090_v21  ;;  %v10820_v24 = vadd.f32 %v3266_v14, %v14026_v31  ;;  %v10884_v30 = vadd.f32 %v3652_v34, %v14028_v28  ;;  %v3268_v60 = vpop.f32.mrb[77].mxu0  ;;  %v3654_v61 = vpop.f32.mrb[77].mxu1 }
 0x350   : > { %16058 = vst [vmem:[#allocation29_spill] sm:$0xff] %v14094_v23  ;;  %v10821_v45 = vadd.f32 %v3268_v60, %v14030_v9  ;;  %v10885_v6 = vadd.f32 %v3654_v61, %v14032_v12  ;;  %v3270_v44 = vpop.f32.mrb[78].mxu0  ;;  %v3656_v62 = vpop.f32.mrb[78].mxu1 }
 0x351   : > { %v10822_v36 = vadd.f32 %v3270_v44, %v14026_v31  ;;  %v10886_v37 = vadd.f32 %v3656_v62, %v14028_v28  ;;  %v3272_v38 = vpop.f32.mrb[79].mxu0  ;;  %v3658_v54 = vpop.f32.mrb[79].mxu1  ;;  %v4629_v52 = vmax.f32 %v10820_v24, 0.0  ;;  %v4631_v53 = vmax.f32 %v10884_v30, 0.0  ;;  %v16060_v44 = vld [vmem:[#allocation27_spill] sm:$0xff] }
 0x352   : > { %v10823_v57 = vadd.f32 %v3272_v38, %v14030_v9  ;;  %v10887_v19 = vadd.f32 %v3658_v54, %v14032_v12  ;;  %v4630_v14 = vmax.f32 %v10821_v45, 0.0  ;;  %v4632_v34 = vmax.f32 %v10885_v6, 0.0 }
 0x353   : > { %v4641_v2 = vmax.f32 %v10822_v36, 0.0  ;;  %v4643_v3 = vmax.f32 %v10886_v37, 0.0  ;;  %3954 = vmatmul.mubr.bf16.gmra.mrb[184].mxu0 %v16059_v51  ;;  %4340 = vmatmul.mubr.bf16.gmra.mrb[184].mxu1 %v16059_v51 }
 0x354   : > { %v4642_v60 = vmax.f32 %v10823_v57, 0.0  ;;  %v4644_v61 = vmax.f32 %v10887_v19, 0.0  ;;  %3963 = vmatprep.mubr.bf16.mxu0 %v16060_v44  ;;  %4349 = vmatprep.mubr.bf16.mxu1 %v16060_v44 }
 0x355   : > { %v14108_v62 = vpack.c.bf16 %v4641_v2, %v4629_v52  ;;  %v14110_v38 = vpack.c.bf16 %v4643_v3, %v4631_v53 }
 0x356   : > { %v14112_v24 = vpack.c.bf16 %v4642_v60, %v4630_v14  ;;  %v3276_v30 = vpop.f32.mrb[80].mxu0  ;;  %v3662_v36 = vpop.f32.mrb[80].mxu1  ;;  %v14114_v37 = vpack.c.bf16 %v4644_v61, %v4632_v34 }
 0x357   : > { %16061 = vst [vmem:[#allocation21_spill] sm:$0xff] %v14110_v38  ;;  %v10824_v54 = vadd.f32 %v3276_v30, %v14026_v31  ;;  %v10888_v45 = vadd.f32 %v3662_v36, %v14028_v28  ;;  %v3278_v6 = vpop.f32.mrb[81].mxu0  ;;  %v3664_v57 = vpop.f32.mrb[81].mxu1 }
 0x358   : > { %16062 = vst [vmem:[#allocation22_spill] sm:$0xff] %v14114_v37  ;;  %v10825_v19 = vadd.f32 %v3278_v6, %v14030_v9  ;;  %v10889_v51 = vadd.f32 %v3664_v57, %v14032_v12  ;;  %v3280_v52 = vpop.f32.mrb[82].mxu0  ;;  %v3666_v2 = vpop.f32.mrb[82].mxu1  ;;  %v16063_v37 = vld [vmem:[#allocation28_spill] sm:$0xff] }
 0x359   : > { %v10826_v53 = vadd.f32 %v3280_v52, %v14026_v31  ;;  %v10890_v3 = vadd.f32 %v3666_v2, %v14028_v28  ;;  %v3282_v14 = vpop.f32.mrb[83].mxu0  ;;  %v3668_v60 = vpop.f32.mrb[83].mxu1  ;;  %v4653_v44 = vmax.f32 %v10824_v54, 0.0  ;;  %v4655_v30 = vmax.f32 %v10888_v45, 0.0 }
 0x35a   : > { %v10827_v34 = vadd.f32 %v3282_v14, %v14030_v9  ;;  %v10891_v61 = vadd.f32 %v3668_v60, %v14032_v12  ;;  %v4654_v6 = vmax.f32 %v10825_v19, 0.0  ;;  %v4656_v57 = vmax.f32 %v10889_v51, 0.0 }
 0x35b   : > { %v4665_v36 = vmax.f32 %v10826_v53, 0.0  ;;  %v4667_v38 = vmax.f32 %v10890_v3, 0.0  ;;  %3964 = vmatmul.mubr.bf16.gmra.mrb[188].mxu0 %v16063_v37  ;;  %4350 = vmatmul.mubr.bf16.gmra.mrb[188].mxu1 %v16063_v37 }
 0x35c   : > { %v4666_v21 = vmax.f32 %v10827_v34, 0.0  ;;  %v4668_v52 = vmax.f32 %v10891_v61, 0.0  ;;  %4006 = vmatprep.mubr.bf16.mxu0 %v16002_v39  ;;  %4392 = vmatprep.mubr.bf16.mxu1 %v16002_v39 }
 0x35d   : > { %v14128_v2 = vpack.c.bf16 %v4665_v36, %v4653_v44  ;;  %v14130_v14 = vpack.c.bf16 %v4667_v38, %v4655_v30  ;;  %v12365_v38 = vld [vmem:[#allocation8 + $0x8] ss:$12 sps:$4 sm:$0xff]   ;;  %v12366_v30 = vld [vmem:[#allocation8] ss:$12 sps:$4 sm:$0xff]  }
 0x35e   : > { %v14132_v54 = vpack.c.bf16 %v4666_v21, %v4654_v6  ;;  %v3286_v45 = vpop.f32.mrb[84].mxu0  ;;  %v3672_v53 = vpop.f32.mrb[84].mxu1  ;;  %v14134_v3 = vpack.c.bf16 %v4668_v52, %v4656_v57 }
 0x35f   : > { %16064 = vst [vmem:[#allocation23_spill] sm:$0xff] %v14128_v2  ;;  %16065 = vst [vmem:[#allocation24_spill] sm:$0xff] %v14130_v14  ;;  %v10828_v37 = vadd.f32 %v3286_v45, %v14026_v31  ;;  %v10892_v19 = vadd.f32 %v3672_v53, %v14028_v28  ;;  %v3288_v51 = vpop.f32.mrb[85].mxu0  ;;  %v3674_v60 = vpop.f32.mrb[85].mxu1  ;;  %v12371_v14 = vld [vmem:[#allocation8 + $0x1c] ss:$12 sps:$4 sm:$0xff]  }
 0x360   : > { %16066 = vst [vmem:[#allocation25_spill] sm:$0xff] %v14134_v3  ;;  %v10829_v34 = vadd.f32 %v3288_v51, %v14030_v9  ;;  %v10893_v61 = vadd.f32 %v3674_v60, %v14032_v12  ;;  %v3290_v44 = vpop.f32.mrb[86].mxu0  ;;  %v3676_v36 = vpop.f32.mrb[86].mxu1  ;;  %v12372_v3 = vld [vmem:[#allocation8 + $0xe0] ss:$12 sps:$4 sm:$0xff]  }
 0x361   : > { %v10830_v21 = vadd.f32 %v3290_v44, %v14026_v31  ;;  %v10894_v6 = vadd.f32 %v3676_v36, %v14028_v28  ;;  %v3292_v57 = vpop.f32.mrb[87].mxu0  ;;  %v3678_v52 = vpop.f32.mrb[87].mxu1  ;;  %v4677_v23 = vmax.f32 %v10828_v37, 0.0  ;;  %v4679_v51 = vmax.f32 %v10892_v19, 0.0  ;;  %v12376_v37 = vld [vmem:[#allocation8 + $0x34] ss:$12 sps:$4 sm:$0xff]  }
 0x362   : > { %v10831_v45 = vadd.f32 %v3292_v57, %v14030_v9  ;;  %v10895_v53 = vadd.f32 %v3678_v52, %v14032_v12  ;;  %v4678_v44 = vmax.f32 %v10829_v34, 0.0  ;;  %v4680_v56 = vmax.f32 %v10893_v61, 0.0  ;;  %v12373_v57 = vld [vmem:[#allocation8 + $0x20] ss:$12 sps:$4 sm:$0xff]   ;;  %v12380_v19 = vld [vmem:[#allocation8 + $0xf8] ss:$12 sps:$4 sm:$0xff]  }
 0x363   : > { %v4689_v16 = vmax.f32 %v10830_v21, 0.0  ;;  %v4691_v60 = vmax.f32 %v10894_v6, 0.0  ;;  %4007 = vmatmul.mubr.bf16.vlgmr.msra.gmra.mrb[128].mxu0 %v13445_v29  ;;  %4393 = vmatmul.mubr.bf16.vlgmr.msra.gmra.mrb[128].mxu1 %v13445_v29 }
 0x364   : > { %v4690_v36 = vmax.f32 %v10831_v45, 0.0  ;;  %v4692_v27 = vmax.f32 %v10895_v53, 0.0  ;;  %10009 = vmatpush3.bf16.msra.mxu1 %v12365_v38  ;;  %7067 = vmatpush1.bf16.msra.mxu0 %v12366_v30 }
 0x365   : > { %v14146_v2 = vpack.c.bf16 %v4689_v16, %v4677_v23  ;;  %4016 = vmatprep.mubr.bf16.mxu0 %v16002_v39  ;;  %4402 = vmatprep.mubr.bf16.mxu1 %v16002_v39  ;;  %v14150_v21 = vpack.c.bf16 %v4691_v60, %v4679_v51 }
 0x366   : > { %v14152_v6 = vpack.c.bf16 %v4690_v36, %v4678_v44  ;;  %v3296_v29 = vpop.f32.mrb[88].mxu0  ;;  %v3682_v34 = vpop.f32.mrb[88].mxu1  ;;  %7068 = vmatprep.subr.bf16.mxu0 %v12371_v14  ;;  %10010 = vmatprep.subr.bf16.mxu1 %v12372_v3  ;;  %v14154_v61 = vpack.c.bf16 %v4692_v27, %v4680_v56  ;;  %v12374_v3 = vld [vmem:[#allocation8 + $0x30] ss:$12 sps:$4 sm:$0xff]   ;;  %v12381_v44 = vld [vmem:[#allocation8 + $0x38] ss:$12 sps:$4 sm:$0xff]  }
 0x367   : > { %16067 = vst [vmem:[#allocation26_spill] sm:$0xff] %v14150_v21  ;;  %v10832_v38 = vadd.f32 %v3296_v29, %v14026_v31  ;;  %v10896_v16 = vadd.f32 %v3682_v34, %v14028_v28  ;;  %v3298_v23 = vpop.f32.mrb[89].mxu0  ;;  %v3684_v30 = vpop.f32.mrb[89].mxu1  ;;  %v12379_v34 = vld [vmem:[#allocation8 + $0x4c] ss:$12 sps:$4 sm:$0xff]  }
 0x368   : > { %16068 = vst [vmem:[#allocation27_spill] sm:$0xff] %v14154_v61  ;;  %v10833_v52 = vadd.f32 %v3298_v23, %v14030_v9  ;;  %v10897_v45 = vadd.f32 %v3684_v30, %v14032_v12  ;;  %v3300_v53 = vpop.f32.mrb[90].mxu0  ;;  %v3686_v51 = vpop.f32.mrb[90].mxu1  ;;  %7069 = vmatpush1.bf16.msra.mxu0 %v12369_v50  ;;  %10011 = vmatpush3.bf16.msra.mxu1 %v12373_v57  ;;  %v12388_v23 = vld [vmem:[#allocation8 + $0x110] ss:$12 sps:$4 sm:$0xff]  }
 0x369   : > { %v10834_v60 = vadd.f32 %v3300_v53, %v14026_v31  ;;  %v10898_v14 = vadd.f32 %v3686_v51, %v14028_v28  ;;  %v3302_v56 = vpop.f32.mrb[91].mxu0  ;;  %v3688_v27 = vpop.f32.mrb[91].mxu1  ;;  %7070 = vmatprep.subr.bf16.mxu0 %v12376_v37  ;;  %10012 = vmatprep.subr.bf16.mxu1 %v12380_v19  ;;  %v4701_v30 = vmax.f32 %v10832_v38, 0.0  ;;  %v4703_v21 = vmax.f32 %v10896_v16, 0.0  ;;  %v12389_v38 = vld [vmem:[#allocation8 + $0x50] ss:$12 sps:$4 sm:$0xff]  }
 0x36a   : > { %v10835_v36 = vadd.f32 %v3302_v56, %v14030_v9  ;;  %v10899_v29 = vadd.f32 %v3688_v27, %v14032_v12  ;;  %v4702_v53 = vmax.f32 %v10833_v52, 0.0  ;;  %v4704_v51 = vmax.f32 %v10897_v45, 0.0  ;;  %v12377_v56 = vld [vmem:[#allocation8 + $0x48] ss:$12 sps:$4 sm:$0xff]   ;;  %v12384_v52 = vld [vmem:[#allocation8 + $0x64] ss:$12 sps:$4 sm:$0xff]  }
 0x36b   : > { %v4713_v50 = vmax.f32 %v10834_v60, 0.0  ;;  %v4715_v57 = vmax.f32 %v10898_v14, 0.0  ;;  %4017 = vmatmul.mubr.bf16.gmra.mrb[132].mxu0 %v13453_v46  ;;  %4403 = vmatmul.mubr.bf16.gmra.mrb[132].mxu1 %v13453_v46  ;;  %v12396_v45 = vld [vmem:[#allocation8 + $0x128] ss:$12 sps:$4 sm:$0xff]  }
 0x36c   : > { %v4714_v61 = vmax.f32 %v10835_v36, 0.0  ;;  %v4716_v37 = vmax.f32 %v10899_v29, 0.0  ;;  %4026 = vmatprep.mubr.bf16.mxu0 %v16002_v39  ;;  %4412 = vmatprep.mubr.bf16.mxu1 %v16002_v39 }
 0x36d   : > { %v14168_v19 = vpack.c.bf16 %v4713_v50, %v4701_v30  ;;  %7071 = vmatpush1.bf16.msra.mxu0 %v12374_v3  ;;  %10013 = vmatpush3.bf16.msra.mxu1 %v12381_v44  ;;  %v14170_v16 = vpack.c.bf16 %v4715_v57, %v4703_v21 }
 0x36e   : > { %v14172_v60 = vpack.c.bf16 %v4714_v61, %v4702_v53  ;;  %v3306_v14 = vpop.f32.mrb[92].mxu0  ;;  %v3692_v46 = vpop.f32.mrb[92].mxu1  ;;  %7072 = vmatprep.subr.bf16.mxu0 %v12379_v34  ;;  %10014 = vmatprep.subr.bf16.mxu1 %v12388_v23  ;;  %v14174_v27 = vpack.c.bf16 %v4716_v37, %v4704_v51  ;;  %v12382_v51 = vld [vmem:[#allocation8 + $0x60] ss:$12 sps:$4 sm:$0xff]   ;;  %v12397_v37 = vld [vmem:[#allocation8 + $0x68] ss:$12 sps:$4 sm:$0xff]  }
 0x36f   : > { %16069 = vst [vmem:[#allocation28_spill] sm:$0xff] %v14168_v19  ;;  %16070 = vst [vmem:[#allocation88_spill] sm:$0xff] %v14170_v16  ;;  %v10836_v36 = vadd.f32 %v3306_v14, %v14026_v31  ;;  %v10900_v29 = vadd.f32 %v3692_v46, %v14028_v28  ;;  %v3308_v3 = vpop.f32.mrb[93].mxu0  ;;  %v3694_v30 = vpop.f32.mrb[93].mxu1 }
 0x370   : > { %16071 = vst [vmem:[#allocation89_spill] sm:$0xff] %v14172_v60  ;;  %16072 = vst [vmem:[#allocation90_spill] sm:$0xff] %v14174_v27  ;;  %v10837_v44 = vadd.f32 %v3308_v3, %v14030_v9  ;;  %v10901_v21 = vadd.f32 %v3694_v30, %v14032_v12  ;;  %v3310_v61 = vpop.f32.mrb[94].mxu0  ;;  %v3696_v50 = vpop.f32.mrb[94].mxu1  ;;  %v12387_v3 = vld [vmem:[#allocation8 + $0x7c] ss:$12 sps:$4 sm:$0xff]  }
 0x371   : > { %v10838_v57 = vadd.f32 %v3310_v61, %v14026_v31  ;;  %v10902_v34 = vadd.f32 %v3696_v50, %v14028_v28  ;;  %v3312_v23 = vpop.f32.mrb[95].mxu0  ;;  %v3698_v53 = vpop.f32.mrb[95].mxu1  ;;  %7073 = vmatpush1.bf16.msra.mxu0 %v12377_v56  ;;  %10015 = vmatpush3.bf16.msra.mxu1 %v12389_v38  ;;  %v12404_v30 = vld [vmem:[#allocation8 + $0x140] ss:$12 sps:$4 sm:$0xff]   ;;  %v4725_v16 = vmax.f32 %v10836_v36, 0.0  ;;  %v4727_v27 = vmax.f32 %v10900_v29, 0.0 }
 0x372   : > { %v10839_v14 = vadd.f32 %v3312_v23, %v14030_v9  ;;  %v10903_v46 = vadd.f32 %v3698_v53, %v14032_v12  ;;  %7074 = vmatprep.subr.bf16.mxu0 %v12384_v52  ;;  %10016 = vmatprep.subr.bf16.mxu1 %v12396_v45  ;;  %v4726_v56 = vmax.f32 %v10837_v44, 0.0  ;;  %v4728_v50 = vmax.f32 %v10901_v21, 0.0  ;;  %v12385_v45 = vld [vmem:[#allocation8 + $0x78] ss:$12 sps:$4 sm:$0xff]   ;;  %v12405_v36 = vld [vmem:[#allocation8 + $0x80] ss:$12 sps:$4 sm:$0xff]  }
 0x373   : > { %v4737_v19 = vmax.f32 %v10838_v57, 0.0  ;;  %v4739_v61 = vmax.f32 %v10902_v34, 0.0  ;;  %4027 = vmatmul.mubr.bf16.gmra.mrb[136].mxu0 %v13461_v0  ;;  %4413 = vmatmul.mubr.bf16.gmra.mrb[136].mxu1 %v13461_v0  ;;  %v12392_v44 = vld [vmem:[#allocation8 + $0x94] ss:$12 sps:$4 sm:$0xff]   ;;  %v12412_v21 = vld [vmem:[#allocation8 + $0x158] ss:$12 sps:$4 sm:$0xff]  }
 0x374   : > { %v4738_v38 = vmax.f32 %v10839_v14, 0.0  ;;  %v4740_v60 = vmax.f32 %v10903_v46, 0.0  ;;  %4036 = vmatprep.mubr.bf16.mxu0 %v16002_v39  ;;  %4422 = vmatprep.mubr.bf16.mxu1 %v16002_v39 }
 0x375   : > { %v14188_v52 = vpack.c.bf16 %v4737_v19, %v4725_v16  ;;  %7075 = vmatpush1.bf16.msra.mxu0 %v12382_v51  ;;  %10017 = vmatpush3.bf16.msra.mxu1 %v12397_v37  ;;  %v14190_v29 = vpack.c.bf16 %v4739_v61, %v4727_v27 }
 0x376   : > { %v14192_v57 = vpack.c.bf16 %v4738_v38, %v4726_v56  ;;  %v3316_v34 = vpop.f32.mrb[96].mxu0  ;;  %v3702_v0 = vpop.f32.mrb[96].mxu1  ;;  %7076 = vmatprep.subr.bf16.mxu0 %v12387_v3  ;;  %10018 = vmatprep.subr.bf16.mxu1 %v12404_v30  ;;  %v14194_v23 = vpack.c.bf16 %v4740_v60, %v4728_v50  ;;  %v12390_v60 = vld [vmem:[#allocation8 + $0x90] ss:$12 sps:$4 sm:$0xff]   ;;  %v12413_v50 = vld [vmem:[#allocation8 + $0x98] ss:$12 sps:$4 sm:$0xff]  }
 0x377   : > { %16073 = vst [vmem:[#allocation91_spill] sm:$0xff] %v14188_v52  ;;  %16074 = vst [vmem:[#allocation92_spill] sm:$0xff] %v14190_v29  ;;  %v10840_v53 = vadd.f32 %v3316_v34, %v14026_v31  ;;  %v10904_v19 = vadd.f32 %v3702_v0, %v14028_v28  ;;  %v3318_v16 = vpop.f32.mrb[97].mxu0  ;;  %v3704_v51 = vpop.f32.mrb[97].mxu1  ;;  %v12395_v0 = vld [vmem:[#allocation8 + $0xac] ss:$12 sps:$4 sm:$0xff]  }
 0x378   : > { %16075 = vst [vmem:[#allocation93_spill] sm:$0xff] %v14194_v23  ;;  %v10841_v37 = vadd.f32 %v3318_v16, %v14030_v9  ;;  %v10905_v27 = vadd.f32 %v3704_v51, %v14032_v12  ;;  %v3320_v14 = vpop.f32.mrb[98].mxu0  ;;  %v3706_v46 = vpop.f32.mrb[98].mxu1  ;;  %v12420_v16 = vld [vmem:[#allocation8 + $0x170] ss:$12 sps:$4 sm:$0xff]  }
 0x379   : > { %v10842_v61 = vadd.f32 %v3320_v14, %v14026_v31  ;;  %v10906_v3 = vadd.f32 %v3706_v46, %v14028_v28  ;;  %v3322_v30 = vpop.f32.mrb[99].mxu0  ;;  %v3708_v56 = vpop.f32.mrb[99].mxu1  ;;  %7077 = vmatpush1.bf16.msra.mxu0 %v12385_v45  ;;  %10019 = vmatpush3.bf16.msra.mxu1 %v12405_v36  ;;  %v4749_v51 = vmax.f32 %v10840_v53, 0.0  ;;  %v4751_v29 = vmax.f32 %v10904_v19, 0.0  ;;  %v12421_v53 = vld [vmem:[#allocation8 + $0xb0] ss:$12 sps:$4 sm:$0xff]  }
 0x37a   : > { %v10843_v38 = vadd.f32 %v3322_v30, %v14030_v9  ;;  %v10907_v34 = vadd.f32 %v3708_v56, %v14032_v12  ;;  %7078 = vmatprep.subr.bf16.mxu0 %v12392_v44  ;;  %10020 = vmatprep.subr.bf16.mxu1 %v12412_v21  ;;  %v4750_v45 = vmax.f32 %v10841_v37, 0.0  ;;  %v4752_v46 = vmax.f32 %v10905_v27, 0.0  ;;  %v12393_v21 = vld [vmem:[#allocation8 + $0xa8] ss:$12 sps:$4 sm:$0xff]   ;;  %v12400_v37 = vld [vmem:[#allocation8 + $0xc4] ss:$12 sps:$4 sm:$0xff]  }
 0x37b   : > { %v4761_v23 = vmax.f32 %v10842_v61, 0.0  ;;  %v4763_v14 = vmax.f32 %v10906_v3, 0.0  ;;  %4037 = vmatmul.mubr.bf16.gmra.mrb[140].mxu0 %v13469_v32  ;;  %4423 = vmatmul.mubr.bf16.gmra.mrb[140].mxu1 %v13469_v32  ;;  %v12428_v27 = vld [vmem:[#allocation8 + $0x248] ss:$12 sps:$4 sm:$0xff]  }
 0x37c   : > { %v4762_v36 = vmax.f32 %v10843_v38, 0.0  ;;  %v4764_v52 = vmax.f32 %v10907_v34, 0.0  ;;  %4046 = vmatprep.mubr.bf16.mxu0 %v16002_v39  ;;  %4432 = vmatprep.mubr.bf16.mxu1 %v16002_v39 }
 0x37d   : > { %v14208_v44 = vpack.c.bf16 %v4761_v23, %v4749_v51  ;;  %7079 = vmatpush1.bf16.msra.mxu0 %v12390_v60  ;;  %10021 = vmatpush3.bf16.msra.mxu1 %v12413_v50  ;;  %v14210_v19 = vpack.c.bf16 %v4763_v14, %v4751_v29 }
 0x37e   : > { %v14212_v61 = vpack.c.bf16 %v4762_v36, %v4750_v45  ;;  %v3326_v3 = vpop.f32.mrb[100].mxu0  ;;  %v3712_v32 = vpop.f32.mrb[100].mxu1  ;;  %7080 = vmatprep.subr.bf16.mxu0 %v12395_v0  ;;  %10022 = vmatprep.subr.bf16.mxu1 %v12420_v16  ;;  %v14214_v30 = vpack.c.bf16 %v4764_v52, %v4752_v46  ;;  %v12398_v52 = vld [vmem:[#allocation8 + $0xc0] ss:$12 sps:$4 sm:$0xff]  }
 0x37f   : > { %16076 = vst [vmem:[#allocation94_spill] sm:$0xff] %v14210_v19  ;;  %v10844_v56 = vadd.f32 %v3326_v3, %v14026_v31  ;;  %v10908_v23 = vadd.f32 %v3712_v32, %v14028_v28  ;;  %v3328_v60 = vpop.f32.mrb[101].mxu0  ;;  %v3714_v38 = vpop.f32.mrb[101].mxu1  ;;  %v12403_v3 = vld [vmem:[#allocation8 + $0xdc] ss:$12 sps:$4 sm:$0xff]  }
 0x380   : > { %16077 = vst [vmem:[#allocation95_spill] sm:$0xff] %v14214_v30  ;;  %v10845_v50 = vadd.f32 %v3328_v60, %v14030_v9  ;;  %v10909_v29 = vadd.f32 %v3714_v38, %v14032_v12  ;;  %v3330_v34 = vpop.f32.mrb[102].mxu0  ;;  %v3716_v51 = vpop.f32.mrb[102].mxu1 }
 0x381   : > { %v10846_v14 = vadd.f32 %v3330_v34, %v14026_v31  ;;  %v10910_v0 = vadd.f32 %v3716_v51, %v14028_v28  ;;  %v3332_v16 = vpop.f32.mrb[103].mxu0  ;;  %v3718_v45 = vpop.f32.mrb[103].mxu1  ;;  %7081 = vmatpush1.bf16.msra.mxu0 %v12393_v21  ;;  %10023 = vmatpush3.bf16.msra.mxu1 %v12421_v53  ;;  %v4773_v32 = vmax.f32 %v10844_v56, 0.0  ;;  %v4775_v60 = vmax.f32 %v10908_v23, 0.0 }
 0x382   : > { %v10847_v46 = vadd.f32 %v3332_v16, %v14030_v9  ;;  %v10911_v36 = vadd.f32 %v3718_v45, %v14032_v12  ;;  %7082 = vmatprep.subr.bf16.mxu0 %v12400_v37  ;;  %10120 = vmatprep.subr.bf16.mxu1 %v12428_v27  ;;  %v4774_v34 = vmax.f32 %v10845_v50, 0.0  ;;  %v4776_v51 = vmax.f32 %v10909_v29, 0.0  ;;  %v12401_v37 = vld [vmem:[#allocation8 + $0xd8] ss:$12 sps:$4 sm:$0xff]  }
 0x383   : > { %v4785_v38 = vmax.f32 %v10846_v14, 0.0  ;;  %v4787_v19 = vmax.f32 %v10910_v0, 0.0  ;;  %4047 = vmatmul.mubr.bf16.gmra.mrb[144].mxu0 %v13477_v55  ;;  %4433 = vmatmul.mubr.bf16.gmra.mrb[144].mxu1 %v13477_v55  ;;  %v12408_v55 = vld [vmem:[#allocation8 + $0xf4] ss:$12 sps:$4 sm:$0xff]  }
 0x384   : > { %v4786_v21 = vmax.f32 %v10847_v46, 0.0  ;;  %v4788_v30 = vmax.f32 %v10911_v36, 0.0  ;;  %4056 = vmatprep.mubr.bf16.mxu0 %v16002_v39  ;;  %4442 = vmatprep.mubr.bf16.mxu1 %v16002_v39 }
 0x385   : > { %v14228_v53 = vpack.c.bf16 %v4785_v38, %v4773_v32  ;;  %7083 = vmatpush1.bf16.msra.mxu0 %v12398_v52  ;;  %v14230_v27 = vpack.c.bf16 %v4787_v19, %v4775_v60 }
 0x386   : > { %v14232_v56 = vpack.c.bf16 %v4786_v21, %v4774_v34  ;;  %v3336_v23 = vpop.f32.mrb[104].mxu0  ;;  %v3722_v14 = vpop.f32.mrb[104].mxu1  ;;  %7084 = vmatprep.subr.bf16.mxu0 %v12403_v3  ;;  %v14234_v50 = vpack.c.bf16 %v4788_v30, %v4776_v51  ;;  %v12406_v30 = vld [vmem:[#allocation8 + $0xf0] ss:$12 sps:$4 sm:$0xff]   ;;  %v12411_v21 = vld [vmem:[#allocation8 + $0x10c] ss:$12 sps:$4 sm:$0xff]  }
 0x387   : > { %16078 = vst [vmem:[#allocation96_spill] sm:$0xff] %v14230_v27  ;;  %v10848_v29 = vadd.f32 %v3336_v23, %v14026_v31  ;;  %v10912_v0 = vadd.f32 %v3722_v14, %v14028_v28  ;;  %v3338_v16 = vpop.f32.mrb[105].mxu0  ;;  %v3724_v45 = vpop.f32.mrb[105].mxu1 }
 0x388   : > { %16079 = vst [vmem:[#allocation97_spill] sm:$0xff] %v14234_v50  ;;  %v10849_v46 = vadd.f32 %v3338_v16, %v14030_v9  ;;  %v10913_v52 = vadd.f32 %v3724_v45, %v14032_v12  ;;  %v3340_v19 = vpop.f32.mrb[106].mxu0  ;;  %v3726_v36 = vpop.f32.mrb[106].mxu1 }
 0x389   : > { %v10850_v32 = vadd.f32 %v3340_v19, %v14026_v31  ;;  %v10914_v60 = vadd.f32 %v3726_v36, %v14028_v28  ;;  %v3342_v3 = vpop.f32.mrb[107].mxu0  ;;  %v3728_v38 = vpop.f32.mrb[107].mxu1  ;;  %7085 = vmatpush1.bf16.msra.mxu0 %v12401_v37  ;;  %v4797_v23 = vmax.f32 %v10848_v29, 0.0  ;;  %v4799_v14 = vmax.f32 %v10912_v0, 0.0 }
 0x38a   : > { %v10851_v34 = vadd.f32 %v3342_v3, %v14030_v9  ;;  %v10915_v51 = vadd.f32 %v3728_v38, %v14032_v12  ;;  %7086 = vmatprep.subr.bf16.mxu0 %v12408_v55  ;;  %v4798_v19 = vmax.f32 %v10849_v46, 0.0  ;;  %v4800_v36 = vmax.f32 %v10913_v52, 0.0  ;;  %v12409_v55 = vld [vmem:[#allocation8 + $0x108] ss:$12 sps:$4 sm:$0xff]  }
 0x38b   : > { %v4809_v16 = vmax.f32 %v10850_v32, 0.0  ;;  %v4811_v45 = vmax.f32 %v10914_v60, 0.0  ;;  %4057 = vmatmul.mubr.bf16.gmra.mrb[148].mxu0 %v13485_v15  ;;  %4443 = vmatmul.mubr.bf16.gmra.mrb[148].mxu1 %v13485_v15  ;;  %v12416_v15 = vld [vmem:[#allocation8 + $0x124] ss:$12 sps:$4 sm:$0xff]  }
 0x38c   : > { %v4810_v27 = vmax.f32 %v10851_v34, 0.0  ;;  %v4812_v50 = vmax.f32 %v10915_v51, 0.0  ;;  %4066 = vmatprep.mubr.bf16.mxu0 %v16002_v39  ;;  %4452 = vmatprep.mubr.bf16.mxu1 %v16002_v39 }
 0x38d   : > { %v14248_v37 = vpack.c.bf16 %v4809_v16, %v4797_v23  ;;  %7087 = vmatpush1.bf16.msra.mxu0 %v12406_v30  ;;  %v14250_v29 = vpack.c.bf16 %v4811_v45, %v4799_v14 }
 0x38e   : > { %v14252_v0 = vpack.c.bf16 %v4810_v27, %v4798_v19  ;;  %v3346_v32 = vpop.f32.mrb[108].mxu0  ;;  %v3732_v60 = vpop.f32.mrb[108].mxu1  ;;  %7088 = vmatprep.subr.bf16.mxu0 %v12411_v21  ;;  %v14254_v46 = vpack.c.bf16 %v4812_v50, %v4800_v36  ;;  %v12414_v50 = vld [vmem:[#allocation8 + $0x120] ss:$12 sps:$4 sm:$0xff]  }
 0x38f   : > { %16080 = vst [vmem:[#allocation98_spill] sm:$0xff] %v14248_v37  ;;  %16081 = vst [vmem:[#allocation99_spill] sm:$0xff] %v14250_v29  ;;  %v10852_v52 = vadd.f32 %v3346_v32, %v14026_v31  ;;  %v10916_v3 = vadd.f32 %v3732_v60, %v14028_v28  ;;  %v3348_v38 = vpop.f32.mrb[109].mxu0  ;;  %v3734_v34 = vpop.f32.mrb[109].mxu1  ;;  %v12419_v32 = vld [vmem:[#allocation8 + $0x13c] ss:$12 sps:$4 sm:$0xff]  }
 0x390   : > { %16082 = vst [vmem:[#allocation100_spill] sm:$0xff] %v14254_v46  ;;  %v10853_v51 = vadd.f32 %v3348_v38, %v14030_v9  ;;  %v10917_v30 = vadd.f32 %v3734_v34, %v14032_v12  ;;  %v3350_v23 = vpop.f32.mrb[110].mxu0  ;;  %v3736_v14 = vpop.f32.mrb[110].mxu1 }
 0x391   : > { %v10854_v27 = vadd.f32 %v3350_v23, %v14026_v31  ;;  %v10918_v16 = vadd.f32 %v3736_v14, %v14028_v28  ;;  %v3352_v21 = vpop.f32.mrb[111].mxu0  ;;  %v3738_v45 = vpop.f32.mrb[111].mxu1  ;;  %7089 = vmatpush1.bf16.msra.mxu0 %v12409_v55  ;;  %v4821_v60 = vmax.f32 %v10852_v52, 0.0  ;;  %v4823_v38 = vmax.f32 %v10916_v3, 0.0 }
 0x392   : > { %v10855_v19 = vadd.f32 %v3352_v21, %v14030_v9  ;;  %v10919_v36 = vadd.f32 %v3738_v45, %v14032_v12  ;;  %7090 = vmatprep.subr.bf16.mxu0 %v12416_v15  ;;  %v4822_v23 = vmax.f32 %v10853_v51, 0.0  ;;  %v4824_v14 = vmax.f32 %v10917_v30, 0.0  ;;  %v12417_v15 = vld [vmem:[#allocation8 + $0x138] ss:$12 sps:$4 sm:$0xff]  }
 0x393   : > { %v4833_v29 = vmax.f32 %v10854_v27, 0.0  ;;  %v4835_v34 = vmax.f32 %v10918_v16, 0.0  ;;  %4067 = vmatmul.mubr.bf16.gmra.mrb[152].mxu0 %v13493_v42  ;;  %4453 = vmatmul.mubr.bf16.gmra.mrb[152].mxu1 %v13493_v42  ;;  %v12424_v42 = vld [vmem:[#allocation8 + $0x154] ss:$12 sps:$4 sm:$0xff]  }
 0x394   : > { %v4834_v46 = vmax.f32 %v10855_v19, 0.0  ;;  %v4836_v37 = vmax.f32 %v10919_v36, 0.0  ;;  %4076 = vmatprep.mubr.bf16.mxu0 %v16002_v39  ;;  %4462 = vmatprep.mubr.bf16.mxu1 %v16002_v39 }
 0x395   : > { %v14268_v55 = vpack.c.bf16 %v4833_v29, %v4821_v60  ;;  %7091 = vmatpush1.bf16.msra.mxu0 %v12414_v50  ;;  %v14270_v52 = vpack.c.bf16 %v4835_v34, %v4823_v38 }
 0x396   : > { %v14272_v3 = vpack.c.bf16 %v4834_v46, %v4822_v23  ;;  %v3356_v27 = vpop.f32.mrb[112].mxu0  ;;  %v3742_v16 = vpop.f32.mrb[112].mxu1  ;;  %7092 = vmatprep.subr.bf16.mxu0 %v12419_v32  ;;  %v14274_v51 = vpack.c.bf16 %v4836_v37, %v4824_v14  ;;  %v12422_v37 = vld [vmem:[#allocation8 + $0x150] ss:$12 sps:$4 sm:$0xff]  }
 0x397   : > { %16083 = vst [vmem:[#allocation101_spill] sm:$0xff] %v14268_v55  ;;  %16084 = vst [vmem:[#allocation102_spill] sm:$0xff] %v14270_v52  ;;  %v10856_v30 = vadd.f32 %v3356_v27, %v14026_v31  ;;  %v10920_v21 = vadd.f32 %v3742_v16, %v14028_v28  ;;  %v3358_v45 = vpop.f32.mrb[113].mxu0  ;;  %v3744_v19 = vpop.f32.mrb[113].mxu1  ;;  %v12427_v27 = vld [vmem:[#allocation8 + $0x16c] ss:$12 sps:$4 sm:$0xff]  }
 0x398   : > { %16085 = vst [vmem:[#allocation103_spill] sm:$0xff] %v14274_v51  ;;  %v10857_v29 = vadd.f32 %v3358_v45, %v14030_v9  ;;  %v10921_v50 = vadd.f32 %v3744_v19, %v14032_v12  ;;  %v3360_v36 = vpop.f32.mrb[114].mxu0  ;;  %v3746_v60 = vpop.f32.mrb[114].mxu1 }
 0x399   : > { %v10858_v46 = vadd.f32 %v3360_v36, %v14026_v31  ;;  %v10922_v38 = vadd.f32 %v3746_v60, %v14028_v28  ;;  %v3362_v32 = vpop.f32.mrb[115].mxu0  ;;  %v3748_v34 = vpop.f32.mrb[115].mxu1  ;;  %7093 = vmatpush1.bf16.msra.mxu0 %v12417_v15  ;;  %v4845_v16 = vmax.f32 %v10856_v30, 0.0  ;;  %v4847_v45 = vmax.f32 %v10920_v21, 0.0 }
 0x39a   : > { %v10859_v23 = vadd.f32 %v3362_v32, %v14030_v9  ;;  %v10923_v14 = vadd.f32 %v3748_v34, %v14032_v12  ;;  %7094 = vmatprep.subr.bf16.mxu0 %v12424_v42  ;;  %v4846_v36 = vmax.f32 %v10857_v29, 0.0  ;;  %v4848_v60 = vmax.f32 %v10921_v50, 0.0  ;;  %v12425_v42 = vld [vmem:[#allocation8 + $0x168] ss:$12 sps:$4 sm:$0xff]  }
 0x39b   : > { %v4857_v52 = vmax.f32 %v10858_v46, 0.0  ;;  %v4859_v19 = vmax.f32 %v10922_v38, 0.0  ;;  %4077 = vmatmul.mubr.bf16.gmra.mrb[156].mxu0 %v13501_v5  ;;  %4463 = vmatmul.mubr.bf16.gmra.mrb[156].mxu1 %v13501_v5  ;;  %v12432_v5 = vld [vmem:[#allocation8 + $0x184] ss:$12 sps:$4 sm:$0xff]  }
 0x39c   : > { %v4858_v51 = vmax.f32 %v10859_v23, 0.0  ;;  %v4860_v55 = vmax.f32 %v10923_v14, 0.0  ;;  %4086 = vmatprep.mubr.bf16.mxu0 %v16002_v39  ;;  %4472 = vmatprep.mubr.bf16.mxu1 %v16002_v39 }
 0x39d   : > { %v14288_v15 = vpack.c.bf16 %v4857_v52, %v4845_v16  ;;  %7095 = vmatpush1.bf16.msra.mxu0 %v12422_v37  ;;  %v14290_v30 = vpack.c.bf16 %v4859_v19, %v4847_v45 }
 0x39e   : > { %v14292_v21 = vpack.c.bf16 %v4858_v51, %v4846_v36  ;;  %v3366_v46 = vpop.f32.mrb[116].mxu0  ;;  %v3752_v38 = vpop.f32.mrb[116].mxu1  ;;  %7096 = vmatprep.subr.bf16.mxu0 %v12427_v27  ;;  %v14294_v29 = vpack.c.bf16 %v4860_v55, %v4848_v60 }
 0x39f   : > { %16086 = vst [vmem:[#allocation104_spill] sm:$0xff] %v14290_v30  ;;  %v10860_v50 = vadd.f32 %v3366_v46, %v14026_v31  ;;  %v10924_v32 = vadd.f32 %v3752_v38, %v14028_v28  ;;  %v3368_v34 = vpop.f32.mrb[117].mxu0  ;;  %v3754_v23 = vpop.f32.mrb[117].mxu1 }
 0x3a0   : > { %16087 = vst [vmem:[#allocation105_spill] sm:$0xff] %v14294_v29  ;;  %v10861_v52 = vadd.f32 %v3368_v34, %v14030_v9  ;;  %v10925_v37 = vadd.f32 %v3754_v23, %v14032_v12  ;;  %v3370_v14 = vpop.f32.mrb[118].mxu0  ;;  %v3756_v16 = vpop.f32.mrb[118].mxu1 }
 0x3a1   : > { %v10862_v51 = vadd.f32 %v3370_v14, %v14026_v31  ;;  %v10926_v45 = vadd.f32 %v3756_v16, %v14028_v28  ;;  %v3372_v27 = vpop.f32.mrb[119].mxu0  ;;  %v3758_v19 = vpop.f32.mrb[119].mxu1  ;;  %7097 = vmatpush1.bf16.msra.mxu0 %v12425_v42  ;;  %v4869_v60 = vmax.f32 %v10860_v50, 0.0  ;;  %v4871_v46 = vmax.f32 %v10924_v32, 0.0 }
 0x3a2   : > { %v10863_v55 = vadd.f32 %v3372_v27, %v14030_v9  ;;  %v10927_v36 = vadd.f32 %v3758_v19, %v14032_v12  ;;  %7259 = vmatprep.subr.bf16.mxu0 %v12432_v5  ;;  %v4870_v23 = vmax.f32 %v10861_v52, 0.0  ;;  %v4872_v14 = vmax.f32 %v10925_v37, 0.0 }
 0x3a3   : > { %v4881_v38 = vmax.f32 %v10862_v51, 0.0  ;;  %v4883_v34 = vmax.f32 %v10926_v45, 0.0  ;;  %4087 = vmatmul.mubr.bf16.gmra.mrb[160].mxu0 %v13509_v35  ;;  %4473 = vmatmul.mubr.bf16.gmra.mrb[160].mxu1 %v13509_v35 }
 0x3a4   : > { %v4882_v30 = vmax.f32 %v10863_v55, 0.0  ;;  %v4884_v16 = vmax.f32 %v10927_v36, 0.0  ;;  %4096 = vmatprep.mubr.bf16.mxu0 %v16002_v39  ;;  %4482 = vmatprep.mubr.bf16.mxu1 %v16002_v39 }
 0x3a5   : > { %v14308_v42 = vpack.c.bf16 %v4881_v38, %v4869_v60  ;;  %v14310_v27 = vpack.c.bf16 %v4883_v34, %v4871_v46 }
 0x3a6   : > { %v14312_v5 = vpack.c.bf16 %v4882_v30, %v4870_v23  ;;  %v3376_v50 = vpop.f32.mrb[120].mxu0  ;;  %v3762_v32 = vpop.f32.mrb[120].mxu1  ;;  %v14314_v51 = vpack.c.bf16 %v4884_v16, %v4872_v14 }
 0x3a7   : > { %16088 = vst [vmem:[#allocation106_spill] sm:$0xff] %v14310_v27  ;;  %v10864_v35 = vadd.f32 %v3376_v50, %v14026_v31  ;;  %v10928_v52 = vadd.f32 %v3762_v32, %v14028_v28  ;;  %v3378_v37 = vpop.f32.mrb[121].mxu0  ;;  %v3764_v45 = vpop.f32.mrb[121].mxu1 }
 0x3a8   : > { %16089 = vst [vmem:[#allocation107_spill] sm:$0xff] %v14314_v51  ;;  %v10865_v19 = vadd.f32 %v3378_v37, %v14030_v9  ;;  %v10929_v55 = vadd.f32 %v3764_v45, %v14032_v12  ;;  %v3380_v36 = vpop.f32.mrb[122].mxu0  ;;  %v3766_v60 = vpop.f32.mrb[122].mxu1 }
 0x3a9   : > { %v10866_v46 = vadd.f32 %v3380_v36, %v14026_v31  ;;  %v10930_v30 = vadd.f32 %v3766_v60, %v14028_v28  ;;  %v3382_v38 = vpop.f32.mrb[123].mxu0  ;;  %v3768_v34 = vpop.f32.mrb[123].mxu1  ;;  %v4893_v16 = vmax.f32 %v10864_v35, 0.0  ;;  %v4895_v50 = vmax.f32 %v10928_v52, 0.0 }
 0x3aa   : > { %v10867_v23 = vadd.f32 %v3382_v38, %v14030_v9  ;;  %v10931_v14 = vadd.f32 %v3768_v34, %v14032_v12  ;;  %v4894_v37 = vmax.f32 %v10865_v19, 0.0  ;;  %v4896_v45 = vmax.f32 %v10929_v55, 0.0 }
 0x3ab   : > { %v4905_v32 = vmax.f32 %v10866_v46, 0.0  ;;  %v4907_v27 = vmax.f32 %v10930_v30, 0.0  ;;  %4097 = vmatmul.mubr.bf16.gmra.mrb[164].mxu0 %v13517_v43  ;;  %4483 = vmatmul.mubr.bf16.gmra.mrb[164].mxu1 %v13517_v43 }
 0x3ac   : > { %v4906_v51 = vmax.f32 %v10867_v23, 0.0  ;;  %v4908_v36 = vmax.f32 %v10931_v14, 0.0  ;;  %4106 = vmatprep.mubr.bf16.mxu0 %v16002_v39  ;;  %4492 = vmatprep.mubr.bf16.mxu1 %v16002_v39 }
 0x3ad   : > { %v14328_v60 = vpack.c.bf16 %v4905_v32, %v4893_v16  ;;  %v14330_v38 = vpack.c.bf16 %v4907_v27, %v4895_v50 }
 0x3ae   : > { %v14332_v35 = vpack.c.bf16 %v4906_v51, %v4894_v37  ;;  %v3386_v52 = vpop.f32.mrb[124].mxu0  ;;  %v3772_v46 = vpop.f32.mrb[124].mxu1  ;;  %v14334_v30 = vpack.c.bf16 %v4908_v36, %v4896_v45 }
 0x3af   : > { %16090 = vst [vmem:[#allocation108_spill] sm:$0xff] %v14330_v38  ;;  %v10868_v43 = vadd.f32 %v3386_v52, %v14026_v31  ;;  %v10932_v19 = vadd.f32 %v3772_v46, %v14028_v28  ;;  %v3388_v55 = vpop.f32.mrb[125].mxu0  ;;  %v3774_v34 = vpop.f32.mrb[125].mxu1 }
 0x3b0   : > { %16091 = vst [vmem:[#allocation109_spill] sm:$0xff] %v14334_v30  ;;  %v10869_v23 = vadd.f32 %v3388_v55, %v14030_v9  ;;  %v3390_v14 = vpop.f32.mrb[126].mxu0  ;;  %v3776_v29 = vpop.f32.mrb[126].mxu1  ;;  %v10933_v16 = vadd.f32 %v3774_v34, %v14032_v12 }
 0x3b1   : > { %v10870_v27 = vadd.f32 %v3390_v14, %v14026_v31  ;;  %v10934_v51 = vadd.f32 %v3776_v29, %v14028_v28  ;;  %v3392_v50 = vpop.f32.mrb[127].mxu0  ;;  %v3778_v32 = vpop.f32.mrb[127].mxu1  ;;  %v4917_v36 = vmax.f32 %v10868_v43, 0.0  ;;  %v4919_v52 = vmax.f32 %v10932_v19, 0.0  ;;  %v12440_v43 = vld [vmem:[#allocation8 + $0x1b4] ss:$12 sps:$4 sm:$0xff]  }
 0x3b2   : > { %v10871_v37 = vadd.f32 %v3392_v50, %v14030_v9  ;;  %v10935_v45 = vadd.f32 %v3778_v32, %v14032_v12  ;;  %v4918_v55 = vmax.f32 %v10869_v23, 0.0  ;;  %v4920_v31 = vmax.f32 %v10933_v16, 0.0  ;;  %v12444_v19 = vld [vmem:[#allocation8 + $0x278] ss:$12 sps:$4 sm:$0xff]   ;;  %v12438_v23 = vld [vmem:[#allocation8 + $0x1b0] ss:$12 sps:$4 sm:$0xff]  }
 0x3b3   : > { %v4929_v46 = vmax.f32 %v10870_v27, 0.0  ;;  %v4931_v38 = vmax.f32 %v10934_v51, 0.0  ;;  %4107 = vmatmul.mubr.bf16.gmra.mrb[168].mxu0 %v13525_v49  ;;  %4493 = vmatmul.mubr.bf16.gmra.mrb[168].mxu1 %v13525_v49  ;;  %v16092_v49 = vld [vmem:[#allocation35_spill] sm:$0xff]  ;;  %v12445_v14 = vld [vmem:[#allocation8 + $0x1b8] ss:$12 sps:$4 sm:$0xff]   ;;  %v16095_v51 = vld [vmem:[#allocation37_spill] sm:$0xff] }
 0x3b4   : > { %v4930_v34 = vmax.f32 %v10871_v37, 0.0  ;;  %v4932_v30 = vmax.f32 %v10935_v45, 0.0  ;;  %4116 = vmatprep.mubr.bf16.mxu0 %v16002_v39  ;;  %4502 = vmatprep.mubr.bf16.mxu1 %v16002_v39  ;;  %v12443_v16 = vld [vmem:[#allocation8 + $0x1cc] ss:$12 sps:$4 sm:$0xff]   ;;  %v12452_v27 = vld [vmem:[#allocation8 + $0x290] ss:$12 sps:$4 sm:$0xff]  }
 0x3b5   : > { %v14348_v28 = vpack.c.bf16 %v4929_v46, %v4917_v36  ;;  %v14350_v9 = vpack.c.bf16 %v4931_v38, %v4919_v52  ;;  %v12436_v38 = vld [vmem:[#allocation8 + $0x260] ss:$12 sps:$4 sm:$0xff]   ;;  %v12441_v32 = vld [vmem:[#allocation8 + $0x1c8] ss:$12 sps:$4 sm:$0xff]   ;;  %v12453_v37 = vld [vmem:[#allocation8 + $0x1d0] ss:$12 sps:$4 sm:$0xff]  }
 0x3b6   : > { %v14352_v12 = vpack.c.bf16 %v4930_v34, %v4918_v55  ;;  %v14354_v29 = vpack.c.bf16 %v4932_v30, %v4920_v31  ;;  %v16093_v30 = vld [vmem:[#allocation33_spill] sm:$0xff]  ;;  %v16096_v50 = vld [vmem:[#allocation43_spill] sm:$0xff]  ;;  %v12460_v36 = vld [vmem:[#allocation8 + $0x2a8] ss:$12 sps:$4 sm:$0xff]  }
 0x3b7   : > { %v12448_v45 = vld [vmem:[#allocation8 + $0x1e4] ss:$12 sps:$4 sm:$0xff]   ;;  %v12446_v52 = vld [vmem:[#allocation8 + $0x1e0] ss:$12 sps:$4 sm:$0xff]   ;;  %v12461_v46 = vld [vmem:[#allocation8 + $0x1e8] ss:$12 sps:$4 sm:$0xff]  }
 0x3b8   : > { %v12451_v55 = vld [vmem:[#allocation8 + $0x1fc] ss:$12 sps:$4 sm:$0xff]   ;;  %v12468_v34 = vld [vmem:[#allocation8 + $0x2c0] ss:$12 sps:$4 sm:$0xff]  }
 0x3b9   : > { %v16097_v31 = vld [vmem:[#allocation41_spill] sm:$0xff] }
 0x3bb   : > { %4117 = vmatmul.mubr.bf16.gmra.mrb[172].mxu0 %v13533_v58  ;;  %4503 = vmatmul.mubr.bf16.gmra.mrb[172].mxu1 %v13533_v58  ;;  %v12429_v58 = vld [vmem:[#allocation8 + $0x188] ss:$12 sps:$4 sm:$0xff]  }
 0x3bc   : > { %4126 = vmatprep.mubr.bf16.mxu0 %v16002_v39  ;;  %4512 = vmatprep.mubr.bf16.mxu1 %v16002_v39 }
 0x3c3   : > { %4127 = vmatmul.mubr.bf16.gmra.mrb[176].mxu0 %v13541_v63  ;;  %4513 = vmatmul.mubr.bf16.gmra.mrb[176].mxu1 %v13541_v63  ;;  %v12430_v63 = vld [vmem:[#allocation8 + $0x180] ss:$12 sps:$4 sm:$0xff]  }
 0x3c4   : > { %4136 = vmatprep.mubr.bf16.mxu0 %v16002_v39  ;;  %4522 = vmatprep.mubr.bf16.mxu1 %v16002_v39 }
 0x3cb   : > { %4137 = vmatmul.mubr.bf16.gmra.mrb[180].mxu0 %v13549_v11  ;;  %4523 = vmatmul.mubr.bf16.gmra.mrb[180].mxu1 %v13549_v11  ;;  %v12435_v11 = vld [vmem:[#allocation8 + $0x19c] ss:$12 sps:$4 sm:$0xff]  }
 0x3cc   : > { %4146 = vmatprep.mubr.bf16.mxu0 %v16002_v39  ;;  %4532 = vmatprep.mubr.bf16.mxu1 %v16002_v39 }
 0x3d3   : > { %4147 = vmatmul.mubr.bf16.gmra.mrb[184].mxu0 %v13557_v26  ;;  %4533 = vmatmul.mubr.bf16.gmra.mrb[184].mxu1 %v13557_v26  ;;  %v16094_v26 = vld [vmem:[#allocation39_spill] sm:$0xff] }
 0x3d4   : > { %4156 = vmatprep.mubr.bf16.mxu0 %v16002_v39  ;;  %4542 = vmatprep.mubr.bf16.mxu1 %v16002_v39  ;;  %v12433_v39 = vld [vmem:[#allocation8 + $0x198] ss:$12 sps:$4 sm:$0xff]  }
 0x3db   : > { %4157 = vmatmul.mubr.bf16.gmra.mrb[188].mxu0 %v13565_v33  ;;  %4543 = vmatmul.mubr.bf16.gmra.mrb[188].mxu1 %v13565_v33  ;;  %v12437_v33 = vld [vmem:[#allocation8 + $0x1a0] ss:$12 sps:$4 sm:$0xff]  }
 0x3dc   : > { %7098 = vmatprep.mubr.bf16.mxu0 %v16092_v49  ;;  %8256 = vmatprep.mubr.bf16.mxu1 %v16092_v49  ;;  %v16098_v49 = vld [vmem:[#allocation47_spill] sm:$0xff] }
 0x3e3   : > { %7099 = vmatmul.mubr.bf16.vlgmr.msra.gmra.mrb[192].mxu0 %v16093_v30  ;;  %8257 = vmatmul.mubr.bf16.vlgmr.msra.gmra.mrb[192].mxu1 %v16093_v30  ;;  %v12454_v30 = vld [vmem:[#allocation8 + $0x210] ss:$12 sps:$4 sm:$0xff]  }
 0x3e4   : > { %7108 = vmatprep.mubr.bf16.mxu0 %v16094_v26  ;;  %8264 = vmatprep.mubr.bf16.mxu1 %v16094_v26  ;;  %v12477_v26 = vld [vmem:[#allocation8 + $0x218] ss:$12 sps:$4 sm:$0xff]  }
 0x3e5   : > { %10121 = vmatpush3.bf16.msra.mxu1 %v12429_v58  ;;  %7260 = vmatpush1.bf16.msra.mxu0 %v12430_v63  ;;  %v12449_v58 = vld [vmem:[#allocation8 + $0x1f8] ss:$12 sps:$4 sm:$0xff]   ;;  %v12469_v63 = vld [vmem:[#allocation8 + $0x200] ss:$12 sps:$4 sm:$0xff]  }
 0x3e6   : > { %7261 = vmatprep.subr.bf16.mxu0 %v12435_v11  ;;  %10122 = vmatprep.subr.bf16.mxu1 %v12436_v38  ;;  %v12456_v11 = vld [vmem:[#allocation8 + $0x214] ss:$12 sps:$4 sm:$0xff]   ;;  %v12476_v38 = vld [vmem:[#allocation8 + $0x2d8] ss:$12 sps:$4 sm:$0xff]  }
 0x3e9   : > { %7262 = vmatpush1.bf16.msra.mxu0 %v12433_v39  ;;  %10123 = vmatpush3.bf16.msra.mxu1 %v12437_v33  ;;  %v12459_v39 = vld [vmem:[#allocation8 + $0x22c] ss:$12 sps:$4 sm:$0xff]   ;;  %v12484_v33 = vld [vmem:[#allocation8 + $0x2f0] ss:$12 sps:$4 sm:$0xff]  }
 0x3ea   : > { %7263 = vmatprep.subr.bf16.mxu0 %v12440_v43  ;;  %10124 = vmatprep.subr.bf16.mxu1 %v12444_v19  ;;  %v16099_v43 = vld [vmem:[#allocation45_spill] sm:$0xff]  ;;  %v16100_v19 = vld [vmem:[#allocation51_spill] sm:$0xff] }
 0x3eb   : > { %7109 = vmatmul.mubr.bf16.gmra.mrb[196].mxu0 %v16095_v51  ;;  %8265 = vmatmul.mubr.bf16.gmra.mrb[196].mxu1 %v16095_v51  ;;  %v12462_v51 = vld [vmem:[#allocation8 + $0x240] ss:$12 sps:$4 sm:$0xff]  }
 0x3ec   : > { %7118 = vmatprep.mubr.bf16.mxu0 %v16096_v50  ;;  %8272 = vmatprep.mubr.bf16.mxu1 %v16096_v50  ;;  %v12467_v50 = vld [vmem:[#allocation8 + $0x25c] ss:$12 sps:$4 sm:$0xff]  }
 0x3ed   : > { %7264 = vmatpush1.bf16.msra.mxu0 %v12438_v23  ;;  %10125 = vmatpush3.bf16.msra.mxu1 %v12445_v14  ;;  %v12457_v23 = vld [vmem:[#allocation8 + $0x228] ss:$12 sps:$4 sm:$0xff]   ;;  %v12485_v14 = vld [vmem:[#allocation8 + $0x230] ss:$12 sps:$4 sm:$0xff]  }
 0x3ee   : > { %7265 = vmatprep.subr.bf16.mxu0 %v12443_v16  ;;  %10126 = vmatprep.subr.bf16.mxu1 %v12452_v27  ;;  %v12464_v16 = vld [vmem:[#allocation8 + $0x244] ss:$12 sps:$4 sm:$0xff]   ;;  %v12492_v27 = vld [vmem:[#allocation8 + $0x3c8] ss:$12 sps:$4 sm:$0xff]  }
 0x3f1   : > { %7266 = vmatpush1.bf16.msra.mxu0 %v12441_v32  ;;  %10127 = vmatpush3.bf16.msra.mxu1 %v12453_v37  ;;  %v16101_v32 = vld [vmem:[#allocation49_spill] sm:$0xff]  ;;  %v16102_v37 = vld [vmem:[#allocation55_spill] sm:$0xff] }
 0x3f2   : > { %7267 = vmatprep.subr.bf16.mxu0 %v12448_v45  ;;  %10128 = vmatprep.subr.bf16.mxu1 %v12460_v36  ;;  %v12465_v45 = vld [vmem:[#allocation8 + $0x258] ss:$12 sps:$4 sm:$0xff]   ;;  %v12472_v36 = vld [vmem:[#allocation8 + $0x274] ss:$12 sps:$4 sm:$0xff]  }
 0x3f3   : > { %7119 = vmatmul.mubr.bf16.gmra.mrb[200].mxu0 %v16097_v31  ;;  %8273 = vmatmul.mubr.bf16.gmra.mrb[200].mxu1 %v16097_v31  ;;  %v12473_v31 = vld [vmem:[#allocation8 + $0x288] ss:$12 sps:$4 sm:$0xff]  }
 0x3f4   : > { %7128 = vmatprep.mubr.bf16.mxu0 %v16098_v49  ;;  %8280 = vmatprep.mubr.bf16.mxu1 %v16098_v49  ;;  %v12480_v49 = vld [vmem:[#allocation8 + $0x2a4] ss:$12 sps:$4 sm:$0xff]  }
 0x3f5   : > { %7268 = vmatpush1.bf16.msra.mxu0 %v12446_v52  ;;  %10129 = vmatpush3.bf16.msra.mxu1 %v12461_v46  ;;  %v12470_v52 = vld [vmem:[#allocation8 + $0x270] ss:$12 sps:$4 sm:$0xff]   ;;  %v12475_v46 = vld [vmem:[#allocation8 + $0x28c] ss:$12 sps:$4 sm:$0xff]  }
 0x3f6   : > { %7269 = vmatprep.subr.bf16.mxu0 %v12451_v55  ;;  %10130 = vmatprep.subr.bf16.mxu1 %v12468_v34  ;;  %v16103_v55 = vld [vmem:[#allocation53_spill] sm:$0xff]  ;;  %v16104_v34 = vld [vmem:[#allocation59_spill] sm:$0xff] }
 0x3f9   : > { %7270 = vmatpush1.bf16.msra.mxu0 %v12449_v58  ;;  %10131 = vmatpush3.bf16.msra.mxu1 %v12469_v63  ;;  %v12478_v58 = vld [vmem:[#allocation8 + $0x2a0] ss:$12 sps:$4 sm:$0xff]   ;;  %v12483_v63 = vld [vmem:[#allocation8 + $0x2bc] ss:$12 sps:$4 sm:$0xff]  }
 0x3fa   : > { %7271 = vmatprep.subr.bf16.mxu0 %v12456_v11  ;;  %10132 = vmatprep.subr.bf16.mxu1 %v12476_v38  ;;  %v16105_v11 = vld [vmem:[#allocation57_spill] sm:$0xff]  ;;  %v16106_v38 = vld [vmem:[#allocation63_spill] sm:$0xff] }
 0x3fb   : > { %7129 = vmatmul.mubr.bf16.gmra.mrb[204].mxu0 %v16099_v43  ;;  %8281 = vmatmul.mubr.bf16.gmra.mrb[204].mxu1 %v16099_v43  ;;  %v16107_v43 = vld [vmem:[#allocation61_spill] sm:$0xff] }
 0x3fc   : > { %7138 = vmatprep.mubr.bf16.mxu0 %v16100_v19  ;;  %8288 = vmatprep.mubr.bf16.mxu1 %v16100_v19  ;;  %v16108_v19 = vld [vmem:[#allocation67_spill] sm:$0xff] }
 0x3fd   : > { %7272 = vmatpush1.bf16.msra.mxu0 %v12454_v30  ;;  %10133 = vmatpush3.bf16.msra.mxu1 %v12477_v26  ;;  %v12481_v30 = vld [vmem:[#allocation8 + $0x2b8] ss:$12 sps:$4 sm:$0xff]   ;;  %v12488_v26 = vld [vmem:[#allocation8 + $0x2d4] ss:$12 sps:$4 sm:$0xff]  }
 0x3fe   : > { %7273 = vmatprep.subr.bf16.mxu0 %v12459_v39  ;;  %10134 = vmatprep.subr.bf16.mxu1 %v12484_v33  ;;  %v12486_v39 = vld [vmem:[#allocation8 + $0x2d0] ss:$12 sps:$4 sm:$0xff]   ;;  %v12491_v33 = vld [vmem:[#allocation8 + $0x2ec] ss:$12 sps:$4 sm:$0xff]  }
 0x401   : > { %7274 = vmatpush1.bf16.msra.mxu0 %v12457_v23  ;;  %10135 = vmatpush3.bf16.msra.mxu1 %v12485_v14  ;;  %v12489_v23 = vld [vmem:[#allocation8 + $0x2e8] ss:$12 sps:$4 sm:$0xff]   ;;  %v12496_v14 = vld [vmem:[#allocation8 + $0x304] ss:$12 sps:$4 sm:$0xff]  }
 0x402   : > { %7275 = vmatprep.subr.bf16.mxu0 %v12464_v16  ;;  %10232 = vmatprep.subr.bf16.mxu1 %v12492_v27  ;;  %v16109_v16 = vld [vmem:[#allocation65_spill] sm:$0xff]  ;;  %v16110_v27 = vld [vmem:[#allocation71_spill] sm:$0xff] }
 0x403   : > { %7139 = vmatmul.mubr.bf16.gmra.mrb[208].mxu0 %v16101_v32  ;;  %8289 = vmatmul.mubr.bf16.gmra.mrb[208].mxu1 %v16101_v32  ;;  %v734_v32 = vld [vmem:[#allocation7 + $0x8] sm:$0xf] }
 0x404   : > { %7148 = vmatprep.mubr.bf16.mxu0 %v16102_v37  ;;  %8296 = vmatprep.mubr.bf16.mxu1 %v16102_v37  ;;  %v16113_v37 = vld [vmem:[#allocation73_spill] sm:$0xff] }
 0x405   : > { %7276 = vmatpush1.bf16.msra.mxu0 %v12462_v51  ;;  %v16111_v51 = vld [vmem:[#allocation69_spill] sm:$0xff] }
 0x406   : > { %7277 = vmatprep.subr.bf16.mxu0 %v12467_v50  ;;  %v16112_v50 = vld [vmem:[#allocation75_spill] sm:$0xff] }
 0x409   : > { %7278 = vmatpush1.bf16.msra.mxu0 %v12465_v45  ;;  %v16114_v45 = vld [vmem:[#allocation30_spill] sm:$0xff] }
 0x40a   : > { %7279 = vmatprep.subr.bf16.mxu0 %v12472_v36  ;;  %v14419_v36 = vrot.slane %v734_v32, %v16114_v45 }
 0x40b   : > { %7149 = vmatmul.mubr.bf16.gmra.mrb[212].mxu0 %v16103_v55  ;;  %8297 = vmatmul.mubr.bf16.gmra.mrb[212].mxu1 %v16103_v55  ;;  %v16116_v55 = vld [vmem:[#allocation79_spill] sm:$0xff] }
 0x40c   : > { %7158 = vmatprep.mubr.bf16.mxu0 %v16104_v34  ;;  %8304 = vmatprep.mubr.bf16.mxu1 %v16104_v34  ;;  %v16117_v34 = vld [vmem:[#allocation32_spill] sm:$0xff] }
 0x40d   : > { %7280 = vmatpush1.bf16.msra.mxu0 %v12470_v52  ;;  %v16115_v52 = vld [vmem:[#allocation31_spill] sm:$0xff] }
 0x40e   : > { %7281 = vmatprep.subr.bf16.mxu0 %v12475_v46  ;;  %v14422_v46 = vrot.slane %v734_v32, %v16115_v52 }
 0x411   : > { %7282 = vmatpush1.bf16.msra.mxu0 %v12473_v31  ;;  %v14427_v31 = vrot.slane %v734_v32, %v16117_v34 }
 0x412   : > { %7283 = vmatprep.subr.bf16.mxu0 %v12480_v49  ;;  %v16118_v49 = vsub.s32 3, %v16047_v10 }
 0x413   : > { %7159 = vmatmul.mubr.bf16.gmra.mrb[216].mxu0 %v16105_v11  ;;  %8305 = vmatmul.mubr.bf16.gmra.mrb[216].mxu1 %v16105_v11 }
 0x414   : > { %7168 = vmatprep.mubr.bf16.mxu0 %v16106_v38  ;;  %8312 = vmatprep.mubr.bf16.mxu1 %v16106_v38 }
 0x415   : > { %7284 = vmatpush1.bf16.msra.mxu0 %v12478_v58  ;;  %v14431_v58 = vrot.slane %v734_v32, %v16118_v49 }
 0x416   : > { %7285 = vmatprep.subr.bf16.mxu0 %v12483_v63 }
 0x419   : > { %7286 = vmatpush1.bf16.msra.mxu0 %v12481_v30 }
 0x41a   : > { %7287 = vmatprep.subr.bf16.mxu0 %v12488_v26 }
 0x41b   : > { %7169 = vmatmul.mubr.bf16.gmra.mrb[220].mxu0 %v16107_v43  ;;  %8313 = vmatmul.mubr.bf16.gmra.mrb[220].mxu1 %v16107_v43 }
 0x41c   : > { %7178 = vmatprep.mubr.bf16.mxu0 %v16108_v19  ;;  %8320 = vmatprep.mubr.bf16.mxu1 %v16108_v19 }
 0x41d   : > { %7288 = vmatpush1.bf16.msra.mxu0 %v12486_v39 }
 0x41e   : > { %7289 = vmatprep.subr.bf16.mxu0 %v12491_v33 }
 0x421   : > { %7290 = vmatpush1.bf16.msra.mxu0 %v12489_v23 }
 0x422   : > { %7452 = vmatprep.subr.bf16.mxu0 %v12496_v14 }
 0x423   : > { %7179 = vmatmul.mubr.bf16.gmra.mrb[224].mxu0 %v16109_v16  ;;  %8321 = vmatmul.mubr.bf16.gmra.mrb[224].mxu1 %v16109_v16 }
 0x424   : > { %7188 = vmatprep.mubr.bf16.mxu0 %v16110_v27  ;;  %8328 = vmatprep.mubr.bf16.mxu1 %v16110_v27 }
 0x42b   : > { %7189 = vmatmul.mubr.bf16.gmra.mrb[228].mxu0 %v16111_v51  ;;  %8329 = vmatmul.mubr.bf16.gmra.mrb[228].mxu1 %v16111_v51 }
 0x42c   : > { %7198 = vmatprep.mubr.bf16.mxu0 %v16112_v50  ;;  %8336 = vmatprep.mubr.bf16.mxu1 %v16112_v50 }
 0x433   : > { %7199 = vmatmul.mubr.bf16.gmra.mrb[232].mxu0 %v16113_v37  ;;  %8337 = vmatmul.mubr.bf16.gmra.mrb[232].mxu1 %v16113_v37 }
 0x434   : > { %7208 = vmatprep.mubr.bf16.mxu0 %v16116_v55  ;;  %8344 = vmatprep.mubr.bf16.mxu1 %v16116_v55 }
 0x436   : > { %v4008_v63 = vpop.f32.mrb[128].mxu0  ;;  %v4394_v11 = vpop.f32.mrb[128].mxu1 }
 0x437   : > { %v10936_v38 = vadd.f32 %v4008_v63, %v14419_v36  ;;  %v11000_v30 = vadd.f32 %v4394_v11, %v14422_v46  ;;  %v4010_v26 = vpop.f32.mrb[129].mxu0  ;;  %v4396_v39 = vpop.f32.mrb[129].mxu1  ;;  %v16119_v63 = vld [vmem:[#allocation77_spill] sm:$0xff] }
 0x438   : > { %v10937_v33 = vadd.f32 %v4010_v26, %v14427_v31  ;;  %v11001_v43 = vadd.f32 %v4396_v39, %v14431_v58  ;;  %v4012_v19 = vpop.f32.mrb[130].mxu0  ;;  %v4398_v23 = vpop.f32.mrb[130].mxu1 }
 0x439   : > { %v10938_v14 = vadd.f32 %v4012_v19, %v14419_v36  ;;  %v11002_v10 = vadd.f32 %v4398_v23, %v14422_v46  ;;  %v4014_v16 = vpop.f32.mrb[131].mxu0  ;;  %v4400_v27 = vpop.f32.mrb[131].mxu1  ;;  %v4561_v32 = vmax.f32 %v10936_v38, 0.0  ;;  %v4563_v37 = vmax.f32 %v11000_v30, 0.0 }
 0x43a   : > { %v10939_v51 = vadd.f32 %v4014_v16, %v14427_v31  ;;  %v11003_v50 = vadd.f32 %v4400_v27, %v14431_v58  ;;  %v4562_v11 = vmax.f32 %v10937_v33, 0.0  ;;  %v4564_v26 = vmax.f32 %v11001_v43, 0.0 }
 0x43b   : > { %v4573_v55 = vmax.f32 %v10938_v14, 0.0  ;;  %v4575_v49 = vmax.f32 %v11002_v10, 0.0  ;;  %7209 = vmatmul.mubr.bf16.gmra.mrb[236].mxu0 %v16119_v63  ;;  %8345 = vmatmul.mubr.bf16.gmra.mrb[236].mxu1 %v16119_v63 }
 0x43c   : > { %v4574_v39 = vmax.f32 %v10939_v51, 0.0  ;;  %v4576_v19 = vmax.f32 %v11003_v50, 0.0  ;;  %7218 = vmatprep.mubr.bf16.mxu0 %v13896_v25  ;;  %8352 = vmatprep.mubr.bf16.mxu1 %v13896_v25 }
 0x43d   : > { %v14445_v23 = vpack.c.bf16 %v4573_v55, %v4561_v32  ;;  %v14447_v16 = vpack.c.bf16 %v4575_v49, %v4563_v37 }
 0x43e   : > { %v14449_v38 = vpack.c.bf16 %v4574_v39, %v4562_v11  ;;  %v4018_v30 = vpop.f32.mrb[132].mxu0  ;;  %v4404_v14 = vpop.f32.mrb[132].mxu1  ;;  %v14451_v10 = vpack.c.bf16 %v4576_v19, %v4564_v26 }
 0x43f   : > { %16120 = vst [vmem:[#allocation35_spill] sm:$0xff] %v14447_v16  ;;  %v10940_v27 = vadd.f32 %v4018_v30, %v14419_v36  ;;  %v11004_v33 = vadd.f32 %v4404_v14, %v14422_v46  ;;  %v4020_v43 = vpop.f32.mrb[133].mxu0  ;;  %v4406_v51 = vpop.f32.mrb[133].mxu1 }
 0x440   : > { %16121 = vst [vmem:[#allocation33_spill] sm:$0xff] %v14451_v10  ;;  %v10941_v50 = vadd.f32 %v4020_v43, %v14427_v31  ;;  %v11005_v25 = vadd.f32 %v4406_v51, %v14431_v58  ;;  %v4022_v32 = vpop.f32.mrb[134].mxu0  ;;  %v4408_v55 = vpop.f32.mrb[134].mxu1  ;;  %v16134_v10 = vld [vmem:[#allocation36_spill] sm:$0xff] }
 0x441   : > { %v10942_v37 = vadd.f32 %v4022_v32, %v14419_v36  ;;  %v11006_v49 = vadd.f32 %v4408_v55, %v14422_v46  ;;  %v4024_v63 = vpop.f32.mrb[135].mxu0  ;;  %v4410_v11 = vpop.f32.mrb[135].mxu1  ;;  %v4585_v19 = vmax.f32 %v10940_v27, 0.0  ;;  %v4587_v30 = vmax.f32 %v11004_v33, 0.0 }
 0x442   : > { %v10943_v26 = vadd.f32 %v4024_v63, %v14427_v31  ;;  %v11007_v39 = vadd.f32 %v4410_v11, %v14431_v58  ;;  %v4586_v43 = vmax.f32 %v10941_v50, 0.0  ;;  %v4588_v51 = vmax.f32 %v11005_v25, 0.0 }
 0x443   : > { %v4597_v14 = vmax.f32 %v10942_v37, 0.0  ;;  %v4599_v34 = vmax.f32 %v11006_v49, 0.0  ;;  %7219 = vmatmul.mubr.bf16.gmra.mrb[240].mxu0 %v13892_v4  ;;  %8353 = vmatmul.mubr.bf16.gmra.mrb[240].mxu1 %v13892_v4 }
 0x444   : > { %v4598_v45 = vmax.f32 %v10943_v26, 0.0  ;;  %v4600_v32 = vmax.f32 %v11007_v39, 0.0  ;;  %7228 = vmatprep.mubr.bf16.mxu0 %v13916_v47  ;;  %8360 = vmatprep.mubr.bf16.mxu1 %v13916_v47 }
 0x445   : > { %v14465_v55 = vpack.c.bf16 %v4597_v14, %v4585_v19  ;;  %v14467_v63 = vpack.c.bf16 %v4599_v34, %v4587_v30 }
 0x446   : > { %v14469_v27 = vpack.c.bf16 %v4598_v45, %v4586_v43  ;;  %v4028_v33 = vpop.f32.mrb[136].mxu0  ;;  %v4414_v37 = vpop.f32.mrb[136].mxu1  ;;  %v14471_v49 = vpack.c.bf16 %v4600_v32, %v4588_v51 }
 0x447   : > { %16122 = vst [vmem:[#allocation39_spill] sm:$0xff] %v14465_v55  ;;  %16123 = vst [vmem:[#allocation37_spill] sm:$0xff] %v14467_v63  ;;  %v10944_v4 = vadd.f32 %v4028_v33, %v14419_v36  ;;  %v11008_v50 = vadd.f32 %v4414_v37, %v14422_v46  ;;  %v4030_v25 = vpop.f32.mrb[137].mxu0  ;;  %v4416_v11 = vpop.f32.mrb[137].mxu1  ;;  %v16146_v55 = vld [vmem:[#allocation44_spill] sm:$0xff] }
 0x448   : > { %16124 = vst [vmem:[#allocation43_spill] sm:$0xff] %v14471_v49  ;;  %v10945_v26 = vadd.f32 %v4030_v25, %v14427_v31  ;;  %v11009_v47 = vadd.f32 %v4416_v11, %v14431_v58  ;;  %v4032_v39 = vpop.f32.mrb[138].mxu0  ;;  %v4418_v19 = vpop.f32.mrb[138].mxu1 }
 0x449   : > { %v10946_v34 = vadd.f32 %v4032_v39, %v14419_v36  ;;  %v11010_v45 = vadd.f32 %v4418_v19, %v14422_v46  ;;  %v4034_v30 = vpop.f32.mrb[139].mxu0  ;;  %v4420_v14 = vpop.f32.mrb[139].mxu1  ;;  %v4609_v32 = vmax.f32 %v10944_v4, 0.0  ;;  %v4611_v33 = vmax.f32 %v11008_v50, 0.0 }
 0x44a   : > { %v10947_v43 = vadd.f32 %v4034_v30, %v14427_v31  ;;  %v11011_v51 = vadd.f32 %v4420_v14, %v14431_v58  ;;  %v4610_v25 = vmax.f32 %v10945_v26, 0.0  ;;  %v4612_v11 = vmax.f32 %v11009_v47, 0.0 }
 0x44b   : > { %v4621_v37 = vmax.f32 %v10946_v34, 0.0  ;;  %v4623_v63 = vmax.f32 %v11010_v45, 0.0  ;;  %7229 = vmatmul.mubr.bf16.gmra.mrb[244].mxu0 %v13912_v1  ;;  %8361 = vmatmul.mubr.bf16.gmra.mrb[244].mxu1 %v13912_v1 }
 0x44c   : > { %v4622_v49 = vmax.f32 %v10947_v43, 0.0  ;;  %v4624_v39 = vmax.f32 %v11011_v51, 0.0  ;;  %7238 = vmatprep.mubr.bf16.mxu0 %v13936_v41  ;;  %8368 = vmatprep.mubr.bf16.mxu1 %v13936_v41 }
 0x44d   : > { %v14485_v19 = vpack.c.bf16 %v4621_v37, %v4609_v32  ;;  %v14487_v30 = vpack.c.bf16 %v4623_v63, %v4611_v33 }
 0x44e   : > { %v14489_v4 = vpack.c.bf16 %v4622_v49, %v4610_v25  ;;  %v4038_v50 = vpop.f32.mrb[140].mxu0  ;;  %v4424_v34 = vpop.f32.mrb[140].mxu1  ;;  %v14491_v45 = vpack.c.bf16 %v4624_v39, %v4612_v11 }
 0x44f   : > { %16125 = vst [vmem:[#allocation41_spill] sm:$0xff] %v14485_v19  ;;  %16126 = vst [vmem:[#allocation47_spill] sm:$0xff] %v14487_v30  ;;  %v10948_v1 = vadd.f32 %v4038_v50, %v14419_v36  ;;  %v11012_v26 = vadd.f32 %v4424_v34, %v14422_v46  ;;  %v4040_v47 = vpop.f32.mrb[141].mxu0  ;;  %v4426_v14 = vpop.f32.mrb[141].mxu1  ;;  %v16140_v19 = vld [vmem:[#allocation40_spill] sm:$0xff] }
 0x450   : > { %16127 = vst [vmem:[#allocation45_spill] sm:$0xff] %v14489_v4  ;;  %16128 = vst [vmem:[#allocation51_spill] sm:$0xff] %v14491_v45  ;;  %v10949_v43 = vadd.f32 %v4040_v47, %v14427_v31  ;;  %v11013_v41 = vadd.f32 %v4426_v14, %v14431_v58  ;;  %v4042_v51 = vpop.f32.mrb[142].mxu0  ;;  %v4428_v32 = vpop.f32.mrb[142].mxu1  ;;  %v16129_v45 = vld [vmem:[#allocation85_spill] sm:$0xff] }
 0x451   : > { %v10950_v63 = vadd.f32 %v4042_v51, %v14419_v36  ;;  %v11014_v49 = vadd.f32 %v4428_v32, %v14422_v46  ;;  %v4044_v33 = vpop.f32.mrb[143].mxu0  ;;  %v4430_v37 = vpop.f32.mrb[143].mxu1  ;;  %v4633_v39 = vmax.f32 %v10948_v1, 0.0  ;;  %v4635_v50 = vmax.f32 %v11012_v26, 0.0 }
 0x452   : > { %v10951_v25 = vadd.f32 %v4044_v33, %v14427_v31  ;;  %v11015_v11 = vadd.f32 %v4430_v37, %v14431_v58  ;;  %v4634_v47 = vmax.f32 %v10949_v43, 0.0  ;;  %v4636_v14 = vmax.f32 %v11013_v41, 0.0 }
 0x453   : > { %v4645_v34 = vmax.f32 %v10950_v63, 0.0  ;;  %v4647_v30 = vmax.f32 %v11014_v49, 0.0  ;;  %7239 = vmatmul.mubr.bf16.gmra.mrb[248].mxu0 %v16129_v45  ;;  %8369 = vmatmul.mubr.bf16.gmra.mrb[248].mxu1 %v16129_v45 }
 0x454   : > { %v4646_v16 = vmax.f32 %v10951_v25, 0.0  ;;  %v4648_v51 = vmax.f32 %v11015_v11, 0.0  ;;  %7248 = vmatprep.mubr.bf16.mxu0 %v13954_v18  ;;  %8376 = vmatprep.mubr.bf16.mxu1 %v13954_v18 }
 0x455   : > { %v14505_v32 = vpack.c.bf16 %v4645_v34, %v4633_v39  ;;  %v14507_v33 = vpack.c.bf16 %v4647_v30, %v4635_v50 }
 0x456   : > { %v14509_v1 = vpack.c.bf16 %v4646_v16, %v4634_v47  ;;  %v4048_v26 = vpop.f32.mrb[144].mxu0  ;;  %v4434_v63 = vpop.f32.mrb[144].mxu1  ;;  %v14511_v49 = vpack.c.bf16 %v4648_v51, %v4636_v14 }
 0x457   : > { %16130 = vst [vmem:[#allocation49_spill] sm:$0xff] %v14505_v32  ;;  %16131 = vst [vmem:[#allocation55_spill] sm:$0xff] %v14507_v33  ;;  %v10952_v45 = vadd.f32 %v4048_v26, %v14419_v36  ;;  %v11016_v43 = vadd.f32 %v4434_v63, %v14422_v46  ;;  %v4050_v41 = vpop.f32.mrb[145].mxu0  ;;  %v4436_v37 = vpop.f32.mrb[145].mxu1 }
 0x458   : > { %16132 = vst [vmem:[#allocation53_spill] sm:$0xff] %v14509_v1  ;;  %16133 = vst [vmem:[#allocation59_spill] sm:$0xff] %v14511_v49  ;;  %v10953_v25 = vadd.f32 %v4050_v41, %v14427_v31  ;;  %v11017_v18 = vadd.f32 %v4436_v37, %v14431_v58  ;;  %v4052_v11 = vpop.f32.mrb[146].mxu0  ;;  %v4438_v39 = vpop.f32.mrb[146].mxu1 }
 0x459   : > { %v10954_v30 = vadd.f32 %v4052_v11, %v14419_v36  ;;  %v11018_v16 = vadd.f32 %v4438_v39, %v14422_v46  ;;  %v4054_v50 = vpop.f32.mrb[147].mxu0  ;;  %v4440_v34 = vpop.f32.mrb[147].mxu1  ;;  %v4657_v51 = vmax.f32 %v10952_v45, 0.0  ;;  %v4659_v26 = vmax.f32 %v11016_v43, 0.0 }
 0x45a   : > { %v10955_v47 = vadd.f32 %v4054_v50, %v14427_v31  ;;  %v11019_v14 = vadd.f32 %v4440_v34, %v14431_v58  ;;  %v4658_v41 = vmax.f32 %v10953_v25, 0.0  ;;  %v4660_v37 = vmax.f32 %v11017_v18, 0.0 }
 0x45b   : > { %v4669_v63 = vmax.f32 %v10954_v30, 0.0  ;;  %v4671_v33 = vmax.f32 %v11018_v16, 0.0  ;;  %7249 = vmatmul.mubr.bf16.gmra.mrb[252].mxu0 %v13952_v7  ;;  %8377 = vmatmul.mubr.bf16.gmra.mrb[252].mxu1 %v13952_v7 }
 0x45c   : > { %v4670_v49 = vmax.f32 %v10955_v47, 0.0  ;;  %v4672_v11 = vmax.f32 %v11019_v14, 0.0  ;;  %7291 = vmatprep.mubr.bf16.mxu0 %v16134_v10  ;;  %8417 = vmatprep.mubr.bf16.mxu1 %v16134_v10 }
 0x45d   : > { %v14525_v39 = vpack.c.bf16 %v4669_v63, %v4657_v51  ;;  %v14527_v50 = vpack.c.bf16 %v4671_v33, %v4659_v26 }
 0x45e   : > { %v14529_v45 = vpack.c.bf16 %v4670_v49, %v4658_v41  ;;  %v4058_v43 = vpop.f32.mrb[148].mxu0  ;;  %v4444_v30 = vpop.f32.mrb[148].mxu1  ;;  %v14531_v16 = vpack.c.bf16 %v4672_v11, %v4660_v37  ;;  %v12493_v41 = vld [vmem:[#allocation8 + $0x308] ss:$12 sps:$4 sm:$0xff]   ;;  %v12494_v37 = vld [vmem:[#allocation8 + $0x300] ss:$12 sps:$4 sm:$0xff]  }
 0x45f   : > { %16135 = vst [vmem:[#allocation57_spill] sm:$0xff] %v14525_v39  ;;  %16136 = vst [vmem:[#allocation63_spill] sm:$0xff] %v14527_v50  ;;  %v10956_v7 = vadd.f32 %v4058_v43, %v14419_v36  ;;  %v11020_v25 = vadd.f32 %v4444_v30, %v14422_v46  ;;  %v4060_v18 = vpop.f32.mrb[149].mxu0  ;;  %v4446_v34 = vpop.f32.mrb[149].mxu1  ;;  %v12499_v30 = vld [vmem:[#allocation8 + $0x31c] ss:$12 sps:$4 sm:$0xff]  }
 0x460   : > { %16137 = vst [vmem:[#allocation61_spill] sm:$0xff] %v14529_v45  ;;  %16138 = vst [vmem:[#allocation67_spill] sm:$0xff] %v14531_v16  ;;  %v10957_v47 = vadd.f32 %v4060_v18, %v14427_v31  ;;  %v11021_v10 = vadd.f32 %v4446_v34, %v14431_v58  ;;  %v4062_v14 = vpop.f32.mrb[150].mxu0  ;;  %v4448_v51 = vpop.f32.mrb[150].mxu1  ;;  %v12500_v50 = vld [vmem:[#allocation8 + $0x3e0] ss:$12 sps:$4 sm:$0xff]  }
 0x461   : > { %v10958_v33 = vadd.f32 %v4062_v14, %v14419_v36  ;;  %v11022_v49 = vadd.f32 %v4448_v51, %v14422_v46  ;;  %v4064_v26 = vpop.f32.mrb[151].mxu0  ;;  %v4450_v63 = vpop.f32.mrb[151].mxu1  ;;  %v4681_v16 = vmax.f32 %v10956_v7, 0.0  ;;  %v4683_v18 = vmax.f32 %v11020_v25, 0.0  ;;  %v16139_v45 = vld [vmem:[#allocation34_spill] sm:$0xff] }
 0x462   : > { %v10959_v11 = vadd.f32 %v4064_v26, %v14427_v31  ;;  %v11023_v43 = vadd.f32 %v4450_v63, %v14431_v58  ;;  %v4682_v14 = vmax.f32 %v10957_v47, 0.0  ;;  %v4684_v51 = vmax.f32 %v11021_v10, 0.0  ;;  %v12497_v7 = vld [vmem:[#allocation8 + $0x318] ss:$12 sps:$4 sm:$0xff]   ;;  %v12501_v25 = vld [vmem:[#allocation8 + $0x320] ss:$12 sps:$4 sm:$0xff]  }
 0x463   : > { %v4693_v39 = vmax.f32 %v10958_v33, 0.0  ;;  %v4695_v34 = vmax.f32 %v11022_v49, 0.0  ;;  %7292 = vmatmul.mubr.bf16.vlgmr.msra.gmra.mrb[192].mxu0 %v16139_v45  ;;  %8418 = vmatmul.mubr.bf16.vlgmr.msra.gmra.mrb[0].mxu1 %v16139_v45  ;;  %v12504_v47 = vld [vmem:[#allocation8 + $0x334] ss:$12 sps:$4 sm:$0xff]   ;;  %v12508_v10 = vld [vmem:[#allocation8 + $0x3f8] ss:$12 sps:$4 sm:$0xff]  }
 0x464   : > { %v4694_v32 = vmax.f32 %v10959_v11, 0.0  ;;  %v4696_v1 = vmax.f32 %v11023_v43, 0.0  ;;  %7301 = vmatprep.mubr.bf16.mxu0 %v16140_v19  ;;  %8425 = vmatprep.mubr.bf16.mxu1 %v16140_v19 }
 0x465   : > { %v14545_v26 = vpack.c.bf16 %v4693_v39, %v4681_v16  ;;  %10233 = vmatpush3.bf16.msra.mxu1 %v12493_v41  ;;  %7453 = vmatpush1.bf16.msra.mxu0 %v12494_v37  ;;  %v14547_v33 = vpack.c.bf16 %v4695_v34, %v4683_v18 }
 0x466   : > { %v14549_v49 = vpack.c.bf16 %v4694_v32, %v4682_v14  ;;  %v4068_v63 = vpop.f32.mrb[152].mxu0  ;;  %v4454_v45 = vpop.f32.mrb[152].mxu1  ;;  %7454 = vmatprep.subr.bf16.mxu0 %v12499_v30  ;;  %10234 = vmatprep.subr.bf16.mxu1 %v12500_v50  ;;  %v14551_v11 = vpack.c.bf16 %v4696_v1, %v4684_v51  ;;  %v12502_v1 = vld [vmem:[#allocation8 + $0x330] ss:$12 sps:$4 sm:$0xff]   ;;  %v12509_v51 = vld [vmem:[#allocation8 + $0x338] ss:$12 sps:$4 sm:$0xff]  }
 0x467   : > { %16141 = vst [vmem:[#allocation65_spill] sm:$0xff] %v14545_v26  ;;  %16142 = vst [vmem:[#allocation71_spill] sm:$0xff] %v14547_v33  ;;  %v10960_v19 = vadd.f32 %v4068_v63, %v14419_v36  ;;  %v11024_v39 = vadd.f32 %v4454_v45, %v14422_v46  ;;  %v4070_v16 = vpop.f32.mrb[153].mxu0  ;;  %v4456_v41 = vpop.f32.mrb[153].mxu1 }
 0x468   : > { %16143 = vst [vmem:[#allocation69_spill] sm:$0xff] %v14549_v49  ;;  %16144 = vst [vmem:[#allocation75_spill] sm:$0xff] %v14551_v11  ;;  %v10961_v37 = vadd.f32 %v4070_v16, %v14427_v31  ;;  %v11025_v43 = vadd.f32 %v4456_v41, %v14431_v58  ;;  %v4072_v32 = vpop.f32.mrb[154].mxu0  ;;  %v4458_v18 = vpop.f32.mrb[154].mxu1  ;;  %v12507_v16 = vld [vmem:[#allocation8 + $0x34c] ss:$12 sps:$4 sm:$0xff]  }
 0x469   : > { %v10962_v34 = vadd.f32 %v4072_v32, %v14419_v36  ;;  %v11026_v50 = vadd.f32 %v4458_v18, %v14422_v46  ;;  %v4074_v30 = vpop.f32.mrb[155].mxu0  ;;  %v4460_v14 = vpop.f32.mrb[155].mxu1  ;;  %7455 = vmatpush1.bf16.msra.mxu0 %v12497_v7  ;;  %10235 = vmatpush3.bf16.msra.mxu1 %v12501_v25  ;;  %v12516_v41 = vld [vmem:[#allocation8 + $0x410] ss:$12 sps:$4 sm:$0xff]   ;;  %v4705_v33 = vmax.f32 %v10960_v19, 0.0  ;;  %v4707_v11 = vmax.f32 %v11024_v39, 0.0 }
 0x46a   : > { %v10963_v63 = vadd.f32 %v4074_v30, %v14427_v31  ;;  %v11027_v45 = vadd.f32 %v4460_v14, %v14431_v58  ;;  %7456 = vmatprep.subr.bf16.mxu0 %v12504_v47  ;;  %10236 = vmatprep.subr.bf16.mxu1 %v12508_v10  ;;  %v16145_v49 = vld [vmem:[#allocation38_spill] sm:$0xff]  ;;  %v4706_v7 = vmax.f32 %v10961_v37, 0.0  ;;  %v4708_v25 = vmax.f32 %v11025_v43, 0.0  ;;  %v12517_v19 = vld [vmem:[#allocation8 + $0x350] ss:$12 sps:$4 sm:$0xff]  }
 0x46b   : > { %v4717_v26 = vmax.f32 %v10962_v34, 0.0  ;;  %v4719_v32 = vmax.f32 %v11026_v50, 0.0  ;;  %7302 = vmatmul.mubr.bf16.gmra.mrb[196].mxu0 %v16145_v49  ;;  %8426 = vmatmul.mubr.bf16.gmra.mrb[4].mxu1 %v16145_v49  ;;  %v12505_v10 = vld [vmem:[#allocation8 + $0x348] ss:$12 sps:$4 sm:$0xff]   ;;  %v12512_v37 = vld [vmem:[#allocation8 + $0x364] ss:$12 sps:$4 sm:$0xff]  }
 0x46c   : > { %v4718_v18 = vmax.f32 %v10963_v63, 0.0  ;;  %v4720_v4 = vmax.f32 %v11027_v45, 0.0  ;;  %7311 = vmatprep.mubr.bf16.mxu0 %v16146_v55  ;;  %8433 = vmatprep.mubr.bf16.mxu1 %v16146_v55  ;;  %v12524_v43 = vld [vmem:[#allocation8 + $0x428] ss:$12 sps:$4 sm:$0xff]  }
 0x46d   : > { %v14565_v47 = vpack.c.bf16 %v4717_v26, %v4705_v33  ;;  %7457 = vmatpush1.bf16.msra.mxu0 %v12502_v1  ;;  %10237 = vmatpush3.bf16.msra.mxu1 %v12509_v51  ;;  %v14567_v39 = vpack.c.bf16 %v4719_v32, %v4707_v11 }
 0x46e   : > { %v14569_v34 = vpack.c.bf16 %v4718_v18, %v4706_v7  ;;  %v4078_v50 = vpop.f32.mrb[156].mxu0  ;;  %v4464_v49 = vpop.f32.mrb[156].mxu1  ;;  %7458 = vmatprep.subr.bf16.mxu0 %v12507_v16  ;;  %10238 = vmatprep.subr.bf16.mxu1 %v12516_v41  ;;  %v14571_v30 = vpack.c.bf16 %v4720_v4, %v4708_v25  ;;  %v12510_v4 = vld [vmem:[#allocation8 + $0x360] ss:$12 sps:$4 sm:$0xff]   ;;  %v12525_v7 = vld [vmem:[#allocation8 + $0x368] ss:$12 sps:$4 sm:$0xff]  }
 0x46f   : > { %16147 = vst [vmem:[#allocation73_spill] sm:$0xff] %v14565_v47  ;;  %16148 = vst [vmem:[#allocation31_spill] sm:$0xff] %v14567_v39  ;;  %v10964_v55 = vadd.f32 %v4078_v50, %v14419_v36  ;;  %v11028_v26 = vadd.f32 %v4464_v49, %v14422_v46  ;;  %v4080_v33 = vpop.f32.mrb[157].mxu0  ;;  %v4466_v14 = vpop.f32.mrb[157].mxu1  ;;  %v12515_v50 = vld [vmem:[#allocation8 + $0x37c] ss:$12 sps:$4 sm:$0xff]  }
 0x470   : > { %16149 = vst [vmem:[#allocation79_spill] sm:$0xff] %v14569_v34  ;;  %16150 = vst [vmem:[#allocation77_spill] sm:$0xff] %v14571_v30  ;;  %v10965_v1 = vadd.f32 %v4080_v33, %v14427_v31  ;;  %v11029_v11 = vadd.f32 %v4466_v14, %v14431_v58  ;;  %v4082_v51 = vpop.f32.mrb[158].mxu0  ;;  %v4468_v63 = vpop.f32.mrb[158].mxu1  ;;  %v12532_v49 = vld [vmem:[#allocation8 + $0x440] ss:$12 sps:$4 sm:$0xff]  }
 0x471   : > { %v10966_v45 = vadd.f32 %v4082_v51, %v14419_v36  ;;  %v11030_v16 = vadd.f32 %v4468_v63, %v14422_v46  ;;  %v4084_v41 = vpop.f32.mrb[159].mxu0  ;;  %v4470_v32 = vpop.f32.mrb[159].mxu1  ;;  %7459 = vmatpush1.bf16.msra.mxu0 %v12505_v10  ;;  %10239 = vmatpush3.bf16.msra.mxu1 %v12517_v19  ;;  %v4729_v33 = vmax.f32 %v10964_v55, 0.0  ;;  %v4731_v14 = vmax.f32 %v11028_v26, 0.0  ;;  %v16151_v30 = vld [vmem:[#allocation42_spill] sm:$0xff]  ;;  %v16152_v34 = vld [vmem:[#allocation48_spill] sm:$0xff] }
 0x472   : > { %v10967_v25 = vadd.f32 %v4084_v41, %v14427_v31  ;;  %v11031_v18 = vadd.f32 %v4470_v32, %v14431_v58  ;;  %7460 = vmatprep.subr.bf16.mxu0 %v12512_v37  ;;  %10240 = vmatprep.subr.bf16.mxu1 %v12524_v43  ;;  %v4730_v10 = vmax.f32 %v10965_v1, 0.0  ;;  %v4732_v63 = vmax.f32 %v11029_v11, 0.0  ;;  %v12513_v43 = vld [vmem:[#allocation8 + $0x378] ss:$12 sps:$4 sm:$0xff]   ;;  %v12533_v55 = vld [vmem:[#allocation8 + $0x380] ss:$12 sps:$4 sm:$0xff]  }
 0x473   : > { %v4741_v39 = vmax.f32 %v10966_v45, 0.0  ;;  %v4743_v51 = vmax.f32 %v11030_v16, 0.0  ;;  %7312 = vmatmul.mubr.bf16.gmra.mrb[200].mxu0 %v16151_v30  ;;  %8434 = vmatmul.mubr.bf16.gmra.mrb[8].mxu1 %v16151_v30  ;;  %v12520_v1 = vld [vmem:[#allocation8 + $0x394] ss:$12 sps:$4 sm:$0xff]   ;;  %v12540_v11 = vld [vmem:[#allocation8 + $0x458] ss:$12 sps:$4 sm:$0xff]  }
 0x474   : > { %v4742_v19 = vmax.f32 %v10967_v25, 0.0  ;;  %v4744_v47 = vmax.f32 %v11031_v18, 0.0  ;;  %7321 = vmatprep.mubr.bf16.mxu0 %v16152_v34  ;;  %8441 = vmatprep.mubr.bf16.mxu1 %v16152_v34 }
 0x475   : > { %v14585_v37 = vpack.c.bf16 %v4741_v39, %v4729_v33  ;;  %7461 = vmatpush1.bf16.msra.mxu0 %v12510_v4  ;;  %10241 = vmatpush3.bf16.msra.mxu1 %v12525_v7  ;;  %v14587_v26 = vpack.c.bf16 %v4743_v51, %v4731_v14 }
 0x476   : > { %v14589_v45 = vpack.c.bf16 %v4742_v19, %v4730_v10  ;;  %v4088_v16 = vpop.f32.mrb[160].mxu0  ;;  %v4474_v30 = vpop.f32.mrb[160].mxu1  ;;  %7462 = vmatprep.subr.bf16.mxu0 %v12515_v50  ;;  %10242 = vmatprep.subr.bf16.mxu1 %v12532_v49  ;;  %v14591_v41 = vpack.c.bf16 %v4744_v47, %v4732_v63  ;;  %v12518_v47 = vld [vmem:[#allocation8 + $0x390] ss:$12 sps:$4 sm:$0xff]   ;;  %v12541_v10 = vld [vmem:[#allocation8 + $0x398] ss:$12 sps:$4 sm:$0xff]  }
 0x477   : > { %16153 = vst [vmem:[#allocation85_spill] sm:$0xff] %v14585_v37  ;;  %16154 = vst [vmem:[#allocation36_spill] sm:$0xff] %v14587_v26  ;;  %v10968_v34 = vadd.f32 %v4088_v16, %v14419_v36  ;;  %v11032_v39 = vadd.f32 %v4474_v30, %v14422_v46  ;;  %v4090_v32 = vpop.f32.mrb[161].mxu0  ;;  %v4476_v4 = vpop.f32.mrb[161].mxu1  ;;  %v12523_v16 = vld [vmem:[#allocation8 + $0x3ac] ss:$12 sps:$4 sm:$0xff]  }
 0x478   : > { %16155 = vst [vmem:[#allocation34_spill] sm:$0xff] %v14589_v45  ;;  %16156 = vst [vmem:[#allocation40_spill] sm:$0xff] %v14591_v41  ;;  %v10969_v7 = vadd.f32 %v4090_v32, %v14427_v31  ;;  %v11033_v25 = vadd.f32 %v4476_v4, %v14431_v58  ;;  %v4092_v18 = vpop.f32.mrb[162].mxu0  ;;  %v4478_v33 = vpop.f32.mrb[162].mxu1  ;;  %v12548_v30 = vld [vmem:[#allocation8 + $0x470] ss:$12 sps:$4 sm:$0xff]  }
 0x479   : > { %v10970_v14 = vadd.f32 %v4092_v18, %v14419_v36  ;;  %v11034_v50 = vadd.f32 %v4478_v33, %v14422_v46  ;;  %v4094_v49 = vpop.f32.mrb[163].mxu0  ;;  %v4480_v51 = vpop.f32.mrb[163].mxu1  ;;  %7463 = vmatpush1.bf16.msra.mxu0 %v12513_v43  ;;  %10243 = vmatpush3.bf16.msra.mxu1 %v12533_v55  ;;  %v4753_v32 = vmax.f32 %v10968_v34, 0.0  ;;  %v4755_v4 = vmax.f32 %v11032_v39, 0.0  ;;  %v16157_v41 = vld [vmem:[#allocation46_spill] sm:$0xff]  ;;  %v16158_v45 = vld [vmem:[#allocation52_spill] sm:$0xff] }
 0x47a   : > { %v10971_v63 = vadd.f32 %v4094_v49, %v14427_v31  ;;  %v11035_v19 = vadd.f32 %v4480_v51, %v14431_v58  ;;  %7464 = vmatprep.subr.bf16.mxu0 %v12520_v1  ;;  %10244 = vmatprep.subr.bf16.mxu1 %v12540_v11  ;;  %v4754_v43 = vmax.f32 %v10969_v7, 0.0  ;;  %v4756_v33 = vmax.f32 %v11033_v25, 0.0  ;;  %v12521_v11 = vld [vmem:[#allocation8 + $0x3a8] ss:$12 sps:$4 sm:$0xff]   ;;  %v12549_v34 = vld [vmem:[#allocation8 + $0x3b0] ss:$12 sps:$4 sm:$0xff]  }
 0x47b   : > { %v4765_v26 = vmax.f32 %v10970_v14, 0.0  ;;  %v4767_v18 = vmax.f32 %v11034_v50, 0.0  ;;  %7322 = vmatmul.mubr.bf16.gmra.mrb[204].mxu0 %v16157_v41  ;;  %8442 = vmatmul.mubr.bf16.gmra.mrb[12].mxu1 %v16157_v41  ;;  %v12528_v7 = vld [vmem:[#allocation8 + $0x3c4] ss:$12 sps:$4 sm:$0xff]   ;;  %v12556_v25 = vld [vmem:[#allocation8 + $0x548] ss:$12 sps:$4 sm:$0xff]  }
 0x47c   : > { %v4766_v55 = vmax.f32 %v10971_v63, 0.0  ;;  %v4768_v37 = vmax.f32 %v11035_v19, 0.0  ;;  %7331 = vmatprep.mubr.bf16.mxu0 %v16158_v45  ;;  %8449 = vmatprep.mubr.bf16.mxu1 %v16158_v45 }
 0x47d   : > { %v14605_v1 = vpack.c.bf16 %v4765_v26, %v4753_v32  ;;  %7465 = vmatpush1.bf16.msra.mxu0 %v12518_v47  ;;  %10245 = vmatpush3.bf16.msra.mxu1 %v12541_v10  ;;  %v14607_v39 = vpack.c.bf16 %v4767_v18, %v4755_v4 }
 0x47e   : > { %v14609_v14 = vpack.c.bf16 %v4766_v55, %v4754_v43  ;;  %v4098_v50 = vpop.f32.mrb[164].mxu0  ;;  %v4484_v41 = vpop.f32.mrb[164].mxu1  ;;  %7466 = vmatprep.subr.bf16.mxu0 %v12523_v16  ;;  %10246 = vmatprep.subr.bf16.mxu1 %v12548_v30  ;;  %v14611_v49 = vpack.c.bf16 %v4768_v37, %v4756_v33  ;;  %v12526_v37 = vld [vmem:[#allocation8 + $0x3c0] ss:$12 sps:$4 sm:$0xff]   ;;  %v12531_v55 = vld [vmem:[#allocation8 + $0x3dc] ss:$12 sps:$4 sm:$0xff]  }
 0x47f   : > { %16159 = vst [vmem:[#allocation38_spill] sm:$0xff] %v14607_v39  ;;  %v10972_v45 = vadd.f32 %v4098_v50, %v14419_v36  ;;  %v11036_v26 = vadd.f32 %v4484_v41, %v14422_v46  ;;  %v4100_v51 = vpop.f32.mrb[165].mxu0  ;;  %v4486_v47 = vpop.f32.mrb[165].mxu1  ;;  %v16161_v39 = vld [vmem:[#allocation50_spill] sm:$0xff] }
 0x480   : > { %16160 = vst [vmem:[#allocation44_spill] sm:$0xff] %v14611_v49  ;;  %v10973_v10 = vadd.f32 %v4100_v51, %v14427_v31  ;;  %v11037_v63 = vadd.f32 %v4486_v47, %v14431_v58  ;;  %v4102_v19 = vpop.f32.mrb[166].mxu0  ;;  %v4488_v32 = vpop.f32.mrb[166].mxu1 }
 0x481   : > { %v10974_v4 = vadd.f32 %v4102_v19, %v14419_v36  ;;  %v11038_v16 = vadd.f32 %v4488_v32, %v14422_v46  ;;  %v4104_v30 = vpop.f32.mrb[167].mxu0  ;;  %v4490_v18 = vpop.f32.mrb[167].mxu1  ;;  %7467 = vmatpush1.bf16.msra.mxu0 %v12521_v11  ;;  %10247 = vmatpush3.bf16.msra.mxu1 %v12549_v34  ;;  %v4777_v50 = vmax.f32 %v10972_v45, 0.0  ;;  %v4779_v41 = vmax.f32 %v11036_v26, 0.0  ;;  %v16162_v34 = vld [vmem:[#allocation56_spill] sm:$0xff] }
 0x482   : > { %v10975_v43 = vadd.f32 %v4104_v30, %v14427_v31  ;;  %v11039_v33 = vadd.f32 %v4490_v18, %v14431_v58  ;;  %7468 = vmatprep.subr.bf16.mxu0 %v12528_v7  ;;  %10344 = vmatprep.subr.bf16.mxu1 %v12556_v25  ;;  %v4778_v19 = vmax.f32 %v10973_v10, 0.0  ;;  %v4780_v32 = vmax.f32 %v11037_v63, 0.0  ;;  %v12529_v7 = vld [vmem:[#allocation8 + $0x3d8] ss:$12 sps:$4 sm:$0xff]  }
 0x483   : > { %v4789_v51 = vmax.f32 %v10974_v4, 0.0  ;;  %v4791_v47 = vmax.f32 %v11038_v16, 0.0  ;;  %7332 = vmatmul.mubr.bf16.gmra.mrb[208].mxu0 %v16161_v39  ;;  %8450 = vmatmul.mubr.bf16.gmra.mrb[16].mxu1 %v16161_v39  ;;  %v12536_v39 = vld [vmem:[#allocation8 + $0x3f4] ss:$12 sps:$4 sm:$0xff]  }
 0x484   : > { %v4790_v11 = vmax.f32 %v10975_v43, 0.0  ;;  %v4792_v49 = vmax.f32 %v11039_v33, 0.0  ;;  %7341 = vmatprep.mubr.bf16.mxu0 %v16162_v34  ;;  %8457 = vmatprep.mubr.bf16.mxu1 %v16162_v34  ;;  %v12539_v34 = vld [vmem:[#allocation8 + $0x40c] ss:$12 sps:$4 sm:$0xff]  }
 0x485   : > { %v14625_v30 = vpack.c.bf16 %v4789_v51, %v4777_v50  ;;  %7469 = vmatpush1.bf16.msra.mxu0 %v12526_v37  ;;  %v14627_v25 = vpack.c.bf16 %v4791_v47, %v4779_v41 }
 0x486   : > { %v14629_v45 = vpack.c.bf16 %v4790_v11, %v4778_v19  ;;  %v4108_v26 = vpop.f32.mrb[168].mxu0  ;;  %v4494_v4 = vpop.f32.mrb[168].mxu1  ;;  %7470 = vmatprep.subr.bf16.mxu0 %v12531_v55  ;;  %v14631_v10 = vpack.c.bf16 %v4792_v49, %v4780_v32  ;;  %v12534_v49 = vld [vmem:[#allocation8 + $0x3f0] ss:$12 sps:$4 sm:$0xff]  }
 0x487   : > { %16163 = vst [vmem:[#allocation42_spill] sm:$0xff] %v14625_v30  ;;  %16164 = vst [vmem:[#allocation48_spill] sm:$0xff] %v14627_v25  ;;  %v10976_v63 = vadd.f32 %v4108_v26, %v14419_v36  ;;  %v11040_v16 = vadd.f32 %v4494_v4, %v14422_v46  ;;  %v4110_v18 = vpop.f32.mrb[169].mxu0  ;;  %v4496_v43 = vpop.f32.mrb[169].mxu1  ;;  %v16166_v25 = vld [vmem:[#allocation54_spill] sm:$0xff] }
 0x488   : > { %16165 = vst [vmem:[#allocation46_spill] sm:$0xff] %v14631_v10  ;;  %v10977_v33 = vadd.f32 %v4110_v18, %v14427_v31  ;;  %v11041_v37 = vadd.f32 %v4496_v43, %v14431_v58  ;;  %v4112_v50 = vpop.f32.mrb[170].mxu0  ;;  %v4498_v41 = vpop.f32.mrb[170].mxu1 }
 0x489   : > { %v10978_v51 = vadd.f32 %v4112_v50, %v14419_v36  ;;  %v11042_v47 = vadd.f32 %v4498_v41, %v14422_v46  ;;  %v4114_v55 = vpop.f32.mrb[171].mxu0  ;;  %v4500_v19 = vpop.f32.mrb[171].mxu1  ;;  %7471 = vmatpush1.bf16.msra.mxu0 %v12529_v7  ;;  %v4801_v26 = vmax.f32 %v10976_v63, 0.0  ;;  %v4803_v4 = vmax.f32 %v11040_v16, 0.0  ;;  %v16167_v7 = vld [vmem:[#allocation60_spill] sm:$0xff] }
 0x48a   : > { %v10979_v32 = vadd.f32 %v4114_v55, %v14427_v31  ;;  %v11043_v11 = vadd.f32 %v4500_v19, %v14431_v58  ;;  %7472 = vmatprep.subr.bf16.mxu0 %v12536_v39  ;;  %v4802_v50 = vmax.f32 %v10977_v33, 0.0  ;;  %v4804_v41 = vmax.f32 %v11041_v37, 0.0  ;;  %v12537_v39 = vld [vmem:[#allocation8 + $0x408] ss:$12 sps:$4 sm:$0xff]  }
 0x48b   : > { %v4813_v18 = vmax.f32 %v10978_v51, 0.0  ;;  %v4815_v43 = vmax.f32 %v11042_v47, 0.0  ;;  %7342 = vmatmul.mubr.bf16.gmra.mrb[212].mxu0 %v16166_v25  ;;  %8458 = vmatmul.mubr.bf16.gmra.mrb[20].mxu1 %v16166_v25  ;;  %v12544_v25 = vld [vmem:[#allocation8 + $0x424] ss:$12 sps:$4 sm:$0xff]  }
 0x48c   : > { %v4814_v10 = vmax.f32 %v10979_v32, 0.0  ;;  %v4816_v30 = vmax.f32 %v11043_v11, 0.0  ;;  %7351 = vmatprep.mubr.bf16.mxu0 %v16167_v7  ;;  %8465 = vmatprep.mubr.bf16.mxu1 %v16167_v7 }
 0x48d   : > { %v14645_v55 = vpack.c.bf16 %v4813_v18, %v4801_v26  ;;  %7473 = vmatpush1.bf16.msra.mxu0 %v12534_v49  ;;  %v14647_v63 = vpack.c.bf16 %v4815_v43, %v4803_v4 }
 0x48e   : > { %v14649_v16 = vpack.c.bf16 %v4814_v10, %v4802_v50  ;;  %v4118_v51 = vpop.f32.mrb[172].mxu0  ;;  %v4504_v47 = vpop.f32.mrb[172].mxu1  ;;  %7474 = vmatprep.subr.bf16.mxu0 %v12539_v34  ;;  %v14651_v33 = vpack.c.bf16 %v4816_v30, %v4804_v41  ;;  %v12542_v30 = vld [vmem:[#allocation8 + $0x420] ss:$12 sps:$4 sm:$0xff]  }
 0x48f   : > { %16168 = vst [vmem:[#allocation52_spill] sm:$0xff] %v14645_v55  ;;  %16169 = vst [vmem:[#allocation50_spill] sm:$0xff] %v14647_v63  ;;  %v10980_v37 = vadd.f32 %v4118_v51, %v14419_v36  ;;  %v11044_v19 = vadd.f32 %v4504_v47, %v14422_v46  ;;  %v4120_v32 = vpop.f32.mrb[173].mxu0  ;;  %v4506_v11 = vpop.f32.mrb[173].mxu1  ;;  %v12547_v51 = vld [vmem:[#allocation8 + $0x43c] ss:$12 sps:$4 sm:$0xff]  }
 0x490   : > { %16170 = vst [vmem:[#allocation56_spill] sm:$0xff] %v14649_v16  ;;  %16171 = vst [vmem:[#allocation54_spill] sm:$0xff] %v14651_v33  ;;  %v10981_v26 = vadd.f32 %v4120_v32, %v14427_v31  ;;  %v11045_v49 = vadd.f32 %v4506_v11, %v14431_v58  ;;  %v4122_v4 = vpop.f32.mrb[174].mxu0  ;;  %v4508_v18 = vpop.f32.mrb[174].mxu1  ;;  %v16172_v33 = vld [vmem:[#allocation58_spill] sm:$0xff] }
 0x491   : > { %v10982_v10 = vadd.f32 %v4122_v4, %v14419_v36  ;;  %v11046_v43 = vadd.f32 %v4508_v18, %v14422_v46  ;;  %v4124_v34 = vpop.f32.mrb[175].mxu0  ;;  %v4510_v50 = vpop.f32.mrb[175].mxu1  ;;  %7475 = vmatpush1.bf16.msra.mxu0 %v12537_v39  ;;  %v4825_v47 = vmax.f32 %v10980_v37, 0.0  ;;  %v4827_v32 = vmax.f32 %v11044_v19, 0.0  ;;  %v16173_v39 = vld [vmem:[#allocation64_spill] sm:$0xff] }
 0x492   : > { %v10983_v41 = vadd.f32 %v4124_v34, %v14427_v31  ;;  %v11047_v7 = vadd.f32 %v4510_v50, %v14431_v58  ;;  %7476 = vmatprep.subr.bf16.mxu0 %v12544_v25  ;;  %v4826_v4 = vmax.f32 %v10981_v26, 0.0  ;;  %v4828_v18 = vmax.f32 %v11045_v49, 0.0  ;;  %v12545_v25 = vld [vmem:[#allocation8 + $0x438] ss:$12 sps:$4 sm:$0xff]  }
 0x493   : > { %v4837_v63 = vmax.f32 %v10982_v10, 0.0  ;;  %v4839_v11 = vmax.f32 %v11046_v43, 0.0  ;;  %7352 = vmatmul.mubr.bf16.gmra.mrb[216].mxu0 %v16172_v33  ;;  %8466 = vmatmul.mubr.bf16.gmra.mrb[24].mxu1 %v16172_v33  ;;  %v12552_v33 = vld [vmem:[#allocation8 + $0x454] ss:$12 sps:$4 sm:$0xff]  }
 0x494   : > { %v4838_v55 = vmax.f32 %v10983_v41, 0.0  ;;  %v4840_v16 = vmax.f32 %v11047_v7, 0.0  ;;  %7361 = vmatprep.mubr.bf16.mxu0 %v16173_v39  ;;  %8473 = vmatprep.mubr.bf16.mxu1 %v16173_v39 }
 0x495   : > { %v14665_v34 = vpack.c.bf16 %v4837_v63, %v4825_v47  ;;  %7477 = vmatpush1.bf16.msra.mxu0 %v12542_v30  ;;  %v14667_v37 = vpack.c.bf16 %v4839_v11, %v4827_v32 }
 0x496   : > { %v14669_v19 = vpack.c.bf16 %v4838_v55, %v4826_v4  ;;  %v4128_v10 = vpop.f32.mrb[176].mxu0  ;;  %v4514_v43 = vpop.f32.mrb[176].mxu1  ;;  %7478 = vmatprep.subr.bf16.mxu0 %v12547_v51  ;;  %v14671_v26 = vpack.c.bf16 %v4840_v16, %v4828_v18  ;;  %v12550_v16 = vld [vmem:[#allocation8 + $0x450] ss:$12 sps:$4 sm:$0xff]  }
 0x497   : > { %16174 = vst [vmem:[#allocation60_spill] sm:$0xff] %v14665_v34  ;;  %16175 = vst [vmem:[#allocation58_spill] sm:$0xff] %v14667_v37  ;;  %v10984_v49 = vadd.f32 %v4128_v10, %v14419_v36  ;;  %v11048_v50 = vadd.f32 %v4514_v43, %v14422_v46  ;;  %v4130_v41 = vpop.f32.mrb[177].mxu0  ;;  %v4516_v7 = vpop.f32.mrb[177].mxu1  ;;  %v12555_v10 = vld [vmem:[#allocation8 + $0x46c] ss:$12 sps:$4 sm:$0xff]  }
 0x498   : > { %16176 = vst [vmem:[#allocation64_spill] sm:$0xff] %v14669_v19  ;;  %16177 = vst [vmem:[#allocation110_spill] sm:$0xff] %v14671_v26  ;;  %v10985_v63 = vadd.f32 %v4130_v41, %v14427_v31  ;;  %v11049_v30 = vadd.f32 %v4516_v7, %v14431_v58  ;;  %v4132_v47 = vpop.f32.mrb[178].mxu0  ;;  %v4518_v32 = vpop.f32.mrb[178].mxu1  ;;  %v16178_v26 = vld [vmem:[#allocation62_spill] sm:$0xff] }
 0x499   : > { %v10986_v55 = vadd.f32 %v4132_v47, %v14419_v36  ;;  %v11050_v11 = vadd.f32 %v4518_v32, %v14422_v46  ;;  %v4134_v51 = vpop.f32.mrb[179].mxu0  ;;  %v4520_v4 = vpop.f32.mrb[179].mxu1  ;;  %7479 = vmatpush1.bf16.msra.mxu0 %v12545_v25  ;;  %v4849_v43 = vmax.f32 %v10984_v49, 0.0  ;;  %v4851_v41 = vmax.f32 %v11048_v50, 0.0  ;;  %v16179_v25 = vld [vmem:[#allocation68_spill] sm:$0xff] }
 0x49a   : > { %v10987_v18 = vadd.f32 %v4134_v51, %v14427_v31  ;;  %v11051_v39 = vadd.f32 %v4520_v4, %v14431_v58  ;;  %7480 = vmatprep.subr.bf16.mxu0 %v12552_v33  ;;  %v4850_v47 = vmax.f32 %v10985_v63, 0.0  ;;  %v4852_v32 = vmax.f32 %v11049_v30, 0.0  ;;  %v12553_v33 = vld [vmem:[#allocation8 + $0x468] ss:$12 sps:$4 sm:$0xff]  }
 0x49b   : > { %v4861_v37 = vmax.f32 %v10986_v55, 0.0  ;;  %v4863_v7 = vmax.f32 %v11050_v11, 0.0  ;;  %7362 = vmatmul.mubr.bf16.gmra.mrb[220].mxu0 %v16178_v26  ;;  %8474 = vmatmul.mubr.bf16.gmra.mrb[28].mxu1 %v16178_v26  ;;  %v12560_v26 = vld [vmem:[#allocation8 + $0x484] ss:$12 sps:$4 sm:$0xff]  }
 0x49c   : > { %v4862_v34 = vmax.f32 %v10987_v18, 0.0  ;;  %v4864_v19 = vmax.f32 %v11051_v39, 0.0  ;;  %7371 = vmatprep.mubr.bf16.mxu0 %v16179_v25  ;;  %8481 = vmatprep.mubr.bf16.mxu1 %v16179_v25 }
 0x49d   : > { %v14685_v51 = vpack.c.bf16 %v4861_v37, %v4849_v43  ;;  %7481 = vmatpush1.bf16.msra.mxu0 %v12550_v16  ;;  %v14687_v49 = vpack.c.bf16 %v4863_v7, %v4851_v41 }
 0x49e   : > { %v14689_v50 = vpack.c.bf16 %v4862_v34, %v4850_v47  ;;  %v4138_v55 = vpop.f32.mrb[180].mxu0  ;;  %v4524_v11 = vpop.f32.mrb[180].mxu1  ;;  %7482 = vmatprep.subr.bf16.mxu0 %v12555_v10  ;;  %v14691_v63 = vpack.c.bf16 %v4864_v19, %v4852_v32 }
 0x49f   : > { %16180 = vst [vmem:[#allocation62_spill] sm:$0xff] %v14685_v51  ;;  %16181 = vst [vmem:[#allocation68_spill] sm:$0xff] %v14687_v49  ;;  %v10988_v30 = vadd.f32 %v4138_v55, %v14419_v36  ;;  %v11052_v4 = vadd.f32 %v4524_v11, %v14422_v46  ;;  %v4140_v18 = vpop.f32.mrb[181].mxu0  ;;  %v4526_v39 = vpop.f32.mrb[181].mxu1  ;;  %v16183_v49 = vld [vmem:[#allocation66_spill] sm:$0xff]  ;;  %v16184_v51 = vld [vmem:[#allocation72_spill] sm:$0xff] }
 0x4a0   : > { %16182 = vst [vmem:[#allocation111_spill] sm:$0xff] %v14691_v63  ;;  %v10989_v37 = vadd.f32 %v4140_v18, %v14427_v31  ;;  %v11053_v16 = vadd.f32 %v4526_v39, %v14431_v58  ;;  %v4142_v43 = vpop.f32.mrb[182].mxu0  ;;  %v4528_v41 = vpop.f32.mrb[182].mxu1 }
 0x4a1   : > { %v10990_v34 = vadd.f32 %v4142_v43, %v14419_v36  ;;  %v11054_v7 = vadd.f32 %v4528_v41, %v14422_v46  ;;  %v4144_v10 = vpop.f32.mrb[183].mxu0  ;;  %v4530_v47 = vpop.f32.mrb[183].mxu1  ;;  %7483 = vmatpush1.bf16.msra.mxu0 %v12553_v33  ;;  %v4873_v25 = vmax.f32 %v10988_v30, 0.0  ;;  %v4875_v55 = vmax.f32 %v11052_v4, 0.0 }
 0x4a2   : > { %v10991_v19 = vadd.f32 %v4144_v10, %v14427_v31  ;;  %v11055_v32 = vadd.f32 %v4530_v47, %v14431_v58  ;;  %7645 = vmatprep.subr.bf16.mxu0 %v12560_v26  ;;  %v4874_v39 = vmax.f32 %v10989_v37, 0.0  ;;  %v4876_v43 = vmax.f32 %v11053_v16, 0.0 }
 0x4a3   : > { %v4885_v11 = vmax.f32 %v10990_v34, 0.0  ;;  %v4887_v18 = vmax.f32 %v11054_v7, 0.0  ;;  %7372 = vmatmul.mubr.bf16.gmra.mrb[224].mxu0 %v16183_v49  ;;  %8482 = vmatmul.mubr.bf16.gmra.mrb[32].mxu1 %v16183_v49 }
 0x4a4   : > { %v4886_v63 = vmax.f32 %v10991_v19, 0.0  ;;  %v4888_v41 = vmax.f32 %v11055_v32, 0.0  ;;  %7381 = vmatprep.mubr.bf16.mxu0 %v16184_v51  ;;  %8489 = vmatprep.mubr.bf16.mxu1 %v16184_v51 }
 0x4a5   : > { %v14705_v33 = vpack.c.bf16 %v4885_v11, %v4873_v25  ;;  %v14707_v10 = vpack.c.bf16 %v4887_v18, %v4875_v55 }
 0x4a6   : > { %v14709_v26 = vpack.c.bf16 %v4886_v63, %v4874_v39  ;;  %v4148_v30 = vpop.f32.mrb[184].mxu0  ;;  %v4534_v4 = vpop.f32.mrb[184].mxu1  ;;  %v14711_v34 = vpack.c.bf16 %v4888_v41, %v4876_v43 }
 0x4a7   : > { %16185 = vst [vmem:[#allocation66_spill] sm:$0xff] %v14705_v33  ;;  %16186 = vst [vmem:[#allocation72_spill] sm:$0xff] %v14707_v10  ;;  %v10992_v49 = vadd.f32 %v4148_v30, %v14419_v36  ;;  %v11056_v37 = vadd.f32 %v4534_v4, %v14422_v46  ;;  %v4150_v16 = vpop.f32.mrb[185].mxu0  ;;  %v4536_v7 = vpop.f32.mrb[185].mxu1  ;;  %v16188_v10 = vld [vmem:[#allocation70_spill] sm:$0xff]  ;;  %v16189_v33 = vld [vmem:[#allocation76_spill] sm:$0xff] }
 0x4a8   : > { %16187 = vst [vmem:[#allocation112_spill] sm:$0xff] %v14711_v34  ;;  %v10993_v47 = vadd.f32 %v4150_v16, %v14427_v31  ;;  %v11057_v51 = vadd.f32 %v4536_v7, %v14431_v58  ;;  %v4152_v19 = vpop.f32.mrb[186].mxu0  ;;  %v4538_v32 = vpop.f32.mrb[186].mxu1 }
 0x4a9   : > { %v10994_v25 = vadd.f32 %v4152_v19, %v14419_v36  ;;  %v11058_v63 = vadd.f32 %v4538_v32, %v14422_v46  ;;  %v4154_v55 = vpop.f32.mrb[187].mxu0  ;;  %v4540_v11 = vpop.f32.mrb[187].mxu1  ;;  %v4897_v43 = vmax.f32 %v10992_v49, 0.0  ;;  %v4899_v41 = vmax.f32 %v11056_v37, 0.0 }
 0x4aa   : > { %v10995_v18 = vadd.f32 %v4154_v55, %v14427_v31  ;;  %v11059_v39 = vadd.f32 %v4540_v11, %v14431_v58  ;;  %v4898_v16 = vmax.f32 %v10993_v47, 0.0  ;;  %v4900_v7 = vmax.f32 %v11057_v51, 0.0 }
 0x4ab   : > { %v4909_v30 = vmax.f32 %v10994_v25, 0.0  ;;  %v4911_v4 = vmax.f32 %v11058_v63, 0.0  ;;  %7382 = vmatmul.mubr.bf16.gmra.mrb[228].mxu0 %v16188_v10  ;;  %8490 = vmatmul.mubr.bf16.gmra.mrb[36].mxu1 %v16188_v10 }
 0x4ac   : > { %v4910_v34 = vmax.f32 %v10995_v18, 0.0  ;;  %v4912_v19 = vmax.f32 %v11059_v39, 0.0  ;;  %7391 = vmatprep.mubr.bf16.mxu0 %v16189_v33  ;;  %8497 = vmatprep.mubr.bf16.mxu1 %v16189_v33 }
 0x4ad   : > { %v14725_v32 = vpack.c.bf16 %v4909_v30, %v4897_v43  ;;  %v14727_v55 = vpack.c.bf16 %v4911_v4, %v4899_v41 }
 0x4ae   : > { %v14729_v49 = vpack.c.bf16 %v4910_v34, %v4898_v16  ;;  %v4158_v37 = vpop.f32.mrb[188].mxu0  ;;  %v4544_v25 = vpop.f32.mrb[188].mxu1  ;;  %v14731_v63 = vpack.c.bf16 %v4912_v19, %v4900_v7 }
 0x4af   : > { %16190 = vst [vmem:[#allocation70_spill] sm:$0xff] %v14725_v32  ;;  %16191 = vst [vmem:[#allocation76_spill] sm:$0xff] %v14727_v55  ;;  %v10996_v10 = vadd.f32 %v4158_v37, %v14419_v36  ;;  %v11060_v47 = vadd.f32 %v4544_v25, %v14422_v46  ;;  %v4160_v51 = vpop.f32.mrb[189].mxu0  ;;  %v4546_v11 = vpop.f32.mrb[189].mxu1 }
 0x4b0   : > { %16192 = vst [vmem:[#allocation113_spill] sm:$0xff] %v14731_v63  ;;  %v10997_v18 = vadd.f32 %v4160_v51, %v14427_v31  ;;  %v11061_v33 = vadd.f32 %v4546_v11, %v14431_v58  ;;  %v4162_v39 = vpop.f32.mrb[190].mxu0  ;;  %v4548_v43 = vpop.f32.mrb[190].mxu1  ;;  %v16193_v63 = vld [vmem:[#allocation74_spill] sm:$0xff] }
 0x4b1   : > { %v10998_v41 = vadd.f32 %v4162_v39, %v14419_v36  ;;  %v11062_v34 = vadd.f32 %v4548_v43, %v14422_v46  ;;  %v4164_v30 = vpop.f32.mrb[191].mxu0  ;;  %v4550_v4 = vpop.f32.mrb[191].mxu1  ;;  %v4921_v19 = vmax.f32 %v10996_v10, 0.0  ;;  %v4923_v37 = vmax.f32 %v11060_v47, 0.0  ;;  %v16194_v39 = vld [vmem:[#allocation80_spill] sm:$0xff] }
 0x4b2   : > { %v10999_v16 = vadd.f32 %v4164_v30, %v14427_v31  ;;  %v11063_v7 = vadd.f32 %v4550_v4, %v14431_v58  ;;  %v4922_v51 = vmax.f32 %v10997_v18, 0.0  ;;  %v4924_v11 = vmax.f32 %v11061_v33, 0.0  ;;  %v16200_v30 = vld [vmem:[#allocation82_spill] sm:$0xff] }
 0x4b3   : > { %v4933_v25 = vmax.f32 %v10998_v41, 0.0  ;;  %v4935_v55 = vmax.f32 %v11062_v34, 0.0  ;;  %7392 = vmatmul.mubr.bf16.gmra.mrb[232].mxu0 %v16193_v63  ;;  %8498 = vmatmul.mubr.bf16.gmra.mrb[40].mxu1 %v16193_v63  ;;  %v16199_v34 = vld [vmem:[#allocation78_spill] sm:$0xff] }
 0x4b4   : > { %v4934_v32 = vmax.f32 %v10999_v16, 0.0  ;;  %v4936_v36 = vmax.f32 %v11063_v7, 0.0  ;;  %7401 = vmatprep.mubr.bf16.mxu0 %v16194_v39  ;;  %8505 = vmatprep.mubr.bf16.mxu1 %v16194_v39 }
 0x4b5   : > { %v14745_v46 = vpack.c.bf16 %v4933_v25, %v4921_v19  ;;  %v14747_v31 = vpack.c.bf16 %v4935_v55, %v4923_v37  ;;  %v16201_v37 = vld [vmem:[#allocation81_spill] sm:$0xff]  ;;  %v16202_v25 = vld [vmem:[#allocation84_spill] sm:$0xff] }
 0x4b6   : > { %v14749_v58 = vpack.c.bf16 %v4934_v32, %v4922_v51  ;;  %v10024_v10 = vpop.f32.mrb[192].mxu1  ;;  %v14751_v47 = vpack.c.bf16 %v4936_v36, %v4924_v11 }
 0x4b7   : > { %16195 = vst [vmem:[#allocation74_spill] sm:$0xff] %v14745_v46  ;;  %16196 = vst [vmem:[#allocation80_spill] sm:$0xff] %v14747_v31  ;;  %v10025_v43 = vpop.f32.mrb[193].mxu1  ;;  %v12573_v46 = vld [vmem:[#allocation8 + $0x4b8] ss:$12 sps:$4 sm:$0xff]  }
 0x4b8   : > { %16197 = vst [vmem:[#allocation114_spill] sm:$0xff] %v14749_v58  ;;  %16198 = vst [vmem:[#allocation115_spill] sm:$0xff] %v14751_v47  ;;  %v14753_v41 = vadd.f32 %v10025_v43, %v10024_v10  ;;  %v10027_v63 = vpop.f32.mrb[194].mxu1 }
 0x4b9   : > { %v10028_v18 = vpop.f32.mrb[195].mxu1 }
 0x4ba   : > { %v14755_v33 = vadd.f32 %v10028_v18, %v10027_v63  ;;  %v16203_v63 = vld [vmem:[#allocation83_spill] sm:$0xff] }
 0x4bb   : > { %7402 = vmatmul.mubr.bf16.gmra.mrb[236].mxu0 %v16199_v34  ;;  %8506 = vmatmul.mubr.bf16.gmra.mrb[44].mxu1 %v16199_v34  ;;  %v16204_v18 = vld [vmem:[#allocation87_spill] sm:$0xff] }
 0x4bc   : > { %7411 = vmatprep.mubr.bf16.mxu0 %v16200_v30  ;;  %8513 = vmatprep.mubr.bf16.mxu1 %v16200_v30 }
 0x4be   : > { %v10030_v32 = vpop.f32.mrb[196].mxu1 }
 0x4bf   : > { %v10031_v55 = vpop.f32.mrb[197].mxu1 }
 0x4c0   : > { %v14761_v4 = vadd.f32 %v10031_v55, %v10030_v32  ;;  %v10033_v16 = vpop.f32.mrb[198].mxu1 }
 0x4c1   : > { %v10034_v7 = vpop.f32.mrb[199].mxu1 }
 0x4c2   : > { %v14763_v19 = vadd.f32 %v10034_v7, %v10033_v16 }
 0x4c3   : > { %7412 = vmatmul.mubr.bf16.gmra.mrb[240].mxu0 %v16201_v37  ;;  %8514 = vmatmul.mubr.bf16.gmra.mrb[48].mxu1 %v16201_v37  ;;  %v16205_v37 = vld [vmem:[#allocation86_spill] sm:$0xff] }
 0x4c4   : > { %7421 = vmatprep.mubr.bf16.mxu0 %v16202_v25  ;;  %8521 = vmatprep.mubr.bf16.mxu1 %v16202_v25 }
 0x4c6   : > { %v10036_v51 = vpop.f32.mrb[200].mxu1 }
 0x4c7   : > { %v10037_v11 = vpop.f32.mrb[201].mxu1 }
 0x4c8   : > { %v14769_v36 = vadd.f32 %v10037_v11, %v10036_v51  ;;  %v10039_v39 = vpop.f32.mrb[202].mxu1 }
 0x4c9   : > { %v10040_v10 = vpop.f32.mrb[203].mxu1 }
 0x4ca   : > { %v14771_v43 = vadd.f32 %v10040_v10, %v10039_v39 }
 0x4cb   : > { %7422 = vmatmul.mubr.bf16.gmra.mrb[244].mxu0 %v16203_v63  ;;  %8522 = vmatmul.mubr.bf16.gmra.mrb[52].mxu1 %v16203_v63 }
 0x4cc   : > { %7431 = vmatprep.mubr.bf16.mxu0 %v16204_v18  ;;  %8529 = vmatprep.mubr.bf16.mxu1 %v16204_v18 }
 0x4ce   : > { %v10042_v34 = vpop.f32.mrb[204].mxu1 }
 0x4cf   : > { %v10043_v30 = vpop.f32.mrb[205].mxu1 }
 0x4d0   : > { %v14777_v32 = vadd.f32 %v10043_v30, %v10042_v34  ;;  %v10045_v55 = vpop.f32.mrb[206].mxu1 }
 0x4d1   : > { %v10046_v16 = vpop.f32.mrb[207].mxu1 }
 0x4d2   : > { %v14779_v7 = vadd.f32 %v10046_v16, %v10045_v55  ;;  %v12557_v16 = vld [vmem:[#allocation8 + $0x488] ss:$12 sps:$4 sm:$0xff]  }
 0x4d3   : > { %7432 = vmatmul.mubr.bf16.gmra.mrb[248].mxu0 %v16205_v37  ;;  %8530 = vmatmul.mubr.bf16.gmra.mrb[56].mxu1 %v16205_v37  ;;  %v12558_v37 = vld [vmem:[#allocation8 + $0x480] ss:$12 sps:$4 sm:$0xff]  }
 0x4d4   : > { %7441 = vmatprep.mubr.bf16.mxu0 %v13956_v20  ;;  %8537 = vmatprep.mubr.bf16.mxu1 %v13956_v20 }
 0x4d6   : > { %v10048_v25 = vpop.f32.mrb[208].mxu1 }
 0x4d7   : > { %v10049_v51 = vpop.f32.mrb[209].mxu1 }
 0x4d8   : > { %v14785_v11 = vadd.f32 %v10049_v51, %v10048_v25  ;;  %v10051_v39 = vpop.f32.mrb[210].mxu1  ;;  %v12563_v51 = vld [vmem:[#allocation8 + $0x49c] ss:$12 sps:$4 sm:$0xff]  }
 0x4d9   : > { %v10052_v10 = vpop.f32.mrb[211].mxu1 }
 0x4da   : > { %v14787_v63 = vadd.f32 %v10052_v10, %v10051_v39  ;;  %v12564_v39 = vld [vmem:[#allocation8 + $0x560] ss:$12 sps:$4 sm:$0xff]  }
 0x4db   : > { %7442 = vmatmul.mubr.bf16.gmra.mrb[252].mxu0 %v13958_v48  ;;  %8538 = vmatmul.mubr.bf16.gmra.mrb[60].mxu1 %v13958_v48  ;;  %v12561_v48 = vld [vmem:[#allocation8 + $0x498] ss:$12 sps:$4 sm:$0xff]  }
 0x4dc   : > { %7484 = vmatprep.mubr.bf16.mxu0 %v14052_v13  ;;  %8578 = vmatprep.mubr.bf16.mxu1 %v14052_v13  ;;  %v12565_v13 = vld [vmem:[#allocation8 + $0x4a0] ss:$12 sps:$4 sm:$0xff]  }
 0x4de   : > { %v10054_v18 = vpop.f32.mrb[212].mxu1 }
 0x4df   : > { %v10055_v34 = vpop.f32.mrb[213].mxu1 }
 0x4e0   : > { %v14793_v30 = vadd.f32 %v10055_v34, %v10054_v18  ;;  %v10057_v20 = vpop.f32.mrb[214].mxu1  ;;  %v12568_v18 = vld [vmem:[#allocation8 + $0x4b4] ss:$12 sps:$4 sm:$0xff]   ;;  %v12572_v34 = vld [vmem:[#allocation8 + $0x578] ss:$12 sps:$4 sm:$0xff]  }
 0x4e1   : > { %v10058_v55 = vpop.f32.mrb[215].mxu1 }
 0x4e2   : > { %v14795_v25 = vadd.f32 %v10058_v55, %v10057_v20 }
 0x4e3   : > { %7485 = vmatmul.mubr.bf16.vlgmr.msra.gmra.mrb[192].mxu0 %v14048_v22  ;;  %8579 = vmatmul.mubr.bf16.vlgmr.msra.gmra.mrb[64].mxu1 %v14048_v22  ;;  %v12566_v22 = vld [vmem:[#allocation8 + $0x4b0] ss:$12 sps:$4 sm:$0xff]  }
 0x4e4   : > { %7494 = vmatprep.mubr.bf16.mxu0 %v14072_v17  ;;  %8586 = vmatprep.mubr.bf16.mxu1 %v14072_v17  ;;  %v12571_v17 = vld [vmem:[#allocation8 + $0x4cc] ss:$12 sps:$4 sm:$0xff]  }
 0x4e5   : > { %10345 = vmatpush3.bf16.msra.mxu1 %v12557_v16  ;;  %7646 = vmatpush1.bf16.msra.mxu0 %v12558_v37  ;;  %v12580_v16 = vld [vmem:[#allocation8 + $0x590] ss:$12 sps:$4 sm:$0xff]   ;;  %v12569_v37 = vld [vmem:[#allocation8 + $0x4c8] ss:$12 sps:$4 sm:$0xff]  }
 0x4e6   : > { %v10060_v10 = vpop.f32.mrb[216].mxu1  ;;  %7647 = vmatprep.subr.bf16.mxu0 %v12563_v51  ;;  %10346 = vmatprep.subr.bf16.mxu1 %v12564_v39  ;;  %v12581_v51 = vld [vmem:[#allocation8 + $0x4d0] ss:$12 sps:$4 sm:$0xff]  }
 0x4e7   : > { %v10061_v20 = vpop.f32.mrb[217].mxu1 }
 0x4e8   : > { %v14801_v55 = vadd.f32 %v10061_v20, %v10060_v10  ;;  %v10063_v31 = vpop.f32.mrb[218].mxu1 }
 0x4e9   : > { %v10064_v47 = vpop.f32.mrb[219].mxu1  ;;  %7648 = vmatpush1.bf16.msra.mxu0 %v12561_v48  ;;  %10347 = vmatpush3.bf16.msra.mxu1 %v12565_v13 }
 0x4ea   : > { %v14803_v58 = vadd.f32 %v10064_v47, %v10063_v31  ;;  %7649 = vmatprep.subr.bf16.mxu0 %v12568_v18  ;;  %10348 = vmatprep.subr.bf16.mxu1 %v12572_v34  ;;  %v12576_v31 = vld [vmem:[#allocation8 + $0x4e4] ss:$12 sps:$4 sm:$0xff]   ;;  %v12588_v47 = vld [vmem:[#allocation8 + $0x5a8] ss:$12 sps:$4 sm:$0xff]  }
 0x4eb   : > { %7495 = vmatmul.mubr.bf16.gmra.mrb[196].mxu0 %v14068_v8  ;;  %8587 = vmatmul.mubr.bf16.gmra.mrb[68].mxu1 %v14068_v8  ;;  %v12574_v8 = vld [vmem:[#allocation8 + $0x4e0] ss:$12 sps:$4 sm:$0xff]   ;;  %v12589_v34 = vld [vmem:[#allocation8 + $0x4e8] ss:$12 sps:$4 sm:$0xff]  }
 0x4ec   : > { %7504 = vmatprep.mubr.bf16.mxu0 %v14092_v59  ;;  %8594 = vmatprep.mubr.bf16.mxu1 %v14092_v59  ;;  %v12579_v59 = vld [vmem:[#allocation8 + $0x4fc] ss:$12 sps:$4 sm:$0xff]  }
 0x4ed   : > { %7650 = vmatpush1.bf16.msra.mxu0 %v12566_v22  ;;  %10349 = vmatpush3.bf16.msra.mxu1 %v12573_v46  ;;  %v12596_v46 = vld [vmem:[#allocation8 + $0x5c0] ss:$12 sps:$4 sm:$0xff]   ;;  %v12577_v22 = vld [vmem:[#allocation8 + $0x4f8] ss:$12 sps:$4 sm:$0xff]  }
 0x4ee   : > { %v10066_v39 = vpop.f32.mrb[220].mxu1  ;;  %7651 = vmatprep.subr.bf16.mxu0 %v12571_v17  ;;  %10350 = vmatprep.subr.bf16.mxu1 %v12580_v16  ;;  %v12597_v17 = vld [vmem:[#allocation8 + $0x500] ss:$12 sps:$4 sm:$0xff]  }
 0x4ef   : > { %v10067_v48 = vpop.f32.mrb[221].mxu1 }
 0x4f0   : > { %v14809_v13 = vadd.f32 %v10067_v48, %v10066_v39  ;;  %v10069_v10 = vpop.f32.mrb[222].mxu1 }
 0x4f1   : > { %v10070_v18 = vpop.f32.mrb[223].mxu1  ;;  %7652 = vmatpush1.bf16.msra.mxu0 %v12569_v37  ;;  %10351 = vmatpush3.bf16.msra.mxu1 %v12581_v51  ;;  %v12584_v37 = vld [vmem:[#allocation8 + $0x514] ss:$12 sps:$4 sm:$0xff]   ;;  %v12604_v51 = vld [vmem:[#allocation8 + $0x5d8] ss:$12 sps:$4 sm:$0xff]  }
 0x4f2   : > { %v14811_v20 = vadd.f32 %v10070_v18, %v10069_v10  ;;  %7653 = vmatprep.subr.bf16.mxu0 %v12576_v31  ;;  %10352 = vmatprep.subr.bf16.mxu1 %v12588_v47  ;;  %v12605_v10 = vld [vmem:[#allocation8 + $0x518] ss:$12 sps:$4 sm:$0xff]  }
 0x4f3   : > { %7505 = vmatmul.mubr.bf16.gmra.mrb[200].mxu0 %v14088_v40  ;;  %8595 = vmatmul.mubr.bf16.gmra.mrb[72].mxu1 %v14088_v40  ;;  %v12582_v40 = vld [vmem:[#allocation8 + $0x510] ss:$12 sps:$4 sm:$0xff]  }
 0x4f4   : > { %7514 = vmatprep.mubr.bf16.mxu0 %v14112_v24  ;;  %8602 = vmatprep.mubr.bf16.mxu1 %v14112_v24  ;;  %v12587_v24 = vld [vmem:[#allocation8 + $0x52c] ss:$12 sps:$4 sm:$0xff]  }
 0x4f5   : > { %7654 = vmatpush1.bf16.msra.mxu0 %v12574_v8  ;;  %10353 = vmatpush3.bf16.msra.mxu1 %v12589_v34  ;;  %v12612_v8 = vld [vmem:[#allocation8 + $0x5f0] ss:$12 sps:$4 sm:$0xff]   ;;  %v12585_v34 = vld [vmem:[#allocation8 + $0x528] ss:$12 sps:$4 sm:$0xff]  }
 0x4f6   : > { %v10072_v16 = vpop.f32.mrb[224].mxu1  ;;  %7655 = vmatprep.subr.bf16.mxu0 %v12579_v59  ;;  %10354 = vmatprep.subr.bf16.mxu1 %v12596_v46  ;;  %v12613_v59 = vld [vmem:[#allocation8 + $0x530] ss:$12 sps:$4 sm:$0xff]  }
 0x4f7   : > { %v10073_v39 = vpop.f32.mrb[225].mxu1 }
 0x4f8   : > { %v14817_v31 = vadd.f32 %v10073_v39, %v10072_v16  ;;  %v10075_v47 = vpop.f32.mrb[226].mxu1 }
 0x4f9   : > { %v10076_v48 = vpop.f32.mrb[227].mxu1  ;;  %7656 = vmatpush1.bf16.msra.mxu0 %v12577_v22  ;;  %10355 = vmatpush3.bf16.msra.mxu1 %v12597_v17  ;;  %v12592_v22 = vld [vmem:[#allocation8 + $0x544] ss:$12 sps:$4 sm:$0xff]   ;;  %v12620_v17 = vld [vmem:[#allocation8 + $0x6c8] ss:$12 sps:$4 sm:$0xff]  }
 0x4fa   : > { %v14819_v18 = vadd.f32 %v10076_v48, %v10075_v47  ;;  %7657 = vmatprep.subr.bf16.mxu0 %v12584_v37  ;;  %10356 = vmatprep.subr.bf16.mxu1 %v12604_v51  ;;  %v16206_v48 = vld [vmem:[#allocation23_spill] sm:$0xff] }
 0x4fb   : > { %7515 = vmatmul.mubr.bf16.gmra.mrb[204].mxu0 %v14108_v62  ;;  %8603 = vmatmul.mubr.bf16.gmra.mrb[76].mxu1 %v14108_v62  ;;  %v12590_v62 = vld [vmem:[#allocation8 + $0x540] ss:$12 sps:$4 sm:$0xff]  }
 0x4fc   : > { %7524 = vmatprep.mubr.bf16.mxu0 %v14132_v54  ;;  %8610 = vmatprep.mubr.bf16.mxu1 %v14132_v54  ;;  %v12595_v54 = vld [vmem:[#allocation8 + $0x55c] ss:$12 sps:$4 sm:$0xff]  }
 0x4fd   : > { %7658 = vmatpush1.bf16.msra.mxu0 %v12582_v40  ;;  %10357 = vmatpush3.bf16.msra.mxu1 %v12605_v10  ;;  %v12593_v40 = vld [vmem:[#allocation8 + $0x558] ss:$12 sps:$4 sm:$0xff]  }
 0x4fe   : > { %v10078_v46 = vpop.f32.mrb[228].mxu1  ;;  %7659 = vmatprep.subr.bf16.mxu0 %v12587_v24  ;;  %10358 = vmatprep.subr.bf16.mxu1 %v12612_v8  ;;  %v12600_v24 = vld [vmem:[#allocation8 + $0x574] ss:$12 sps:$4 sm:$0xff]  }
 0x4ff   : > { %v10079_v16 = vpop.f32.mrb[229].mxu1 }
 0x500   : > { %v14825_v37 = vadd.f32 %v10079_v16, %v10078_v46  ;;  %v10081_v51 = vpop.f32.mrb[230].mxu1  ;;  %v12603_v16 = vld [vmem:[#allocation8 + $0x58c] ss:$12 sps:$4 sm:$0xff]  }
 0x501   : > { %v10082_v39 = vpop.f32.mrb[231].mxu1  ;;  %7660 = vmatpush1.bf16.msra.mxu0 %v12585_v34  ;;  %10359 = vmatpush3.bf16.msra.mxu1 %v12613_v59 }
 0x502   : > { %v14827_v47 = vadd.f32 %v10082_v39, %v10081_v51  ;;  %7661 = vmatprep.subr.bf16.mxu0 %v12592_v22  ;;  %10456 = vmatprep.subr.bf16.mxu1 %v12620_v17  ;;  %v12598_v22 = vld [vmem:[#allocation8 + $0x570] ss:$12 sps:$4 sm:$0xff]   ;;  %v12601_v51 = vld [vmem:[#allocation8 + $0x588] ss:$12 sps:$4 sm:$0xff]  }
 0x503   : > { %7525 = vmatmul.mubr.bf16.gmra.mrb[208].mxu0 %v16206_v48  ;;  %8611 = vmatmul.mubr.bf16.gmra.mrb[80].mxu1 %v16206_v48 }
 0x504   : > { %7534 = vmatprep.mubr.bf16.mxu0 %v14152_v6  ;;  %8618 = vmatprep.mubr.bf16.mxu1 %v14152_v6  ;;  %v16207_v6 = vld [vmem:[#allocation89_spill] sm:$0xff] }
 0x505   : > { %7662 = vmatpush1.bf16.msra.mxu0 %v12590_v62  ;;  %v12608_v62 = vld [vmem:[#allocation8 + $0x5a4] ss:$12 sps:$4 sm:$0xff]  }
 0x506   : > { %v10084_v10 = vpop.f32.mrb[232].mxu1  ;;  %7663 = vmatprep.subr.bf16.mxu0 %v12595_v54 }
 0x507   : > { %v10085_v8 = vpop.f32.mrb[233].mxu1 }
 0x508   : > { %v14833_v34 = vadd.f32 %v10085_v8, %v10084_v10  ;;  %v10087_v59 = vpop.f32.mrb[234].mxu1 }
 0x509   : > { %v10088_v46 = vpop.f32.mrb[235].mxu1  ;;  %7664 = vmatpush1.bf16.msra.mxu0 %v12593_v40 }
 0x50a   : > { %v14835_v17 = vadd.f32 %v10088_v46, %v10087_v59  ;;  %7665 = vmatprep.subr.bf16.mxu0 %v12600_v24  ;;  %v12606_v24 = vld [vmem:[#allocation8 + $0x5a0] ss:$12 sps:$4 sm:$0xff]   ;;  %v16208_v59 = vld [vmem:[#allocation28_spill] sm:$0xff] }
 0x50b   : > { %7535 = vmatmul.mubr.bf16.gmra.mrb[212].mxu0 %v14146_v2  ;;  %8619 = vmatmul.mubr.bf16.gmra.mrb[84].mxu1 %v14146_v2  ;;  %v12611_v2 = vld [vmem:[#allocation8 + $0x5bc] ss:$12 sps:$4 sm:$0xff]   ;;  %v12609_v46 = vld [vmem:[#allocation8 + $0x5b8] ss:$12 sps:$4 sm:$0xff]  }
 0x50c   : > { %7544 = vmatprep.mubr.bf16.mxu0 %v16207_v6  ;;  %8626 = vmatprep.mubr.bf16.mxu1 %v16207_v6 }
 0x50d   : > { %7666 = vmatpush1.bf16.msra.mxu0 %v12598_v22 }
 0x50e   : > { %v10090_v39 = vpop.f32.mrb[236].mxu1  ;;  %7667 = vmatprep.subr.bf16.mxu0 %v12603_v16  ;;  %v12616_v16 = vld [vmem:[#allocation8 + $0x5d4] ss:$12 sps:$4 sm:$0xff]  }
 0x50f   : > { %v10091_v54 = vpop.f32.mrb[237].mxu1 }
 0x510   : > { %v14841_v48 = vadd.f32 %v10091_v54, %v10090_v39  ;;  %v10093_v40 = vpop.f32.mrb[238].mxu1 }
 0x511   : > { %v10094_v10 = vpop.f32.mrb[239].mxu1  ;;  %7668 = vmatpush1.bf16.msra.mxu0 %v12601_v51 }
 0x512   : > { %v14843_v8 = vadd.f32 %v10094_v10, %v10093_v40  ;;  %7669 = vmatprep.subr.bf16.mxu0 %v12608_v62  ;;  %v12614_v62 = vld [vmem:[#allocation8 + $0x5d0] ss:$12 sps:$4 sm:$0xff]   ;;  %v12619_v10 = vld [vmem:[#allocation8 + $0x5ec] ss:$12 sps:$4 sm:$0xff]  }
 0x513   : > { %7545 = vmatmul.mubr.bf16.gmra.mrb[216].mxu0 %v16208_v59  ;;  %8627 = vmatmul.mubr.bf16.gmra.mrb[88].mxu1 %v16208_v59  ;;  %v16209_v59 = vld [vmem:[#allocation91_spill] sm:$0xff] }
 0x514   : > { %7554 = vmatprep.mubr.bf16.mxu0 %v14192_v57  ;;  %8634 = vmatprep.mubr.bf16.mxu1 %v14192_v57  ;;  %v12617_v57 = vld [vmem:[#allocation8 + $0x5e8] ss:$12 sps:$4 sm:$0xff]  }
 0x515   : > { %7670 = vmatpush1.bf16.msra.mxu0 %v12606_v24 }
 0x516   : > { %v10096_v22 = vpop.f32.mrb[240].mxu1  ;;  %7671 = vmatprep.subr.bf16.mxu0 %v12611_v2  ;;  %v12624_v2 = vld [vmem:[#allocation8 + $0x604] ss:$12 sps:$4 sm:$0xff]  }
 0x517   : > { %v10097_v6 = vpop.f32.mrb[241].mxu1 }
 0x518   : > { %v14849_v51 = vadd.f32 %v10097_v6, %v10096_v22  ;;  %v10099_v39 = vpop.f32.mrb[242].mxu1 }
 0x519   : > { %v10100_v54 = vpop.f32.mrb[243].mxu1  ;;  %7672 = vmatpush1.bf16.msra.mxu0 %v12609_v46 }
 0x51a   : > { %v14851_v40 = vadd.f32 %v10100_v54, %v10099_v39  ;;  %7673 = vmatprep.subr.bf16.mxu0 %v12616_v16 }
 0x51b   : > { %7555 = vmatmul.mubr.bf16.gmra.mrb[220].mxu0 %v16209_v59  ;;  %8635 = vmatmul.mubr.bf16.gmra.mrb[92].mxu1 %v16209_v59 }
 0x51c   : > { %7564 = vmatprep.mubr.bf16.mxu0 %v14212_v61  ;;  %8642 = vmatprep.mubr.bf16.mxu1 %v14212_v61 }
 0x51d   : > { %7674 = vmatpush1.bf16.msra.mxu0 %v12614_v62 }
 0x51e   : > { %v10102_v24 = vpop.f32.mrb[244].mxu1  ;;  %7675 = vmatprep.subr.bf16.mxu0 %v12619_v10 }
 0x51f   : > { %v10103_v22 = vpop.f32.mrb[245].mxu1 }
 0x520   : > { %v14857_v46 = vadd.f32 %v10103_v22, %v10102_v24  ;;  %v10105_v6 = vpop.f32.mrb[246].mxu1  ;;  %v5513_v22 = vld [vmem:[#allocation10] sm:$0x7] }
 0x521   : > { %v10106_v39 = vpop.f32.mrb[247].mxu1  ;;  %7676 = vmatpush1.bf16.msra.mxu0 %v12617_v57 }
 0x522   : > { %v14859_v16 = vadd.f32 %v10106_v39, %v10105_v6  ;;  %7838 = vmatprep.subr.bf16.mxu0 %v12624_v2 }
 0x523   : > { %7565 = vmatmul.mubr.bf16.gmra.mrb[224].mxu0 %v14208_v44  ;;  %8643 = vmatmul.mubr.bf16.gmra.mrb[96].mxu1 %v14208_v44 }
 0x524   : > { %7574 = vmatprep.mubr.bf16.mxu0 %v14232_v56  ;;  %8650 = vmatprep.mubr.bf16.mxu1 %v14232_v56 }
 0x526   : > { %v10108_v61 = vpop.f32.mrb[248].mxu1 }
 0x527   : > { %v10109_v54 = vpop.f32.mrb[249].mxu1 }
 0x528   : > { %v14865_v62 = vadd.f32 %v10109_v54, %v10108_v61  ;;  %v10111_v10 = vpop.f32.mrb[250].mxu1  ;;  %v16210_v61 = vld [vmem:[#allocation98_spill] sm:$0xff]  ;;  %v14880_v54 = vrot.slane %v5513_v22, %v16115_v52  ;;  %v16211_v52 = vld [vmem:[#allocation101_spill] sm:$0xff] }
 0x529   : > { %v10112_v59 = vpop.f32.mrb[251].mxu1 }
 0x52a   : > { %v14867_v24 = vadd.f32 %v10112_v59, %v10111_v10  ;;  %v8259_v10 = vadd.f32 %v14753_v41, %v14880_v54 }
 0x52b   : > { %7575 = vmatmul.mubr.bf16.gmra.mrb[228].mxu0 %v14228_v53  ;;  %8651 = vmatmul.mubr.bf16.gmra.mrb[100].mxu1 %v14228_v53 }
 0x52c   : > { %7584 = vmatprep.mubr.bf16.mxu0 %v14252_v0  ;;  %8658 = vmatprep.mubr.bf16.mxu1 %v14252_v0 }
 0x52e   : > { %v10114_v44 = vpop.f32.mrb[252].mxu1 }
 0x52f   : > { %v10115_v57 = vpop.f32.mrb[253].mxu1 }
 0x530   : > { %v14873_v2 = vadd.f32 %v10115_v57, %v10114_v44  ;;  %v10117_v56 = vpop.f32.mrb[254].mxu1 }
 0x531   : > { %v10118_v6 = vpop.f32.mrb[255].mxu1 }
 0x532   : > { %v14875_v39 = vadd.f32 %v10118_v6, %v10117_v56  ;;  %v8262_v56 = vadd.f32 %v14755_v33, %v14880_v54 }
 0x533   : > { %7585 = vmatmul.mubr.bf16.gmra.mrb[232].mxu0 %v16210_v61  ;;  %8659 = vmatmul.mubr.bf16.gmra.mrb[104].mxu1 %v16210_v61 }
 0x534   : > { %7594 = vmatprep.mubr.bf16.mxu0 %v14272_v3  ;;  %8666 = vmatprep.mubr.bf16.mxu1 %v14272_v3 }
 0x536   : > { %v10136_v53 = vpop.f32.mrb[0].mxu1 }
 0x537   : > { %v10137_v0 = vpop.f32.mrb[1].mxu1 }
 0x538   : > { %v10138_v59 = vadd.f32 %v10137_v0, %v10136_v53  ;;  %v10139_v44 = vpop.f32.mrb[2].mxu1  ;;  %v8267_v53 = vadd.f32 %v14761_v4, %v14880_v54 }
 0x539   : > { %v10140_v57 = vpop.f32.mrb[3].mxu1 }
 0x53a   : > { %v10141_v6 = vadd.f32 %v10140_v57, %v10139_v44  ;;  %v14888_v61 = vadd.f32 %v10138_v59, %v8259_v10  ;;  %v8270_v10 = vadd.f32 %v14763_v19, %v14880_v54 }
 0x53b   : > { %7595 = vmatmul.mubr.bf16.gmra.mrb[236].mxu0 %v16211_v52  ;;  %8667 = vmatmul.mubr.bf16.gmra.mrb[108].mxu1 %v16211_v52 }
 0x53c   : > { %7604 = vmatprep.mubr.bf16.mxu0 %v14292_v21  ;;  %8674 = vmatprep.mubr.bf16.mxu1 %v14292_v21  ;;  %v14894_v3 = vadd.f32 %v10141_v6, %v8262_v56  ;;  %v8275_v6 = vadd.f32 %v14769_v36, %v14880_v54 }
 0x53e   : > { %v10142_v41 = vpop.f32.mrb[4].mxu1 }
 0x53f   : > { %v10143_v22 = vpop.f32.mrb[5].mxu1 }
 0x540   : > { %v10144_v0 = vadd.f32 %v10143_v22, %v10142_v41  ;;  %v10145_v33 = vpop.f32.mrb[6].mxu1  ;;  %v8278_v22 = vadd.f32 %v14771_v43, %v14880_v54 }
 0x541   : > { %v10146_v44 = vpop.f32.mrb[7].mxu1 }
 0x542   : > { %v10147_v59 = vadd.f32 %v10146_v44, %v10145_v33  ;;  %v14900_v57 = vadd.f32 %v10144_v0, %v8267_v53  ;;  %v8283_v33 = vadd.f32 %v14777_v32, %v14880_v54 }
 0x543   : > { %7605 = vmatmul.mubr.bf16.gmra.mrb[240].mxu0 %v14288_v15  ;;  %8675 = vmatmul.mubr.bf16.gmra.mrb[112].mxu1 %v14288_v15 }
 0x544   : > { %7614 = vmatprep.mubr.bf16.mxu0 %v14312_v5  ;;  %8682 = vmatprep.mubr.bf16.mxu1 %v14312_v5  ;;  %v14906_v21 = vadd.f32 %v10147_v59, %v8270_v10  ;;  %v8286_v59 = vadd.f32 %v14779_v7, %v14880_v54 }
 0x546   : > { %v10148_v4 = vpop.f32.mrb[8].mxu1 }
 0x547   : > { %v10149_v56 = vpop.f32.mrb[9].mxu1 }
 0x548   : > { %v10150_v52 = vadd.f32 %v10149_v56, %v10148_v4  ;;  %v10151_v19 = vpop.f32.mrb[10].mxu1 }
 0x549   : > { %v10152_v41 = vpop.f32.mrb[11].mxu1 }
 0x54a   : > { %v10153_v53 = vadd.f32 %v10152_v41, %v10151_v19  ;;  %v14912_v0 = vadd.f32 %v10150_v52, %v8275_v6  ;;  %v8291_v6 = vadd.f32 %v14785_v11, %v14880_v54  ;;  %v8294_v41 = vadd.f32 %v14787_v63, %v14880_v54 }
 0x54b   : > { %7615 = vmatmul.mubr.bf16.gmra.mrb[244].mxu0 %v14308_v42  ;;  %8683 = vmatmul.mubr.bf16.gmra.mrb[116].mxu1 %v14308_v42 }
 0x54c   : > { %7624 = vmatprep.mubr.bf16.mxu0 %v14332_v35  ;;  %8690 = vmatprep.mubr.bf16.mxu1 %v14332_v35  ;;  %v14918_v15 = vadd.f32 %v10153_v53, %v8278_v22 }
 0x54e   : > { %v10154_v5 = vpop.f32.mrb[12].mxu1 }
 0x54f   : > { %v10155_v36 = vpop.f32.mrb[13].mxu1 }
 0x550   : > { %v10156_v44 = vadd.f32 %v10155_v36, %v10154_v5  ;;  %v10157_v43 = vpop.f32.mrb[14].mxu1  ;;  %v8299_v36 = vadd.f32 %v14793_v30, %v14880_v54 }
 0x551   : > { %v10158_v10 = vpop.f32.mrb[15].mxu1 }
 0x552   : > { %v10159_v4 = vadd.f32 %v10158_v10, %v10157_v43  ;;  %v14924_v56 = vadd.f32 %v10156_v44, %v8283_v33  ;;  %v12621_v43 = vld [vmem:[#allocation8 + $0x608] ss:$12 sps:$4 sm:$0xff]   ;;  %v12622_v10 = vld [vmem:[#allocation8 + $0x600] ss:$12 sps:$4 sm:$0xff]  }
 0x553   : > { %7625 = vmatmul.mubr.bf16.gmra.mrb[248].mxu0 %v14328_v60  ;;  %8691 = vmatmul.mubr.bf16.gmra.mrb[120].mxu1 %v14328_v60  ;;  %v16212_v60 = vld [vmem:[#allocation17_spill] sm:$0xff] }
 0x554   : > { %7634 = vmatprep.mubr.bf16.mxu0 %v14352_v12  ;;  %8698 = vmatprep.mubr.bf16.mxu1 %v14352_v12  ;;  %v14930_v42 = vadd.f32 %v10159_v4, %v8286_v59  ;;  %v8302_v59 = vadd.f32 %v14795_v25, %v14880_v54  ;;  %v12627_v4 = vld [vmem:[#allocation8 + $0x61c] ss:$12 sps:$4 sm:$0xff]  }
 0x556   : > { %v10160_v35 = vpop.f32.mrb[16].mxu1 }
 0x557   : > { %v10161_v32 = vpop.f32.mrb[17].mxu1 }
 0x558   : > { %v10162_v52 = vadd.f32 %v10161_v32, %v10160_v35  ;;  %v10163_v7 = vpop.f32.mrb[18].mxu1  ;;  %v12628_v35 = vld [vmem:[#allocation8 + $0x6e0] ss:$12 sps:$4 sm:$0xff]  }
 0x559   : > { %v10164_v19 = vpop.f32.mrb[19].mxu1 }
 0x55a   : > { %v10165_v22 = vadd.f32 %v10164_v19, %v10163_v7  ;;  %v14936_v53 = vadd.f32 %v10162_v52, %v8291_v6  ;;  %v16213_v6 = vld [vmem:[#allocation16_spill] sm:$0xff]  ;;  %v16214_v52 = vld [vmem:[#allocation19_spill] sm:$0xff] }
 0x55b   : > { %7635 = vmatmul.mubr.bf16.gmra.mrb[252].mxu0 %v14348_v28  ;;  %8699 = vmatmul.mubr.bf16.gmra.mrb[124].mxu1 %v14348_v28  ;;  %v12625_v7 = vld [vmem:[#allocation8 + $0x618] ss:$12 sps:$4 sm:$0xff]   ;;  %v12629_v19 = vld [vmem:[#allocation8 + $0x620] ss:$12 sps:$4 sm:$0xff]  }
 0x55c   : > { %7677 = vmatprep.mubr.bf16.mxu0 %v16212_v60  ;;  %8739 = vmatprep.mubr.bf16.mxu1 %v16212_v60  ;;  %v14942_v12 = vadd.f32 %v10165_v22, %v8294_v41  ;;  %v12632_v41 = vld [vmem:[#allocation8 + $0x634] ss:$12 sps:$4 sm:$0xff]   ;;  %v12636_v22 = vld [vmem:[#allocation8 + $0x6f8] ss:$12 sps:$4 sm:$0xff]  }
 0x55e   : > { %v10166_v11 = vpop.f32.mrb[20].mxu1 }
 0x55f   : > { %v10167_v5 = vpop.f32.mrb[21].mxu1 }
 0x560   : > { %v10168_v33 = vadd.f32 %v10167_v5, %v10166_v11  ;;  %v10169_v63 = vpop.f32.mrb[22].mxu1  ;;  %v8307_v11 = vadd.f32 %v14801_v55, %v14880_v54  ;;  %v16216_v55 = vld [vmem:[#allocation29_spill] sm:$0xff] }
 0x561   : > { %v10170_v44 = vpop.f32.mrb[23].mxu1 }
 0x562   : > { %v10171_v28 = vadd.f32 %v10170_v44, %v10169_v63  ;;  %v14948_v32 = vadd.f32 %v10168_v33, %v8299_v36  ;;  %v12630_v63 = vld [vmem:[#allocation8 + $0x630] ss:$12 sps:$4 sm:$0xff]   ;;  %v12637_v44 = vld [vmem:[#allocation8 + $0x638] ss:$12 sps:$4 sm:$0xff]  }
 0x563   : > { %7678 = vmatmul.mubr.bf16.vlgmr.msra.gmra.mrb[192].mxu0 %v16213_v6  ;;  %8740 = vmatmul.mubr.bf16.vlgmr.msra.gmra.mrb[128].mxu1 %v16213_v6 }
 0x564   : > { %7687 = vmatprep.mubr.bf16.mxu0 %v16214_v52  ;;  %8747 = vmatprep.mubr.bf16.mxu1 %v16214_v52  ;;  %v14954_v30 = vadd.f32 %v10171_v28, %v8302_v59  ;;  %v12635_v59 = vld [vmem:[#allocation8 + $0x64c] ss:$12 sps:$4 sm:$0xff]   ;;  %v12644_v28 = vld [vmem:[#allocation8 + $0x710] ss:$12 sps:$4 sm:$0xff]   ;;  %v12633_v52 = vld [vmem:[#allocation8 + $0x648] ss:$12 sps:$4 sm:$0xff]  }
 0x565   : > { %10457 = vmatpush3.bf16.msra.mxu1 %v12621_v43  ;;  %7839 = vmatpush1.bf16.msra.mxu0 %v12622_v10  ;;  %v8310_v43 = vadd.f32 %v14803_v58, %v14880_v54  ;;  %v12645_v58 = vld [vmem:[#allocation8 + $0x650] ss:$12 sps:$4 sm:$0xff]  }
 0x566   : > { %v10172_v25 = vpop.f32.mrb[24].mxu1  ;;  %7840 = vmatprep.subr.bf16.mxu0 %v12627_v4  ;;  %10458 = vmatprep.subr.bf16.mxu1 %v12628_v35  ;;  %v16215_v35 = vld [vmem:[#allocation18_spill] sm:$0xff] }
 0x567   : > { %v10173_v60 = vpop.f32.mrb[25].mxu1 }
 0x568   : > { %v10174_v5 = vadd.f32 %v10173_v60, %v10172_v25  ;;  %v10175_v36 = vpop.f32.mrb[26].mxu1  ;;  %v12652_v25 = vld [vmem:[#allocation8 + $0x728] ss:$12 sps:$4 sm:$0xff]  }
 0x569   : > { %v10176_v33 = vpop.f32.mrb[27].mxu1  ;;  %7841 = vmatpush1.bf16.msra.mxu0 %v12625_v7  ;;  %10459 = vmatpush3.bf16.msra.mxu1 %v12629_v19  ;;  %v12640_v19 = vld [vmem:[#allocation8 + $0x664] ss:$12 sps:$4 sm:$0xff]  }
 0x56a   : > { %v10177_v10 = vadd.f32 %v10176_v33, %v10175_v36  ;;  %7842 = vmatprep.subr.bf16.mxu0 %v12632_v41  ;;  %10460 = vmatprep.subr.bf16.mxu1 %v12636_v22  ;;  %v14960_v4 = vadd.f32 %v10174_v5, %v8307_v11  ;;  %v8315_v22 = vadd.f32 %v14809_v13, %v14880_v54  ;;  %v12638_v36 = vld [vmem:[#allocation8 + $0x660] ss:$12 sps:$4 sm:$0xff]   ;;  %v12653_v33 = vld [vmem:[#allocation8 + $0x668] ss:$12 sps:$4 sm:$0xff]  }
 0x56b   : > { %7688 = vmatmul.mubr.bf16.gmra.mrb[196].mxu0 %v16215_v35  ;;  %8748 = vmatmul.mubr.bf16.gmra.mrb[132].mxu1 %v16215_v35  ;;  %v16218_v13 = vld [vmem:[#allocation22_spill] sm:$0xff] }
 0x56c   : > { %7697 = vmatprep.mubr.bf16.mxu0 %v16216_v55  ;;  %8755 = vmatprep.mubr.bf16.mxu1 %v16216_v55  ;;  %v14966_v6 = vadd.f32 %v10177_v10, %v8310_v43  ;;  %v12643_v43 = vld [vmem:[#allocation8 + $0x67c] ss:$12 sps:$4 sm:$0xff]   ;;  %v12660_v10 = vld [vmem:[#allocation8 + $0x740] ss:$12 sps:$4 sm:$0xff]   ;;  %v12641_v55 = vld [vmem:[#allocation8 + $0x678] ss:$12 sps:$4 sm:$0xff]  }
 0x56d   : > { %7843 = vmatpush1.bf16.msra.mxu0 %v12630_v63  ;;  %10461 = vmatpush3.bf16.msra.mxu1 %v12637_v44  ;;  %v8318_v63 = vadd.f32 %v14811_v20, %v14880_v54  ;;  %v12661_v20 = vld [vmem:[#allocation8 + $0x680] ss:$12 sps:$4 sm:$0xff]  }
 0x56e   : > { %v10178_v7 = vpop.f32.mrb[28].mxu1  ;;  %7844 = vmatprep.subr.bf16.mxu0 %v12635_v59  ;;  %10462 = vmatprep.subr.bf16.mxu1 %v12644_v28  ;;  %v16217_v28 = vld [vmem:[#allocation20_spill] sm:$0xff] }
 0x56f   : > { %v10179_v41 = vpop.f32.mrb[29].mxu1 }
 0x570   : > { %v10180_v60 = vadd.f32 %v10179_v41, %v10178_v7  ;;  %v10181_v11 = vpop.f32.mrb[30].mxu1  ;;  %v12668_v7 = vld [vmem:[#allocation8 + $0x758] ss:$12 sps:$4 sm:$0xff]  }
 0x571   : > { %v10182_v5 = vpop.f32.mrb[31].mxu1  ;;  %7845 = vmatpush1.bf16.msra.mxu0 %v12633_v52  ;;  %10463 = vmatpush3.bf16.msra.mxu1 %v12645_v58  ;;  %v12648_v58 = vld [vmem:[#allocation8 + $0x694] ss:$12 sps:$4 sm:$0xff]  }
 0x572   : > { %v10183_v44 = vadd.f32 %v10182_v5, %v10181_v11  ;;  %7846 = vmatprep.subr.bf16.mxu0 %v12640_v19  ;;  %10464 = vmatprep.subr.bf16.mxu1 %v12652_v25  ;;  %v14972_v59 = vadd.f32 %v10180_v60, %v8315_v22  ;;  %v8323_v25 = vadd.f32 %v14817_v31, %v14880_v54  ;;  %v12646_v11 = vld [vmem:[#allocation8 + $0x690] ss:$12 sps:$4 sm:$0xff]   ;;  %v12669_v5 = vld [vmem:[#allocation8 + $0x698] ss:$12 sps:$4 sm:$0xff]  }
 0x573   : > { %7698 = vmatmul.mubr.bf16.gmra.mrb[200].mxu0 %v16217_v28  ;;  %8756 = vmatmul.mubr.bf16.gmra.mrb[136].mxu1 %v16217_v28  ;;  %v16220_v31 = vld [vmem:[#allocation25_spill] sm:$0xff] }
 0x574   : > { %7707 = vmatprep.mubr.bf16.mxu0 %v16218_v13  ;;  %8763 = vmatprep.mubr.bf16.mxu1 %v16218_v13  ;;  %v14978_v35 = vadd.f32 %v10183_v44, %v8318_v63  ;;  %v12651_v63 = vld [vmem:[#allocation8 + $0x6ac] ss:$12 sps:$4 sm:$0xff]   ;;  %v12676_v44 = vld [vmem:[#allocation8 + $0x770] ss:$12 sps:$4 sm:$0xff]   ;;  %v12649_v13 = vld [vmem:[#allocation8 + $0x6a8] ss:$12 sps:$4 sm:$0xff]  }
 0x575   : > { %7847 = vmatpush1.bf16.msra.mxu0 %v12638_v36  ;;  %10465 = vmatpush3.bf16.msra.mxu1 %v12653_v33  ;;  %v8326_v36 = vadd.f32 %v14819_v18, %v14880_v54  ;;  %v12677_v18 = vld [vmem:[#allocation8 + $0x6b0] ss:$12 sps:$4 sm:$0xff]  }
 0x576   : > { %v10184_v52 = vpop.f32.mrb[32].mxu1  ;;  %7848 = vmatprep.subr.bf16.mxu0 %v12643_v43  ;;  %10466 = vmatprep.subr.bf16.mxu1 %v12660_v10  ;;  %v16219_v10 = vld [vmem:[#allocation21_spill] sm:$0xff] }
 0x577   : > { %v10185_v19 = vpop.f32.mrb[33].mxu1 }
 0x578   : > { %v10186_v41 = vadd.f32 %v10185_v19, %v10184_v52  ;;  %v10187_v22 = vpop.f32.mrb[34].mxu1  ;;  %v12684_v52 = vld [vmem:[#allocation8 + $0x848] ss:$12 sps:$4 sm:$0xff]  }
 0x579   : > { %v10188_v60 = vpop.f32.mrb[35].mxu1  ;;  %7849 = vmatpush1.bf16.msra.mxu0 %v12641_v55  ;;  %10467 = vmatpush3.bf16.msra.mxu1 %v12661_v20  ;;  %v12656_v20 = vld [vmem:[#allocation8 + $0x6c4] ss:$12 sps:$4 sm:$0xff]  }
 0x57a   : > { %v10189_v33 = vadd.f32 %v10188_v60, %v10187_v22  ;;  %7850 = vmatprep.subr.bf16.mxu0 %v12648_v58  ;;  %10468 = vmatprep.subr.bf16.mxu1 %v12668_v7  ;;  %v14984_v43 = vadd.f32 %v10186_v41, %v8323_v25  ;;  %v8331_v7 = vadd.f32 %v14825_v37, %v14880_v54  ;;  %v12654_v22 = vld [vmem:[#allocation8 + $0x6c0] ss:$12 sps:$4 sm:$0xff]  }
 0x57b   : > { %7708 = vmatmul.mubr.bf16.gmra.mrb[204].mxu0 %v16219_v10  ;;  %8764 = vmatmul.mubr.bf16.gmra.mrb[140].mxu1 %v16219_v10  ;;  %v8334_v60 = vadd.f32 %v14827_v47, %v14880_v54  ;;  %v16222_v37 = vld [vmem:[#allocation27_spill] sm:$0xff] }
 0x57c   : > { %7717 = vmatprep.mubr.bf16.mxu0 %v16220_v31  ;;  %8771 = vmatprep.mubr.bf16.mxu1 %v16220_v31  ;;  %v14990_v28 = vadd.f32 %v10189_v33, %v8326_v36  ;;  %v16221_v33 = vld [vmem:[#allocation24_spill] sm:$0xff]  ;;  %v12664_v47 = vld [vmem:[#allocation8 + $0x6f4] ss:$12 sps:$4 sm:$0xff]  }
 0x57d   : > { %7851 = vmatpush1.bf16.msra.mxu0 %v12646_v11  ;;  %10469 = vmatpush3.bf16.msra.mxu1 %v12669_v5  ;;  %v12659_v5 = vld [vmem:[#allocation8 + $0x6dc] ss:$12 sps:$4 sm:$0xff]  }
 0x57e   : > { %v10190_v55 = vpop.f32.mrb[36].mxu1  ;;  %7852 = vmatprep.subr.bf16.mxu0 %v12651_v63  ;;  %10470 = vmatprep.subr.bf16.mxu1 %v12676_v44  ;;  %v12657_v44 = vld [vmem:[#allocation8 + $0x6d8] ss:$12 sps:$4 sm:$0xff]  }
 0x57f   : > { %v10191_v58 = vpop.f32.mrb[37].mxu1 }
 0x580   : > { %v10192_v19 = vadd.f32 %v10191_v58, %v10190_v55  ;;  %v10193_v25 = vpop.f32.mrb[38].mxu1  ;;  %v8342_v58 = vadd.f32 %v14835_v17, %v14880_v54  ;;  %v12672_v17 = vld [vmem:[#allocation8 + $0x724] ss:$12 sps:$4 sm:$0xff]  }
 0x581   : > { %v10194_v41 = vpop.f32.mrb[39].mxu1  ;;  %7853 = vmatpush1.bf16.msra.mxu0 %v12649_v13  ;;  %10471 = vmatpush3.bf16.msra.mxu1 %v12677_v18  ;;  %v8339_v13 = vadd.f32 %v14833_v34, %v14880_v54 }
 0x582   : > { %v10195_v11 = vadd.f32 %v10194_v41, %v10193_v25  ;;  %7854 = vmatprep.subr.bf16.mxu0 %v12656_v20  ;;  %10568 = vmatprep.subr.bf16.mxu1 %v12684_v52  ;;  %v14996_v36 = vadd.f32 %v10192_v19, %v8331_v7  ;;  %v12662_v52 = vld [vmem:[#allocation8 + $0x6f0] ss:$12 sps:$4 sm:$0xff]   ;;  %v12667_v19 = vld [vmem:[#allocation8 + $0x70c] ss:$12 sps:$4 sm:$0xff]  }
 0x583   : > { %7718 = vmatmul.mubr.bf16.gmra.mrb[208].mxu0 %v16221_v33  ;;  %8772 = vmatmul.mubr.bf16.gmra.mrb[144].mxu1 %v16221_v33  ;;  %v16223_v41 = vld [vmem:[#allocation26_spill] sm:$0xff]  ;;  %v8347_v33 = vadd.f32 %v14841_v48, %v14880_v54 }
 0x584   : > { %7727 = vmatprep.mubr.bf16.mxu0 %v16222_v37  ;;  %8779 = vmatprep.mubr.bf16.mxu1 %v16222_v37  ;;  %v15002_v63 = vadd.f32 %v10195_v11, %v8334_v60  ;;  %v12665_v60 = vld [vmem:[#allocation8 + $0x708] ss:$12 sps:$4 sm:$0xff]  }
 0x585   : > { %7855 = vmatpush1.bf16.msra.mxu0 %v12654_v22  ;;  %v16224_v22 = vld [vmem:[#allocation90_spill] sm:$0xff] }
 0x586   : > { %v10196_v10 = vpop.f32.mrb[40].mxu1  ;;  %7856 = vmatprep.subr.bf16.mxu0 %v12659_v5 }
 0x587   : > { %v10197_v31 = vpop.f32.mrb[41].mxu1 }
 0x588   : > { %v10198_v18 = vadd.f32 %v10197_v31, %v10196_v10  ;;  %v10199_v55 = vpop.f32.mrb[42].mxu1  ;;  %v8350_v31 = vadd.f32 %v14843_v8, %v14880_v54  ;;  %v12680_v8 = vld [vmem:[#allocation8 + $0x754] ss:$12 sps:$4 sm:$0xff]  }
 0x589   : > { %v10200_v20 = vpop.f32.mrb[43].mxu1  ;;  %7857 = vmatpush1.bf16.msra.mxu0 %v12657_v44 }
 0x58a   : > { %v10201_v7 = vadd.f32 %v10200_v20, %v10199_v55  ;;  %7858 = vmatprep.subr.bf16.mxu0 %v12664_v47  ;;  %v15008_v25 = vadd.f32 %v10198_v18, %v8339_v13  ;;  %v12670_v47 = vld [vmem:[#allocation8 + $0x720] ss:$12 sps:$4 sm:$0xff]   ;;  %v12675_v18 = vld [vmem:[#allocation8 + $0x73c] ss:$12 sps:$4 sm:$0xff]  }
 0x58b   : > { %7728 = vmatmul.mubr.bf16.gmra.mrb[212].mxu0 %v16223_v41  ;;  %8780 = vmatmul.mubr.bf16.gmra.mrb[148].mxu1 %v16223_v41  ;;  %v16225_v20 = vld [vmem:[#allocation88_spill] sm:$0xff]  ;;  %v8355_v41 = vadd.f32 %v14849_v51, %v14880_v54 }
 0x58c   : > { %7737 = vmatprep.mubr.bf16.mxu0 %v16224_v22  ;;  %8787 = vmatprep.mubr.bf16.mxu1 %v16224_v22  ;;  %v15014_v34 = vadd.f32 %v10201_v7, %v8342_v58  ;;  %v12673_v58 = vld [vmem:[#allocation8 + $0x738] ss:$12 sps:$4 sm:$0xff]  }
 0x58d   : > { %7859 = vmatpush1.bf16.msra.mxu0 %v12662_v52  ;;  %v16226_v52 = vld [vmem:[#allocation93_spill] sm:$0xff] }
 0x58e   : > { %v10202_v11 = vpop.f32.mrb[44].mxu1  ;;  %7860 = vmatprep.subr.bf16.mxu0 %v12667_v19 }
 0x58f   : > { %v10203_v5 = vpop.f32.mrb[45].mxu1 }
 0x590   : > { %v10204_v37 = vadd.f32 %v10203_v5, %v10202_v11  ;;  %v10205_v44 = vpop.f32.mrb[46].mxu1  ;;  %v8358_v5 = vadd.f32 %v14851_v40, %v14880_v54  ;;  %v12688_v40 = vld [vmem:[#allocation8 + $0x784] ss:$12 sps:$4 sm:$0xff]  }
 0x591   : > { %v10206_v10 = vpop.f32.mrb[47].mxu1  ;;  %7861 = vmatpush1.bf16.msra.mxu0 %v12665_v60 }
 0x592   : > { %v10207_v13 = vadd.f32 %v10206_v10, %v10205_v44  ;;  %7862 = vmatprep.subr.bf16.mxu0 %v12672_v17  ;;  %v15020_v55 = vadd.f32 %v10204_v37, %v8347_v33  ;;  %v12678_v17 = vld [vmem:[#allocation8 + $0x750] ss:$12 sps:$4 sm:$0xff]   ;;  %v12683_v37 = vld [vmem:[#allocation8 + $0x76c] ss:$12 sps:$4 sm:$0xff]   ;;  %v16227_v10 = vld [vmem:[#allocation92_spill] sm:$0xff] }
 0x593   : > { %7738 = vmatmul.mubr.bf16.gmra.mrb[216].mxu0 %v16225_v20  ;;  %8788 = vmatmul.mubr.bf16.gmra.mrb[152].mxu1 %v16225_v20  ;;  %v8363_v20 = vadd.f32 %v14857_v46, %v14880_v54 }
 0x594   : > { %7747 = vmatprep.mubr.bf16.mxu0 %v16226_v52  ;;  %8795 = vmatprep.mubr.bf16.mxu1 %v16226_v52  ;;  %v15026_v48 = vadd.f32 %v10207_v13, %v8350_v31  ;;  %v12681_v31 = vld [vmem:[#allocation8 + $0x768] ss:$12 sps:$4 sm:$0xff]  }
 0x595   : > { %7863 = vmatpush1.bf16.msra.mxu0 %v12670_v47  ;;  %v16228_v47 = vld [vmem:[#allocation95_spill] sm:$0xff] }
 0x596   : > { %v10208_v7 = vpop.f32.mrb[48].mxu1  ;;  %7864 = vmatprep.subr.bf16.mxu0 %v12675_v18 }
 0x597   : > { %v10209_v19 = vpop.f32.mrb[49].mxu1 }
 0x598   : > { %v10210_v22 = vadd.f32 %v10209_v19, %v10208_v7  ;;  %v10211_v60 = vpop.f32.mrb[50].mxu1 }
 0x599   : > { %v10212_v11 = vpop.f32.mrb[51].mxu1  ;;  %7865 = vmatpush1.bf16.msra.mxu0 %v12673_v58 }
 0x59a   : > { %v10213_v33 = vadd.f32 %v10212_v11, %v10211_v60  ;;  %7866 = vmatprep.subr.bf16.mxu0 %v12680_v8  ;;  %v15032_v44 = vadd.f32 %v10210_v22, %v8355_v41  ;;  %v8366_v8 = vadd.f32 %v14859_v16, %v14880_v54  ;;  %v16229_v22 = vld [vmem:[#allocation94_spill] sm:$0xff]  ;;  %v16230_v60 = vld [vmem:[#allocation97_spill] sm:$0xff] }
 0x59b   : > { %7748 = vmatmul.mubr.bf16.gmra.mrb[220].mxu0 %v16227_v10  ;;  %8796 = vmatmul.mubr.bf16.gmra.mrb[156].mxu1 %v16227_v10  ;;  %v8374_v10 = vadd.f32 %v14867_v24, %v14880_v54 }
 0x59c   : > { %7757 = vmatprep.mubr.bf16.mxu0 %v16228_v47  ;;  %8803 = vmatprep.mubr.bf16.mxu1 %v16228_v47  ;;  %v15038_v51 = vadd.f32 %v10213_v33, %v8358_v5  ;;  %v8371_v5 = vadd.f32 %v14865_v62, %v14880_v54 }
 0x59d   : > { %7867 = vmatpush1.bf16.msra.mxu0 %v12678_v17 }
 0x59e   : > { %v10214_v13 = vpop.f32.mrb[52].mxu1  ;;  %7868 = vmatprep.subr.bf16.mxu0 %v12683_v37 }
 0x59f   : > { %v10215_v18 = vpop.f32.mrb[53].mxu1 }
 0x5a0   : > { %v10216_v52 = vadd.f32 %v10215_v18, %v10214_v13  ;;  %v10217_v58 = vpop.f32.mrb[54].mxu1  ;;  %v16231_v13 = vld [vmem:[#allocation96_spill] sm:$0xff] }
 0x5a1   : > { %v10218_v7 = vpop.f32.mrb[55].mxu1  ;;  %7869 = vmatpush1.bf16.msra.mxu0 %v12681_v31 }
 0x5a2   : > { %v10219_v19 = vadd.f32 %v10218_v7, %v10217_v58  ;;  %8031 = vmatprep.subr.bf16.mxu0 %v12688_v40  ;;  %v15044_v41 = vadd.f32 %v10216_v52, %v8363_v20  ;;  %v16232_v40 = vld [vmem:[#allocation100_spill] sm:$0xff]  ;;  %v8379_v52 = vadd.f32 %v14873_v2, %v14880_v54 }
 0x5a3   : > { %7758 = vmatmul.mubr.bf16.gmra.mrb[224].mxu0 %v16229_v22  ;;  %8804 = vmatmul.mubr.bf16.gmra.mrb[160].mxu1 %v16229_v22 }
 0x5a4   : > { %7767 = vmatprep.mubr.bf16.mxu0 %v16230_v60  ;;  %8811 = vmatprep.mubr.bf16.mxu1 %v16230_v60  ;;  %v15050_v46 = vadd.f32 %v10219_v19, %v8366_v8  ;;  %v8382_v8 = vadd.f32 %v14875_v39, %v14880_v54  ;;  %v16233_v60 = vld [vmem:[#allocation99_spill] sm:$0xff] }
 0x5a6   : > { %v10220_v11 = vpop.f32.mrb[56].mxu1 }
 0x5a7   : > { %v10221_v17 = vpop.f32.mrb[57].mxu1 }
 0x5a8   : > { %v10222_v16 = vadd.f32 %v10221_v17, %v10220_v11  ;;  %v10223_v33 = vpop.f32.mrb[58].mxu1  ;;  %v16234_v11 = vld [vmem:[#allocation103_spill] sm:$0xff] }
 0x5a9   : > { %v10224_v37 = vpop.f32.mrb[59].mxu1 }
 0x5aa   : > { %v10225_v47 = vadd.f32 %v10224_v37, %v10223_v33  ;;  %v15056_v31 = vadd.f32 %v10222_v16, %v8371_v5 }
 0x5ab   : > { %7768 = vmatmul.mubr.bf16.gmra.mrb[228].mxu0 %v16231_v13  ;;  %8812 = vmatmul.mubr.bf16.gmra.mrb[164].mxu1 %v16231_v13  ;;  %v16236_v13 = vld [vmem:[#allocation105_spill] sm:$0xff] }
 0x5ac   : > { %7777 = vmatprep.mubr.bf16.mxu0 %v16232_v40  ;;  %8819 = vmatprep.mubr.bf16.mxu1 %v16232_v40  ;;  %v15062_v18 = vadd.f32 %v10225_v47, %v8374_v10  ;;  %v16235_v10 = vld [vmem:[#allocation102_spill] sm:$0xff] }
 0x5ae   : > { %v10226_v62 = vpop.f32.mrb[60].mxu1 }
 0x5af   : > { %v10227_v20 = vpop.f32.mrb[61].mxu1 }
 0x5b0   : > { %v10228_v58 = vadd.f32 %v10227_v20, %v10226_v62  ;;  %v10229_v24 = vpop.f32.mrb[62].mxu1 }
 0x5b1   : > { %v10230_v7 = vpop.f32.mrb[63].mxu1 }
 0x5b2   : > { %v10231_v19 = vadd.f32 %v10230_v7, %v10229_v24  ;;  %v15068_v22 = vadd.f32 %v10228_v58, %v8379_v52  ;;  %v16237_v7 = vld [vmem:[#allocation104_spill] sm:$0xff] }
 0x5b3   : > { %7778 = vmatmul.mubr.bf16.gmra.mrb[232].mxu0 %v16233_v60  ;;  %8820 = vmatmul.mubr.bf16.gmra.mrb[168].mxu1 %v16233_v60 }
 0x5b4   : > { %7787 = vmatprep.mubr.bf16.mxu0 %v16234_v11  ;;  %8827 = vmatprep.mubr.bf16.mxu1 %v16234_v11  ;;  %v15074_v17 = vadd.f32 %v10231_v19, %v8382_v8  ;;  %v16238_v8 = vld [vmem:[#allocation107_spill] sm:$0xff] }
 0x5b6   : > { %v10248_v2 = vpop.f32.mrb[64].mxu1 }
 0x5b7   : > { %v10249_v5 = vpop.f32.mrb[65].mxu1 }
 0x5b8   : > { %v10250_v16 = vadd.f32 %v10249_v5, %v10248_v2  ;;  %v10251_v33 = vpop.f32.mrb[66].mxu1 }
 0x5b9   : > { %v10252_v37 = vpop.f32.mrb[67].mxu1 }
 0x5ba   : > { %v15077_v39 = vadd.f32 %v10250_v16, %v14888_v61  ;;  %v10253_v54 = vadd.f32 %v10252_v37, %v10251_v33  ;;  %v16239_v33 = vld [vmem:[#allocation106_spill] sm:$0xff]  ;;  %v16240_v37 = vld [vmem:[#allocation109_spill] sm:$0xff] }
 0x5bb   : > { %7788 = vmatmul.mubr.bf16.gmra.mrb[236].mxu0 %v16235_v10  ;;  %8828 = vmatmul.mubr.bf16.gmra.mrb[172].mxu1 %v16235_v10 }
 0x5bc   : > { %v15082_v47 = vadd.f32 %v10253_v54, %v14894_v3  ;;  %7797 = vmatprep.mubr.bf16.mxu0 %v16236_v13  ;;  %8835 = vmatprep.mubr.bf16.mxu1 %v16236_v13 }
 0x5be   : > { %v10254_v40 = vpop.f32.mrb[68].mxu1 }
 0x5bf   : > { %v10255_v62 = vpop.f32.mrb[69].mxu1 }
 0x5c0   : > { %v10256_v20 = vadd.f32 %v10255_v62, %v10254_v40  ;;  %v10257_v52 = vpop.f32.mrb[70].mxu1 }
 0x5c1   : > { %v10258_v58 = vpop.f32.mrb[71].mxu1 }
 0x5c2   : > { %v15087_v61 = vadd.f32 %v10256_v20, %v14900_v57  ;;  %v10259_v24 = vadd.f32 %v10258_v58, %v10257_v52  ;;  %v16241_v52 = vld [vmem:[#allocation108_spill] sm:$0xff] }
 0x5c3   : > { %7798 = vmatmul.mubr.bf16.gmra.mrb[240].mxu0 %v16237_v7  ;;  %8836 = vmatmul.mubr.bf16.gmra.mrb[176].mxu1 %v16237_v7 }
 0x5c4   : > { %v15092_v3 = vadd.f32 %v10259_v24, %v14906_v21  ;;  %7807 = vmatprep.mubr.bf16.mxu0 %v16238_v8  ;;  %8843 = vmatprep.mubr.bf16.mxu1 %v16238_v8 }
 0x5c6   : > { %v10260_v19 = vpop.f32.mrb[72].mxu1 }
 0x5c7   : > { %v10261_v60 = vpop.f32.mrb[73].mxu1 }
 0x5c8   : > { %v10262_v11 = vadd.f32 %v10261_v60, %v10260_v19  ;;  %v10263_v2 = vpop.f32.mrb[74].mxu1 }
 0x5c9   : > { %v10264_v5 = vpop.f32.mrb[75].mxu1 }
 0x5ca   : > { %v15097_v57 = vadd.f32 %v10262_v11, %v14912_v0  ;;  %v10265_v16 = vadd.f32 %v10264_v5, %v10263_v2 }
 0x5cb   : > { %7808 = vmatmul.mubr.bf16.gmra.mrb[244].mxu0 %v16239_v33  ;;  %8844 = vmatmul.mubr.bf16.gmra.mrb[180].mxu1 %v16239_v33  ;;  %v12685_v33 = vld [vmem:[#allocation8 + $0x788] ss:$12 sps:$4 sm:$0xff]  }
 0x5cc   : > { %v15102_v21 = vadd.f32 %v10265_v16, %v14918_v15  ;;  %7817 = vmatprep.mubr.bf16.mxu0 %v16240_v37  ;;  %8851 = vmatprep.mubr.bf16.mxu1 %v16240_v37 }
 0x5ce   : > { %v10266_v54 = vpop.f32.mrb[76].mxu1 }
 0x5cf   : > { %v10267_v10 = vpop.f32.mrb[77].mxu1 }
 0x5d0   : > { %v10268_v13 = vadd.f32 %v10267_v10, %v10266_v54  ;;  %v10269_v40 = vpop.f32.mrb[78].mxu1  ;;  %v12691_v10 = vld [vmem:[#allocation8 + $0x79c] ss:$12 sps:$4 sm:$0xff]  }
 0x5d1   : > { %v10270_v62 = vpop.f32.mrb[79].mxu1 }
 0x5d2   : > { %v15107_v0 = vadd.f32 %v10268_v13, %v14924_v56  ;;  %v10271_v20 = vadd.f32 %v10270_v62, %v10269_v40  ;;  %v12693_v13 = vld [vmem:[#allocation8 + $0x7a0] ss:$12 sps:$4 sm:$0xff]   ;;  %v12700_v62 = vld [vmem:[#allocation8 + $0x878] ss:$12 sps:$4 sm:$0xff]  }
 0x5d3   : > { %7818 = vmatmul.mubr.bf16.gmra.mrb[248].mxu0 %v16241_v52  ;;  %8852 = vmatmul.mubr.bf16.gmra.mrb[184].mxu1 %v16241_v52  ;;  %v12696_v40 = vld [vmem:[#allocation8 + $0x7b4] ss:$12 sps:$4 sm:$0xff]  }
 0x5d4   : > { %v15112_v15 = vadd.f32 %v10271_v20, %v14930_v42  ;;  %7827 = vmatprep.mubr.bf16.mxu0 %v14354_v29  ;;  %8859 = vmatprep.mubr.bf16.mxu1 %v14354_v29 }
 0x5d6   : > { %v10272_v58 = vpop.f32.mrb[80].mxu1 }
 0x5d7   : > { %v10273_v24 = vpop.f32.mrb[81].mxu1 }
 0x5d8   : > { %v10274_v7 = vadd.f32 %v10273_v24, %v10272_v58  ;;  %v10275_v8 = vpop.f32.mrb[82].mxu1  ;;  %v12701_v24 = vld [vmem:[#allocation8 + $0x7b8] ss:$12 sps:$4 sm:$0xff]  }
 0x5d9   : > { %v10276_v19 = vpop.f32.mrb[83].mxu1 }
 0x5da   : > { %v15117_v56 = vadd.f32 %v10274_v7, %v14936_v53  ;;  %v10277_v60 = vadd.f32 %v10276_v19, %v10275_v8  ;;  %v12686_v53 = vld [vmem:[#allocation8 + $0x780] ss:$12 sps:$4 sm:$0xff]   ;;  %v12708_v19 = vld [vmem:[#allocation8 + $0x890] ss:$12 sps:$4 sm:$0xff]  }
 0x5db   : > { %7828 = vmatmul.mubr.bf16.gmra.mrb[252].mxu0 %v14350_v9  ;;  %8860 = vmatmul.mubr.bf16.gmra.mrb[188].mxu1 %v14350_v9  ;;  %v12692_v9 = vld [vmem:[#allocation8 + $0x860] ss:$12 sps:$4 sm:$0xff]  }
 0x5dc   : > { %v15122_v42 = vadd.f32 %v10277_v60, %v14942_v12  ;;  %7870 = vmatprep.mubr.bf16.mxu0 %v14449_v38  ;;  %8900 = vmatprep.mubr.bf16.mxu1 %v14449_v38  ;;  %v12689_v38 = vld [vmem:[#allocation8 + $0x798] ss:$12 sps:$4 sm:$0xff]   ;;  %v16242_v60 = vld [vmem:[#allocation39_spill] sm:$0xff] }
 0x5dd   : > { %v12699_v8 = vld [vmem:[#allocation8 + $0x7cc] ss:$12 sps:$4 sm:$0xff]  }
 0x5de   : > { %v10278_v29 = vpop.f32.mrb[84].mxu1 }
 0x5df   : > { %v10279_v11 = vpop.f32.mrb[85].mxu1 }
 0x5e0   : > { %v10280_v2 = vadd.f32 %v10279_v11, %v10278_v29  ;;  %v10281_v5 = vpop.f32.mrb[86].mxu1  ;;  %v16243_v11 = vld [vmem:[#allocation45_spill] sm:$0xff] }
 0x5e1   : > { %v10282_v16 = vpop.f32.mrb[87].mxu1 }
 0x5e2   : > { %v15127_v37 = vadd.f32 %v10280_v2, %v14948_v32  ;;  %v10283_v54 = vadd.f32 %v10282_v16, %v10281_v5  ;;  %v12697_v2 = vld [vmem:[#allocation8 + $0x7c8] ss:$12 sps:$4 sm:$0xff]   ;;  %v12704_v16 = vld [vmem:[#allocation8 + $0x7e4] ss:$12 sps:$4 sm:$0xff]  }
 0x5e3   : > { %7871 = vmatmul.mubr.bf16.vlgmr.msra.gmra.mrb[192].mxu0 %v14445_v23  ;;  %8901 = vmatmul.mubr.bf16.vlgmr.msra.gmra.mrb[192].mxu1 %v14445_v23 }
 0x5e4   : > { %v15132_v12 = vadd.f32 %v10283_v54, %v14954_v30  ;;  %7880 = vmatprep.mubr.bf16.mxu0 %v14469_v27  ;;  %8908 = vmatprep.mubr.bf16.mxu1 %v14469_v27  ;;  %v12694_v30 = vld [vmem:[#allocation8 + $0x7b0] ss:$12 sps:$4 sm:$0xff]  }
 0x5e5   : > { %10569 = vmatpush3.bf16.msra.mxu1 %v12685_v33  ;;  %8032 = vmatpush1.bf16.msra.mxu0 %v12686_v53  ;;  %v12716_v33 = vld [vmem:[#allocation8 + $0x8a8] ss:$12 sps:$4 sm:$0xff]  }
 0x5e6   : > { %v10284_v32 = vpop.f32.mrb[88].mxu1  ;;  %8033 = vmatprep.subr.bf16.mxu0 %v12691_v10  ;;  %10570 = vmatprep.subr.bf16.mxu1 %v12692_v9 }
 0x5e7   : > { %v10285_v20 = vpop.f32.mrb[89].mxu1 }
 0x5e8   : > { %v10286_v52 = vadd.f32 %v10285_v20, %v10284_v32  ;;  %v10287_v58 = vpop.f32.mrb[90].mxu1  ;;  %v16244_v20 = vld [vmem:[#allocation41_spill] sm:$0xff] }
 0x5e9   : > { %v10288_v23 = vpop.f32.mrb[91].mxu1  ;;  %8034 = vmatpush1.bf16.msra.mxu0 %v12689_v38  ;;  %10571 = vmatpush3.bf16.msra.mxu1 %v12693_v13  ;;  %v12717_v38 = vld [vmem:[#allocation8 + $0x7e8] ss:$12 sps:$4 sm:$0xff]  }
 0x5ea   : > { %v15137_v7 = vadd.f32 %v10286_v52, %v14960_v4  ;;  %v10289_v27 = vadd.f32 %v10288_v23, %v10287_v58  ;;  %8035 = vmatprep.subr.bf16.mxu0 %v12696_v40  ;;  %10572 = vmatprep.subr.bf16.mxu1 %v12700_v62  ;;  %v12709_v4 = vld [vmem:[#allocation8 + $0x7d0] ss:$12 sps:$4 sm:$0xff]   ;;  %v12724_v62 = vld [vmem:[#allocation8 + $0x8c0] ss:$12 sps:$4 sm:$0xff]   ;;  %v12705_v23 = vld [vmem:[#allocation8 + $0x7f8] ss:$12 sps:$4 sm:$0xff]  }
 0x5eb   : > { %7881 = vmatmul.mubr.bf16.gmra.mrb[196].mxu0 %v16242_v60  ;;  %8909 = vmatmul.mubr.bf16.gmra.mrb[196].mxu1 %v16242_v60  ;;  %v12707_v40 = vld [vmem:[#allocation8 + $0x7fc] ss:$12 sps:$4 sm:$0xff]   ;;  %v16245_v58 = vld [vmem:[#allocation53_spill] sm:$0xff] }
 0x5ec   : > { %v15142_v29 = vadd.f32 %v10289_v27, %v14966_v6  ;;  %7890 = vmatprep.mubr.bf16.mxu0 %v16243_v11  ;;  %8916 = vmatprep.mubr.bf16.mxu1 %v16243_v11  ;;  %v12702_v6 = vld [vmem:[#allocation8 + $0x7e0] ss:$12 sps:$4 sm:$0xff]   ;;  %v12732_v27 = vld [vmem:[#allocation8 + $0x8d8] ss:$12 sps:$4 sm:$0xff]  }
 0x5ed   : > { %8036 = vmatpush1.bf16.msra.mxu0 %v12694_v30  ;;  %10573 = vmatpush3.bf16.msra.mxu1 %v12701_v24  ;;  %v12712_v24 = vld [vmem:[#allocation8 + $0x814] ss:$12 sps:$4 sm:$0xff]  }
 0x5ee   : > { %v10290_v5 = vpop.f32.mrb[92].mxu1  ;;  %8037 = vmatprep.subr.bf16.mxu0 %v12699_v8  ;;  %10574 = vmatprep.subr.bf16.mxu1 %v12708_v19 }
 0x5ef   : > { %v10291_v53 = vpop.f32.mrb[93].mxu1 }
 0x5f0   : > { %v10292_v54 = vadd.f32 %v10291_v53, %v10290_v5  ;;  %v10293_v10 = vpop.f32.mrb[94].mxu1  ;;  %v16246_v53 = vld [vmem:[#allocation49_spill] sm:$0xff] }
 0x5f1   : > { %v10294_v9 = vpop.f32.mrb[95].mxu1  ;;  %8038 = vmatpush1.bf16.msra.mxu0 %v12697_v2  ;;  %10575 = vmatpush3.bf16.msra.mxu1 %v12709_v4  ;;  %v12733_v2 = vld [vmem:[#allocation8 + $0x818] ss:$12 sps:$4 sm:$0xff]  }
 0x5f2   : > { %v15147_v13 = vadd.f32 %v10292_v54, %v14972_v59  ;;  %v10295_v32 = vadd.f32 %v10294_v9, %v10293_v10  ;;  %8039 = vmatprep.subr.bf16.mxu0 %v12704_v16  ;;  %10576 = vmatprep.subr.bf16.mxu1 %v12716_v33  ;;  %v12725_v59 = vld [vmem:[#allocation8 + $0x800] ss:$12 sps:$4 sm:$0xff]   ;;  %v12740_v33 = vld [vmem:[#allocation8 + $0x8f0] ss:$12 sps:$4 sm:$0xff]   ;;  %v12713_v9 = vld [vmem:[#allocation8 + $0x828] ss:$12 sps:$4 sm:$0xff]  }
 0x5f3   : > { %7891 = vmatmul.mubr.bf16.gmra.mrb[200].mxu0 %v16244_v20  ;;  %8917 = vmatmul.mubr.bf16.gmra.mrb[200].mxu1 %v16244_v20  ;;  %v12715_v16 = vld [vmem:[#allocation8 + $0x82c] ss:$12 sps:$4 sm:$0xff]  }
 0x5f4   : > { %v15152_v52 = vadd.f32 %v10295_v32, %v14978_v35  ;;  %7900 = vmatprep.mubr.bf16.mxu0 %v16245_v58  ;;  %8924 = vmatprep.mubr.bf16.mxu1 %v16245_v58  ;;  %v12710_v35 = vld [vmem:[#allocation8 + $0x810] ss:$12 sps:$4 sm:$0xff]   ;;  %v12718_v58 = vld [vmem:[#allocation8 + $0x840] ss:$12 sps:$4 sm:$0xff]  }
 0x5f5   : > { %8040 = vmatpush1.bf16.msra.mxu0 %v12702_v6  ;;  %10577 = vmatpush3.bf16.msra.mxu1 %v12717_v38  ;;  %v16247_v10 = vld [vmem:[#allocation61_spill] sm:$0xff] }
 0x5f6   : > { %v10296_v30 = vpop.f32.mrb[96].mxu1  ;;  %8041 = vmatprep.subr.bf16.mxu0 %v12707_v40  ;;  %10578 = vmatprep.subr.bf16.mxu1 %v12724_v62  ;;  %v12720_v38 = vld [vmem:[#allocation8 + $0x844] ss:$12 sps:$4 sm:$0xff]  }
 0x5f7   : > { %v10297_v8 = vpop.f32.mrb[97].mxu1 }
 0x5f8   : > { %v10298_v19 = vadd.f32 %v10297_v8, %v10296_v30  ;;  %v10299_v60 = vpop.f32.mrb[98].mxu1  ;;  %v16248_v30 = vld [vmem:[#allocation57_spill] sm:$0xff]  ;;  %v12721_v8 = vld [vmem:[#allocation8 + $0x858] ss:$12 sps:$4 sm:$0xff]  }
 0x5f9   : > { %v10300_v11 = vpop.f32.mrb[99].mxu1  ;;  %8042 = vmatpush1.bf16.msra.mxu0 %v12705_v23  ;;  %10579 = vmatpush3.bf16.msra.mxu1 %v12725_v59  ;;  %v12723_v59 = vld [vmem:[#allocation8 + $0x85c] ss:$12 sps:$4 sm:$0xff]  }
 0x5fa   : > { %v15157_v4 = vadd.f32 %v10298_v19, %v14984_v43  ;;  %v10301_v5 = vadd.f32 %v10300_v11, %v10299_v60  ;;  %8043 = vmatprep.subr.bf16.mxu0 %v12712_v24  ;;  %10580 = vmatprep.subr.bf16.mxu1 %v12732_v27  ;;  %v12741_v43 = vld [vmem:[#allocation8 + $0x830] ss:$12 sps:$4 sm:$0xff]  }
 0x5fb   : > { %7901 = vmatmul.mubr.bf16.gmra.mrb[204].mxu0 %v16246_v53  ;;  %8925 = vmatmul.mubr.bf16.gmra.mrb[204].mxu1 %v16246_v53  ;;  %v16249_v27 = vld [vmem:[#allocation69_spill] sm:$0xff] }
 0x5fc   : > { %v15162_v54 = vadd.f32 %v10301_v5, %v14990_v28  ;;  %7910 = vmatprep.mubr.bf16.mxu0 %v16247_v10  ;;  %8932 = vmatprep.mubr.bf16.mxu1 %v16247_v10  ;;  %v12726_v5 = vld [vmem:[#allocation8 + $0x870] ss:$12 sps:$4 sm:$0xff]  }
 0x5fd   : > { %8044 = vmatpush1.bf16.msra.mxu0 %v12710_v35  ;;  %10581 = vmatpush3.bf16.msra.mxu1 %v12733_v2  ;;  %v16250_v53 = vld [vmem:[#allocation65_spill] sm:$0xff] }
 0x5fe   : > { %v10302_v6 = vpop.f32.mrb[100].mxu1  ;;  %8045 = vmatprep.subr.bf16.mxu0 %v12715_v16  ;;  %10582 = vmatprep.subr.bf16.mxu1 %v12740_v33  ;;  %v12731_v33 = vld [vmem:[#allocation8 + $0x88c] ss:$12 sps:$4 sm:$0xff]  }
 0x5ff   : > { %v10303_v32 = vpop.f32.mrb[101].mxu1 }
 0x600   : > { %v10304_v40 = vadd.f32 %v10303_v32, %v10302_v6  ;;  %v10305_v62 = vpop.f32.mrb[102].mxu1 }
 0x601   : > { %v10306_v20 = vpop.f32.mrb[103].mxu1  ;;  %8046 = vmatpush1.bf16.msra.mxu0 %v12713_v9  ;;  %10583 = vmatpush3.bf16.msra.mxu1 %v12741_v43  ;;  %v16251_v9 = vld [vmem:[#allocation79_spill] sm:$0xff]  ;;  %v12729_v43 = vld [vmem:[#allocation8 + $0x888] ss:$12 sps:$4 sm:$0xff]  }
 0x602   : > { %v15167_v28 = vadd.f32 %v10304_v40, %v14996_v36  ;;  %v10307_v23 = vadd.f32 %v10306_v20, %v10305_v62  ;;  %8047 = vmatprep.subr.bf16.mxu0 %v12720_v38  ;;  %v12728_v36 = vld [vmem:[#allocation8 + $0x874] ss:$12 sps:$4 sm:$0xff]  }
 0x603   : > { %7911 = vmatmul.mubr.bf16.gmra.mrb[208].mxu0 %v16248_v30  ;;  %8933 = vmatmul.mubr.bf16.gmra.mrb[208].mxu1 %v16248_v30  ;;  %v12734_v20 = vld [vmem:[#allocation8 + $0x8a0] ss:$12 sps:$4 sm:$0xff]  }
 0x604   : > { %v15172_v24 = vadd.f32 %v10307_v23, %v15002_v63  ;;  %7920 = vmatprep.mubr.bf16.mxu0 %v16249_v27  ;;  %8940 = vmatprep.mubr.bf16.mxu1 %v16249_v27  ;;  %v12739_v23 = vld [vmem:[#allocation8 + $0x8bc] ss:$12 sps:$4 sm:$0xff]   ;;  %v16253_v27 = vld [vmem:[#allocation34_spill] sm:$0xff] }
 0x605   : > { %8048 = vmatpush1.bf16.msra.mxu0 %v12718_v58 }
 0x606   : > { %v10308_v19 = vpop.f32.mrb[104].mxu1  ;;  %8049 = vmatprep.subr.bf16.mxu0 %v12723_v59  ;;  %v16252_v59 = vld [vmem:[#allocation73_spill] sm:$0xff] }
 0x607   : > { %v10309_v60 = vpop.f32.mrb[105].mxu1 }
 0x608   : > { %v10310_v11 = vadd.f32 %v10309_v60, %v10308_v19  ;;  %v10311_v35 = vpop.f32.mrb[106].mxu1 }
 0x609   : > { %v10312_v2 = vpop.f32.mrb[107].mxu1  ;;  %8050 = vmatpush1.bf16.msra.mxu0 %v12721_v8  ;;  %v12737_v8 = vld [vmem:[#allocation8 + $0x8b8] ss:$12 sps:$4 sm:$0xff]  }
 0x60a   : > { %v15177_v16 = vadd.f32 %v10310_v11, %v15008_v25  ;;  %v10313_v63 = vadd.f32 %v10312_v2, %v10311_v35  ;;  %8051 = vmatprep.subr.bf16.mxu0 %v12728_v36  ;;  %v12736_v25 = vld [vmem:[#allocation8 + $0x8a4] ss:$12 sps:$4 sm:$0xff]  }
 0x60b   : > { %7921 = vmatmul.mubr.bf16.gmra.mrb[212].mxu0 %v16250_v53  ;;  %8941 = vmatmul.mubr.bf16.gmra.mrb[212].mxu1 %v16250_v53  ;;  %v12742_v2 = vld [vmem:[#allocation8 + $0x8d0] ss:$12 sps:$4 sm:$0xff]  }
 0x60c   : > { %v15182_v10 = vadd.f32 %v10313_v63, %v15014_v34  ;;  %7930 = vmatprep.mubr.bf16.mxu0 %v16251_v9  ;;  %8948 = vmatprep.mubr.bf16.mxu1 %v16251_v9  ;;  %v12747_v63 = vld [vmem:[#allocation8 + $0x8ec] ss:$12 sps:$4 sm:$0xff]   ;;  %v12745_v9 = vld [vmem:[#allocation8 + $0x8e8] ss:$12 sps:$4 sm:$0xff]  }
 0x60d   : > { %8052 = vmatpush1.bf16.msra.mxu0 %v12726_v5 }
 0x60e   : > { %v10314_v6 = vpop.f32.mrb[108].mxu1  ;;  %8053 = vmatprep.subr.bf16.mxu0 %v12731_v33  ;;  %v16254_v33 = vld [vmem:[#allocation85_spill] sm:$0xff] }
 0x60f   : > { %v10315_v38 = vpop.f32.mrb[109].mxu1 }
 0x610   : > { %v10316_v32 = vadd.f32 %v10315_v38, %v10314_v6  ;;  %v10317_v40 = vpop.f32.mrb[110].mxu1 }
 0x611   : > { %v10318_v62 = vpop.f32.mrb[111].mxu1  ;;  %8054 = vmatpush1.bf16.msra.mxu0 %v12729_v43 }
 0x612   : > { %v15187_v58 = vadd.f32 %v10316_v32, %v15020_v55  ;;  %v10319_v34 = vadd.f32 %v10318_v62, %v10317_v40  ;;  %8055 = vmatprep.subr.bf16.mxu0 %v12736_v25  ;;  %v12744_v55 = vld [vmem:[#allocation8 + $0x8d4] ss:$12 sps:$4 sm:$0xff]  }
 0x613   : > { %7931 = vmatmul.mubr.bf16.gmra.mrb[216].mxu0 %v16252_v59  ;;  %8949 = vmatmul.mubr.bf16.gmra.mrb[216].mxu1 %v16252_v59 }
 0x614   : > { %v15192_v30 = vadd.f32 %v10319_v34, %v15026_v48  ;;  %7940 = vmatprep.mubr.bf16.mxu0 %v16253_v27  ;;  %8956 = vmatprep.mubr.bf16.mxu1 %v16253_v27  ;;  %v16255_v27 = vld [vmem:[#allocation42_spill] sm:$0xff] }
 0x615   : > { %8056 = vmatpush1.bf16.msra.mxu0 %v12734_v20 }
 0x616   : > { %v10320_v19 = vpop.f32.mrb[112].mxu1  ;;  %8057 = vmatprep.subr.bf16.mxu0 %v12739_v23 }
 0x617   : > { %v10321_v36 = vpop.f32.mrb[113].mxu1 }
 0x618   : > { %v10322_v60 = vadd.f32 %v10321_v36, %v10320_v19  ;;  %v10323_v11 = vpop.f32.mrb[114].mxu1 }
 0x619   : > { %v10324_v35 = vpop.f32.mrb[115].mxu1  ;;  %8058 = vmatpush1.bf16.msra.mxu0 %v12737_v8 }
 0x61a   : > { %v15197_v5 = vadd.f32 %v10322_v60, %v15032_v44  ;;  %v10325_v48 = vadd.f32 %v10324_v35, %v10323_v11  ;;  %8059 = vmatprep.subr.bf16.mxu0 %v12744_v55  ;;  %v16257_v11 = vld [vmem:[#allocation52_spill] sm:$0xff] }
 0x61b   : > { %7941 = vmatmul.mubr.bf16.gmra.mrb[220].mxu0 %v16254_v33  ;;  %8957 = vmatmul.mubr.bf16.gmra.mrb[220].mxu1 %v16254_v33  ;;  %v16258_v35 = vld [vmem:[#allocation64_spill] sm:$0xff] }
 0x61c   : > { %v15202_v53 = vadd.f32 %v10325_v48, %v15038_v51  ;;  %7950 = vmatprep.mubr.bf16.mxu0 %v14609_v14  ;;  %8964 = vmatprep.mubr.bf16.mxu1 %v14609_v14 }
 0x61d   : > { %8060 = vmatpush1.bf16.msra.mxu0 %v12742_v2 }
 0x61e   : > { %v10326_v43 = vpop.f32.mrb[116].mxu1  ;;  %8061 = vmatprep.subr.bf16.mxu0 %v12747_v63 }
 0x61f   : > { %v10327_v44 = vpop.f32.mrb[117].mxu1 }
 0x620   : > { %v10328_v6 = vadd.f32 %v10327_v44, %v10326_v43  ;;  %v10329_v25 = vpop.f32.mrb[118].mxu1  ;;  %v16259_v44 = vld [vmem:[#allocation60_spill] sm:$0xff] }
 0x621   : > { %v10330_v38 = vpop.f32.mrb[119].mxu1  ;;  %8062 = vmatpush1.bf16.msra.mxu0 %v12745_v9 }
 0x622   : > { %v15207_v32 = vadd.f32 %v10328_v6, %v15044_v41  ;;  %v10331_v40 = vadd.f32 %v10330_v38, %v10329_v25 }
 0x623   : > { %7951 = vmatmul.mubr.bf16.gmra.mrb[224].mxu0 %v14605_v1  ;;  %8965 = vmatmul.mubr.bf16.gmra.mrb[224].mxu1 %v14605_v1 }
 0x624   : > { %v15212_v51 = vadd.f32 %v10331_v40, %v15050_v46  ;;  %7960 = vmatprep.mubr.bf16.mxu0 %v14629_v45  ;;  %8972 = vmatprep.mubr.bf16.mxu1 %v14629_v45  ;;  %v16256_v46 = vld [vmem:[#allocation56_spill] sm:$0xff] }
 0x626   : > { %v10332_v14 = vpop.f32.mrb[120].mxu1 }
 0x627   : > { %v10333_v62 = vpop.f32.mrb[121].mxu1 }
 0x628   : > { %v10334_v20 = vadd.f32 %v10333_v62, %v10332_v14  ;;  %v10335_v34 = vpop.f32.mrb[122].mxu1 }
 0x629   : > { %v10336_v23 = vpop.f32.mrb[123].mxu1 }
 0x62a   : > { %v15217_v41 = vadd.f32 %v10334_v20, %v15056_v31  ;;  %v10337_v59 = vadd.f32 %v10336_v23, %v10335_v34  ;;  %v16260_v20 = vld [vmem:[#allocation62_spill] sm:$0xff] }
 0x62b   : > { %7961 = vmatmul.mubr.bf16.gmra.mrb[228].mxu0 %v16255_v27  ;;  %8973 = vmatmul.mubr.bf16.gmra.mrb[228].mxu1 %v16255_v27 }
 0x62c   : > { %v15222_v1 = vadd.f32 %v10337_v59, %v15062_v18  ;;  %7970 = vmatprep.mubr.bf16.mxu0 %v16256_v46  ;;  %8980 = vmatprep.mubr.bf16.mxu1 %v16256_v46 }
 0x62e   : > { %v10338_v45 = vpop.f32.mrb[124].mxu1 }
 0x62f   : > { %v10339_v8 = vpop.f32.mrb[125].mxu1 }
 0x630   : > { %v10340_v19 = vadd.f32 %v10339_v8, %v10338_v45  ;;  %v10341_v55 = vpop.f32.mrb[126].mxu1  ;;  %v16261_v45 = vld [vmem:[#allocation66_spill] sm:$0xff] }
 0x631   : > { %v10342_v36 = vpop.f32.mrb[127].mxu1 }
 0x632   : > { %v15227_v31 = vadd.f32 %v10340_v19, %v15068_v22  ;;  %v10343_v60 = vadd.f32 %v10342_v36, %v10341_v55 }
 0x633   : > { %7971 = vmatmul.mubr.bf16.gmra.mrb[232].mxu0 %v16257_v11  ;;  %8981 = vmatmul.mubr.bf16.gmra.mrb[232].mxu1 %v16257_v11  ;;  %v16262_v11 = vld [vmem:[#allocation70_spill] sm:$0xff] }
 0x634   : > { %v15232_v18 = vadd.f32 %v10343_v60, %v15074_v17  ;;  %7980 = vmatprep.mubr.bf16.mxu0 %v16258_v35  ;;  %8988 = vmatprep.mubr.bf16.mxu1 %v16258_v35  ;;  %v16263_v35 = vld [vmem:[#allocation114_spill] sm:$0xff] }
 0x636   : > { %v10360_v2 = vpop.f32.mrb[128].mxu1 }
 0x637   : > { %v10361_v48 = vpop.f32.mrb[129].mxu1 }
 0x638   : > { %v10362_v63 = vadd.f32 %v10361_v48, %v10360_v2  ;;  %v10363_v33 = vpop.f32.mrb[130].mxu1 }
 0x639   : > { %v10364_v9 = vpop.f32.mrb[131].mxu1 }
 0x63a   : > { %v15237_v22 = vadd.f32 %v10362_v63, %v15077_v39  ;;  %v10365_v43 = vadd.f32 %v10364_v9, %v10363_v33 }
 0x63b   : > { %7981 = vmatmul.mubr.bf16.gmra.mrb[236].mxu0 %v16259_v44  ;;  %8989 = vmatmul.mubr.bf16.gmra.mrb[236].mxu1 %v16259_v44  ;;  %v16265_v44 = vld [vmem:[#allocation33_spill] sm:$0xff] }
 0x63c   : > { %v15242_v17 = vadd.f32 %v10365_v43, %v15082_v47  ;;  %7990 = vmatprep.mubr.bf16.mxu0 %v14689_v50  ;;  %8996 = vmatprep.mubr.bf16.mxu1 %v14689_v50  ;;  %v16264_v43 = vld [vmem:[#allocation74_spill] sm:$0xff] }
 0x63e   : > { %v10366_v6 = vpop.f32.mrb[132].mxu1 }
 0x63f   : > { %v10367_v25 = vpop.f32.mrb[133].mxu1 }
 0x640   : > { %v10368_v38 = vadd.f32 %v10367_v25, %v10366_v6  ;;  %v10369_v40 = vpop.f32.mrb[134].mxu1 }
 0x641   : > { %v10370_v14 = vpop.f32.mrb[135].mxu1 }
 0x642   : > { %v15247_v39 = vadd.f32 %v10368_v38, %v15087_v61  ;;  %v10371_v62 = vadd.f32 %v10370_v14, %v10369_v40 }
 0x643   : > { %7991 = vmatmul.mubr.bf16.gmra.mrb[240].mxu0 %v16260_v20  ;;  %8997 = vmatmul.mubr.bf16.gmra.mrb[240].mxu1 %v16260_v20  ;;  %v16266_v20 = vld [vmem:[#allocation35_spill] sm:$0xff] }
 0x644   : > { %v15252_v47 = vadd.f32 %v10371_v62, %v15092_v3  ;;  %8000 = vmatprep.mubr.bf16.mxu0 %v14709_v26  ;;  %9004 = vmatprep.mubr.bf16.mxu1 %v14709_v26 }
 0x646   : > { %v10372_v50 = vpop.f32.mrb[136].mxu1 }
 0x647   : > { %v10373_v34 = vpop.f32.mrb[137].mxu1 }
 0x648   : > { %v10374_v23 = vadd.f32 %v10373_v34, %v10372_v50  ;;  %v10375_v59 = vpop.f32.mrb[138].mxu1  ;;  %v16267_v50 = vld [vmem:[#allocation43_spill] sm:$0xff] }
 0x649   : > { %v10376_v27 = vpop.f32.mrb[139].mxu1 }
 0x64a   : > { %v15257_v61 = vadd.f32 %v10374_v23, %v15097_v57  ;;  %v10377_v46 = vadd.f32 %v10376_v27, %v10375_v59 }
 0x64b   : > { %8001 = vmatmul.mubr.bf16.gmra.mrb[244].mxu0 %v16261_v45  ;;  %9005 = vmatmul.mubr.bf16.gmra.mrb[244].mxu1 %v16261_v45 }
 0x64c   : > { %v15262_v3 = vadd.f32 %v10377_v46, %v15102_v21  ;;  %8010 = vmatprep.mubr.bf16.mxu0 %v14729_v49  ;;  %9012 = vmatprep.mubr.bf16.mxu1 %v14729_v49 }
 0x64e   : > { %v10378_v26 = vpop.f32.mrb[140].mxu1 }
 0x64f   : > { %v10379_v8 = vpop.f32.mrb[141].mxu1 }
 0x650   : > { %v10380_v19 = vadd.f32 %v10379_v8, %v10378_v26  ;;  %v10381_v55 = vpop.f32.mrb[142].mxu1  ;;  %v16268_v26 = vld [vmem:[#allocation37_spill] sm:$0xff]  ;;  %v16269_v8 = vld [vmem:[#allocation51_spill] sm:$0xff] }
 0x651   : > { %v10382_v36 = vpop.f32.mrb[143].mxu1 }
 0x652   : > { %v15267_v57 = vadd.f32 %v10380_v19, %v15107_v0  ;;  %v10383_v60 = vadd.f32 %v10382_v36, %v10381_v55 }
 0x653   : > { %8011 = vmatmul.mubr.bf16.gmra.mrb[248].mxu0 %v16262_v11  ;;  %9013 = vmatmul.mubr.bf16.gmra.mrb[248].mxu1 %v16262_v11 }
 0x654   : > { %v15272_v21 = vadd.f32 %v10383_v60, %v15112_v15  ;;  %8020 = vmatprep.mubr.bf16.mxu0 %v16263_v35  ;;  %9020 = vmatprep.mubr.bf16.mxu1 %v16263_v35 }
 0x656   : > { %v10384_v49 = vpop.f32.mrb[144].mxu1 }
 0x657   : > { %v10385_v2 = vpop.f32.mrb[145].mxu1 }
 0x658   : > { %v10386_v48 = vadd.f32 %v10385_v2, %v10384_v49  ;;  %v10387_v63 = vpop.f32.mrb[146].mxu1  ;;  %v16270_v49 = vld [vmem:[#allocation47_spill] sm:$0xff] }
 0x659   : > { %v10388_v33 = vpop.f32.mrb[147].mxu1  ;;  %v16271_v2 = vld [vmem:[#allocation59_spill] sm:$0xff] }
 0x65a   : > { %v15277_v0 = vadd.f32 %v10386_v48, %v15117_v56  ;;  %v10389_v9 = vadd.f32 %v10388_v33, %v10387_v63 }
 0x65b   : > { %8021 = vmatmul.mubr.bf16.gmra.mrb[252].mxu0 %v16264_v43  ;;  %9021 = vmatmul.mubr.bf16.gmra.mrb[252].mxu1 %v16264_v43 }
 0x65c   : > { %v15282_v15 = vadd.f32 %v10389_v9, %v15122_v42  ;;  %8063 = vmatprep.mubr.bf16.mxu0 %v16265_v44  ;;  %9061 = vmatprep.mubr.bf16.mxu1 %v16265_v44 }
 0x65e   : > { %v10390_v6 = vpop.f32.mrb[148].mxu1 }
 0x65f   : > { %v10391_v25 = vpop.f32.mrb[149].mxu1 }
 0x660   : > { %v10392_v38 = vadd.f32 %v10391_v25, %v10390_v6  ;;  %v10393_v40 = vpop.f32.mrb[150].mxu1  ;;  %v16272_v6 = vld [vmem:[#allocation55_spill] sm:$0xff] }
 0x661   : > { %v10394_v14 = vpop.f32.mrb[151].mxu1  ;;  %v16273_v25 = vld [vmem:[#allocation67_spill] sm:$0xff] }
 0x662   : > { %v15287_v56 = vadd.f32 %v10392_v38, %v15127_v37  ;;  %v10395_v62 = vadd.f32 %v10394_v14, %v10393_v40 }
 0x663   : > { %8064 = vmatmul.mubr.bf16.vlgmr.msra.gmra.mrb[192].mxu0 %v16266_v20  ;;  %9062 = vmatmul.mubr.bf16.vlgmr.msra.gmra.mrb[0].mxu1 %v16266_v20 }
 0x664   : > { %v15292_v42 = vadd.f32 %v10395_v62, %v15132_v12  ;;  %8073 = vmatprep.mubr.bf16.mxu0 %v16267_v50  ;;  %9069 = vmatprep.mubr.bf16.mxu1 %v16267_v50 }
 0x666   : > { %v10396_v34 = vpop.f32.mrb[152].mxu1 }
 0x667   : > { %v10397_v23 = vpop.f32.mrb[153].mxu1 }
 0x668   : > { %v10398_v59 = vadd.f32 %v10397_v23, %v10396_v34  ;;  %v10399_v27 = vpop.f32.mrb[154].mxu1  ;;  %v16274_v34 = vld [vmem:[#allocation63_spill] sm:$0xff] }
 0x669   : > { %v10400_v46 = vpop.f32.mrb[155].mxu1  ;;  %v16275_v23 = vld [vmem:[#allocation75_spill] sm:$0xff] }
 0x66a   : > { %v15297_v37 = vadd.f32 %v10398_v59, %v15137_v7  ;;  %v10401_v45 = vadd.f32 %v10400_v46, %v10399_v27 }
 0x66b   : > { %8074 = vmatmul.mubr.bf16.gmra.mrb[196].mxu0 %v16268_v26  ;;  %9070 = vmatmul.mubr.bf16.gmra.mrb[4].mxu1 %v16268_v26 }
 0x66c   : > { %v15302_v12 = vadd.f32 %v10401_v45, %v15142_v29  ;;  %8083 = vmatprep.mubr.bf16.mxu0 %v16269_v8  ;;  %9077 = vmatprep.mubr.bf16.mxu1 %v16269_v8 }
 0x66e   : > { %v10402_v19 = vpop.f32.mrb[156].mxu1 }
 0x66f   : > { %v10403_v55 = vpop.f32.mrb[157].mxu1 }
 0x670   : > { %v10404_v36 = vadd.f32 %v10403_v55, %v10402_v19  ;;  %v10405_v60 = vpop.f32.mrb[158].mxu1  ;;  %v16276_v19 = vld [vmem:[#allocation71_spill] sm:$0xff]  ;;  %v16277_v55 = vld [vmem:[#allocation77_spill] sm:$0xff] }
 0x671   : > { %v10406_v11 = vpop.f32.mrb[159].mxu1 }
 0x672   : > { %v15307_v7 = vadd.f32 %v10404_v36, %v15147_v13  ;;  %v10407_v35 = vadd.f32 %v10406_v11, %v10405_v60 }
 0x673   : > { %8084 = vmatmul.mubr.bf16.gmra.mrb[200].mxu0 %v16270_v49  ;;  %9078 = vmatmul.mubr.bf16.gmra.mrb[8].mxu1 %v16270_v49 }
 0x674   : > { %v15312_v29 = vadd.f32 %v10407_v35, %v15152_v52  ;;  %8093 = vmatprep.mubr.bf16.mxu0 %v16271_v2  ;;  %9085 = vmatprep.mubr.bf16.mxu1 %v16271_v2 }
 0x676   : > { %v10408_v48 = vpop.f32.mrb[160].mxu1 }
 0x677   : > { %v10409_v63 = vpop.f32.mrb[161].mxu1 }
 0x678   : > { %v10410_v33 = vadd.f32 %v10409_v63, %v10408_v48  ;;  %v10411_v9 = vpop.f32.mrb[162].mxu1  ;;  %v16278_v48 = vld [vmem:[#allocation31_spill] sm:$0xff]  ;;  %v16279_v63 = vld [vmem:[#allocation40_spill] sm:$0xff] }
 0x679   : > { %v10412_v43 = vpop.f32.mrb[163].mxu1 }
 0x67a   : > { %v15317_v13 = vadd.f32 %v10410_v33, %v15157_v4  ;;  %v10413_v44 = vadd.f32 %v10412_v43, %v10411_v9 }
 0x67b   : > { %8094 = vmatmul.mubr.bf16.gmra.mrb[204].mxu0 %v16272_v6  ;;  %9086 = vmatmul.mubr.bf16.gmra.mrb[12].mxu1 %v16272_v6 }
 0x67c   : > { %v15322_v52 = vadd.f32 %v10413_v44, %v15162_v54  ;;  %8103 = vmatprep.mubr.bf16.mxu0 %v16273_v25  ;;  %9093 = vmatprep.mubr.bf16.mxu1 %v16273_v25 }
 0x67e   : > { %v10414_v38 = vpop.f32.mrb[164].mxu1 }
 0x67f   : > { %v10415_v40 = vpop.f32.mrb[165].mxu1 }
 0x680   : > { %v10416_v14 = vadd.f32 %v10415_v40, %v10414_v38  ;;  %v10417_v62 = vpop.f32.mrb[166].mxu1  ;;  %v16280_v38 = vld [vmem:[#allocation36_spill] sm:$0xff] }
 0x681   : > { %v10418_v20 = vpop.f32.mrb[167].mxu1  ;;  %v16281_v40 = vld [vmem:[#allocation44_spill] sm:$0xff] }
 0x682   : > { %v15327_v4 = vadd.f32 %v10416_v14, %v15167_v28  ;;  %v10419_v50 = vadd.f32 %v10418_v20, %v10417_v62 }
 0x683   : > { %8104 = vmatmul.mubr.bf16.gmra.mrb[208].mxu0 %v16274_v34  ;;  %9094 = vmatmul.mubr.bf16.gmra.mrb[16].mxu1 %v16274_v34 }
 0x684   : > { %v15332_v54 = vadd.f32 %v10419_v50, %v15172_v24  ;;  %8113 = vmatprep.mubr.bf16.mxu0 %v16275_v23  ;;  %9101 = vmatprep.mubr.bf16.mxu1 %v16275_v23 }
 0x686   : > { %v10420_v59 = vpop.f32.mrb[168].mxu1 }
 0x687   : > { %v10421_v27 = vpop.f32.mrb[169].mxu1 }
 0x688   : > { %v10422_v46 = vadd.f32 %v10421_v27, %v10420_v59  ;;  %v10423_v45 = vpop.f32.mrb[170].mxu1  ;;  %v16282_v59 = vld [vmem:[#allocation38_spill] sm:$0xff] }
 0x689   : > { %v10424_v26 = vpop.f32.mrb[171].mxu1  ;;  %v16283_v27 = vld [vmem:[#allocation46_spill] sm:$0xff] }
 0x68a   : > { %v15337_v28 = vadd.f32 %v10422_v46, %v15177_v16  ;;  %v10425_v8 = vadd.f32 %v10424_v26, %v10423_v45 }
 0x68b   : > { %8114 = vmatmul.mubr.bf16.gmra.mrb[212].mxu0 %v16276_v19  ;;  %9102 = vmatmul.mubr.bf16.gmra.mrb[20].mxu1 %v16276_v19 }
 0x68c   : > { %v15342_v24 = vadd.f32 %v10425_v8, %v15182_v10  ;;  %8123 = vmatprep.mubr.bf16.mxu0 %v16277_v55  ;;  %9109 = vmatprep.mubr.bf16.mxu1 %v16277_v55 }
 0x68e   : > { %v10426_v36 = vpop.f32.mrb[172].mxu1 }
 0x68f   : > { %v10427_v60 = vpop.f32.mrb[173].mxu1 }
 0x690   : > { %v10428_v11 = vadd.f32 %v10427_v60, %v10426_v36  ;;  %v10429_v35 = vpop.f32.mrb[174].mxu1  ;;  %v16284_v36 = vld [vmem:[#allocation48_spill] sm:$0xff]  ;;  %v16285_v60 = vld [vmem:[#allocation54_spill] sm:$0xff] }
 0x691   : > { %v10430_v49 = vpop.f32.mrb[175].mxu1 }
 0x692   : > { %v15347_v16 = vadd.f32 %v10428_v11, %v15187_v58  ;;  %v10431_v2 = vadd.f32 %v10430_v49, %v10429_v35 }
 0x693   : > { %8124 = vmatmul.mubr.bf16.gmra.mrb[216].mxu0 %v16278_v48  ;;  %9110 = vmatmul.mubr.bf16.gmra.mrb[24].mxu1 %v16278_v48 }
 0x694   : > { %v15352_v10 = vadd.f32 %v10431_v2, %v15192_v30  ;;  %8133 = vmatprep.mubr.bf16.mxu0 %v16279_v63  ;;  %9117 = vmatprep.mubr.bf16.mxu1 %v16279_v63 }
 0x696   : > { %v10432_v33 = vpop.f32.mrb[176].mxu1 }
 0x697   : > { %v10433_v9 = vpop.f32.mrb[177].mxu1 }
 0x698   : > { %v10434_v43 = vadd.f32 %v10433_v9, %v10432_v33  ;;  %v10435_v44 = vpop.f32.mrb[178].mxu1  ;;  %v16286_v33 = vld [vmem:[#allocation50_spill] sm:$0xff] }
 0x699   : > { %v10436_v6 = vpop.f32.mrb[179].mxu1  ;;  %v16287_v9 = vld [vmem:[#allocation110_spill] sm:$0xff] }
 0x69a   : > { %v15357_v58 = vadd.f32 %v10434_v43, %v15197_v5  ;;  %v10437_v25 = vadd.f32 %v10436_v6, %v10435_v44 }
 0x69b   : > { %8134 = vmatmul.mubr.bf16.gmra.mrb[220].mxu0 %v16280_v38  ;;  %9118 = vmatmul.mubr.bf16.gmra.mrb[28].mxu1 %v16280_v38 }
 0x69c   : > { %v15362_v30 = vadd.f32 %v10437_v25, %v15202_v53  ;;  %8143 = vmatprep.mubr.bf16.mxu0 %v16281_v40  ;;  %9125 = vmatprep.mubr.bf16.mxu1 %v16281_v40 }
 0x69e   : > { %v10438_v14 = vpop.f32.mrb[180].mxu1 }
 0x69f   : > { %v10439_v62 = vpop.f32.mrb[181].mxu1 }
 0x6a0   : > { %v10440_v20 = vadd.f32 %v10439_v62, %v10438_v14  ;;  %v10441_v50 = vpop.f32.mrb[182].mxu1  ;;  %v16288_v14 = vld [vmem:[#allocation58_spill] sm:$0xff]  ;;  %v16289_v62 = vld [vmem:[#allocation111_spill] sm:$0xff] }
 0x6a1   : > { %v10442_v34 = vpop.f32.mrb[183].mxu1 }
 0x6a2   : > { %v15367_v5 = vadd.f32 %v10440_v20, %v15207_v32  ;;  %v10443_v23 = vadd.f32 %v10442_v34, %v10441_v50 }
 0x6a3   : > { %8144 = vmatmul.mubr.bf16.gmra.mrb[224].mxu0 %v16282_v59  ;;  %9126 = vmatmul.mubr.bf16.gmra.mrb[32].mxu1 %v16282_v59 }
 0x6a4   : > { %v15372_v53 = vadd.f32 %v10443_v23, %v15212_v51  ;;  %8153 = vmatprep.mubr.bf16.mxu0 %v16283_v27  ;;  %9133 = vmatprep.mubr.bf16.mxu1 %v16283_v27 }
 0x6a6   : > { %v10444_v46 = vpop.f32.mrb[184].mxu1 }
 0x6a7   : > { %v10445_v45 = vpop.f32.mrb[185].mxu1 }
 0x6a8   : > { %v10446_v26 = vadd.f32 %v10445_v45, %v10444_v46  ;;  %v10447_v8 = vpop.f32.mrb[186].mxu1  ;;  %v16290_v46 = vld [vmem:[#allocation68_spill] sm:$0xff] }
 0x6a9   : > { %v10448_v19 = vpop.f32.mrb[187].mxu1  ;;  %v16291_v45 = vld [vmem:[#allocation112_spill] sm:$0xff] }
 0x6aa   : > { %v15377_v32 = vadd.f32 %v10446_v26, %v15217_v41  ;;  %v10449_v55 = vadd.f32 %v10448_v19, %v10447_v8 }
 0x6ab   : > { %8154 = vmatmul.mubr.bf16.gmra.mrb[228].mxu0 %v16284_v36  ;;  %9134 = vmatmul.mubr.bf16.gmra.mrb[36].mxu1 %v16284_v36 }
 0x6ac   : > { %v15382_v51 = vadd.f32 %v10449_v55, %v15222_v1  ;;  %8163 = vmatprep.mubr.bf16.mxu0 %v16285_v60  ;;  %9141 = vmatprep.mubr.bf16.mxu1 %v16285_v60 }
 0x6ae   : > { %v10450_v11 = vpop.f32.mrb[188].mxu1 }
 0x6af   : > { %v10451_v35 = vpop.f32.mrb[189].mxu1 }
 0x6b0   : > { %v10452_v49 = vadd.f32 %v10451_v35, %v10450_v11  ;;  %v10453_v2 = vpop.f32.mrb[190].mxu1  ;;  %v16292_v11 = vld [vmem:[#allocation72_spill] sm:$0xff]  ;;  %v16293_v35 = vld [vmem:[#allocation113_spill] sm:$0xff] }
 0x6b1   : > { %v10454_v48 = vpop.f32.mrb[191].mxu1 }
 0x6b2   : > { %v15387_v41 = vadd.f32 %v10452_v49, %v15227_v31  ;;  %v10455_v63 = vadd.f32 %v10454_v48, %v10453_v2 }
 0x6b3   : > { %8164 = vmatmul.mubr.bf16.gmra.mrb[232].mxu0 %v16286_v33  ;;  %9142 = vmatmul.mubr.bf16.gmra.mrb[40].mxu1 %v16286_v33 }
 0x6b4   : > { %v15392_v1 = vadd.f32 %v10455_v63, %v15232_v18  ;;  %8173 = vmatprep.mubr.bf16.mxu0 %v16287_v9  ;;  %9149 = vmatprep.mubr.bf16.mxu1 %v16287_v9 }
 0x6b6   : > { %v10472_v43 = vpop.f32.mrb[192].mxu1 }
 0x6b7   : > { %v10473_v44 = vpop.f32.mrb[193].mxu1 }
 0x6b8   : > { %v10474_v6 = vadd.f32 %v10473_v44, %v10472_v43  ;;  %v10475_v25 = vpop.f32.mrb[194].mxu1  ;;  %v16294_v43 = vld [vmem:[#allocation76_spill] sm:$0xff]  ;;  %v16295_v44 = vld [vmem:[#allocation115_spill] sm:$0xff] }
 0x6b9   : > { %v10476_v38 = vpop.f32.mrb[195].mxu1 }
 0x6ba   : > { %v15397_v31 = vadd.f32 %v10474_v6, %v15237_v22  ;;  %v10477_v40 = vadd.f32 %v10476_v38, %v10475_v25 }
 0x6bb   : > { %8174 = vmatmul.mubr.bf16.gmra.mrb[236].mxu0 %v16288_v14  ;;  %9150 = vmatmul.mubr.bf16.gmra.mrb[44].mxu1 %v16288_v14 }
 0x6bc   : > { %v15402_v18 = vadd.f32 %v10477_v40, %v15242_v17  ;;  %8183 = vmatprep.mubr.bf16.mxu0 %v16289_v62  ;;  %9157 = vmatprep.mubr.bf16.mxu1 %v16289_v62 }
 0x6be   : > { %v10478_v20 = vpop.f32.mrb[196].mxu1 }
 0x6bf   : > { %v10479_v50 = vpop.f32.mrb[197].mxu1 }
 0x6c0   : > { %v10480_v34 = vadd.f32 %v10479_v50, %v10478_v20  ;;  %v10481_v23 = vpop.f32.mrb[198].mxu1  ;;  %v16296_v20 = vld [vmem:[#allocation80_spill] sm:$0xff] }
 0x6c1   : > { %v10482_v59 = vpop.f32.mrb[199].mxu1 }
 0x6c2   : > { %v15407_v22 = vadd.f32 %v10480_v34, %v15247_v39  ;;  %v10483_v27 = vadd.f32 %v10482_v59, %v10481_v23 }
 0x6c3   : > { %8184 = vmatmul.mubr.bf16.gmra.mrb[240].mxu0 %v16290_v46  ;;  %9158 = vmatmul.mubr.bf16.gmra.mrb[48].mxu1 %v16290_v46 }
 0x6c4   : > { %v15412_v17 = vadd.f32 %v10483_v27, %v15252_v47  ;;  %8193 = vmatprep.mubr.bf16.mxu0 %v16291_v45  ;;  %9165 = vmatprep.mubr.bf16.mxu1 %v16291_v45 }
 0x6c6   : > { %v10484_v26 = vpop.f32.mrb[200].mxu1 }
 0x6c7   : > { %v10485_v8 = vpop.f32.mrb[201].mxu1 }
 0x6c8   : > { %v10486_v19 = vadd.f32 %v10485_v8, %v10484_v26  ;;  %v10487_v55 = vpop.f32.mrb[202].mxu1 }
 0x6c9   : > { %v10488_v36 = vpop.f32.mrb[203].mxu1 }
 0x6ca   : > { %v15417_v39 = vadd.f32 %v10486_v19, %v15257_v61  ;;  %v10489_v60 = vadd.f32 %v10488_v36, %v10487_v55 }
 0x6cb   : > { %8194 = vmatmul.mubr.bf16.gmra.mrb[244].mxu0 %v16292_v11  ;;  %9166 = vmatmul.mubr.bf16.gmra.mrb[52].mxu1 %v16292_v11 }
 0x6cc   : > { %v15422_v47 = vadd.f32 %v10489_v60, %v15262_v3  ;;  %8203 = vmatprep.mubr.bf16.mxu0 %v16293_v35  ;;  %9173 = vmatprep.mubr.bf16.mxu1 %v16293_v35 }
 0x6ce   : > { %v10490_v49 = vpop.f32.mrb[204].mxu1 }
 0x6cf   : > { %v10491_v2 = vpop.f32.mrb[205].mxu1 }
 0x6d0   : > { %v10492_v48 = vadd.f32 %v10491_v2, %v10490_v49  ;;  %v10493_v63 = vpop.f32.mrb[206].mxu1 }
 0x6d1   : > { %v10494_v33 = vpop.f32.mrb[207].mxu1 }
 0x6d2   : > { %v15427_v61 = vadd.f32 %v10492_v48, %v15267_v57  ;;  %v10495_v9 = vadd.f32 %v10494_v33, %v10493_v63 }
 0x6d3   : > { %8204 = vmatmul.mubr.bf16.gmra.mrb[248].mxu0 %v16294_v43  ;;  %9174 = vmatmul.mubr.bf16.gmra.mrb[56].mxu1 %v16294_v43 }
 0x6d4   : > { %v15432_v3 = vadd.f32 %v10495_v9, %v15272_v21  ;;  %8213 = vmatprep.mubr.bf16.mxu0 %v16295_v44  ;;  %9181 = vmatprep.mubr.bf16.mxu1 %v16295_v44 }
 0x6d6   : > { %v10496_v6 = vpop.f32.mrb[208].mxu1 }
 0x6d7   : > { %v10497_v25 = vpop.f32.mrb[209].mxu1 }
 0x6d8   : > { %v10498_v38 = vadd.f32 %v10497_v25, %v10496_v6  ;;  %v10499_v40 = vpop.f32.mrb[210].mxu1 }
 0x6d9   : > { %v10500_v14 = vpop.f32.mrb[211].mxu1 }
 0x6da   : > { %v15437_v57 = vadd.f32 %v10498_v38, %v15277_v0  ;;  %v10501_v62 = vadd.f32 %v10500_v14, %v10499_v40 }
 0x6db   : > { %8214 = vmatmul.mubr.bf16.gmra.mrb[252].mxu0 %v16296_v20  ;;  %9182 = vmatmul.mubr.bf16.gmra.mrb[60].mxu1 %v16296_v20 }
 0x6dc   : > { %v15442_v21 = vadd.f32 %v10501_v62, %v15282_v15 }
 0x6de   : > { %v10502_v50 = vpop.f32.mrb[212].mxu1 }
 0x6df   : > { %v10503_v34 = vpop.f32.mrb[213].mxu1 }
 0x6e0   : > { %v10504_v23 = vadd.f32 %v10503_v34, %v10502_v50  ;;  %v10505_v59 = vpop.f32.mrb[214].mxu1 }
 0x6e1   : > { %v10506_v27 = vpop.f32.mrb[215].mxu1 }
 0x6e2   : > { %v15445_v46 = vadd.f32 %v10504_v23, %v15287_v56  ;;  %v10507_v45 = vadd.f32 %v10506_v27, %v10505_v59 }
 0x6e4   : > { %v15448_v0 = vadd.f32 %v10507_v45, %v15292_v42 }
 0x6e6   : > { %v10508_v26 = vpop.f32.mrb[216].mxu1 }
 0x6e7   : > { %v10509_v8 = vpop.f32.mrb[217].mxu1 }
 0x6e8   : > { %v10510_v19 = vadd.f32 %v10509_v8, %v10508_v26  ;;  %v10511_v55 = vpop.f32.mrb[218].mxu1 }
 0x6e9   : > { %v10512_v36 = vpop.f32.mrb[219].mxu1 }
 0x6ea   : > { %v15451_v15 = vadd.f32 %v10510_v19, %v15297_v37  ;;  %v10513_v60 = vadd.f32 %v10512_v36, %v10511_v55 }
 0x6ec   : > { %v15454_v11 = vadd.f32 %v10513_v60, %v15302_v12 }
 0x6ee   : > { %v10514_v35 = vpop.f32.mrb[220].mxu1 }
 0x6ef   : > { %v10515_v49 = vpop.f32.mrb[221].mxu1 }
 0x6f0   : > { %v10516_v56 = vadd.f32 %v10515_v49, %v10514_v35  ;;  %v10517_v2 = vpop.f32.mrb[222].mxu1 }
 0x6f1   : > { %v10518_v48 = vpop.f32.mrb[223].mxu1 }
 0x6f2   : > { %v15457_v42 = vadd.f32 %v10516_v56, %v15307_v7  ;;  %v10519_v63 = vadd.f32 %v10518_v48, %v10517_v2 }
 0x6f4   : > { %v15460_v33 = vadd.f32 %v10519_v63, %v15312_v29 }
 0x6f6   : > { %v10520_v9 = vpop.f32.mrb[224].mxu1 }
 0x6f7   : > { %v10521_v43 = vpop.f32.mrb[225].mxu1 }
 0x6f8   : > { %v10522_v37 = vadd.f32 %v10521_v43, %v10520_v9  ;;  %v10523_v44 = vpop.f32.mrb[226].mxu1 }
 0x6f9   : > { %v10524_v6 = vpop.f32.mrb[227].mxu1 }
 0x6fa   : > { %v15463_v12 = vadd.f32 %v10522_v37, %v15317_v13  ;;  %v10525_v25 = vadd.f32 %v10524_v6, %v10523_v44 }
 0x6fc   : > { %v15466_v38 = vadd.f32 %v10525_v25, %v15322_v52 }
 0x6fe   : > { %v10526_v40 = vpop.f32.mrb[228].mxu1 }
 0x6ff   : > { %v10527_v14 = vpop.f32.mrb[229].mxu1 }
 0x700   : > { %v10528_v7 = vadd.f32 %v10527_v14, %v10526_v40  ;;  %v10529_v62 = vpop.f32.mrb[230].mxu1 }
 0x701   : > { %v10530_v20 = vpop.f32.mrb[231].mxu1 }
 0x702   : > { %v15469_v29 = vadd.f32 %v10528_v7, %v15327_v4  ;;  %v10531_v50 = vadd.f32 %v10530_v20, %v10529_v62 }
 0x704   : > { %v15472_v34 = vadd.f32 %v10531_v50, %v15332_v54 }
 0x706   : > { %v10532_v23 = vpop.f32.mrb[232].mxu1 }
 0x707   : > { %v10533_v59 = vpop.f32.mrb[233].mxu1 }
 0x708   : > { %v10534_v13 = vadd.f32 %v10533_v59, %v10532_v23  ;;  %v10535_v27 = vpop.f32.mrb[234].mxu1 }
 0x709   : > { %v10536_v45 = vpop.f32.mrb[235].mxu1 }
 0x70a   : > { %v15475_v52 = vadd.f32 %v10534_v13, %v15337_v28  ;;  %v10537_v26 = vadd.f32 %v10536_v45, %v10535_v27 }
 0x70c   : > { %v15478_v8 = vadd.f32 %v10537_v26, %v15342_v24 }
 0x70e   : > { %v10538_v19 = vpop.f32.mrb[236].mxu1 }
 0x70f   : > { %v10539_v55 = vpop.f32.mrb[237].mxu1 }
 0x710   : > { %v10540_v4 = vadd.f32 %v10539_v55, %v10538_v19  ;;  %v10541_v36 = vpop.f32.mrb[238].mxu1  ;;  %v12749_v55 = vld [vmem:[#allocation10] sm:$0x7] }
 0x711   : > { %v10542_v60 = vpop.f32.mrb[239].mxu1 }
 0x712   : > { %v15481_v54 = vadd.f32 %v10540_v4, %v15347_v16  ;;  %v10543_v35 = vadd.f32 %v10542_v60, %v10541_v36  ;;  %v16297_v4 = vld [vmem:[#allocation30_spill] sm:$0xff]  ;;  %v16298_v60 = vld [vmem:[#allocation32_spill] sm:$0xff] }
 0x713   : > { %v15508_v36 = vrot.slane %v12749_v55, %v16297_v4 }
 0x714   : > { %v15484_v49 = vadd.f32 %v10543_v35, %v15352_v10 }
 0x716   : > { %v10544_v56 = vpop.f32.mrb[240].mxu1 }
 0x717   : > { %v10545_v2 = vpop.f32.mrb[241].mxu1 }
 0x718   : > { %v10546_v28 = vadd.f32 %v10545_v2, %v10544_v56  ;;  %v10547_v48 = vpop.f32.mrb[242].mxu1 }
 0x719   : > { %v10548_v63 = vpop.f32.mrb[243].mxu1 }
 0x71a   : > { %v15487_v24 = vadd.f32 %v10546_v28, %v15357_v58  ;;  %v10549_v9 = vadd.f32 %v10548_v63, %v10547_v48 }
 0x71c   : > { %v15490_v43 = vadd.f32 %v10549_v9, %v15362_v30 }
 0x71e   : > { %v10550_v37 = vpop.f32.mrb[244].mxu1 }
 0x71f   : > { %v10551_v44 = vpop.f32.mrb[245].mxu1 }
 0x720   : > { %v10552_v16 = vadd.f32 %v10551_v44, %v10550_v37  ;;  %v10553_v6 = vpop.f32.mrb[246].mxu1 }
 0x721   : > { %v10554_v25 = vpop.f32.mrb[247].mxu1 }
 0x722   : > { %v15493_v10 = vadd.f32 %v10552_v16, %v15367_v5  ;;  %v10555_v40 = vadd.f32 %v10554_v25, %v10553_v6 }
 0x724   : > { %v15496_v14 = vadd.f32 %v10555_v40, %v15372_v53 }
 0x726   : > { %v10556_v7 = vpop.f32.mrb[248].mxu1 }
 0x727   : > { %v10557_v62 = vpop.f32.mrb[249].mxu1 }
 0x728   : > { %v10558_v58 = vadd.f32 %v10557_v62, %v10556_v7  ;;  %v10559_v20 = vpop.f32.mrb[250].mxu1 }
 0x729   : > { %v10560_v50 = vpop.f32.mrb[251].mxu1 }
 0x72a   : > { %v15499_v30 = vadd.f32 %v10558_v58, %v15377_v32  ;;  %v10561_v23 = vadd.f32 %v10560_v50, %v10559_v20 }
 0x72c   : > { %v15502_v59 = vadd.f32 %v10561_v23, %v15382_v51  ;;  %v15514_v51 = vrot.slane %v12749_v55, %v16298_v60 }
 0x72e   : > { %v10562_v13 = vpop.f32.mrb[252].mxu1 }
 0x72f   : > { %v10563_v27 = vpop.f32.mrb[253].mxu1 }
 0x730   : > { %v10564_v5 = vadd.f32 %v10563_v27, %v10562_v13  ;;  %v10565_v45 = vpop.f32.mrb[254].mxu1 }
 0x731   : > { %v10566_v26 = vpop.f32.mrb[255].mxu1 }
 0x732   : > { %v15505_v53 = vadd.f32 %v10564_v5, %v15387_v41  ;;  %v10567_v19 = vadd.f32 %v10566_v26, %v10565_v45 }
 0x734   : > { %v15511_v32 = vadd.f32 %v10567_v19, %v15392_v1 }
 0x736   : > { %v8065_v35 = vpop.f32.mrb[192].mxu0  ;;  %v10584_v56 = vpop.f32.mrb[0].mxu1 }
 0x737   : > { %v11064_v2 = vadd.f32 %v8065_v35, %v15508_v36  ;;  %v8067_v28 = vpop.f32.mrb[193].mxu0  ;;  %v10585_v48 = vpop.f32.mrb[1].mxu1 }
 0x738   : > { %v11065_v41 = vadd.f32 %v8067_v28, %v15514_v51  ;;  %v10586_v63 = vadd.f32 %v10585_v48, %v10584_v56  ;;  %v8069_v9 = vpop.f32.mrb[194].mxu0  ;;  %v10587_v37 = vpop.f32.mrb[2].mxu1 }
 0x739   : > { %9190 = vst [vmem:[%s15520_s24] sm:$0xff] %v11064_v2  ;;  %v11066_v1 = vadd.f32 %v8069_v9, %v15508_v36  ;;  %v8071_v44 = vpop.f32.mrb[195].mxu0  ;;  %v10588_v16 = vpop.f32.mrb[3].mxu1 }
 0x73a   : > { %9191 = vst [vmem:[%s15520_s24 + $0x8] sm:$0xff] %v11065_v41  ;;  %v9064_v6 = vadd.f32 %v10586_v63, %v15397_v31  ;;  %v11067_v25 = vadd.f32 %v8071_v44, %v15514_v51  ;;  %v10589_v40 = vadd.f32 %v10588_v16, %v10587_v37 }
 0x73b   : > { %9193 = vst [vmem:[%s15520_s24 + $0x18] sm:$0xff] %v11066_v1 }
 0x73c   : > { %9192 = vst [vmem:[%s15520_s24 + $0x10] sm:$0xff] %v9064_v6  ;;  %9194 = vst [vmem:[%s15520_s24 + $0x20] sm:$0xff] %v11067_v25  ;;  %v9067_v7 = vadd.f32 %v10589_v40, %v15402_v18 }
 0x73e   : > { %9195 = vst [vmem:[%s15520_s24 + $0x28] sm:$0xff] %v9067_v7  ;;  %v8075_v62 = vpop.f32.mrb[196].mxu0  ;;  %v10590_v58 = vpop.f32.mrb[4].mxu1 }
 0x73f   : > { %v11068_v20 = vadd.f32 %v8075_v62, %v15508_v36  ;;  %v8077_v50 = vpop.f32.mrb[197].mxu0  ;;  %v10591_v31 = vpop.f32.mrb[5].mxu1 }
 0x740   : > { %v11069_v23 = vadd.f32 %v8077_v50, %v15514_v51  ;;  %v10592_v13 = vadd.f32 %v10591_v31, %v10590_v58  ;;  %v8079_v27 = vpop.f32.mrb[198].mxu0  ;;  %v10593_v5 = vpop.f32.mrb[6].mxu1 }
 0x741   : > { %9196 = vst [vmem:[%s15520_s24 + $0x30] sm:$0xff] %v11068_v20  ;;  %v11070_v45 = vadd.f32 %v8079_v27, %v15508_v36  ;;  %v8081_v18 = vpop.f32.mrb[199].mxu0  ;;  %v10594_v26 = vpop.f32.mrb[7].mxu1 }
 0x742   : > { %9197 = vst [vmem:[%s15520_s24 + $0x38] sm:$0xff] %v11069_v23  ;;  %v9072_v19 = vadd.f32 %v10592_v13, %v15407_v22  ;;  %v11071_v55 = vadd.f32 %v8081_v18, %v15514_v51  ;;  %v10595_v4 = vadd.f32 %v10594_v26, %v10593_v5 }
 0x743   : > { %9199 = vst [vmem:[%s15520_s24 + $0x48] sm:$0xff] %v11070_v45 }
 0x744   : > { %9198 = vst [vmem:[%s15520_s24 + $0x40] sm:$0xff] %v9072_v19  ;;  %9200 = vst [vmem:[%s15520_s24 + $0x50] sm:$0xff] %v11071_v55  ;;  %v9075_v60 = vadd.f32 %v10595_v4, %v15412_v17 }
 0x746   : > { %9201 = vst [vmem:[%s15520_s24 + $0x58] sm:$0xff] %v9075_v60  ;;  %v8085_v35 = vpop.f32.mrb[200].mxu0  ;;  %v10596_v56 = vpop.f32.mrb[8].mxu1 }
 0x747   : > { %v11072_v2 = vadd.f32 %v8085_v35, %v15508_v36  ;;  %v8087_v28 = vpop.f32.mrb[201].mxu0  ;;  %v10597_v22 = vpop.f32.mrb[9].mxu1 }
 0x748   : > { %v11073_v48 = vadd.f32 %v8087_v28, %v15514_v51  ;;  %v10598_v41 = vadd.f32 %v10597_v22, %v10596_v56  ;;  %v8089_v63 = vpop.f32.mrb[202].mxu0  ;;  %v10599_v9 = vpop.f32.mrb[10].mxu1 }
 0x749   : > { %9202 = vst [vmem:[%s15520_s24 + $0x60] sm:$0xff] %v11072_v2  ;;  %v11074_v37 = vadd.f32 %v8089_v63, %v15508_v36  ;;  %v8091_v17 = vpop.f32.mrb[203].mxu0  ;;  %v10600_v1 = vpop.f32.mrb[11].mxu1 }
 0x74a   : > { %9203 = vst [vmem:[%s15520_s24 + $0x68] sm:$0xff] %v11073_v48  ;;  %v9080_v44 = vadd.f32 %v10598_v41, %v15417_v39  ;;  %v11075_v16 = vadd.f32 %v8091_v17, %v15514_v51  ;;  %v10601_v6 = vadd.f32 %v10600_v1, %v10599_v9 }
 0x74b   : > { %9205 = vst [vmem:[%s15520_s24 + $0x78] sm:$0xff] %v11074_v37 }
 0x74c   : > { %9204 = vst [vmem:[%s15520_s24 + $0x70] sm:$0xff] %v9080_v44  ;;  %9206 = vst [vmem:[%s15520_s24 + $0x80] sm:$0xff] %v11075_v16  ;;  %v9083_v25 = vadd.f32 %v10601_v6, %v15422_v47 }
 0x74e   : > { %9207 = vst [vmem:[%s15520_s24 + $0x88] sm:$0xff] %v9083_v25  ;;  %v8095_v40 = vpop.f32.mrb[204].mxu0  ;;  %v10602_v7 = vpop.f32.mrb[12].mxu1 }
 0x74f   : > { %v11076_v62 = vadd.f32 %v8095_v40, %v15508_v36  ;;  %v8097_v58 = vpop.f32.mrb[205].mxu0  ;;  %v10603_v39 = vpop.f32.mrb[13].mxu1 }
 0x750   : > { %v11077_v20 = vadd.f32 %v8097_v58, %v15514_v51  ;;  %v10604_v50 = vadd.f32 %v10603_v39, %v10602_v7  ;;  %v8099_v31 = vpop.f32.mrb[206].mxu0  ;;  %v10605_v23 = vpop.f32.mrb[14].mxu1 }
 0x751   : > { %9208 = vst [vmem:[%s15520_s24 + $0x90] sm:$0xff] %v11076_v62  ;;  %v11078_v13 = vadd.f32 %v8099_v31, %v15508_v36  ;;  %v8101_v47 = vpop.f32.mrb[207].mxu0  ;;  %v10606_v27 = vpop.f32.mrb[15].mxu1 }
 0x752   : > { %9209 = vst [vmem:[%s15520_s24 + $0x98] sm:$0xff] %v11077_v20  ;;  %v9088_v5 = vadd.f32 %v10604_v50, %v15427_v61  ;;  %v11079_v45 = vadd.f32 %v8101_v47, %v15514_v51  ;;  %v10607_v18 = vadd.f32 %v10606_v27, %v10605_v23 }
 0x753   : > { %9211 = vst [vmem:[%s15520_s24 + $0xa8] sm:$0xff] %v11078_v13 }
 0x754   : > { %9210 = vst [vmem:[%s15520_s24 + $0xa0] sm:$0xff] %v9088_v5  ;;  %9212 = vst [vmem:[%s15520_s24 + $0xb0] sm:$0xff] %v11079_v45  ;;  %v9091_v26 = vadd.f32 %v10607_v18, %v15432_v3 }
 0x756   : > { %9213 = vst [vmem:[%s15520_s24 + $0xb8] sm:$0xff] %v9091_v26  ;;  %v8105_v19 = vpop.f32.mrb[208].mxu0  ;;  %v10608_v55 = vpop.f32.mrb[16].mxu1 }
 0x757   : > { %v11080_v4 = vadd.f32 %v8105_v19, %v15508_v36  ;;  %v8107_v60 = vpop.f32.mrb[209].mxu0  ;;  %v10609_v61 = vpop.f32.mrb[17].mxu1 }
 0x758   : > { %v11081_v35 = vadd.f32 %v8107_v60, %v15514_v51  ;;  %v10610_v56 = vadd.f32 %v10609_v61, %v10608_v55  ;;  %v8109_v2 = vpop.f32.mrb[210].mxu0  ;;  %v10611_v28 = vpop.f32.mrb[18].mxu1 }
 0x759   : > { %9214 = vst [vmem:[%s15520_s24 + $0xc0] sm:$0xff] %v11080_v4  ;;  %v11082_v22 = vadd.f32 %v8109_v2, %v15508_v36  ;;  %v8111_v3 = vpop.f32.mrb[211].mxu0  ;;  %v10612_v48 = vpop.f32.mrb[19].mxu1 }
 0x75a   : > { %9215 = vst [vmem:[%s15520_s24 + $0xc8] sm:$0xff] %v11081_v35  ;;  %v9096_v41 = vadd.f32 %v10610_v56, %v15437_v57  ;;  %v11083_v63 = vadd.f32 %v8111_v3, %v15514_v51  ;;  %v10613_v9 = vadd.f32 %v10612_v48, %v10611_v28 }
 0x75b   : > { %9217 = vst [vmem:[%s15520_s24 + $0xd8] sm:$0xff] %v11082_v22 }
 0x75c   : > { %9216 = vst [vmem:[%s15520_s24 + $0xd0] sm:$0xff] %v9096_v41  ;;  %9218 = vst [vmem:[%s15520_s24 + $0xe0] sm:$0xff] %v11083_v63  ;;  %v9099_v37 = vadd.f32 %v10613_v9, %v15442_v21 }
 0x75e   : > { %9219 = vst [vmem:[%s15520_s24 + $0xe8] sm:$0xff] %v9099_v37  ;;  %v8115_v17 = vpop.f32.mrb[212].mxu0  ;;  %v10614_v1 = vpop.f32.mrb[20].mxu1 }
 0x75f   : > { %v11084_v44 = vadd.f32 %v8115_v17, %v15508_v36  ;;  %v8117_v16 = vpop.f32.mrb[213].mxu0  ;;  %v10615_v57 = vpop.f32.mrb[21].mxu1 }
 0x760   : > { %v11085_v6 = vadd.f32 %v8117_v16, %v15514_v51  ;;  %v10616_v25 = vadd.f32 %v10615_v57, %v10614_v1  ;;  %v8119_v40 = vpop.f32.mrb[214].mxu0  ;;  %v10617_v7 = vpop.f32.mrb[22].mxu1 }
 0x761   : > { %9220 = vst [vmem:[%s15520_s24 + $0xf0] sm:$0xff] %v11084_v44  ;;  %v11086_v62 = vadd.f32 %v8119_v40, %v15508_v36  ;;  %v8121_v21 = vpop.f32.mrb[215].mxu0  ;;  %v10618_v58 = vpop.f32.mrb[23].mxu1 }
 0x762   : > { %9221 = vst [vmem:[%s15520_s24 + $0xf8] sm:$0xff] %v11085_v6  ;;  %v9104_v39 = vadd.f32 %v10616_v25, %v15445_v46  ;;  %v11087_v20 = vadd.f32 %v8121_v21, %v15514_v51  ;;  %v10619_v50 = vadd.f32 %v10618_v58, %v10617_v7 }
 0x763   : > { %9223 = vst [vmem:[%s15520_s24 + $0x108] sm:$0xff] %v11086_v62 }
 0x764   : > { %9222 = vst [vmem:[%s15520_s24 + $0x100] sm:$0xff] %v9104_v39  ;;  %9224 = vst [vmem:[%s15520_s24 + $0x110] sm:$0xff] %v11087_v20  ;;  %v9107_v31 = vadd.f32 %v10619_v50, %v15448_v0 }
 0x766   : > { %9225 = vst [vmem:[%s15520_s24 + $0x118] sm:$0xff] %v9107_v31  ;;  %v8125_v23 = vpop.f32.mrb[216].mxu0  ;;  %v10620_v13 = vpop.f32.mrb[24].mxu1 }
 0x767   : > { %v11088_v47 = vadd.f32 %v8125_v23, %v15508_v36  ;;  %v8127_v27 = vpop.f32.mrb[217].mxu0  ;;  %v10621_v46 = vpop.f32.mrb[25].mxu1 }
 0x768   : > { %v11089_v5 = vadd.f32 %v8127_v27, %v15514_v51  ;;  %v10622_v45 = vadd.f32 %v10621_v46, %v10620_v13  ;;  %v8129_v18 = vpop.f32.mrb[218].mxu0  ;;  %v10623_v26 = vpop.f32.mrb[26].mxu1 }
 0x769   : > { %9226 = vst [vmem:[%s15520_s24 + $0x120] sm:$0xff] %v11088_v47  ;;  %v11090_v19 = vadd.f32 %v8129_v18, %v15508_v36  ;;  %v8131_v0 = vpop.f32.mrb[219].mxu0  ;;  %v10624_v55 = vpop.f32.mrb[27].mxu1 }
 0x76a   : > { %9227 = vst [vmem:[%s15520_s24 + $0x128] sm:$0xff] %v11089_v5  ;;  %v9112_v4 = vadd.f32 %v10622_v45, %v15451_v15  ;;  %v11091_v60 = vadd.f32 %v8131_v0, %v15514_v51  ;;  %v10625_v61 = vadd.f32 %v10624_v55, %v10623_v26 }
 0x76b   : > { %9229 = vst [vmem:[%s15520_s24 + $0x138] sm:$0xff] %v11090_v19 }
 0x76c   : > { %9228 = vst [vmem:[%s15520_s24 + $0x130] sm:$0xff] %v9112_v4  ;;  %9230 = vst [vmem:[%s15520_s24 + $0x140] sm:$0xff] %v11091_v60  ;;  %v9115_v35 = vadd.f32 %v10625_v61, %v15454_v11 }
 0x76e   : > { %9231 = vst [vmem:[%s15520_s24 + $0x148] sm:$0xff] %v9115_v35  ;;  %v8135_v56 = vpop.f32.mrb[220].mxu0  ;;  %v10626_v2 = vpop.f32.mrb[28].mxu1 }
 0x76f   : > { %v11092_v28 = vadd.f32 %v8135_v56, %v15508_v36  ;;  %v8137_v22 = vpop.f32.mrb[221].mxu0  ;;  %v10627_v15 = vpop.f32.mrb[29].mxu1 }
 0x770   : > { %v11093_v3 = vadd.f32 %v8137_v22, %v15514_v51  ;;  %v10628_v48 = vadd.f32 %v10627_v15, %v10626_v2  ;;  %v8139_v41 = vpop.f32.mrb[222].mxu0  ;;  %v10629_v63 = vpop.f32.mrb[30].mxu1 }
 0x771   : > { %9232 = vst [vmem:[%s15520_s24 + $0x150] sm:$0xff] %v11092_v28  ;;  %v11094_v9 = vadd.f32 %v8139_v41, %v15508_v36  ;;  %v8141_v11 = vpop.f32.mrb[223].mxu0  ;;  %v10630_v37 = vpop.f32.mrb[31].mxu1 }
 0x772   : > { %9233 = vst [vmem:[%s15520_s24 + $0x158] sm:$0xff] %v11093_v3  ;;  %v9120_v17 = vadd.f32 %v10628_v48, %v15457_v42  ;;  %v11095_v1 = vadd.f32 %v8141_v11, %v15514_v51  ;;  %v10631_v44 = vadd.f32 %v10630_v37, %v10629_v63 }
 0x773   : > { %9235 = vst [vmem:[%s15520_s24 + $0x168] sm:$0xff] %v11094_v9 }
 0x774   : > { %9234 = vst [vmem:[%s15520_s24 + $0x160] sm:$0xff] %v9120_v17  ;;  %9236 = vst [vmem:[%s15520_s24 + $0x170] sm:$0xff] %v11095_v1  ;;  %v9123_v16 = vadd.f32 %v10631_v44, %v15460_v33 }
 0x776   : > { %9237 = vst [vmem:[%s15520_s24 + $0x178] sm:$0xff] %v9123_v16  ;;  %v8145_v57 = vpop.f32.mrb[224].mxu0  ;;  %v10632_v6 = vpop.f32.mrb[32].mxu1 }
 0x777   : > { %v11096_v25 = vadd.f32 %v8145_v57, %v15508_v36  ;;  %v8147_v40 = vpop.f32.mrb[225].mxu0  ;;  %v10633_v42 = vpop.f32.mrb[33].mxu1 }
 0x778   : > { %v11097_v7 = vadd.f32 %v8147_v40, %v15514_v51  ;;  %v10634_v62 = vadd.f32 %v10633_v42, %v10632_v6  ;;  %v8149_v21 = vpop.f32.mrb[226].mxu0  ;;  %v10635_v58 = vpop.f32.mrb[34].mxu1 }
 0x779   : > { %9238 = vst [vmem:[%s15520_s24 + $0x180] sm:$0xff] %v11096_v25  ;;  %v11098_v39 = vadd.f32 %v8149_v21, %v15508_v36  ;;  %v8151_v33 = vpop.f32.mrb[227].mxu0  ;;  %v10636_v20 = vpop.f32.mrb[35].mxu1 }
 0x77a   : > { %9239 = vst [vmem:[%s15520_s24 + $0x188] sm:$0xff] %v11097_v7  ;;  %v9128_v50 = vadd.f32 %v10634_v62, %v15463_v12  ;;  %v11099_v31 = vadd.f32 %v8151_v33, %v15514_v51  ;;  %v10637_v23 = vadd.f32 %v10636_v20, %v10635_v58 }
 0x77b   : > { %9241 = vst [vmem:[%s15520_s24 + $0x198] sm:$0xff] %v11098_v39 }
 0x77c   : > { %9240 = vst [vmem:[%s15520_s24 + $0x190] sm:$0xff] %v9128_v50  ;;  %9242 = vst [vmem:[%s15520_s24 + $0x1a0] sm:$0xff] %v11099_v31  ;;  %v9131_v13 = vadd.f32 %v10637_v23, %v15466_v38 }
 0x77e   : > { %9243 = vst [vmem:[%s15520_s24 + $0x1a8] sm:$0xff] %v9131_v13  ;;  %v8155_v47 = vpop.f32.mrb[228].mxu0  ;;  %v10638_v27 = vpop.f32.mrb[36].mxu1 }
 0x77f   : > { %v11100_v46 = vadd.f32 %v8155_v47, %v15508_v36  ;;  %v8157_v5 = vpop.f32.mrb[229].mxu0  ;;  %v10639_v12 = vpop.f32.mrb[37].mxu1 }
 0x780   : > { %v11101_v45 = vadd.f32 %v8157_v5, %v15514_v51  ;;  %v10640_v18 = vadd.f32 %v10639_v12, %v10638_v27  ;;  %v8159_v26 = vpop.f32.mrb[230].mxu0  ;;  %v10641_v19 = vpop.f32.mrb[38].mxu1 }
 0x781   : > { %9244 = vst [vmem:[%s15520_s24 + $0x1b0] sm:$0xff] %v11100_v46  ;;  %v11102_v0 = vadd.f32 %v8159_v26, %v15508_v36  ;;  %v8161_v38 = vpop.f32.mrb[231].mxu0  ;;  %v10642_v55 = vpop.f32.mrb[39].mxu1 }
 0x782   : > { %9245 = vst [vmem:[%s15520_s24 + $0x1b8] sm:$0xff] %v11101_v45  ;;  %v9136_v4 = vadd.f32 %v10640_v18, %v15469_v29  ;;  %v11103_v60 = vadd.f32 %v8161_v38, %v15514_v51  ;;  %v10643_v61 = vadd.f32 %v10642_v55, %v10641_v19 }
 0x783   : > { %9247 = vst [vmem:[%s15520_s24 + $0x1c8] sm:$0xff] %v11102_v0 }
 0x784   : > { %9246 = vst [vmem:[%s15520_s24 + $0x1c0] sm:$0xff] %v9136_v4  ;;  %9248 = vst [vmem:[%s15520_s24 + $0x1d0] sm:$0xff] %v11103_v60  ;;  %v9139_v35 = vadd.f32 %v10643_v61, %v15472_v34 }
 0x786   : > { %9249 = vst [vmem:[%s15520_s24 + $0x1d8] sm:$0xff] %v9139_v35  ;;  %v8165_v56 = vpop.f32.mrb[232].mxu0  ;;  %v10644_v2 = vpop.f32.mrb[40].mxu1 }
 0x787   : > { %v11104_v28 = vadd.f32 %v8165_v56, %v15508_v36  ;;  %v8167_v22 = vpop.f32.mrb[233].mxu0  ;;  %v10645_v29 = vpop.f32.mrb[41].mxu1 }
 0x788   : > { %v11105_v15 = vadd.f32 %v8167_v22, %v15514_v51  ;;  %v10646_v3 = vadd.f32 %v10645_v29, %v10644_v2  ;;  %v8169_v48 = vpop.f32.mrb[234].mxu0  ;;  %v10647_v41 = vpop.f32.mrb[42].mxu1 }
 0x789   : > { %9250 = vst [vmem:[%s15520_s24 + $0x1e0] sm:$0xff] %v11104_v28  ;;  %v11106_v63 = vadd.f32 %v8169_v48, %v15508_v36  ;;  %v8171_v34 = vpop.f32.mrb[235].mxu0  ;;  %v10648_v9 = vpop.f32.mrb[43].mxu1 }
 0x78a   : > { %9251 = vst [vmem:[%s15520_s24 + $0x1e8] sm:$0xff] %v11105_v15  ;;  %v9144_v11 = vadd.f32 %v10646_v3, %v15475_v52  ;;  %v11107_v37 = vadd.f32 %v8171_v34, %v15514_v51  ;;  %v10649_v17 = vadd.f32 %v10648_v9, %v10647_v41 }
 0x78b   : > { %9253 = vst [vmem:[%s15520_s24 + $0x1f8] sm:$0xff] %v11106_v63 }
 0x78c   : > { %9252 = vst [vmem:[%s15520_s24 + $0x1f0] sm:$0xff] %v9144_v11  ;;  %9254 = vst [vmem:[%s15520_s24 + $0x200] sm:$0xff] %v11107_v37  ;;  %v9147_v1 = vadd.f32 %v10649_v17, %v15478_v8 }
 0x78e   : > { %9255 = vst [vmem:[%s15520_s24 + $0x208] sm:$0xff] %v9147_v1  ;;  %v8175_v44 = vpop.f32.mrb[236].mxu0  ;;  %v10650_v16 = vpop.f32.mrb[44].mxu1 }
 0x78f   : > { %v11108_v57 = vadd.f32 %v8175_v44, %v15508_v36  ;;  %v8177_v6 = vpop.f32.mrb[237].mxu0  ;;  %v10651_v52 = vpop.f32.mrb[45].mxu1 }
 0x790   : > { %v11109_v25 = vadd.f32 %v8177_v6, %v15514_v51  ;;  %v10652_v40 = vadd.f32 %v10651_v52, %v10650_v16  ;;  %v8179_v42 = vpop.f32.mrb[238].mxu0  ;;  %v10653_v7 = vpop.f32.mrb[46].mxu1 }
 0x791   : > { %9256 = vst [vmem:[%s15520_s24 + $0x210] sm:$0xff] %v11108_v57  ;;  %v11110_v62 = vadd.f32 %v8179_v42, %v15508_v36  ;;  %v8181_v8 = vpop.f32.mrb[239].mxu0  ;;  %v10654_v21 = vpop.f32.mrb[47].mxu1 }
 0x792   : > { %9257 = vst [vmem:[%s15520_s24 + $0x218] sm:$0xff] %v11109_v25  ;;  %v9152_v58 = vadd.f32 %v10652_v40, %v15481_v54  ;;  %v11111_v39 = vadd.f32 %v8181_v8, %v15514_v51  ;;  %v10655_v33 = vadd.f32 %v10654_v21, %v10653_v7 }
 0x793   : > { %9259 = vst [vmem:[%s15520_s24 + $0x228] sm:$0xff] %v11110_v62 }
 0x794   : > { %9258 = vst [vmem:[%s15520_s24 + $0x220] sm:$0xff] %v9152_v58  ;;  %9260 = vst [vmem:[%s15520_s24 + $0x230] sm:$0xff] %v11111_v39  ;;  %v9155_v20 = vadd.f32 %v10655_v33, %v15484_v49 }
 0x796   : > { %9261 = vst [vmem:[%s15520_s24 + $0x238] sm:$0xff] %v9155_v20  ;;  %v8185_v50 = vpop.f32.mrb[240].mxu0  ;;  %v10656_v31 = vpop.f32.mrb[48].mxu1 }
 0x797   : > { %v11112_v23 = vadd.f32 %v8185_v50, %v15508_v36  ;;  %v8187_v13 = vpop.f32.mrb[241].mxu0  ;;  %v10657_v54 = vpop.f32.mrb[49].mxu1 }
 0x798   : > { %v11113_v47 = vadd.f32 %v8187_v13, %v15514_v51  ;;  %v10658_v27 = vadd.f32 %v10657_v54, %v10656_v31  ;;  %v8189_v46 = vpop.f32.mrb[242].mxu0  ;;  %v10659_v5 = vpop.f32.mrb[50].mxu1 }
 0x799   : > { %9262 = vst [vmem:[%s15520_s24 + $0x240] sm:$0xff] %v11112_v23  ;;  %v11114_v12 = vadd.f32 %v8189_v46, %v15508_v36  ;;  %v8191_v49 = vpop.f32.mrb[243].mxu0  ;;  %v10660_v45 = vpop.f32.mrb[51].mxu1 }
 0x79a   : > { %9263 = vst [vmem:[%s15520_s24 + $0x248] sm:$0xff] %v11113_v47  ;;  %v9160_v18 = vadd.f32 %v10658_v27, %v15487_v24  ;;  %v11115_v26 = vadd.f32 %v8191_v49, %v15514_v51  ;;  %v10661_v19 = vadd.f32 %v10660_v45, %v10659_v5 }
 0x79b   : > { %9265 = vst [vmem:[%s15520_s24 + $0x258] sm:$0xff] %v11114_v12 }
 0x79c   : > { %9264 = vst [vmem:[%s15520_s24 + $0x250] sm:$0xff] %v9160_v18  ;;  %9266 = vst [vmem:[%s15520_s24 + $0x260] sm:$0xff] %v11115_v26  ;;  %v9163_v0 = vadd.f32 %v10661_v19, %v15490_v43 }
 0x79e   : > { %9267 = vst [vmem:[%s15520_s24 + $0x268] sm:$0xff] %v9163_v0  ;;  %v8195_v38 = vpop.f32.mrb[244].mxu0  ;;  %v10662_v55 = vpop.f32.mrb[52].mxu1 }
 0x79f   : > { %v11116_v4 = vadd.f32 %v8195_v38, %v15508_v36  ;;  %v8197_v60 = vpop.f32.mrb[245].mxu0  ;;  %v10663_v24 = vpop.f32.mrb[53].mxu1 }
 0x7a0   : > { %v11117_v61 = vadd.f32 %v8197_v60, %v15514_v51  ;;  %v10664_v35 = vadd.f32 %v10663_v24, %v10662_v55  ;;  %v8199_v56 = vpop.f32.mrb[246].mxu0  ;;  %v10665_v2 = vpop.f32.mrb[54].mxu1 }
 0x7a1   : > { %9268 = vst [vmem:[%s15520_s24 + $0x270] sm:$0xff] %v11116_v4  ;;  %v11118_v28 = vadd.f32 %v8199_v56, %v15508_v36  ;;  %v8201_v43 = vpop.f32.mrb[247].mxu0  ;;  %v10666_v22 = vpop.f32.mrb[55].mxu1 }
 0x7a2   : > { %9269 = vst [vmem:[%s15520_s24 + $0x278] sm:$0xff] %v11117_v61  ;;  %v9168_v29 = vadd.f32 %v10664_v35, %v15493_v10  ;;  %v11119_v15 = vadd.f32 %v8201_v43, %v15514_v51  ;;  %v10667_v3 = vadd.f32 %v10666_v22, %v10665_v2 }
 0x7a3   : > { %9271 = vst [vmem:[%s15520_s24 + $0x288] sm:$0xff] %v11118_v28 }
 0x7a4   : > { %9270 = vst [vmem:[%s15520_s24 + $0x280] sm:$0xff] %v9168_v29  ;;  %9272 = vst [vmem:[%s15520_s24 + $0x290] sm:$0xff] %v11119_v15  ;;  %v9171_v48 = vadd.f32 %v10667_v3, %v15496_v14 }
 0x7a6   : > { %9273 = vst [vmem:[%s15520_s24 + $0x298] sm:$0xff] %v9171_v48  ;;  %v8205_v41 = vpop.f32.mrb[248].mxu0  ;;  %v10668_v63 = vpop.f32.mrb[56].mxu1 }
 0x7a7   : > { %v11120_v34 = vadd.f32 %v8205_v41, %v15508_v36  ;;  %v8207_v9 = vpop.f32.mrb[249].mxu0  ;;  %v10669_v10 = vpop.f32.mrb[57].mxu1 }
 0x7a8   : > { %v11121_v11 = vadd.f32 %v8207_v9, %v15514_v51  ;;  %v10670_v37 = vadd.f32 %v10669_v10, %v10668_v63  ;;  %v8209_v17 = vpop.f32.mrb[250].mxu0  ;;  %v10671_v1 = vpop.f32.mrb[58].mxu1 }
 0x7a9   : > { %9274 = vst [vmem:[%s15520_s24 + $0x2a0] sm:$0xff] %v11120_v34  ;;  %v11122_v44 = vadd.f32 %v8209_v17, %v15508_v36  ;;  %v8211_v14 = vpop.f32.mrb[251].mxu0  ;;  %v10672_v16 = vpop.f32.mrb[59].mxu1 }
 0x7aa   : > { %9275 = vst [vmem:[%s15520_s24 + $0x2a8] sm:$0xff] %v11121_v11  ;;  %v9176_v57 = vadd.f32 %v10670_v37, %v15499_v30  ;;  %v11123_v6 = vadd.f32 %v8211_v14, %v15514_v51  ;;  %v10673_v52 = vadd.f32 %v10672_v16, %v10671_v1 }
 0x7ab   : > { %9277 = vst [vmem:[%s15520_s24 + $0x2b8] sm:$0xff] %v11122_v44 }
 0x7ac   : > { %9276 = vst [vmem:[%s15520_s24 + $0x2b0] sm:$0xff] %v9176_v57  ;;  %9278 = vst [vmem:[%s15520_s24 + $0x2c0] sm:$0xff] %v11123_v6  ;;  %v9179_v25 = vadd.f32 %v10673_v52, %v15502_v59 }
 0x7ae   : > { %9279 = vst [vmem:[%s15520_s24 + $0x2c8] sm:$0xff] %v9179_v25  ;;  %v8215_v40 = vpop.f32.mrb[252].mxu0  ;;  %v10674_v42 = vpop.f32.mrb[60].mxu1 }
 0x7af   : > { %v11124_v7 = vadd.f32 %v8215_v40, %v15508_v36  ;;  %v8217_v62 = vpop.f32.mrb[253].mxu0  ;;  %v10675_v8 = vpop.f32.mrb[61].mxu1 }
 0x7b0   : > { %v11125_v30 = vadd.f32 %v8217_v62, %v15514_v51  ;;  %v10676_v21 = vadd.f32 %v10675_v8, %v10674_v42  ;;  %v8219_v58 = vpop.f32.mrb[254].mxu0  ;;  %v10677_v39 = vpop.f32.mrb[62].mxu1 }
 0x7b1   : > { %9280 = vst [vmem:[%s15520_s24 + $0x2d0] sm:$0xff] %v11124_v7  ;;  %v11126_v59 = vadd.f32 %v8219_v58, %v15508_v36  ;;  %v8221_v33 = vpop.f32.mrb[255].mxu0  ;;  %v10678_v20 = vpop.f32.mrb[63].mxu1 }
 0x7b2   : > { %9281 = vst [vmem:[%s15520_s24 + $0x2d8] sm:$0xff] %v11125_v30  ;;  %v9184_v50 = vadd.f32 %v10676_v21, %v15505_v53  ;;  %v11127_v31 = vadd.f32 %v8221_v33, %v15514_v51  ;;  %v10679_v23 = vadd.f32 %v10678_v20, %v10677_v39 }
 0x7b3   : > { %9283 = vst [vmem:[%s15520_s24 + $0x2e8] sm:$0xff] %v11126_v59 }
 0x7b4   : > { %9282 = vst [vmem:[%s15520_s24 + $0x2e0] sm:$0xff] %v9184_v50  ;;  %9284 = vst [vmem:[%s15520_s24 + $0x2f0] sm:$0xff] %v11127_v31  ;;  %v9187_v36 = vadd.f32 %v10679_v23, %v15511_v32 }
 0x7b6   : > { %9285 = vst [vmem:[%s15520_s24 + $0x2f8] sm:$0xff] %v9187_v36 }
 0x7b7   : > { %12905 = shalt.err (!%p12902_p13)
}
 0x7b8   : > { %s12906_s28 = scalar_lea.hbm %s15713_s27, 12288  ;;  %s12910_s7 = scalar_lea.hbm %s15768_s5, 24576 }
 0x7b9   : > { %p12907_p9 = scmp.ne.s32.totalorder %s15713_s27, %s12906_s28  ;;  %p12911_p6 = scmp.lt.u32.totalorder %s15713_s27, %s15768_s5 }
 0x7ba   : > { %p12912_p10 = scmp.lt.u32.totalorder %s12910_s7, %s12906_s28  ;;  %p12914_p4 = scmp.lt.u32.totalorder %s12906_s28, %s15713_s27 }
 0x7bb   : > { %p12908_p0 = pnand %p12907_p9, %p13180_p8 }
 0x7bc   : > { %p12913_p3 = por %p12912_p10, %p12911_p6 }
 0x7bd   : > { %p12909_p11 = pneg %p12908_p0 }
 0x7be   : > { %p12915_p5 = por %p12914_p4, %p12913_p3 }
 0x7c0   : > { %p12916_p7 = pnand %p12915_p5, %p12909_p11 }
 0x7c2   : > { %12919 = shalt.err (!%p12916_p7)
}
 0x7c3   : > { %s12981_s26 = smov 384   ;;  %s12982_s22 = smov 24  }
 0x7c4   : > { %11854 = dma.vmem_to_hbm [thread:$0]  (%p13180_p8), %s15715_s30, 12288, %s15713_s27, %s9287_s13, %s12981_s26, %s12981_s26, %s12982_s22  }
 0x7c5 PF: > { %s9316_s10 = sand.u32 1, %s12954_s18   ;;  %p16299_p12 = scmp.ne.s32.totalorder %s15956_s25, 0 }
 0x7c6   : > { %p16300_p2 = scmp.ge.s32.totalorder %s12966_s21, 2  ;;  %s9317_s17 = scalar_lea.sflag [#allocation4], %s9316_s10 }
 0x7c8   : > { %p11874_p1 = pnand %p16300_p2, %p16299_p12 }
 0x7ca   : > { %12949 = dma.done.wait (!%p11874_p1), %s9317_s17, 12288  }
 0x7cb   : > { %12951 = vsyncadd (!%p11874_p1), %s9317_s17, 4294955008  ;;  %p20_p13 = scmp.ge.s32.totalorder %s13167_s12, 4   ;;  %s16301_s18 = smov %s12958_s19 }
 0x7cc   : > { %s16302_s19 = smov %s12962_s20  ;;  %s16303_s20 = smov %s13176_s15 }
 0x7cd   : > { %s16304_s21 = smov %s13167_s12  ;;  %22 = sbr.rel (!%p20_p13) target bundleno = 7 (0x7), region = 101 }
 0x7d4   :  { %9322 = vsyncpa [#allocation3], 1 }
 0x7d5   :  { %9324 = vsyncpa [#allocation3 + $0x1], 1 }
 0x7d6   :  { %9325 = vsyncpa [#allocation6], 1 }
 0x7d7   :  { %9326 = vsyncpa [#allocation9], 1 }
 0x7d8   :  { %9327 = vsyncpa [#allocation4], 1 }
 0x7d9   :  { %9329 = vsyncpa [#allocation4 + $0x1], 1 }

</bundles_post_ra>
